<compile_context>
chip_gen: v6e
topology: v6e:2x2x1
jax: 0.10.0
libtpu: 0.0.40
codegen_flags: <defaults>
</compile_context>

<pallas_src>
import math

import jax
import jax.numpy as jnp
from jax.experimental import pallas as pl
from jax.experimental.pallas import tpu as pltpu

# ----------------------------- configuration -------------------------------
DTYPE     = jnp.float32
WDTYPE    = jnp.bfloat16   # storage dtype for MXU weights
BATCH     = 2
IMG       = 16             # input_size (small, consistent with the module)
IN_CH     = 4              # in_channels
PATCH     = 2              # config.patch_size
HIDDEN    = 32             # config.hidden_size
NUM_HEADS = 4              # config.attn_heads
HEAD_DIM  = HIDDEN // NUM_HEADS
N_LAYERS  = 2              # config.tr_blocks
TXT_SEQ   = 8              # caption token length
TXT_DIM   = IN_CH          # CaptionEmbedder(in_channels, hidden)
FREQ_DIM  = 256            # TimestepEmbedder frequency embedding size
OUT_CH    = IN_CH * 2      # return_sigma=True -> out_channels = in_channels * 2
GRID      = IMG // PATCH
NUM_TOK   = GRID * GRID
MLP_RATIO = 4
PATCH_DIM = IN_CH * PATCH * PATCH
OUT_DIM   = PATCH * PATCH * OUT_CH

# ----------------------------- fused Pallas kernel --------------------------

def _fused_dit_kernel(
    # per-batch activations / conditioning
    xp_ref, t6_ref, txt_ref, temb_ref,
    # constants
    pw_ref, pb_ref, pos_ref,
    # per-layer (stacked on leading axis, resident for the whole call)
    sst_ref, qkvw_ref, qkvb_ref, apw_ref, apb_ref,
    cqw_ref, cqb_ref, ckvw_ref, ckvb_ref, cpw_ref, cpb_ref,
    f1w_ref, f1b_ref, f2w_ref, f2b_ref,
    # final layer
    ftab_ref, fw_ref, fb_ref,
    # output
    o_ref):
    """One grid step = one batch element: patch-embed -> N DiT blocks -> final."""
    f32, bf16 = jnp.float32, jnp.bfloat16
    sm_scale = 1.0 / math.sqrt(HEAD_DIM)

    def mxu(a_bf16, w_bf16):
        # bf16 MXU operands, f32 accumulation.
        return jnp.dot(a_bf16, w_bf16, preferred_element_type=f32)

    def ln_mod(v, shift, scale):
        # LayerNorm (no affine, eps=1e-6) fused with adaLN (t2i) modulation.
        mu = jnp.mean(v, axis=-1, keepdims=True)
        var = jnp.mean(jnp.square(v - mu), axis=-1, keepdims=True)
        return (v - mu) * jax.lax.rsqrt(var + 1e-6) * (1.0 + scale) + shift

    def softmax_rows(s):
        s = s - jnp.max(s, axis=-1, keepdims=True)
        p = jnp.exp(s)
        denom = jnp.sum(p, axis=-1, keepdims=True)
        return p * pl.reciprocal(denom, approx=True)

    def mha(q, k, v, proj_w_bf16, proj_b_f32):
        # q: (Tq, H) f32 (already scaled); k, v: (Tk, H) f32.
        # Casts hoisted out of the head loop; single K=32 output projection.
        qh = q.astype(bf16)
        kh = k.astype(bf16)
        vh = v.astype(bf16)
        ctx = []
        for h in range(NUM_HEADS):
            sl = slice(h * HEAD_DIM, (h + 1) * HEAD_DIM)
            s = jax.lax.dot_general(qh[:, sl], kh[:, sl],
                                    (((1,), (1,)), ((), ())),
                                    preferred_element_type=f32)     # (Tq, Tk)
            p = softmax_rows(s)
            ctx.append(mxu(p.astype(bf16), vh[:, sl]))              # (Tq, D)
        ctx = jnp.concatenate(ctx, axis=-1)                         # (Tq, H)
        return mxu(ctx.astype(bf16), proj_w_bf16) + proj_b_f32      # (Tq, H)

    # ---- patch-embed conv (as matmul) + positional embedding --------------
    x = mxu(xp_ref[...].astype(bf16), pw_ref[...]) + pb_ref[...] + pos_ref[...]

    t6 = t6_ref[...]            # (6, H) f32
    txt = txt_ref[...]          # (S, H) f32
    txt_bf = txt.astype(bf16)

    # ---- DiT blocks: static unroll over the stacked layer axis ------------
    for l in range(N_LAYERS):
        mod = sst_ref[l] + t6                                   # (6, H)
        shift_msa, scale_msa, gate_msa = mod[0:1], mod[1:2], mod[2:3]
        shift_mlp, scale_mlp, gate_mlp = mod[3:4], mod[4:5], mod[5:6]

        # ------ self-attention ------
        xn = ln_mod(x, shift_msa, scale_msa)
        qkv = mxu(xn.astype(bf16), qkvw_ref[l]) + qkvb_ref[l]   # (T, 3H)
        q = qkv[:, 0:HIDDEN] * sm_scale
        k = qkv[:, HIDDEN:2 * HIDDEN]
        v = qkv[:, 2 * HIDDEN:3 * HIDDEN]
        attn = mha(q, k, v, apw_ref[l], apb_ref[l])
        x = x + gate_msa * attn

        # ------ cross-attention on text conditioning ------
        qx = (mxu(x.astype(bf16), cqw_ref[l]) + cqb_ref[l]) * sm_scale   # (T, H)
        kv = mxu(txt_bf, ckvw_ref[l]) + ckvb_ref[l]                      # (S, 2H)
        kt = kv[:, 0:HIDDEN]
        vt = kv[:, HIDDEN:2 * HIDDEN]
        x = x + mha(qx, kt, vt, cpw_ref[l], cpb_ref[l])

        # ------ MLP (GELU tanh) ------
        xn = ln_mod(x, shift_mlp, scale_mlp)
        h1 = mxu(xn.astype(bf16), f1w_ref[l]) + f1b_ref[l]
        h1 = jax.nn.gelu(h1, approximate=True)
        h2 = mxu(h1.astype(bf16), f2w_ref[l]) + f2b_ref[l]
        x = x + gate_mlp * h2

    # ---- FinalLayer: LN + modulate + linear to patch pixels ----------------
    fmod = ftab_ref[...] + temb_ref[...]                        # (2, H)
    y = ln_mod(x, fmod[0:1], fmod[1:2])
    o_ref[...] = (mxu(y.astype(bf16), fw_ref[...]) + fb_ref[...]).astype(o_ref.dtype)


def fused_transformer(params, x_patches, t6, text_cond, t_emb):
    """Whole transformer stack + final layer in a single pallas_call, grid=(B,)."""
    B, T, PD = x_patches.shape
    H, S, L = HIDDEN, TXT_SEQ, N_LAYERS

    def const(shape):
        return pl.BlockSpec(shape, lambda b: (0,) * len(shape))

    def per_b(shape):
        return pl.BlockSpec((None,) + shape, lambda b: (b,) + (0,) * len(shape))

    in_specs = [
        per_b((T, PD)),                    # x_patches
        per_b((6, H)),                     # t6 (time_block output)
        per_b((S, H)),                     # text_cond
        per_b((1, H)),                     # t_emb (final-layer modulation)
        const((PD, H)),                    # patch_w  (bf16)
        const((1, H)),                     # patch_b
        const((T, H)),                     # pos_embed
        const((L, 6, H)),                  # scale_shift_table
        const((L, H, 3 * H)),              # attn qkv_w  (bf16)
        const((L, 1, 3 * H)),              # attn qkv_b
        const((L, H, H)),                  # attn proj_w (bf16)
        const((L, 1, H)),                  # attn proj_b
        const((L, H, H)),                  # cross q_w   (bf16)
        const((L, 1, H)),                  # cross q_b
        const((L, H, 2 * H)),              # cross kv_w  (bf16)
        const((L, 1, 2 * H)),              # cross kv_b
        const((L, H, H)),                  # cross proj_w (bf16)
        const((L, 1, H)),                  # cross proj_b
        const((L, H, MLP_RATIO * H)),      # mlp fc1_w   (bf16)
        const((L, 1, MLP_RATIO * H)),      # mlp fc1_b
        const((L, MLP_RATIO * H, H)),      # mlp fc2_w   (bf16)
        const((L, 1, H)),                  # mlp fc2_b
        const((2, H)),                     # final scale_shift_table
        const((H, OUT_DIM)),               # final_w     (bf16)
        const((1, OUT_DIM)),               # final_b
    ]
    out_spec = pl.BlockSpec((None, T, OUT_DIM), lambda b: (b, 0, 0))

    return pl.pallas_call(
        _fused_dit_kernel,
        out_shape=jax.ShapeDtypeStruct((B, T, OUT_DIM), DTYPE),
        grid=(B,),
        in_specs=in_specs,
        out_specs=out_spec,
        compiler_params=pltpu.CompilerParams(
            dimension_semantics=("parallel",),        # v7x: one batch per TC
            vmem_limit_bytes=32 * 1024 * 1024),
    )(x_patches, t6, text_cond, t_emb,
      params['patch_w'], params['patch_b'], params['pos_embed'],
      params['sst'], params['qkv_w'], params['qkv_b'],
      params['aproj_w'], params['aproj_b'],
      params['cq_w'], params['cq_b'], params['ckv_w'], params['ckv_b'],
      params['cproj_w'], params['cproj_b'],
      params['fc1_w'], params['fc1_b'], params['fc2_w'], params['fc2_b'],
      params['final_table'], params['final_w'], params['final_b'])

# ------------------------------ JAX glue ------------------------------------

def patchify(x_img, p):
    # (B, C, H, W) NCHW -> (B, T, C*p*p), patch flatten order (C, ph, pw)
    B, C, H, W = x_img.shape
    hp, wp = H // p, W // p
    x = x_img.reshape(B, C, hp, p, wp, p)
    x = x.transpose(0, 2, 4, 1, 3, 5)          # (B, hp, wp, C, p, p)
    return x.reshape(B, hp * wp, C * p * p)


def unpatchify(x, p, out_ch):
    # x: (B, T, p*p*out_ch) -> (B, out_ch, H, W)   (matches torch einsum nhwpqc->nchpwq)
    B, T, _ = x.shape
    h = w = int(math.isqrt(T))
    x = x.reshape(B, h, w, p, p, out_ch)
    x = jnp.einsum('nhwpqc->nchpwq', x)
    return x.reshape(B, out_ch, h * p, w * p)


def timestep_embedding(t, dim, max_period=10000.0):
    half = dim // 2
    freqs = jnp.exp(-jnp.log(max_period) * jnp.arange(half, dtype=jnp.float32) / half)
    args = t.astype(jnp.float32)[:, None] * freqs[None]
    return jnp.concatenate([jnp.cos(args), jnp.sin(args)], axis=-1).astype(DTYPE)


def get_2d_sincos_pos_embed(embed_dim, grid_size, base_size):
    def one_d(dim, pos):
        omega = jnp.arange(dim // 2, dtype=jnp.float32) / (dim / 2.0)
        omega = 1.0 / (10000.0 ** omega)
        out = pos.reshape(-1)[:, None] * omega[None]
        return jnp.concatenate([jnp.sin(out), jnp.cos(out)], axis=1)

    coords = jnp.arange(grid_size, dtype=jnp.float32) / (grid_size / base_size)
    grid_w, grid_h = jnp.meshgrid(coords, coords)          # (H', W')
    emb_h = one_d(embed_dim // 2, grid_w)
    emb_w = one_d(embed_dim // 2, grid_h)
    return jnp.concatenate([emb_h, emb_w], axis=1).astype(DTYPE)  # (T, hidden)

# -------------------------- parameter construction --------------------------

def init_params(key):
    keys = iter(jax.random.split(key, 64))

    def nrm(shape, std=0.02, dtype=DTYPE):
        return (std * jax.random.normal(next(keys), shape)).astype(dtype)

    def wnrm(shape, std=0.02):
        # MXU weights stored in bf16 once (halves weight DMA traffic, no
        # per-step casts inside the kernel).
        return nrm(shape, std, dtype=WDTYPE)

    def zeros(shape, dtype=DTYPE):
        return jnp.zeros(shape, dtype)

    L, H = N_LAYERS, HIDDEN
    p = {
        # PatchEmbed: Conv2d(IN_CH, HIDDEN, k=p, s=p) stored as (C*p*p, HIDDEN)
        'patch_w': wnrm((PATCH_DIM, H)),
        'patch_b': zeros((1, H)),
        'pos_embed': get_2d_sincos_pos_embed(H, GRID, base_size=GRID),   # (T, H)
        # TimestepEmbedder MLP: Linear(256,H) -> SiLU -> Linear(H,H)   (plain JAX)
        'time_fc1_w': nrm((FREQ_DIM, H)), 'time_fc1_b': zeros((H,)),
        'time_fc2_w': nrm((H, H)),        'time_fc2_b': zeros((H,)),
        # time_block: SiLU -> Linear(H, 6H)                             (plain JAX)
        'time_block_w': nrm((H, 6 * H)),  'time_block_b': zeros((6 * H,)),
        # CaptionEmbedder Mlp: fc1(TXT_DIM,H) -> GELU(tanh) -> fc2(H,H) (plain JAX)
        'cap_fc1_w': nrm((TXT_DIM, H)), 'cap_fc1_b': zeros((H,)),
        'cap_fc2_w': nrm((H, H)),       'cap_fc2_b': zeros((H,)),
        # FinalLayer (reference zero-inits the linear; small normals keep the
        # synthetic output nontrivial)
        'final_table': nrm((2, H), std=1.0 / math.sqrt(H)),
        'final_w': wnrm((H, OUT_DIM)),
        'final_b': zeros((1, OUT_DIM)),
        # --- per-layer weights, stacked on a leading layer axis ---
        'sst':     nrm((L, 6, H), std=1.0 / math.sqrt(H)),
        'qkv_w':   wnrm((L, H, 3 * H)),        'qkv_b':   zeros((L, 1, 3 * H)),
        'aproj_w': wnrm((L, H, H)),            'aproj_b': zeros((L, 1, H)),
        'cq_w':    wnrm((L, H, H)),            'cq_b':    zeros((L, 1, H)),
        'ckv_w':   wnrm((L, H, 2 * H)),        'ckv_b':   zeros((L, 1, 2 * H)),
        'cproj_w': wnrm((L, H, H)),            'cproj_b': zeros((L, 1, H)),
        'fc1_w':   wnrm((L, H, MLP_RATIO * H)), 'fc1_b':  zeros((L, 1, MLP_RATIO * H)),
        'fc2_w':   wnrm((L, MLP_RATIO * H, H)), 'fc2_b':  zeros((L, 1, H)),
    }
    return p

# ------------------------------ model forward --------------------------------

def pixart_dit_forward(params, latent_image, encoded_text, timestep):
    B = latent_image.shape[0]

    # patch extraction (layout op, plain JAX); the conv-as-matmul + pos-embed
    # add happens inside the fused kernel.
    x_patches = patchify(latent_image.astype(DTYPE), PATCH)          # (B, T, C*p*p)

    # ---- tiny conditioning MLPs: B=2-row GEMVs left to XLA (a pallas_call
    # launch would dominate the work; XLA fuses the SiLU/GELU for free). ----
    t_freq = timestep_embedding(timestep.astype(DTYPE), FREQ_DIM)    # (B, 256)
    h = jnp.dot(t_freq, params['time_fc1_w']) + params['time_fc1_b']
    h = h * jax.nn.sigmoid(h)                                        # SiLU
    t_emb = jnp.dot(h, params['time_fc2_w']) + params['time_fc2_b']  # (B, H)
    ts = t_emb * jax.nn.sigmoid(t_emb)                               # time_block SiLU
    t6 = (jnp.dot(ts, params['time_block_w'])
          + params['time_block_b']).reshape(B, 6, HIDDEN)            # (B, 6, H)

    y = jnp.dot(encoded_text.astype(DTYPE), params['cap_fc1_w']) + params['cap_fc1_b']
    y = jax.nn.gelu(y, approximate=True)
    text_cond = jnp.dot(y, params['cap_fc2_w']) + params['cap_fc2_b']  # (B, S, H)

    # ---- fused transformer stack + FinalLayer (single pallas_call) ----
    # NOTE: reference code builds FinalLayer with the constructor `out_channels`
    # arg but unpatchifies with in_channels*2; we use in_channels*2 consistently.
    # FinalLayer modulation consumes the raw timestep-embedder output t_emb
    # (matches PixArt: blocks use t_block(t), final layer uses t).
    out_tok = fused_transformer(params, x_patches, t6, text_cond,
                                t_emb.reshape(B, 1, HIDDEN))         # (B, T, p*p*out_ch)

    return unpatchify(out_tok, PATCH, OUT_CH)

# ---------------------------------- main -------------------------------------

if __name__ == "__main__":
    key = jax.random.PRNGKey(0)
    k_params, k_img, k_txt = jax.random.split(key, 3)

    params = init_params(k_params)
    latent_image = jax.random.normal(k_img, (BATCH, IN_CH, IMG, IMG), dtype=DTYPE)
    encoded_text = jax.random.normal(k_txt, (BATCH, TXT_SEQ, TXT_DIM), dtype=DTYPE)
    timestep = jnp.array([17.0, 503.0], dtype=DTYPE)

    fwd = jax.jit(pixart_dit_forward)
    out = fwd(params, latent_image, encoded_text, timestep)
    out = jax.block_until_ready(out)

    assert out.shape == (BATCH, OUT_CH, IMG, IMG), out.shape
    assert bool(jnp.all(jnp.isfinite(out)))
    print("KERNEL_OK")
</pallas_src>

<mosaic_0001>
module attributes {stable_mosaic.version = 11 : i64} {
  func.func @_fused_dit_kernel(%arg0: i32, %arg1: memref<1x64x16xf32, #tpu.memory_space<vmem>>, %arg2: memref<1x6x32xf32, #tpu.memory_space<vmem>>, %arg3: memref<1x8x32xf32, #tpu.memory_space<vmem>>, %arg4: memref<1x1x32xf32, #tpu.memory_space<vmem>>, %arg5: memref<16x32xbf16, #tpu.memory_space<vmem>>, %arg6: memref<1x32xf32, #tpu.memory_space<vmem>>, %arg7: memref<64x32xf32, #tpu.memory_space<vmem>>, %arg8: memref<2x6x32xf32, #tpu.memory_space<vmem>>, %arg9: memref<2x32x96xbf16, #tpu.memory_space<vmem>>, %arg10: memref<2x1x96xf32, #tpu.memory_space<vmem>>, %arg11: memref<2x32x32xbf16, #tpu.memory_space<vmem>>, %arg12: memref<2x1x32xf32, #tpu.memory_space<vmem>>, %arg13: memref<2x32x32xbf16, #tpu.memory_space<vmem>>, %arg14: memref<2x1x32xf32, #tpu.memory_space<vmem>>, %arg15: memref<2x32x64xbf16, #tpu.memory_space<vmem>>, %arg16: memref<2x1x64xf32, #tpu.memory_space<vmem>>, %arg17: memref<2x32x32xbf16, #tpu.memory_space<vmem>>, %arg18: memref<2x1x32xf32, #tpu.memory_space<vmem>>, %arg19: memref<2x32x128xbf16, #tpu.memory_space<vmem>>, %arg20: memref<2x1x128xf32, #tpu.memory_space<vmem>>, %arg21: memref<2x128x32xbf16, #tpu.memory_space<vmem>>, %arg22: memref<2x1x32xf32, #tpu.memory_space<vmem>>, %arg23: memref<2x32xf32, #tpu.memory_space<vmem>>, %arg24: memref<32x32xbf16, #tpu.memory_space<vmem>>, %arg25: memref<1x32xf32, #tpu.memory_space<vmem>>, %arg26: memref<1x64x32xf32, #tpu.memory_space<vmem>>) attributes {dimension_semantics = [#tpu.dimension_semantics<parallel>], iteration_bounds = array<i64: 2>, scalar_prefetch = 0 : i64, scratch_operands = 0 : i64, tpu.core_type = #tpu.core_type<tc>, window_params = [{transform_indices = @transform_0, window_bounds = array<i64: 1, 64, 16>}, {transform_indices = @transform_1, window_bounds = array<i64: 1, 6, 32>}, {transform_indices = @transform_2, window_bounds = array<i64: 1, 8, 32>}, {transform_indices = @transform_3, window_bounds = array<i64: 1, 1, 32>}, {pipeline_mode = #tpu.pipeline_mode<synchronous>, transform_indices = @transform_4, window_bounds = array<i64: 16, 32>}, {pipeline_mode = #tpu.pipeline_mode<synchronous>, transform_indices = @transform_5, window_bounds = array<i64: 1, 32>}, {pipeline_mode = #tpu.pipeline_mode<synchronous>, transform_indices = @transform_6, window_bounds = array<i64: 64, 32>}, {pipeline_mode = #tpu.pipeline_mode<synchronous>, transform_indices = @transform_7, window_bounds = array<i64: 2, 6, 32>}, {pipeline_mode = #tpu.pipeline_mode<synchronous>, transform_indices = @transform_8, window_bounds = array<i64: 2, 32, 96>}, {pipeline_mode = #tpu.pipeline_mode<synchronous>, transform_indices = @transform_9, window_bounds = array<i64: 2, 1, 96>}, {pipeline_mode = #tpu.pipeline_mode<synchronous>, transform_indices = @transform_10, window_bounds = array<i64: 2, 32, 32>}, {pipeline_mode = #tpu.pipeline_mode<synchronous>, transform_indices = @transform_11, window_bounds = array<i64: 2, 1, 32>}, {pipeline_mode = #tpu.pipeline_mode<synchronous>, transform_indices = @transform_12, window_bounds = array<i64: 2, 32, 32>}, {pipeline_mode = #tpu.pipeline_mode<synchronous>, transform_indices = @transform_13, window_bounds = array<i64: 2, 1, 32>}, {pipeline_mode = #tpu.pipeline_mode<synchronous>, transform_indices = @transform_14, window_bounds = array<i64: 2, 32, 64>}, {pipeline_mode = #tpu.pipeline_mode<synchronous>, transform_indices = @transform_15, window_bounds = array<i64: 2, 1, 64>}, {pipeline_mode = #tpu.pipeline_mode<synchronous>, transform_indices = @transform_16, window_bounds = array<i64: 2, 32, 32>}, {pipeline_mode = #tpu.pipeline_mode<synchronous>, transform_indices = @transform_17, window_bounds = array<i64: 2, 1, 32>}, {pipeline_mode = #tpu.pipeline_mode<synchronous>, transform_indices = @transform_18, window_bounds = array<i64: 2, 32, 128>}, {pipeline_mode = #tpu.pipeline_mode<synchronous>, transform_indices = @transform_19, window_bounds = array<i64: 2, 1, 128>}, {pipeline_mode = #tpu.pipeline_mode<synchronous>, transform_indices = @transform_20, window_bounds = array<i64: 2, 128, 32>}, {pipeline_mode = #tpu.pipeline_mode<synchronous>, transform_indices = @transform_21, window_bounds = array<i64: 2, 1, 32>}, {pipeline_mode = #tpu.pipeline_mode<synchronous>, transform_indices = @transform_22, window_bounds = array<i64: 2, 32>}, {pipeline_mode = #tpu.pipeline_mode<synchronous>, transform_indices = @transform_23, window_bounds = array<i64: 32, 32>}, {pipeline_mode = #tpu.pipeline_mode<synchronous>, transform_indices = @transform_24, window_bounds = array<i64: 1, 32>}, {transform_indices = @transform_25, window_bounds = array<i64: 1, 64, 32>}]} {
    %c0 = arith.constant 0 : index
    %c0_0 = arith.constant 0 : index
    %c0_1 = arith.constant 0 : index
    %0 = vector.load %arg1[%c0, %c0_0, %c0_1] : memref<1x64x16xf32, #tpu.memory_space<vmem>>, vector<1x64x16xf32>
    %1 = vector.shape_cast %0 : vector<1x64x16xf32> to vector<64x16xf32>
    %2 = arith.truncf %1 : vector<64x16xf32> to vector<64x16xbf16>
    %c0_2 = arith.constant 0 : index
    %c0_3 = arith.constant 0 : index
    %3 = vector.load %arg5[%c0_2, %c0_3] : memref<16x32xbf16, #tpu.memory_space<vmem>>, vector<16x32xbf16>
    %cst = arith.constant dense<0.000000e+00> : vector<64x32xf32>
    %4 = tpu.matmul %2, %3, %cst {dimension_numbers = #tpu.dot_dimension_numbers<[1], [0], [0], [1], [0, 0, 1, 1], [], []>} : vector<64x16xbf16>, vector<16x32xbf16>, vector<64x32xf32> -> vector<64x32xf32>
    %c0_4 = arith.constant 0 : index
    %c0_5 = arith.constant 0 : index
    %5 = vector.load %arg6[%c0_4, %c0_5] : memref<1x32xf32, #tpu.memory_space<vmem>>, vector<1x32xf32>
    %6 = vector.broadcast %5 : vector<1x32xf32> to vector<64x32xf32>
    %7 = arith.addf %4, %6 : vector<64x32xf32>
    %c0_6 = arith.constant 0 : index
    %c0_7 = arith.constant 0 : index
    %8 = vector.load %arg7[%c0_6, %c0_7] : memref<64x32xf32, #tpu.memory_space<vmem>>, vector<64x32xf32>
    %9 = arith.addf %7, %8 : vector<64x32xf32>
    %c0_8 = arith.constant 0 : index
    %c0_9 = arith.constant 0 : index
    %c0_10 = arith.constant 0 : index
    %10 = vector.load %arg2[%c0_8, %c0_9, %c0_10] : memref<1x6x32xf32, #tpu.memory_space<vmem>>, vector<1x6x32xf32>
    %11 = vector.shape_cast %10 : vector<1x6x32xf32> to vector<6x32xf32>
    %c0_11 = arith.constant 0 : index
    %c0_12 = arith.constant 0 : index
    %c0_13 = arith.constant 0 : index
    %12 = vector.load %arg3[%c0_11, %c0_12, %c0_13] : memref<1x8x32xf32, #tpu.memory_space<vmem>>, vector<1x8x32xf32>
    %13 = vector.shape_cast %12 : vector<1x8x32xf32> to vector<8x32xf32>
    %14 = arith.truncf %13 : vector<8x32xf32> to vector<8x32xbf16>
    %c0_14 = arith.constant 0 : index
    %c0_15 = arith.constant 0 : index
    %c0_16 = arith.constant 0 : index
    %15 = vector.load %arg8[%c0_14, %c0_15, %c0_16] : memref<2x6x32xf32, #tpu.memory_space<vmem>>, vector<1x6x32xf32>
    %16 = vector.shape_cast %15 : vector<1x6x32xf32> to vector<6x32xf32>
    %17 = arith.addf %16, %11 : vector<6x32xf32>
    %18 = vector.extract_strided_slice %17 {offsets = [0, 0], sizes = [1, 32], strides = [1, 1]} : vector<6x32xf32> to vector<1x32xf32>
    %19 = vector.extract_strided_slice %17 {offsets = [1, 0], sizes = [1, 32], strides = [1, 1]} : vector<6x32xf32> to vector<1x32xf32>
    %20 = vector.extract_strided_slice %17 {offsets = [2, 0], sizes = [1, 32], strides = [1, 1]} : vector<6x32xf32> to vector<1x32xf32>
    %21 = vector.extract_strided_slice %17 {offsets = [3, 0], sizes = [1, 32], strides = [1, 1]} : vector<6x32xf32> to vector<1x32xf32>
    %22 = vector.extract_strided_slice %17 {offsets = [4, 0], sizes = [1, 32], strides = [1, 1]} : vector<6x32xf32> to vector<1x32xf32>
    %23 = vector.extract_strided_slice %17 {offsets = [5, 0], sizes = [1, 32], strides = [1, 1]} : vector<6x32xf32> to vector<1x32xf32>
    %cst_17 = arith.constant dense<0.000000e+00> : vector<64xf32>
    %24 = vector.multi_reduction <add>, %9, %cst_17 [1] : vector<64x32xf32> to vector<64xf32>
    %25 = vector.shape_cast %24 : vector<64xf32> to vector<64x1xf32>
    %cst_18 = arith.constant 3.200000e+01 : f32
    %26 = vector.broadcast %cst_18 : f32 to vector<64x1xf32>
    %27 = arith.divf %25, %26 : vector<64x1xf32>
    %28 = vector.broadcast %27 : vector<64x1xf32> to vector<64x32xf32>
    %29 = arith.subf %9, %28 : vector<64x32xf32>
    %30 = arith.mulf %29, %29 : vector<64x32xf32>
    %cst_19 = arith.constant dense<0.000000e+00> : vector<64xf32>
    %31 = vector.multi_reduction <add>, %30, %cst_19 [1] : vector<64x32xf32> to vector<64xf32>
    %32 = vector.shape_cast %31 : vector<64xf32> to vector<64x1xf32>
    %cst_20 = arith.constant 3.200000e+01 : f32
    %33 = vector.broadcast %cst_20 : f32 to vector<64x1xf32>
    %34 = arith.divf %32, %33 : vector<64x1xf32>
    %35 = vector.broadcast %27 : vector<64x1xf32> to vector<64x32xf32>
    %36 = arith.subf %9, %35 : vector<64x32xf32>
    %cst_21 = arith.constant 9.99999997E-7 : f32
    %37 = vector.broadcast %cst_21 : f32 to vector<64x1xf32>
    %38 = arith.addf %34, %37 : vector<64x1xf32>
    %39 = math.rsqrt %38 : vector<64x1xf32>
    %40 = vector.broadcast %39 : vector<64x1xf32> to vector<64x32xf32>
    %41 = arith.mulf %36, %40 : vector<64x32xf32>
    %cst_22 = arith.constant 1.000000e+00 : f32
    %42 = vector.broadcast %cst_22 : f32 to vector<1x32xf32>
    %43 = arith.addf %42, %19 : vector<1x32xf32>
    %44 = vector.broadcast %43 : vector<1x32xf32> to vector<64x32xf32>
    %45 = arith.mulf %41, %44 : vector<64x32xf32>
    %46 = vector.broadcast %18 : vector<1x32xf32> to vector<64x32xf32>
    %47 = arith.addf %45, %46 : vector<64x32xf32>
    %48 = arith.truncf %47 : vector<64x32xf32> to vector<64x32xbf16>
    %c0_23 = arith.constant 0 : index
    %c0_24 = arith.constant 0 : index
    %c0_25 = arith.constant 0 : index
    %49 = vector.load %arg9[%c0_23, %c0_24, %c0_25] : memref<2x32x96xbf16, #tpu.memory_space<vmem>>, vector<1x32x96xbf16>
    %50 = vector.shape_cast %49 : vector<1x32x96xbf16> to vector<32x96xbf16>
    %cst_26 = arith.constant dense<0.000000e+00> : vector<64x96xf32>
    %51 = tpu.matmul %48, %50, %cst_26 {dimension_numbers = #tpu.dot_dimension_numbers<[1], [0], [0], [1], [0, 0, 1, 1], [], []>} : vector<64x32xbf16>, vector<32x96xbf16>, vector<64x96xf32> -> vector<64x96xf32>
    %c0_27 = arith.constant 0 : index
    %c0_28 = arith.constant 0 : index
    %c0_29 = arith.constant 0 : index
    %52 = vector.load %arg10[%c0_27, %c0_28, %c0_29] : memref<2x1x96xf32, #tpu.memory_space<vmem>>, vector<1x1x96xf32>
    %53 = vector.shape_cast %52 : vector<1x1x96xf32> to vector<1x96xf32>
    %54 = vector.broadcast %53 : vector<1x96xf32> to vector<64x96xf32>
    %55 = arith.addf %51, %54 : vector<64x96xf32>
    %56 = vector.extract_strided_slice %55 {offsets = [0, 0], sizes = [64, 32], strides = [1, 1]} : vector<64x96xf32> to vector<64x32xf32>
    %cst_30 = arith.constant 0.353553385 : f32
    %57 = vector.broadcast %cst_30 : f32 to vector<64x32xf32>
    %58 = arith.mulf %56, %57 : vector<64x32xf32>
    %59 = vector.extract_strided_slice %55 {offsets = [0, 32], sizes = [64, 32], strides = [1, 1]} : vector<64x96xf32> to vector<64x32xf32>
    %60 = vector.extract_strided_slice %55 {offsets = [0, 64], sizes = [64, 32], strides = [1, 1]} : vector<64x96xf32> to vector<64x32xf32>
    %c0_31 = arith.constant 0 : index
    %c0_32 = arith.constant 0 : index
    %c0_33 = arith.constant 0 : index
    %61 = vector.load %arg11[%c0_31, %c0_32, %c0_33] : memref<2x32x32xbf16, #tpu.memory_space<vmem>>, vector<1x32x32xbf16>
    %62 = vector.shape_cast %61 : vector<1x32x32xbf16> to vector<32x32xbf16>
    %c0_34 = arith.constant 0 : index
    %c0_35 = arith.constant 0 : index
    %c0_36 = arith.constant 0 : index
    %63 = vector.load %arg12[%c0_34, %c0_35, %c0_36] : memref<2x1x32xf32, #tpu.memory_space<vmem>>, vector<1x1x32xf32>
    %64 = vector.shape_cast %63 : vector<1x1x32xf32> to vector<1x32xf32>
    %65 = arith.truncf %58 : vector<64x32xf32> to vector<64x32xbf16>
    %66 = arith.truncf %59 : vector<64x32xf32> to vector<64x32xbf16>
    %67 = arith.truncf %60 : vector<64x32xf32> to vector<64x32xbf16>
    %68 = vector.extract_strided_slice %65 {offsets = [0, 0], sizes = [64, 8], strides = [1, 1]} : vector<64x32xbf16> to vector<64x8xbf16>
    %69 = vector.extract_strided_slice %66 {offsets = [0, 0], sizes = [64, 8], strides = [1, 1]} : vector<64x32xbf16> to vector<64x8xbf16>
    %cst_37 = arith.constant dense<0.000000e+00> : vector<64x64xf32>
    %70 = tpu.matmul %68, %69, %cst_37 {dimension_numbers = #tpu.dot_dimension_numbers<[1], [1], [0], [0], [0, 0, 1, 0], [], []>} : vector<64x8xbf16>, vector<64x8xbf16>, vector<64x64xf32> -> vector<64x64xf32>
    %cst_38 = arith.constant dense<0xFF800000> : vector<64xf32>
    %71 = vector.multi_reduction <maximumf>, %70, %cst_38 [1] : vector<64x64xf32> to vector<64xf32>
    %72 = vector.shape_cast %71 : vector<64xf32> to vector<64x1xf32>
    %73 = vector.broadcast %72 : vector<64x1xf32> to vector<64x64xf32>
    %74 = arith.subf %70, %73 : vector<64x64xf32>
    %75 = math.exp %74 : vector<64x64xf32>
    %cst_39 = arith.constant dense<0.000000e+00> : vector<64xf32>
    %76 = vector.multi_reduction <add>, %75, %cst_39 [1] : vector<64x64xf32> to vector<64xf32>
    %77 = vector.shape_cast %76 : vector<64xf32> to vector<64x1xf32>
    %78 = tpu.reciprocal %77 {approx = true} : vector<64x1xf32> -> vector<64x1xf32>
    %79 = vector.broadcast %78 : vector<64x1xf32> to vector<64x64xf32>
    %80 = arith.mulf %75, %79 : vector<64x64xf32>
    %81 = arith.truncf %80 : vector<64x64xf32> to vector<64x64xbf16>
    %82 = vector.extract_strided_slice %67 {offsets = [0, 0], sizes = [64, 8], strides = [1, 1]} : vector<64x32xbf16> to vector<64x8xbf16>
    %cst_40 = arith.constant dense<0.000000e+00> : vector<64x8xf32>
    %83 = tpu.matmul %81, %82, %cst_40 {dimension_numbers = #tpu.dot_dimension_numbers<[1], [0], [0], [1], [0, 0, 1, 1], [], []>} : vector<64x64xbf16>, vector<64x8xbf16>, vector<64x8xf32> -> vector<64x8xf32>
    %84 = vector.extract_strided_slice %65 {offsets = [0, 8], sizes = [64, 8], strides = [1, 1]} : vector<64x32xbf16> to vector<64x8xbf16>
    %85 = vector.extract_strided_slice %66 {offsets = [0, 8], sizes = [64, 8], strides = [1, 1]} : vector<64x32xbf16> to vector<64x8xbf16>
    %cst_41 = arith.constant dense<0.000000e+00> : vector<64x64xf32>
    %86 = tpu.matmul %84, %85, %cst_41 {dimension_numbers = #tpu.dot_dimension_numbers<[1], [1], [0], [0], [0, 0, 1, 0], [], []>} : vector<64x8xbf16>, vector<64x8xbf16>, vector<64x64xf32> -> vector<64x64xf32>
    %cst_42 = arith.constant dense<0xFF800000> : vector<64xf32>
    %87 = vector.multi_reduction <maximumf>, %86, %cst_42 [1] : vector<64x64xf32> to vector<64xf32>
    %88 = vector.shape_cast %87 : vector<64xf32> to vector<64x1xf32>
    %89 = vector.broadcast %88 : vector<64x1xf32> to vector<64x64xf32>
    %90 = arith.subf %86, %89 : vector<64x64xf32>
    %91 = math.exp %90 : vector<64x64xf32>
    %cst_43 = arith.constant dense<0.000000e+00> : vector<64xf32>
    %92 = vector.multi_reduction <add>, %91, %cst_43 [1] : vector<64x64xf32> to vector<64xf32>
    %93 = vector.shape_cast %92 : vector<64xf32> to vector<64x1xf32>
    %94 = tpu.reciprocal %93 {approx = true} : vector<64x1xf32> -> vector<64x1xf32>
    %95 = vector.broadcast %94 : vector<64x1xf32> to vector<64x64xf32>
    %96 = arith.mulf %91, %95 : vector<64x64xf32>
    %97 = arith.truncf %96 : vector<64x64xf32> to vector<64x64xbf16>
    %98 = vector.extract_strided_slice %67 {offsets = [0, 8], sizes = [64, 8], strides = [1, 1]} : vector<64x32xbf16> to vector<64x8xbf16>
    %cst_44 = arith.constant dense<0.000000e+00> : vector<64x8xf32>
    %99 = tpu.matmul %97, %98, %cst_44 {dimension_numbers = #tpu.dot_dimension_numbers<[1], [0], [0], [1], [0, 0, 1, 1], [], []>} : vector<64x64xbf16>, vector<64x8xbf16>, vector<64x8xf32> -> vector<64x8xf32>
    %100 = vector.extract_strided_slice %65 {offsets = [0, 16], sizes = [64, 8], strides = [1, 1]} : vector<64x32xbf16> to vector<64x8xbf16>
    %101 = vector.extract_strided_slice %66 {offsets = [0, 16], sizes = [64, 8], strides = [1, 1]} : vector<64x32xbf16> to vector<64x8xbf16>
    %cst_45 = arith.constant dense<0.000000e+00> : vector<64x64xf32>
    %102 = tpu.matmul %100, %101, %cst_45 {dimension_numbers = #tpu.dot_dimension_numbers<[1], [1], [0], [0], [0, 0, 1, 0], [], []>} : vector<64x8xbf16>, vector<64x8xbf16>, vector<64x64xf32> -> vector<64x64xf32>
    %cst_46 = arith.constant dense<0xFF800000> : vector<64xf32>
    %103 = vector.multi_reduction <maximumf>, %102, %cst_46 [1] : vector<64x64xf32> to vector<64xf32>
    %104 = vector.shape_cast %103 : vector<64xf32> to vector<64x1xf32>
    %105 = vector.broadcast %104 : vector<64x1xf32> to vector<64x64xf32>
    %106 = arith.subf %102, %105 : vector<64x64xf32>
    %107 = math.exp %106 : vector<64x64xf32>
    %cst_47 = arith.constant dense<0.000000e+00> : vector<64xf32>
    %108 = vector.multi_reduction <add>, %107, %cst_47 [1] : vector<64x64xf32> to vector<64xf32>
    %109 = vector.shape_cast %108 : vector<64xf32> to vector<64x1xf32>
    %110 = tpu.reciprocal %109 {approx = true} : vector<64x1xf32> -> vector<64x1xf32>
    %111 = vector.broadcast %110 : vector<64x1xf32> to vector<64x64xf32>
    %112 = arith.mulf %107, %111 : vector<64x64xf32>
    %113 = arith.truncf %112 : vector<64x64xf32> to vector<64x64xbf16>
    %114 = vector.extract_strided_slice %67 {offsets = [0, 16], sizes = [64, 8], strides = [1, 1]} : vector<64x32xbf16> to vector<64x8xbf16>
    %cst_48 = arith.constant dense<0.000000e+00> : vector<64x8xf32>
    %115 = tpu.matmul %113, %114, %cst_48 {dimension_numbers = #tpu.dot_dimension_numbers<[1], [0], [0], [1], [0, 0, 1, 1], [], []>} : vector<64x64xbf16>, vector<64x8xbf16>, vector<64x8xf32> -> vector<64x8xf32>
    %116 = vector.extract_strided_slice %65 {offsets = [0, 24], sizes = [64, 8], strides = [1, 1]} : vector<64x32xbf16> to vector<64x8xbf16>
    %117 = vector.extract_strided_slice %66 {offsets = [0, 24], sizes = [64, 8], strides = [1, 1]} : vector<64x32xbf16> to vector<64x8xbf16>
    %cst_49 = arith.constant dense<0.000000e+00> : vector<64x64xf32>
    %118 = tpu.matmul %116, %117, %cst_49 {dimension_numbers = #tpu.dot_dimension_numbers<[1], [1], [0], [0], [0, 0, 1, 0], [], []>} : vector<64x8xbf16>, vector<64x8xbf16>, vector<64x64xf32> -> vector<64x64xf32>
    %cst_50 = arith.constant dense<0xFF800000> : vector<64xf32>
    %119 = vector.multi_reduction <maximumf>, %118, %cst_50 [1] : vector<64x64xf32> to vector<64xf32>
    %120 = vector.shape_cast %119 : vector<64xf32> to vector<64x1xf32>
    %121 = vector.broadcast %120 : vector<64x1xf32> to vector<64x64xf32>
    %122 = arith.subf %118, %121 : vector<64x64xf32>
    %123 = math.exp %122 : vector<64x64xf32>
    %cst_51 = arith.constant dense<0.000000e+00> : vector<64xf32>
    %124 = vector.multi_reduction <add>, %123, %cst_51 [1] : vector<64x64xf32> to vector<64xf32>
    %125 = vector.shape_cast %124 : vector<64xf32> to vector<64x1xf32>
    %126 = tpu.reciprocal %125 {approx = true} : vector<64x1xf32> -> vector<64x1xf32>
    %127 = vector.broadcast %126 : vector<64x1xf32> to vector<64x64xf32>
    %128 = arith.mulf %123, %127 : vector<64x64xf32>
    %129 = arith.truncf %128 : vector<64x64xf32> to vector<64x64xbf16>
    %130 = vector.extract_strided_slice %67 {offsets = [0, 24], sizes = [64, 8], strides = [1, 1]} : vector<64x32xbf16> to vector<64x8xbf16>
    %cst_52 = arith.constant dense<0.000000e+00> : vector<64x8xf32>
    %131 = tpu.matmul %129, %130, %cst_52 {dimension_numbers = #tpu.dot_dimension_numbers<[1], [0], [0], [1], [0, 0, 1, 1], [], []>} : vector<64x64xbf16>, vector<64x8xbf16>, vector<64x8xf32> -> vector<64x8xf32>
    %132 = tpu.concatenate %83, %99, %115, %131 in 1 : vector<64x8xf32>, vector<64x8xf32>, vector<64x8xf32>, vector<64x8xf32> -> vector<64x32xf32>
    %133 = arith.truncf %132 : vector<64x32xf32> to vector<64x32xbf16>
    %cst_53 = arith.constant dense<0.000000e+00> : vector<64x32xf32>
    %134 = tpu.matmul %133, %62, %cst_53 {dimension_numbers = #tpu.dot_dimension_numbers<[1], [0], [0], [1], [0, 0, 1, 1], [], []>} : vector<64x32xbf16>, vector<32x32xbf16>, vector<64x32xf32> -> vector<64x32xf32>
    %135 = vector.broadcast %64 : vector<1x32xf32> to vector<64x32xf32>
    %136 = arith.addf %134, %135 : vector<64x32xf32>
    %137 = vector.broadcast %20 : vector<1x32xf32> to vector<64x32xf32>
    %138 = arith.mulf %137, %136 : vector<64x32xf32>
    %139 = arith.addf %9, %138 : vector<64x32xf32>
    %140 = arith.truncf %139 : vector<64x32xf32> to vector<64x32xbf16>
    %c0_54 = arith.constant 0 : index
    %c0_55 = arith.constant 0 : index
    %c0_56 = arith.constant 0 : index
    %141 = vector.load %arg13[%c0_54, %c0_55, %c0_56] : memref<2x32x32xbf16, #tpu.memory_space<vmem>>, vector<1x32x32xbf16>
    %142 = vector.shape_cast %141 : vector<1x32x32xbf16> to vector<32x32xbf16>
    %cst_57 = arith.constant dense<0.000000e+00> : vector<64x32xf32>
    %143 = tpu.matmul %140, %142, %cst_57 {dimension_numbers = #tpu.dot_dimension_numbers<[1], [0], [0], [1], [0, 0, 1, 1], [], []>} : vector<64x32xbf16>, vector<32x32xbf16>, vector<64x32xf32> -> vector<64x32xf32>
    %c0_58 = arith.constant 0 : index
    %c0_59 = arith.constant 0 : index
    %c0_60 = arith.constant 0 : index
    %144 = vector.load %arg14[%c0_58, %c0_59, %c0_60] : memref<2x1x32xf32, #tpu.memory_space<vmem>>, vector<1x1x32xf32>
    %145 = vector.shape_cast %144 : vector<1x1x32xf32> to vector<1x32xf32>
    %146 = vector.broadcast %145 : vector<1x32xf32> to vector<64x32xf32>
    %147 = arith.addf %143, %146 : vector<64x32xf32>
    %cst_61 = arith.constant 0.353553385 : f32
    %148 = vector.broadcast %cst_61 : f32 to vector<64x32xf32>
    %149 = arith.mulf %147, %148 : vector<64x32xf32>
    %c0_62 = arith.constant 0 : index
    %c0_63 = arith.constant 0 : index
    %c0_64 = arith.constant 0 : index
    %150 = vector.load %arg15[%c0_62, %c0_63, %c0_64] : memref<2x32x64xbf16, #tpu.memory_space<vmem>>, vector<1x32x64xbf16>
    %151 = vector.shape_cast %150 : vector<1x32x64xbf16> to vector<32x64xbf16>
    %cst_65 = arith.constant dense<0.000000e+00> : vector<8x64xf32>
    %152 = tpu.matmul %14, %151, %cst_65 {dimension_numbers = #tpu.dot_dimension_numbers<[1], [0], [0], [1], [0, 0, 1, 1], [], []>} : vector<8x32xbf16>, vector<32x64xbf16>, vector<8x64xf32> -> vector<8x64xf32>
    %c0_66 = arith.constant 0 : index
    %c0_67 = arith.constant 0 : index
    %c0_68 = arith.constant 0 : index
    %153 = vector.load %arg16[%c0_66, %c0_67, %c0_68] : memref<2x1x64xf32, #tpu.memory_space<vmem>>, vector<1x1x64xf32>
    %154 = vector.shape_cast %153 : vector<1x1x64xf32> to vector<1x64xf32>
    %155 = vector.broadcast %154 : vector<1x64xf32> to vector<8x64xf32>
    %156 = arith.addf %152, %155 : vector<8x64xf32>
    %157 = vector.extract_strided_slice %156 {offsets = [0, 0], sizes = [8, 32], strides = [1, 1]} : vector<8x64xf32> to vector<8x32xf32>
    %158 = vector.extract_strided_slice %156 {offsets = [0, 32], sizes = [8, 32], strides = [1, 1]} : vector<8x64xf32> to vector<8x32xf32>
    %c0_69 = arith.constant 0 : index
    %c0_70 = arith.constant 0 : index
    %c0_71 = arith.constant 0 : index
    %159 = vector.load %arg17[%c0_69, %c0_70, %c0_71] : memref<2x32x32xbf16, #tpu.memory_space<vmem>>, vector<1x32x32xbf16>
    %160 = vector.shape_cast %159 : vector<1x32x32xbf16> to vector<32x32xbf16>
    %c0_72 = arith.constant 0 : index
    %c0_73 = arith.constant 0 : index
    %c0_74 = arith.constant 0 : index
    %161 = vector.load %arg18[%c0_72, %c0_73, %c0_74] : memref<2x1x32xf32, #tpu.memory_space<vmem>>, vector<1x1x32xf32>
    %162 = vector.shape_cast %161 : vector<1x1x32xf32> to vector<1x32xf32>
    %163 = arith.truncf %149 : vector<64x32xf32> to vector<64x32xbf16>
    %164 = arith.truncf %157 : vector<8x32xf32> to vector<8x32xbf16>
    %165 = arith.truncf %158 : vector<8x32xf32> to vector<8x32xbf16>
    %166 = vector.extract_strided_slice %163 {offsets = [0, 0], sizes = [64, 8], strides = [1, 1]} : vector<64x32xbf16> to vector<64x8xbf16>
    %167 = vector.extract_strided_slice %164 {offsets = [0, 0], sizes = [8, 8], strides = [1, 1]} : vector<8x32xbf16> to vector<8x8xbf16>
    %cst_75 = arith.constant dense<0.000000e+00> : vector<64x8xf32>
    %168 = tpu.matmul %166, %167, %cst_75 {dimension_numbers = #tpu.dot_dimension_numbers<[1], [1], [0], [0], [0, 0, 1, 0], [], []>} : vector<64x8xbf16>, vector<8x8xbf16>, vector<64x8xf32> -> vector<64x8xf32>
    %cst_76 = arith.constant dense<0xFF800000> : vector<64xf32>
    %169 = vector.multi_reduction <maximumf>, %168, %cst_76 [1] : vector<64x8xf32> to vector<64xf32>
    %170 = vector.shape_cast %169 : vector<64xf32> to vector<64x1xf32>
    %171 = vector.broadcast %170 : vector<64x1xf32> to vector<64x8xf32>
    %172 = arith.subf %168, %171 : vector<64x8xf32>
    %173 = math.exp %172 : vector<64x8xf32>
    %cst_77 = arith.constant dense<0.000000e+00> : vector<64xf32>
    %174 = vector.multi_reduction <add>, %173, %cst_77 [1] : vector<64x8xf32> to vector<64xf32>
    %175 = vector.shape_cast %174 : vector<64xf32> to vector<64x1xf32>
    %176 = tpu.reciprocal %175 {approx = true} : vector<64x1xf32> -> vector<64x1xf32>
    %177 = vector.broadcast %176 : vector<64x1xf32> to vector<64x8xf32>
    %178 = arith.mulf %173, %177 : vector<64x8xf32>
    %179 = arith.truncf %178 : vector<64x8xf32> to vector<64x8xbf16>
    %180 = vector.extract_strided_slice %165 {offsets = [0, 0], sizes = [8, 8], strides = [1, 1]} : vector<8x32xbf16> to vector<8x8xbf16>
    %cst_78 = arith.constant dense<0.000000e+00> : vector<64x8xf32>
    %181 = tpu.matmul %179, %180, %cst_78 {dimension_numbers = #tpu.dot_dimension_numbers<[1], [0], [0], [1], [0, 0, 1, 1], [], []>} : vector<64x8xbf16>, vector<8x8xbf16>, vector<64x8xf32> -> vector<64x8xf32>
    %182 = vector.extract_strided_slice %163 {offsets = [0, 8], sizes = [64, 8], strides = [1, 1]} : vector<64x32xbf16> to vector<64x8xbf16>
    %183 = vector.extract_strided_slice %164 {offsets = [0, 8], sizes = [8, 8], strides = [1, 1]} : vector<8x32xbf16> to vector<8x8xbf16>
    %cst_79 = arith.constant dense<0.000000e+00> : vector<64x8xf32>
    %184 = tpu.matmul %182, %183, %cst_79 {dimension_numbers = #tpu.dot_dimension_numbers<[1], [1], [0], [0], [0, 0, 1, 0], [], []>} : vector<64x8xbf16>, vector<8x8xbf16>, vector<64x8xf32> -> vector<64x8xf32>
    %cst_80 = arith.constant dense<0xFF800000> : vector<64xf32>
    %185 = vector.multi_reduction <maximumf>, %184, %cst_80 [1] : vector<64x8xf32> to vector<64xf32>
    %186 = vector.shape_cast %185 : vector<64xf32> to vector<64x1xf32>
    %187 = vector.broadcast %186 : vector<64x1xf32> to vector<64x8xf32>
    %188 = arith.subf %184, %187 : vector<64x8xf32>
    %189 = math.exp %188 : vector<64x8xf32>
    %cst_81 = arith.constant dense<0.000000e+00> : vector<64xf32>
    %190 = vector.multi_reduction <add>, %189, %cst_81 [1] : vector<64x8xf32> to vector<64xf32>
    %191 = vector.shape_cast %190 : vector<64xf32> to vector<64x1xf32>
    %192 = tpu.reciprocal %191 {approx = true} : vector<64x1xf32> -> vector<64x1xf32>
    %193 = vector.broadcast %192 : vector<64x1xf32> to vector<64x8xf32>
    %194 = arith.mulf %189, %193 : vector<64x8xf32>
    %195 = arith.truncf %194 : vector<64x8xf32> to vector<64x8xbf16>
    %196 = vector.extract_strided_slice %165 {offsets = [0, 8], sizes = [8, 8], strides = [1, 1]} : vector<8x32xbf16> to vector<8x8xbf16>
    %cst_82 = arith.constant dense<0.000000e+00> : vector<64x8xf32>
    %197 = tpu.matmul %195, %196, %cst_82 {dimension_numbers = #tpu.dot_dimension_numbers<[1], [0], [0], [1], [0, 0, 1, 1], [], []>} : vector<64x8xbf16>, vector<8x8xbf16>, vector<64x8xf32> -> vector<64x8xf32>
    %198 = vector.extract_strided_slice %163 {offsets = [0, 16], sizes = [64, 8], strides = [1, 1]} : vector<64x32xbf16> to vector<64x8xbf16>
    %199 = vector.extract_strided_slice %164 {offsets = [0, 16], sizes = [8, 8], strides = [1, 1]} : vector<8x32xbf16> to vector<8x8xbf16>
    %cst_83 = arith.constant dense<0.000000e+00> : vector<64x8xf32>
    %200 = tpu.matmul %198, %199, %cst_83 {dimension_numbers = #tpu.dot_dimension_numbers<[1], [1], [0], [0], [0, 0, 1, 0], [], []>} : vector<64x8xbf16>, vector<8x8xbf16>, vector<64x8xf32> -> vector<64x8xf32>
    %cst_84 = arith.constant dense<0xFF800000> : vector<64xf32>
    %201 = vector.multi_reduction <maximumf>, %200, %cst_84 [1] : vector<64x8xf32> to vector<64xf32>
    %202 = vector.shape_cast %201 : vector<64xf32> to vector<64x1xf32>
    %203 = vector.broadcast %202 : vector<64x1xf32> to vector<64x8xf32>
    %204 = arith.subf %200, %203 : vector<64x8xf32>
    %205 = math.exp %204 : vector<64x8xf32>
    %cst_85 = arith.constant dense<0.000000e+00> : vector<64xf32>
    %206 = vector.multi_reduction <add>, %205, %cst_85 [1] : vector<64x8xf32> to vector<64xf32>
    %207 = vector.shape_cast %206 : vector<64xf32> to vector<64x1xf32>
    %208 = tpu.reciprocal %207 {approx = true} : vector<64x1xf32> -> vector<64x1xf32>
    %209 = vector.broadcast %208 : vector<64x1xf32> to vector<64x8xf32>
    %210 = arith.mulf %205, %209 : vector<64x8xf32>
    %211 = arith.truncf %210 : vector<64x8xf32> to vector<64x8xbf16>
    %212 = vector.extract_strided_slice %165 {offsets = [0, 16], sizes = [8, 8], strides = [1, 1]} : vector<8x32xbf16> to vector<8x8xbf16>
    %cst_86 = arith.constant dense<0.000000e+00> : vector<64x8xf32>
    %213 = tpu.matmul %211, %212, %cst_86 {dimension_numbers = #tpu.dot_dimension_numbers<[1], [0], [0], [1], [0, 0, 1, 1], [], []>} : vector<64x8xbf16>, vector<8x8xbf16>, vector<64x8xf32> -> vector<64x8xf32>
    %214 = vector.extract_strided_slice %163 {offsets = [0, 24], sizes = [64, 8], strides = [1, 1]} : vector<64x32xbf16> to vector<64x8xbf16>
    %215 = vector.extract_strided_slice %164 {offsets = [0, 24], sizes = [8, 8], strides = [1, 1]} : vector<8x32xbf16> to vector<8x8xbf16>
    %cst_87 = arith.constant dense<0.000000e+00> : vector<64x8xf32>
    %216 = tpu.matmul %214, %215, %cst_87 {dimension_numbers = #tpu.dot_dimension_numbers<[1], [1], [0], [0], [0, 0, 1, 0], [], []>} : vector<64x8xbf16>, vector<8x8xbf16>, vector<64x8xf32> -> vector<64x8xf32>
    %cst_88 = arith.constant dense<0xFF800000> : vector<64xf32>
    %217 = vector.multi_reduction <maximumf>, %216, %cst_88 [1] : vector<64x8xf32> to vector<64xf32>
    %218 = vector.shape_cast %217 : vector<64xf32> to vector<64x1xf32>
    %219 = vector.broadcast %218 : vector<64x1xf32> to vector<64x8xf32>
    %220 = arith.subf %216, %219 : vector<64x8xf32>
    %221 = math.exp %220 : vector<64x8xf32>
    %cst_89 = arith.constant dense<0.000000e+00> : vector<64xf32>
    %222 = vector.multi_reduction <add>, %221, %cst_89 [1] : vector<64x8xf32> to vector<64xf32>
    %223 = vector.shape_cast %222 : vector<64xf32> to vector<64x1xf32>
    %224 = tpu.reciprocal %223 {approx = true} : vector<64x1xf32> -> vector<64x1xf32>
    %225 = vector.broadcast %224 : vector<64x1xf32> to vector<64x8xf32>
    %226 = arith.mulf %221, %225 : vector<64x8xf32>
    %227 = arith.truncf %226 : vector<64x8xf32> to vector<64x8xbf16>
    %228 = vector.extract_strided_slice %165 {offsets = [0, 24], sizes = [8, 8], strides = [1, 1]} : vector<8x32xbf16> to vector<8x8xbf16>
    %cst_90 = arith.constant dense<0.000000e+00> : vector<64x8xf32>
    %229 = tpu.matmul %227, %228, %cst_90 {dimension_numbers = #tpu.dot_dimension_numbers<[1], [0], [0], [1], [0, 0, 1, 1], [], []>} : vector<64x8xbf16>, vector<8x8xbf16>, vector<64x8xf32> -> vector<64x8xf32>
    %230 = tpu.concatenate %181, %197, %213, %229 in 1 : vector<64x8xf32>, vector<64x8xf32>, vector<64x8xf32>, vector<64x8xf32> -> vector<64x32xf32>
    %231 = arith.truncf %230 : vector<64x32xf32> to vector<64x32xbf16>
    %cst_91 = arith.constant dense<0.000000e+00> : vector<64x32xf32>
    %232 = tpu.matmul %231, %160, %cst_91 {dimension_numbers = #tpu.dot_dimension_numbers<[1], [0], [0], [1], [0, 0, 1, 1], [], []>} : vector<64x32xbf16>, vector<32x32xbf16>, vector<64x32xf32> -> vector<64x32xf32>
    %233 = vector.broadcast %162 : vector<1x32xf32> to vector<64x32xf32>
    %234 = arith.addf %232, %233 : vector<64x32xf32>
    %235 = arith.addf %139, %234 : vector<64x32xf32>
    %cst_92 = arith.constant dense<0.000000e+00> : vector<64xf32>
    %236 = vector.multi_reduction <add>, %235, %cst_92 [1] : vector<64x32xf32> to vector<64xf32>
    %237 = vector.shape_cast %236 : vector<64xf32> to vector<64x1xf32>
    %cst_93 = arith.constant 3.200000e+01 : f32
    %238 = vector.broadcast %cst_93 : f32 to vector<64x1xf32>
    %239 = arith.divf %237, %238 : vector<64x1xf32>
    %240 = vector.broadcast %239 : vector<64x1xf32> to vector<64x32xf32>
    %241 = arith.subf %235, %240 : vector<64x32xf32>
    %242 = arith.mulf %241, %241 : vector<64x32xf32>
    %cst_94 = arith.constant dense<0.000000e+00> : vector<64xf32>
    %243 = vector.multi_reduction <add>, %242, %cst_94 [1] : vector<64x32xf32> to vector<64xf32>
    %244 = vector.shape_cast %243 : vector<64xf32> to vector<64x1xf32>
    %cst_95 = arith.constant 3.200000e+01 : f32
    %245 = vector.broadcast %cst_95 : f32 to vector<64x1xf32>
    %246 = arith.divf %244, %245 : vector<64x1xf32>
    %247 = vector.broadcast %239 : vector<64x1xf32> to vector<64x32xf32>
    %248 = arith.subf %235, %247 : vector<64x32xf32>
    %cst_96 = arith.constant 9.99999997E-7 : f32
    %249 = vector.broadcast %cst_96 : f32 to vector<64x1xf32>
    %250 = arith.addf %246, %249 : vector<64x1xf32>
    %251 = math.rsqrt %250 : vector<64x1xf32>
    %252 = vector.broadcast %251 : vector<64x1xf32> to vector<64x32xf32>
    %253 = arith.mulf %248, %252 : vector<64x32xf32>
    %cst_97 = arith.constant 1.000000e+00 : f32
    %254 = vector.broadcast %cst_97 : f32 to vector<1x32xf32>
    %255 = arith.addf %254, %22 : vector<1x32xf32>
    %256 = vector.broadcast %255 : vector<1x32xf32> to vector<64x32xf32>
    %257 = arith.mulf %253, %256 : vector<64x32xf32>
    %258 = vector.broadcast %21 : vector<1x32xf32> to vector<64x32xf32>
    %259 = arith.addf %257, %258 : vector<64x32xf32>
    %260 = arith.truncf %259 : vector<64x32xf32> to vector<64x32xbf16>
    %c0_98 = arith.constant 0 : index
    %c0_99 = arith.constant 0 : index
    %c0_100 = arith.constant 0 : index
    %261 = vector.load %arg19[%c0_98, %c0_99, %c0_100] : memref<2x32x128xbf16, #tpu.memory_space<vmem>>, vector<1x32x128xbf16>
    %262 = vector.shape_cast %261 : vector<1x32x128xbf16> to vector<32x128xbf16>
    %cst_101 = arith.constant dense<0.000000e+00> : vector<64x128xf32>
    %263 = tpu.matmul %260, %262, %cst_101 {dimension_numbers = #tpu.dot_dimension_numbers<[1], [0], [0], [1], [0, 0, 1, 1], [], []>} : vector<64x32xbf16>, vector<32x128xbf16>, vector<64x128xf32> -> vector<64x128xf32>
    %c0_102 = arith.constant 0 : index
    %c0_103 = arith.constant 0 : index
    %c0_104 = arith.constant 0 : index
    %264 = vector.load %arg20[%c0_102, %c0_103, %c0_104] : memref<2x1x128xf32, #tpu.memory_space<vmem>>, vector<1x1x128xf32>
    %265 = vector.shape_cast %264 : vector<1x1x128xf32> to vector<1x128xf32>
    %266 = vector.broadcast %265 : vector<1x128xf32> to vector<64x128xf32>
    %267 = arith.addf %263, %266 : vector<64x128xf32>
    %268 = arith.mulf %267, %267 : vector<64x128xf32>
    %269 = arith.mulf %267, %268 : vector<64x128xf32>
    %cst_105 = arith.constant 4.471500e-02 : f32
    %270 = vector.broadcast %cst_105 : f32 to vector<64x128xf32>
    %271 = arith.mulf %270, %269 : vector<64x128xf32>
    %272 = arith.addf %267, %271 : vector<64x128xf32>
    %cst_106 = arith.constant 0.797884583 : f32
    %273 = vector.broadcast %cst_106 : f32 to vector<64x128xf32>
    %274 = arith.mulf %273, %272 : vector<64x128xf32>
    %275 = math.tanh %274 : vector<64x128xf32>
    %cst_107 = arith.constant 1.000000e+00 : f32
    %276 = vector.broadcast %cst_107 : f32 to vector<64x128xf32>
    %277 = arith.addf %276, %275 : vector<64x128xf32>
    %cst_108 = arith.constant 5.000000e-01 : f32
    %278 = vector.broadcast %cst_108 : f32 to vector<64x128xf32>
    %279 = arith.mulf %278, %277 : vector<64x128xf32>
    %280 = arith.mulf %267, %279 : vector<64x128xf32>
    %281 = arith.truncf %280 : vector<64x128xf32> to vector<64x128xbf16>
    %c0_109 = arith.constant 0 : index
    %c0_110 = arith.constant 0 : index
    %c0_111 = arith.constant 0 : index
    %282 = vector.load %arg21[%c0_109, %c0_110, %c0_111] : memref<2x128x32xbf16, #tpu.memory_space<vmem>>, vector<1x128x32xbf16>
    %283 = vector.shape_cast %282 : vector<1x128x32xbf16> to vector<128x32xbf16>
    %cst_112 = arith.constant dense<0.000000e+00> : vector<64x32xf32>
    %284 = tpu.matmul %281, %283, %cst_112 {dimension_numbers = #tpu.dot_dimension_numbers<[1], [0], [0], [1], [0, 0, 1, 1], [], []>} : vector<64x128xbf16>, vector<128x32xbf16>, vector<64x32xf32> -> vector<64x32xf32>
    %c0_113 = arith.constant 0 : index
    %c0_114 = arith.constant 0 : index
    %c0_115 = arith.constant 0 : index
    %285 = vector.load %arg22[%c0_113, %c0_114, %c0_115] : memref<2x1x32xf32, #tpu.memory_space<vmem>>, vector<1x1x32xf32>
    %286 = vector.shape_cast %285 : vector<1x1x32xf32> to vector<1x32xf32>
    %287 = vector.broadcast %286 : vector<1x32xf32> to vector<64x32xf32>
    %288 = arith.addf %284, %287 : vector<64x32xf32>
    %289 = vector.broadcast %23 : vector<1x32xf32> to vector<64x32xf32>
    %290 = arith.mulf %289, %288 : vector<64x32xf32>
    %291 = arith.addf %235, %290 : vector<64x32xf32>
    %c1 = arith.constant 1 : index
    %c0_116 = arith.constant 0 : index
    %c0_117 = arith.constant 0 : index
    %292 = vector.load %arg8[%c1, %c0_116, %c0_117] : memref<2x6x32xf32, #tpu.memory_space<vmem>>, vector<1x6x32xf32>
    %293 = vector.shape_cast %292 : vector<1x6x32xf32> to vector<6x32xf32>
    %294 = arith.addf %293, %11 : vector<6x32xf32>
    %295 = vector.extract_strided_slice %294 {offsets = [0, 0], sizes = [1, 32], strides = [1, 1]} : vector<6x32xf32> to vector<1x32xf32>
    %296 = vector.extract_strided_slice %294 {offsets = [1, 0], sizes = [1, 32], strides = [1, 1]} : vector<6x32xf32> to vector<1x32xf32>
    %297 = vector.extract_strided_slice %294 {offsets = [2, 0], sizes = [1, 32], strides = [1, 1]} : vector<6x32xf32> to vector<1x32xf32>
    %298 = vector.extract_strided_slice %294 {offsets = [3, 0], sizes = [1, 32], strides = [1, 1]} : vector<6x32xf32> to vector<1x32xf32>
    %299 = vector.extract_strided_slice %294 {offsets = [4, 0], sizes = [1, 32], strides = [1, 1]} : vector<6x32xf32> to vector<1x32xf32>
    %300 = vector.extract_strided_slice %294 {offsets = [5, 0], sizes = [1, 32], strides = [1, 1]} : vector<6x32xf32> to vector<1x32xf32>
    %cst_118 = arith.constant dense<0.000000e+00> : vector<64xf32>
    %301 = vector.multi_reduction <add>, %291, %cst_118 [1] : vector<64x32xf32> to vector<64xf32>
    %302 = vector.shape_cast %301 : vector<64xf32> to vector<64x1xf32>
    %cst_119 = arith.constant 3.200000e+01 : f32
    %303 = vector.broadcast %cst_119 : f32 to vector<64x1xf32>
    %304 = arith.divf %302, %303 : vector<64x1xf32>
    %305 = vector.broadcast %304 : vector<64x1xf32> to vector<64x32xf32>
    %306 = arith.subf %291, %305 : vector<64x32xf32>
    %307 = arith.mulf %306, %306 : vector<64x32xf32>
    %cst_120 = arith.constant dense<0.000000e+00> : vector<64xf32>
    %308 = vector.multi_reduction <add>, %307, %cst_120 [1] : vector<64x32xf32> to vector<64xf32>
    %309 = vector.shape_cast %308 : vector<64xf32> to vector<64x1xf32>
    %cst_121 = arith.constant 3.200000e+01 : f32
    %310 = vector.broadcast %cst_121 : f32 to vector<64x1xf32>
    %311 = arith.divf %309, %310 : vector<64x1xf32>
    %312 = vector.broadcast %304 : vector<64x1xf32> to vector<64x32xf32>
    %313 = arith.subf %291, %312 : vector<64x32xf32>
    %cst_122 = arith.constant 9.99999997E-7 : f32
    %314 = vector.broadcast %cst_122 : f32 to vector<64x1xf32>
    %315 = arith.addf %311, %314 : vector<64x1xf32>
    %316 = math.rsqrt %315 : vector<64x1xf32>
    %317 = vector.broadcast %316 : vector<64x1xf32> to vector<64x32xf32>
    %318 = arith.mulf %313, %317 : vector<64x32xf32>
    %cst_123 = arith.constant 1.000000e+00 : f32
    %319 = vector.broadcast %cst_123 : f32 to vector<1x32xf32>
    %320 = arith.addf %319, %296 : vector<1x32xf32>
    %321 = vector.broadcast %320 : vector<1x32xf32> to vector<64x32xf32>
    %322 = arith.mulf %318, %321 : vector<64x32xf32>
    %323 = vector.broadcast %295 : vector<1x32xf32> to vector<64x32xf32>
    %324 = arith.addf %322, %323 : vector<64x32xf32>
    %325 = arith.truncf %324 : vector<64x32xf32> to vector<64x32xbf16>
    %c1_124 = arith.constant 1 : index
    %c0_125 = arith.constant 0 : index
    %c0_126 = arith.constant 0 : index
    %326 = vector.load %arg9[%c1_124, %c0_125, %c0_126] : memref<2x32x96xbf16, #tpu.memory_space<vmem>>, vector<1x32x96xbf16>
    %327 = vector.shape_cast %326 : vector<1x32x96xbf16> to vector<32x96xbf16>
    %cst_127 = arith.constant dense<0.000000e+00> : vector<64x96xf32>
    %328 = tpu.matmul %325, %327, %cst_127 {dimension_numbers = #tpu.dot_dimension_numbers<[1], [0], [0], [1], [0, 0, 1, 1], [], []>} : vector<64x32xbf16>, vector<32x96xbf16>, vector<64x96xf32> -> vector<64x96xf32>
    %c1_128 = arith.constant 1 : index
    %c0_129 = arith.constant 0 : index
    %c0_130 = arith.constant 0 : index
    %329 = vector.load %arg10[%c1_128, %c0_129, %c0_130] : memref<2x1x96xf32, #tpu.memory_space<vmem>>, vector<1x1x96xf32>
    %330 = vector.shape_cast %329 : vector<1x1x96xf32> to vector<1x96xf32>
    %331 = vector.broadcast %330 : vector<1x96xf32> to vector<64x96xf32>
    %332 = arith.addf %328, %331 : vector<64x96xf32>
    %333 = vector.extract_strided_slice %332 {offsets = [0, 0], sizes = [64, 32], strides = [1, 1]} : vector<64x96xf32> to vector<64x32xf32>
    %cst_131 = arith.constant 0.353553385 : f32
    %334 = vector.broadcast %cst_131 : f32 to vector<64x32xf32>
    %335 = arith.mulf %333, %334 : vector<64x32xf32>
    %336 = vector.extract_strided_slice %332 {offsets = [0, 32], sizes = [64, 32], strides = [1, 1]} : vector<64x96xf32> to vector<64x32xf32>
    %337 = vector.extract_strided_slice %332 {offsets = [0, 64], sizes = [64, 32], strides = [1, 1]} : vector<64x96xf32> to vector<64x32xf32>
    %c1_132 = arith.constant 1 : index
    %c0_133 = arith.constant 0 : index
    %c0_134 = arith.constant 0 : index
    %338 = vector.load %arg11[%c1_132, %c0_133, %c0_134] : memref<2x32x32xbf16, #tpu.memory_space<vmem>>, vector<1x32x32xbf16>
    %339 = vector.shape_cast %338 : vector<1x32x32xbf16> to vector<32x32xbf16>
    %c1_135 = arith.constant 1 : index
    %c0_136 = arith.constant 0 : index
    %c0_137 = arith.constant 0 : index
    %340 = vector.load %arg12[%c1_135, %c0_136, %c0_137] : memref<2x1x32xf32, #tpu.memory_space<vmem>>, vector<1x1x32xf32>
    %341 = vector.shape_cast %340 : vector<1x1x32xf32> to vector<1x32xf32>
    %342 = arith.truncf %335 : vector<64x32xf32> to vector<64x32xbf16>
    %343 = arith.truncf %336 : vector<64x32xf32> to vector<64x32xbf16>
    %344 = arith.truncf %337 : vector<64x32xf32> to vector<64x32xbf16>
    %345 = vector.extract_strided_slice %342 {offsets = [0, 0], sizes = [64, 8], strides = [1, 1]} : vector<64x32xbf16> to vector<64x8xbf16>
    %346 = vector.extract_strided_slice %343 {offsets = [0, 0], sizes = [64, 8], strides = [1, 1]} : vector<64x32xbf16> to vector<64x8xbf16>
    %cst_138 = arith.constant dense<0.000000e+00> : vector<64x64xf32>
    %347 = tpu.matmul %345, %346, %cst_138 {dimension_numbers = #tpu.dot_dimension_numbers<[1], [1], [0], [0], [0, 0, 1, 0], [], []>} : vector<64x8xbf16>, vector<64x8xbf16>, vector<64x64xf32> -> vector<64x64xf32>
    %cst_139 = arith.constant dense<0xFF800000> : vector<64xf32>
    %348 = vector.multi_reduction <maximumf>, %347, %cst_139 [1] : vector<64x64xf32> to vector<64xf32>
    %349 = vector.shape_cast %348 : vector<64xf32> to vector<64x1xf32>
    %350 = vector.broadcast %349 : vector<64x1xf32> to vector<64x64xf32>
    %351 = arith.subf %347, %350 : vector<64x64xf32>
    %352 = math.exp %351 : vector<64x64xf32>
    %cst_140 = arith.constant dense<0.000000e+00> : vector<64xf32>
    %353 = vector.multi_reduction <add>, %352, %cst_140 [1] : vector<64x64xf32> to vector<64xf32>
    %354 = vector.shape_cast %353 : vector<64xf32> to vector<64x1xf32>
    %355 = tpu.reciprocal %354 {approx = true} : vector<64x1xf32> -> vector<64x1xf32>
    %356 = vector.broadcast %355 : vector<64x1xf32> to vector<64x64xf32>
    %357 = arith.mulf %352, %356 : vector<64x64xf32>
    %358 = arith.truncf %357 : vector<64x64xf32> to vector<64x64xbf16>
    %359 = vector.extract_strided_slice %344 {offsets = [0, 0], sizes = [64, 8], strides = [1, 1]} : vector<64x32xbf16> to vector<64x8xbf16>
    %cst_141 = arith.constant dense<0.000000e+00> : vector<64x8xf32>
    %360 = tpu.matmul %358, %359, %cst_141 {dimension_numbers = #tpu.dot_dimension_numbers<[1], [0], [0], [1], [0, 0, 1, 1], [], []>} : vector<64x64xbf16>, vector<64x8xbf16>, vector<64x8xf32> -> vector<64x8xf32>
    %361 = vector.extract_strided_slice %342 {offsets = [0, 8], sizes = [64, 8], strides = [1, 1]} : vector<64x32xbf16> to vector<64x8xbf16>
    %362 = vector.extract_strided_slice %343 {offsets = [0, 8], sizes = [64, 8], strides = [1, 1]} : vector<64x32xbf16> to vector<64x8xbf16>
    %cst_142 = arith.constant dense<0.000000e+00> : vector<64x64xf32>
    %363 = tpu.matmul %361, %362, %cst_142 {dimension_numbers = #tpu.dot_dimension_numbers<[1], [1], [0], [0], [0, 0, 1, 0], [], []>} : vector<64x8xbf16>, vector<64x8xbf16>, vector<64x64xf32> -> vector<64x64xf32>
    %cst_143 = arith.constant dense<0xFF800000> : vector<64xf32>
    %364 = vector.multi_reduction <maximumf>, %363, %cst_143 [1] : vector<64x64xf32> to vector<64xf32>
    %365 = vector.shape_cast %364 : vector<64xf32> to vector<64x1xf32>
    %366 = vector.broadcast %365 : vector<64x1xf32> to vector<64x64xf32>
    %367 = arith.subf %363, %366 : vector<64x64xf32>
    %368 = math.exp %367 : vector<64x64xf32>
    %cst_144 = arith.constant dense<0.000000e+00> : vector<64xf32>
    %369 = vector.multi_reduction <add>, %368, %cst_144 [1] : vector<64x64xf32> to vector<64xf32>
    %370 = vector.shape_cast %369 : vector<64xf32> to vector<64x1xf32>
    %371 = tpu.reciprocal %370 {approx = true} : vector<64x1xf32> -> vector<64x1xf32>
    %372 = vector.broadcast %371 : vector<64x1xf32> to vector<64x64xf32>
    %373 = arith.mulf %368, %372 : vector<64x64xf32>
    %374 = arith.truncf %373 : vector<64x64xf32> to vector<64x64xbf16>
    %375 = vector.extract_strided_slice %344 {offsets = [0, 8], sizes = [64, 8], strides = [1, 1]} : vector<64x32xbf16> to vector<64x8xbf16>
    %cst_145 = arith.constant dense<0.000000e+00> : vector<64x8xf32>
    %376 = tpu.matmul %374, %375, %cst_145 {dimension_numbers = #tpu.dot_dimension_numbers<[1], [0], [0], [1], [0, 0, 1, 1], [], []>} : vector<64x64xbf16>, vector<64x8xbf16>, vector<64x8xf32> -> vector<64x8xf32>
    %377 = vector.extract_strided_slice %342 {offsets = [0, 16], sizes = [64, 8], strides = [1, 1]} : vector<64x32xbf16> to vector<64x8xbf16>
    %378 = vector.extract_strided_slice %343 {offsets = [0, 16], sizes = [64, 8], strides = [1, 1]} : vector<64x32xbf16> to vector<64x8xbf16>
    %cst_146 = arith.constant dense<0.000000e+00> : vector<64x64xf32>
    %379 = tpu.matmul %377, %378, %cst_146 {dimension_numbers = #tpu.dot_dimension_numbers<[1], [1], [0], [0], [0, 0, 1, 0], [], []>} : vector<64x8xbf16>, vector<64x8xbf16>, vector<64x64xf32> -> vector<64x64xf32>
    %cst_147 = arith.constant dense<0xFF800000> : vector<64xf32>
    %380 = vector.multi_reduction <maximumf>, %379, %cst_147 [1] : vector<64x64xf32> to vector<64xf32>
    %381 = vector.shape_cast %380 : vector<64xf32> to vector<64x1xf32>
    %382 = vector.broadcast %381 : vector<64x1xf32> to vector<64x64xf32>
    %383 = arith.subf %379, %382 : vector<64x64xf32>
    %384 = math.exp %383 : vector<64x64xf32>
    %cst_148 = arith.constant dense<0.000000e+00> : vector<64xf32>
    %385 = vector.multi_reduction <add>, %384, %cst_148 [1] : vector<64x64xf32> to vector<64xf32>
    %386 = vector.shape_cast %385 : vector<64xf32> to vector<64x1xf32>
    %387 = tpu.reciprocal %386 {approx = true} : vector<64x1xf32> -> vector<64x1xf32>
    %388 = vector.broadcast %387 : vector<64x1xf32> to vector<64x64xf32>
    %389 = arith.mulf %384, %388 : vector<64x64xf32>
    %390 = arith.truncf %389 : vector<64x64xf32> to vector<64x64xbf16>
    %391 = vector.extract_strided_slice %344 {offsets = [0, 16], sizes = [64, 8], strides = [1, 1]} : vector<64x32xbf16> to vector<64x8xbf16>
    %cst_149 = arith.constant dense<0.000000e+00> : vector<64x8xf32>
    %392 = tpu.matmul %390, %391, %cst_149 {dimension_numbers = #tpu.dot_dimension_numbers<[1], [0], [0], [1], [0, 0, 1, 1], [], []>} : vector<64x64xbf16>, vector<64x8xbf16>, vector<64x8xf32> -> vector<64x8xf32>
    %393 = vector.extract_strided_slice %342 {offsets = [0, 24], sizes = [64, 8], strides = [1, 1]} : vector<64x32xbf16> to vector<64x8xbf16>
    %394 = vector.extract_strided_slice %343 {offsets = [0, 24], sizes = [64, 8], strides = [1, 1]} : vector<64x32xbf16> to vector<64x8xbf16>
    %cst_150 = arith.constant dense<0.000000e+00> : vector<64x64xf32>
    %395 = tpu.matmul %393, %394, %cst_150 {dimension_numbers = #tpu.dot_dimension_numbers<[1], [1], [0], [0], [0, 0, 1, 0], [], []>} : vector<64x8xbf16>, vector<64x8xbf16>, vector<64x64xf32> -> vector<64x64xf32>
    %cst_151 = arith.constant dense<0xFF800000> : vector<64xf32>
    %396 = vector.multi_reduction <maximumf>, %395, %cst_151 [1] : vector<64x64xf32> to vector<64xf32>
    %397 = vector.shape_cast %396 : vector<64xf32> to vector<64x1xf32>
    %398 = vector.broadcast %397 : vector<64x1xf32> to vector<64x64xf32>
    %399 = arith.subf %395, %398 : vector<64x64xf32>
    %400 = math.exp %399 : vector<64x64xf32>
    %cst_152 = arith.constant dense<0.000000e+00> : vector<64xf32>
    %401 = vector.multi_reduction <add>, %400, %cst_152 [1] : vector<64x64xf32> to vector<64xf32>
    %402 = vector.shape_cast %401 : vector<64xf32> to vector<64x1xf32>
    %403 = tpu.reciprocal %402 {approx = true} : vector<64x1xf32> -> vector<64x1xf32>
    %404 = vector.broadcast %403 : vector<64x1xf32> to vector<64x64xf32>
    %405 = arith.mulf %400, %404 : vector<64x64xf32>
    %406 = arith.truncf %405 : vector<64x64xf32> to vector<64x64xbf16>
    %407 = vector.extract_strided_slice %344 {offsets = [0, 24], sizes = [64, 8], strides = [1, 1]} : vector<64x32xbf16> to vector<64x8xbf16>
    %cst_153 = arith.constant dense<0.000000e+00> : vector<64x8xf32>
    %408 = tpu.matmul %406, %407, %cst_153 {dimension_numbers = #tpu.dot_dimension_numbers<[1], [0], [0], [1], [0, 0, 1, 1], [], []>} : vector<64x64xbf16>, vector<64x8xbf16>, vector<64x8xf32> -> vector<64x8xf32>
    %409 = tpu.concatenate %360, %376, %392, %408 in 1 : vector<64x8xf32>, vector<64x8xf32>, vector<64x8xf32>, vector<64x8xf32> -> vector<64x32xf32>
    %410 = arith.truncf %409 : vector<64x32xf32> to vector<64x32xbf16>
    %cst_154 = arith.constant dense<0.000000e+00> : vector<64x32xf32>
    %411 = tpu.matmul %410, %339, %cst_154 {dimension_numbers = #tpu.dot_dimension_numbers<[1], [0], [0], [1], [0, 0, 1, 1], [], []>} : vector<64x32xbf16>, vector<32x32xbf16>, vector<64x32xf32> -> vector<64x32xf32>
    %412 = vector.broadcast %341 : vector<1x32xf32> to vector<64x32xf32>
    %413 = arith.addf %411, %412 : vector<64x32xf32>
    %414 = vector.broadcast %297 : vector<1x32xf32> to vector<64x32xf32>
    %415 = arith.mulf %414, %413 : vector<64x32xf32>
    %416 = arith.addf %291, %415 : vector<64x32xf32>
    %417 = arith.truncf %416 : vector<64x32xf32> to vector<64x32xbf16>
    %c1_155 = arith.constant 1 : index
    %c0_156 = arith.constant 0 : index
    %c0_157 = arith.constant 0 : index
    %418 = vector.load %arg13[%c1_155, %c0_156, %c0_157] : memref<2x32x32xbf16, #tpu.memory_space<vmem>>, vector<1x32x32xbf16>
    %419 = vector.shape_cast %418 : vector<1x32x32xbf16> to vector<32x32xbf16>
    %cst_158 = arith.constant dense<0.000000e+00> : vector<64x32xf32>
    %420 = tpu.matmul %417, %419, %cst_158 {dimension_numbers = #tpu.dot_dimension_numbers<[1], [0], [0], [1], [0, 0, 1, 1], [], []>} : vector<64x32xbf16>, vector<32x32xbf16>, vector<64x32xf32> -> vector<64x32xf32>
    %c1_159 = arith.constant 1 : index
    %c0_160 = arith.constant 0 : index
    %c0_161 = arith.constant 0 : index
    %421 = vector.load %arg14[%c1_159, %c0_160, %c0_161] : memref<2x1x32xf32, #tpu.memory_space<vmem>>, vector<1x1x32xf32>
    %422 = vector.shape_cast %421 : vector<1x1x32xf32> to vector<1x32xf32>
    %423 = vector.broadcast %422 : vector<1x32xf32> to vector<64x32xf32>
    %424 = arith.addf %420, %423 : vector<64x32xf32>
    %cst_162 = arith.constant 0.353553385 : f32
    %425 = vector.broadcast %cst_162 : f32 to vector<64x32xf32>
    %426 = arith.mulf %424, %425 : vector<64x32xf32>
    %c1_163 = arith.constant 1 : index
    %c0_164 = arith.constant 0 : index
    %c0_165 = arith.constant 0 : index
    %427 = vector.load %arg15[%c1_163, %c0_164, %c0_165] : memref<2x32x64xbf16, #tpu.memory_space<vmem>>, vector<1x32x64xbf16>
    %428 = vector.shape_cast %427 : vector<1x32x64xbf16> to vector<32x64xbf16>
    %cst_166 = arith.constant dense<0.000000e+00> : vector<8x64xf32>
    %429 = tpu.matmul %14, %428, %cst_166 {dimension_numbers = #tpu.dot_dimension_numbers<[1], [0], [0], [1], [0, 0, 1, 1], [], []>} : vector<8x32xbf16>, vector<32x64xbf16>, vector<8x64xf32> -> vector<8x64xf32>
    %c1_167 = arith.constant 1 : index
    %c0_168 = arith.constant 0 : index
    %c0_169 = arith.constant 0 : index
    %430 = vector.load %arg16[%c1_167, %c0_168, %c0_169] : memref<2x1x64xf32, #tpu.memory_space<vmem>>, vector<1x1x64xf32>
    %431 = vector.shape_cast %430 : vector<1x1x64xf32> to vector<1x64xf32>
    %432 = vector.broadcast %431 : vector<1x64xf32> to vector<8x64xf32>
    %433 = arith.addf %429, %432 : vector<8x64xf32>
    %434 = vector.extract_strided_slice %433 {offsets = [0, 0], sizes = [8, 32], strides = [1, 1]} : vector<8x64xf32> to vector<8x32xf32>
    %435 = vector.extract_strided_slice %433 {offsets = [0, 32], sizes = [8, 32], strides = [1, 1]} : vector<8x64xf32> to vector<8x32xf32>
    %c1_170 = arith.constant 1 : index
    %c0_171 = arith.constant 0 : index
    %c0_172 = arith.constant 0 : index
    %436 = vector.load %arg17[%c1_170, %c0_171, %c0_172] : memref<2x32x32xbf16, #tpu.memory_space<vmem>>, vector<1x32x32xbf16>
    %437 = vector.shape_cast %436 : vector<1x32x32xbf16> to vector<32x32xbf16>
    %c1_173 = arith.constant 1 : index
    %c0_174 = arith.constant 0 : index
    %c0_175 = arith.constant 0 : index
    %438 = vector.load %arg18[%c1_173, %c0_174, %c0_175] : memref<2x1x32xf32, #tpu.memory_space<vmem>>, vector<1x1x32xf32>
    %439 = vector.shape_cast %438 : vector<1x1x32xf32> to vector<1x32xf32>
    %440 = arith.truncf %426 : vector<64x32xf32> to vector<64x32xbf16>
    %441 = arith.truncf %434 : vector<8x32xf32> to vector<8x32xbf16>
    %442 = arith.truncf %435 : vector<8x32xf32> to vector<8x32xbf16>
    %443 = vector.extract_strided_slice %440 {offsets = [0, 0], sizes = [64, 8], strides = [1, 1]} : vector<64x32xbf16> to vector<64x8xbf16>
    %444 = vector.extract_strided_slice %441 {offsets = [0, 0], sizes = [8, 8], strides = [1, 1]} : vector<8x32xbf16> to vector<8x8xbf16>
    %cst_176 = arith.constant dense<0.000000e+00> : vector<64x8xf32>
    %445 = tpu.matmul %443, %444, %cst_176 {dimension_numbers = #tpu.dot_dimension_numbers<[1], [1], [0], [0], [0, 0, 1, 0], [], []>} : vector<64x8xbf16>, vector<8x8xbf16>, vector<64x8xf32> -> vector<64x8xf32>
    %cst_177 = arith.constant dense<0xFF800000> : vector<64xf32>
    %446 = vector.multi_reduction <maximumf>, %445, %cst_177 [1] : vector<64x8xf32> to vector<64xf32>
    %447 = vector.shape_cast %446 : vector<64xf32> to vector<64x1xf32>
    %448 = vector.broadcast %447 : vector<64x1xf32> to vector<64x8xf32>
    %449 = arith.subf %445, %448 : vector<64x8xf32>
    %450 = math.exp %449 : vector<64x8xf32>
    %cst_178 = arith.constant dense<0.000000e+00> : vector<64xf32>
    %451 = vector.multi_reduction <add>, %450, %cst_178 [1] : vector<64x8xf32> to vector<64xf32>
    %452 = vector.shape_cast %451 : vector<64xf32> to vector<64x1xf32>
    %453 = tpu.reciprocal %452 {approx = true} : vector<64x1xf32> -> vector<64x1xf32>
    %454 = vector.broadcast %453 : vector<64x1xf32> to vector<64x8xf32>
    %455 = arith.mulf %450, %454 : vector<64x8xf32>
    %456 = arith.truncf %455 : vector<64x8xf32> to vector<64x8xbf16>
    %457 = vector.extract_strided_slice %442 {offsets = [0, 0], sizes = [8, 8], strides = [1, 1]} : vector<8x32xbf16> to vector<8x8xbf16>
    %cst_179 = arith.constant dense<0.000000e+00> : vector<64x8xf32>
    %458 = tpu.matmul %456, %457, %cst_179 {dimension_numbers = #tpu.dot_dimension_numbers<[1], [0], [0], [1], [0, 0, 1, 1], [], []>} : vector<64x8xbf16>, vector<8x8xbf16>, vector<64x8xf32> -> vector<64x8xf32>
    %459 = vector.extract_strided_slice %440 {offsets = [0, 8], sizes = [64, 8], strides = [1, 1]} : vector<64x32xbf16> to vector<64x8xbf16>
    %460 = vector.extract_strided_slice %441 {offsets = [0, 8], sizes = [8, 8], strides = [1, 1]} : vector<8x32xbf16> to vector<8x8xbf16>
    %cst_180 = arith.constant dense<0.000000e+00> : vector<64x8xf32>
    %461 = tpu.matmul %459, %460, %cst_180 {dimension_numbers = #tpu.dot_dimension_numbers<[1], [1], [0], [0], [0, 0, 1, 0], [], []>} : vector<64x8xbf16>, vector<8x8xbf16>, vector<64x8xf32> -> vector<64x8xf32>
    %cst_181 = arith.constant dense<0xFF800000> : vector<64xf32>
    %462 = vector.multi_reduction <maximumf>, %461, %cst_181 [1] : vector<64x8xf32> to vector<64xf32>
    %463 = vector.shape_cast %462 : vector<64xf32> to vector<64x1xf32>
    %464 = vector.broadcast %463 : vector<64x1xf32> to vector<64x8xf32>
    %465 = arith.subf %461, %464 : vector<64x8xf32>
    %466 = math.exp %465 : vector<64x8xf32>
    %cst_182 = arith.constant dense<0.000000e+00> : vector<64xf32>
    %467 = vector.multi_reduction <add>, %466, %cst_182 [1] : vector<64x8xf32> to vector<64xf32>
    %468 = vector.shape_cast %467 : vector<64xf32> to vector<64x1xf32>
    %469 = tpu.reciprocal %468 {approx = true} : vector<64x1xf32> -> vector<64x1xf32>
    %470 = vector.broadcast %469 : vector<64x1xf32> to vector<64x8xf32>
    %471 = arith.mulf %466, %470 : vector<64x8xf32>
    %472 = arith.truncf %471 : vector<64x8xf32> to vector<64x8xbf16>
    %473 = vector.extract_strided_slice %442 {offsets = [0, 8], sizes = [8, 8], strides = [1, 1]} : vector<8x32xbf16> to vector<8x8xbf16>
    %cst_183 = arith.constant dense<0.000000e+00> : vector<64x8xf32>
    %474 = tpu.matmul %472, %473, %cst_183 {dimension_numbers = #tpu.dot_dimension_numbers<[1], [0], [0], [1], [0, 0, 1, 1], [], []>} : vector<64x8xbf16>, vector<8x8xbf16>, vector<64x8xf32> -> vector<64x8xf32>
    %475 = vector.extract_strided_slice %440 {offsets = [0, 16], sizes = [64, 8], strides = [1, 1]} : vector<64x32xbf16> to vector<64x8xbf16>
    %476 = vector.extract_strided_slice %441 {offsets = [0, 16], sizes = [8, 8], strides = [1, 1]} : vector<8x32xbf16> to vector<8x8xbf16>
    %cst_184 = arith.constant dense<0.000000e+00> : vector<64x8xf32>
    %477 = tpu.matmul %475, %476, %cst_184 {dimension_numbers = #tpu.dot_dimension_numbers<[1], [1], [0], [0], [0, 0, 1, 0], [], []>} : vector<64x8xbf16>, vector<8x8xbf16>, vector<64x8xf32> -> vector<64x8xf32>
    %cst_185 = arith.constant dense<0xFF800000> : vector<64xf32>
    %478 = vector.multi_reduction <maximumf>, %477, %cst_185 [1] : vector<64x8xf32> to vector<64xf32>
    %479 = vector.shape_cast %478 : vector<64xf32> to vector<64x1xf32>
    %480 = vector.broadcast %479 : vector<64x1xf32> to vector<64x8xf32>
    %481 = arith.subf %477, %480 : vector<64x8xf32>
    %482 = math.exp %481 : vector<64x8xf32>
    %cst_186 = arith.constant dense<0.000000e+00> : vector<64xf32>
    %483 = vector.multi_reduction <add>, %482, %cst_186 [1] : vector<64x8xf32> to vector<64xf32>
    %484 = vector.shape_cast %483 : vector<64xf32> to vector<64x1xf32>
    %485 = tpu.reciprocal %484 {approx = true} : vector<64x1xf32> -> vector<64x1xf32>
    %486 = vector.broadcast %485 : vector<64x1xf32> to vector<64x8xf32>
    %487 = arith.mulf %482, %486 : vector<64x8xf32>
    %488 = arith.truncf %487 : vector<64x8xf32> to vector<64x8xbf16>
    %489 = vector.extract_strided_slice %442 {offsets = [0, 16], sizes = [8, 8], strides = [1, 1]} : vector<8x32xbf16> to vector<8x8xbf16>
    %cst_187 = arith.constant dense<0.000000e+00> : vector<64x8xf32>
    %490 = tpu.matmul %488, %489, %cst_187 {dimension_numbers = #tpu.dot_dimension_numbers<[1], [0], [0], [1], [0, 0, 1, 1], [], []>} : vector<64x8xbf16>, vector<8x8xbf16>, vector<64x8xf32> -> vector<64x8xf32>
    %491 = vector.extract_strided_slice %440 {offsets = [0, 24], sizes = [64, 8], strides = [1, 1]} : vector<64x32xbf16> to vector<64x8xbf16>
    %492 = vector.extract_strided_slice %441 {offsets = [0, 24], sizes = [8, 8], strides = [1, 1]} : vector<8x32xbf16> to vector<8x8xbf16>
    %cst_188 = arith.constant dense<0.000000e+00> : vector<64x8xf32>
    %493 = tpu.matmul %491, %492, %cst_188 {dimension_numbers = #tpu.dot_dimension_numbers<[1], [1], [0], [0], [0, 0, 1, 0], [], []>} : vector<64x8xbf16>, vector<8x8xbf16>, vector<64x8xf32> -> vector<64x8xf32>
    %cst_189 = arith.constant dense<0xFF800000> : vector<64xf32>
    %494 = vector.multi_reduction <maximumf>, %493, %cst_189 [1] : vector<64x8xf32> to vector<64xf32>
    %495 = vector.shape_cast %494 : vector<64xf32> to vector<64x1xf32>
    %496 = vector.broadcast %495 : vector<64x1xf32> to vector<64x8xf32>
    %497 = arith.subf %493, %496 : vector<64x8xf32>
    %498 = math.exp %497 : vector<64x8xf32>
    %cst_190 = arith.constant dense<0.000000e+00> : vector<64xf32>
    %499 = vector.multi_reduction <add>, %498, %cst_190 [1] : vector<64x8xf32> to vector<64xf32>
    %500 = vector.shape_cast %499 : vector<64xf32> to vector<64x1xf32>
    %501 = tpu.reciprocal %500 {approx = true} : vector<64x1xf32> -> vector<64x1xf32>
    %502 = vector.broadcast %501 : vector<64x1xf32> to vector<64x8xf32>
    %503 = arith.mulf %498, %502 : vector<64x8xf32>
    %504 = arith.truncf %503 : vector<64x8xf32> to vector<64x8xbf16>
    %505 = vector.extract_strided_slice %442 {offsets = [0, 24], sizes = [8, 8], strides = [1, 1]} : vector<8x32xbf16> to vector<8x8xbf16>
    %cst_191 = arith.constant dense<0.000000e+00> : vector<64x8xf32>
    %506 = tpu.matmul %504, %505, %cst_191 {dimension_numbers = #tpu.dot_dimension_numbers<[1], [0], [0], [1], [0, 0, 1, 1], [], []>} : vector<64x8xbf16>, vector<8x8xbf16>, vector<64x8xf32> -> vector<64x8xf32>
    %507 = tpu.concatenate %458, %474, %490, %506 in 1 : vector<64x8xf32>, vector<64x8xf32>, vector<64x8xf32>, vector<64x8xf32> -> vector<64x32xf32>
    %508 = arith.truncf %507 : vector<64x32xf32> to vector<64x32xbf16>
    %cst_192 = arith.constant dense<0.000000e+00> : vector<64x32xf32>
    %509 = tpu.matmul %508, %437, %cst_192 {dimension_numbers = #tpu.dot_dimension_numbers<[1], [0], [0], [1], [0, 0, 1, 1], [], []>} : vector<64x32xbf16>, vector<32x32xbf16>, vector<64x32xf32> -> vector<64x32xf32>
    %510 = vector.broadcast %439 : vector<1x32xf32> to vector<64x32xf32>
    %511 = arith.addf %509, %510 : vector<64x32xf32>
    %512 = arith.addf %416, %511 : vector<64x32xf32>
    %cst_193 = arith.constant dense<0.000000e+00> : vector<64xf32>
    %513 = vector.multi_reduction <add>, %512, %cst_193 [1] : vector<64x32xf32> to vector<64xf32>
    %514 = vector.shape_cast %513 : vector<64xf32> to vector<64x1xf32>
    %cst_194 = arith.constant 3.200000e+01 : f32
    %515 = vector.broadcast %cst_194 : f32 to vector<64x1xf32>
    %516 = arith.divf %514, %515 : vector<64x1xf32>
    %517 = vector.broadcast %516 : vector<64x1xf32> to vector<64x32xf32>
    %518 = arith.subf %512, %517 : vector<64x32xf32>
    %519 = arith.mulf %518, %518 : vector<64x32xf32>
    %cst_195 = arith.constant dense<0.000000e+00> : vector<64xf32>
    %520 = vector.multi_reduction <add>, %519, %cst_195 [1] : vector<64x32xf32> to vector<64xf32>
    %521 = vector.shape_cast %520 : vector<64xf32> to vector<64x1xf32>
    %cst_196 = arith.constant 3.200000e+01 : f32
    %522 = vector.broadcast %cst_196 : f32 to vector<64x1xf32>
    %523 = arith.divf %521, %522 : vector<64x1xf32>
    %524 = vector.broadcast %516 : vector<64x1xf32> to vector<64x32xf32>
    %525 = arith.subf %512, %524 : vector<64x32xf32>
    %cst_197 = arith.constant 9.99999997E-7 : f32
    %526 = vector.broadcast %cst_197 : f32 to vector<64x1xf32>
    %527 = arith.addf %523, %526 : vector<64x1xf32>
    %528 = math.rsqrt %527 : vector<64x1xf32>
    %529 = vector.broadcast %528 : vector<64x1xf32> to vector<64x32xf32>
    %530 = arith.mulf %525, %529 : vector<64x32xf32>
    %cst_198 = arith.constant 1.000000e+00 : f32
    %531 = vector.broadcast %cst_198 : f32 to vector<1x32xf32>
    %532 = arith.addf %531, %299 : vector<1x32xf32>
    %533 = vector.broadcast %532 : vector<1x32xf32> to vector<64x32xf32>
    %534 = arith.mulf %530, %533 : vector<64x32xf32>
    %535 = vector.broadcast %298 : vector<1x32xf32> to vector<64x32xf32>
    %536 = arith.addf %534, %535 : vector<64x32xf32>
    %537 = arith.truncf %536 : vector<64x32xf32> to vector<64x32xbf16>
    %c1_199 = arith.constant 1 : index
    %c0_200 = arith.constant 0 : index
    %c0_201 = arith.constant 0 : index
    %538 = vector.load %arg19[%c1_199, %c0_200, %c0_201] : memref<2x32x128xbf16, #tpu.memory_space<vmem>>, vector<1x32x128xbf16>
    %539 = vector.shape_cast %538 : vector<1x32x128xbf16> to vector<32x128xbf16>
    %cst_202 = arith.constant dense<0.000000e+00> : vector<64x128xf32>
    %540 = tpu.matmul %537, %539, %cst_202 {dimension_numbers = #tpu.dot_dimension_numbers<[1], [0], [0], [1], [0, 0, 1, 1], [], []>} : vector<64x32xbf16>, vector<32x128xbf16>, vector<64x128xf32> -> vector<64x128xf32>
    %c1_203 = arith.constant 1 : index
    %c0_204 = arith.constant 0 : index
    %c0_205 = arith.constant 0 : index
    %541 = vector.load %arg20[%c1_203, %c0_204, %c0_205] : memref<2x1x128xf32, #tpu.memory_space<vmem>>, vector<1x1x128xf32>
    %542 = vector.shape_cast %541 : vector<1x1x128xf32> to vector<1x128xf32>
    %543 = vector.broadcast %542 : vector<1x128xf32> to vector<64x128xf32>
    %544 = arith.addf %540, %543 : vector<64x128xf32>
    %545 = arith.mulf %544, %544 : vector<64x128xf32>
    %546 = arith.mulf %544, %545 : vector<64x128xf32>
    %cst_206 = arith.constant 4.471500e-02 : f32
    %547 = vector.broadcast %cst_206 : f32 to vector<64x128xf32>
    %548 = arith.mulf %547, %546 : vector<64x128xf32>
    %549 = arith.addf %544, %548 : vector<64x128xf32>
    %cst_207 = arith.constant 0.797884583 : f32
    %550 = vector.broadcast %cst_207 : f32 to vector<64x128xf32>
    %551 = arith.mulf %550, %549 : vector<64x128xf32>
    %552 = math.tanh %551 : vector<64x128xf32>
    %cst_208 = arith.constant 1.000000e+00 : f32
    %553 = vector.broadcast %cst_208 : f32 to vector<64x128xf32>
    %554 = arith.addf %553, %552 : vector<64x128xf32>
    %cst_209 = arith.constant 5.000000e-01 : f32
    %555 = vector.broadcast %cst_209 : f32 to vector<64x128xf32>
    %556 = arith.mulf %555, %554 : vector<64x128xf32>
    %557 = arith.mulf %544, %556 : vector<64x128xf32>
    %558 = arith.truncf %557 : vector<64x128xf32> to vector<64x128xbf16>
    %c1_210 = arith.constant 1 : index
    %c0_211 = arith.constant 0 : index
    %c0_212 = arith.constant 0 : index
    %559 = vector.load %arg21[%c1_210, %c0_211, %c0_212] : memref<2x128x32xbf16, #tpu.memory_space<vmem>>, vector<1x128x32xbf16>
    %560 = vector.shape_cast %559 : vector<1x128x32xbf16> to vector<128x32xbf16>
    %cst_213 = arith.constant dense<0.000000e+00> : vector<64x32xf32>
    %561 = tpu.matmul %558, %560, %cst_213 {dimension_numbers = #tpu.dot_dimension_numbers<[1], [0], [0], [1], [0, 0, 1, 1], [], []>} : vector<64x128xbf16>, vector<128x32xbf16>, vector<64x32xf32> -> vector<64x32xf32>
    %c1_214 = arith.constant 1 : index
    %c0_215 = arith.constant 0 : index
    %c0_216 = arith.constant 0 : index
    %562 = vector.load %arg22[%c1_214, %c0_215, %c0_216] : memref<2x1x32xf32, #tpu.memory_space<vmem>>, vector<1x1x32xf32>
    %563 = vector.shape_cast %562 : vector<1x1x32xf32> to vector<1x32xf32>
    %564 = vector.broadcast %563 : vector<1x32xf32> to vector<64x32xf32>
    %565 = arith.addf %561, %564 : vector<64x32xf32>
    %566 = vector.broadcast %300 : vector<1x32xf32> to vector<64x32xf32>
    %567 = arith.mulf %566, %565 : vector<64x32xf32>
    %568 = arith.addf %512, %567 : vector<64x32xf32>
    %c0_217 = arith.constant 0 : index
    %c0_218 = arith.constant 0 : index
    %569 = vector.load %arg23[%c0_217, %c0_218] : memref<2x32xf32, #tpu.memory_space<vmem>>, vector<2x32xf32>
    %c0_219 = arith.constant 0 : index
    %c0_220 = arith.constant 0 : index
    %c0_221 = arith.constant 0 : index
    %570 = vector.load %arg4[%c0_219, %c0_220, %c0_221] : memref<1x1x32xf32, #tpu.memory_space<vmem>>, vector<1x1x32xf32>
    %571 = vector.shape_cast %570 : vector<1x1x32xf32> to vector<1x32xf32>
    %572 = vector.broadcast %571 : vector<1x32xf32> to vector<2x32xf32>
    %573 = arith.addf %569, %572 : vector<2x32xf32>
    %574 = vector.extract_strided_slice %573 {offsets = [0, 0], sizes = [1, 32], strides = [1, 1]} : vector<2x32xf32> to vector<1x32xf32>
    %575 = vector.extract_strided_slice %573 {offsets = [1, 0], sizes = [1, 32], strides = [1, 1]} : vector<2x32xf32> to vector<1x32xf32>
    %cst_222 = arith.constant dense<0.000000e+00> : vector<64xf32>
    %576 = vector.multi_reduction <add>, %568, %cst_222 [1] : vector<64x32xf32> to vector<64xf32>
    %577 = vector.shape_cast %576 : vector<64xf32> to vector<64x1xf32>
    %cst_223 = arith.constant 3.200000e+01 : f32
    %578 = vector.broadcast %cst_223 : f32 to vector<64x1xf32>
    %579 = arith.divf %577, %578 : vector<64x1xf32>
    %580 = vector.broadcast %579 : vector<64x1xf32> to vector<64x32xf32>
    %581 = arith.subf %568, %580 : vector<64x32xf32>
    %582 = arith.mulf %581, %581 : vector<64x32xf32>
    %cst_224 = arith.constant dense<0.000000e+00> : vector<64xf32>
    %583 = vector.multi_reduction <add>, %582, %cst_224 [1] : vector<64x32xf32> to vector<64xf32>
    %584 = vector.shape_cast %583 : vector<64xf32> to vector<64x1xf32>
    %cst_225 = arith.constant 3.200000e+01 : f32
    %585 = vector.broadcast %cst_225 : f32 to vector<64x1xf32>
    %586 = arith.divf %584, %585 : vector<64x1xf32>
    %587 = vector.broadcast %579 : vector<64x1xf32> to vector<64x32xf32>
    %588 = arith.subf %568, %587 : vector<64x32xf32>
    %cst_226 = arith.constant 9.99999997E-7 : f32
    %589 = vector.broadcast %cst_226 : f32 to vector<64x1xf32>
    %590 = arith.addf %586, %589 : vector<64x1xf32>
    %591 = math.rsqrt %590 : vector<64x1xf32>
    %592 = vector.broadcast %591 : vector<64x1xf32> to vector<64x32xf32>
    %593 = arith.mulf %588, %592 : vector<64x32xf32>
    %cst_227 = arith.constant 1.000000e+00 : f32
    %594 = vector.broadcast %cst_227 : f32 to vector<1x32xf32>
    %595 = arith.addf %594, %575 : vector<1x32xf32>
    %596 = vector.broadcast %595 : vector<1x32xf32> to vector<64x32xf32>
    %597 = arith.mulf %593, %596 : vector<64x32xf32>
    %598 = vector.broadcast %574 : vector<1x32xf32> to vector<64x32xf32>
    %599 = arith.addf %597, %598 : vector<64x32xf32>
    %600 = arith.truncf %599 : vector<64x32xf32> to vector<64x32xbf16>
    %c0_228 = arith.constant 0 : index
    %c0_229 = arith.constant 0 : index
    %601 = vector.load %arg24[%c0_228, %c0_229] : memref<32x32xbf16, #tpu.memory_space<vmem>>, vector<32x32xbf16>
    %cst_230 = arith.constant dense<0.000000e+00> : vector<64x32xf32>
    %602 = tpu.matmul %600, %601, %cst_230 {dimension_numbers = #tpu.dot_dimension_numbers<[1], [0], [0], [1], [0, 0, 1, 1], [], []>} : vector<64x32xbf16>, vector<32x32xbf16>, vector<64x32xf32> -> vector<64x32xf32>
    %c0_231 = arith.constant 0 : index
    %c0_232 = arith.constant 0 : index
    %603 = vector.load %arg25[%c0_231, %c0_232] : memref<1x32xf32, #tpu.memory_space<vmem>>, vector<1x32xf32>
    %604 = vector.broadcast %603 : vector<1x32xf32> to vector<64x32xf32>
    %605 = arith.addf %602, %604 : vector<64x32xf32>
    %c0_233 = arith.constant 0 : index
    %c0_234 = arith.constant 0 : index
    %c0_235 = arith.constant 0 : index
    %606 = vector.load %arg26[%c0_233, %c0_234, %c0_235] : memref<1x64x32xf32, #tpu.memory_space<vmem>>, vector<1x64x32xf32>
    %607 = vector.shape_cast %606 : vector<1x64x32xf32> to vector<64x32xf32>
    %608 = vector.shape_cast %605 : vector<64x32xf32> to vector<1x64x32xf32>
    tpu.vector_store %arg26[%c0_233, %c0_234, %c0_235], %608 {strides = array<i32>} : memref<1x64x32xf32, #tpu.memory_space<vmem>>, vector<1x64x32xf32>,
    return
  }
  func.func @transform_0(%arg0: i32) -> (i32, i32, i32) {
    %c0_i32 = arith.constant 0 : i32
    %c0_i32_0 = arith.constant 0 : i32
    %c0_i32_1 = arith.constant 0 : i32
    return %arg0, %c0_i32, %c0_i32_0 : i32, i32, i32
  }
  func.func @transform_1(%arg0: i32) -> (i32, i32, i32) {
    %c0_i32 = arith.constant 0 : i32
    %c0_i32_0 = arith.constant 0 : i32
    %c0_i32_1 = arith.constant 0 : i32
    return %arg0, %c0_i32, %c0_i32_0 : i32, i32, i32
  }
  func.func @transform_2(%arg0: i32) -> (i32, i32, i32) {
    %c0_i32 = arith.constant 0 : i32
    %c0_i32_0 = arith.constant 0 : i32
    %c0_i32_1 = arith.constant 0 : i32
    return %arg0, %c0_i32, %c0_i32_0 : i32, i32, i32
  }
  func.func @transform_3(%arg0: i32) -> (i32, i32, i32) {
    %c0_i32 = arith.constant 0 : i32
    %c0_i32_0 = arith.constant 0 : i32
    %c0_i32_1 = arith.constant 0 : i32
    return %arg0, %c0_i32, %c0_i32_0 : i32, i32, i32
  }
  func.func @transform_4(%arg0: i32) -> (i32, i32) {
    %c0_i32 = arith.constant 0 : i32
    %c0_i32_0 = arith.constant 0 : i32
    %c0_i32_1 = arith.constant 0 : i32
    return %c0_i32, %c0_i32_0 : i32, i32
  }
  func.func @transform_5(%arg0: i32) -> (i32, i32) {
    %c0_i32 = arith.constant 0 : i32
    %c0_i32_0 = arith.constant 0 : i32
    %c0_i32_1 = arith.constant 0 : i32
    return %c0_i32, %c0_i32_0 : i32, i32
  }
  func.func @transform_6(%arg0: i32) -> (i32, i32) {
    %c0_i32 = arith.constant 0 : i32
    %c0_i32_0 = arith.constant 0 : i32
    %c0_i32_1 = arith.constant 0 : i32
    return %c0_i32, %c0_i32_0 : i32, i32
  }
  func.func @transform_7(%arg0: i32) -> (i32, i32, i32) {
    %c0_i32 = arith.constant 0 : i32
    %c0_i32_0 = arith.constant 0 : i32
    %c0_i32_1 = arith.constant 0 : i32
    %c0_i32_2 = arith.constant 0 : i32
    return %c0_i32, %c0_i32_0, %c0_i32_1 : i32, i32, i32
  }
  func.func @transform_8(%arg0: i32) -> (i32, i32, i32) {
    %c0_i32 = arith.constant 0 : i32
    %c0_i32_0 = arith.constant 0 : i32
    %c0_i32_1 = arith.constant 0 : i32
    %c0_i32_2 = arith.constant 0 : i32
    return %c0_i32, %c0_i32_0, %c0_i32_1 : i32, i32, i32
  }
  func.func @transform_9(%arg0: i32) -> (i32, i32, i32) {
    %c0_i32 = arith.constant 0 : i32
    %c0_i32_0 = arith.constant 0 : i32
    %c0_i32_1 = arith.constant 0 : i32
    %c0_i32_2 = arith.constant 0 : i32
    return %c0_i32, %c0_i32_0, %c0_i32_1 : i32, i32, i32
  }
  func.func @transform_10(%arg0: i32) -> (i32, i32, i32) {
    %c0_i32 = arith.constant 0 : i32
    %c0_i32_0 = arith.constant 0 : i32
    %c0_i32_1 = arith.constant 0 : i32
    %c0_i32_2 = arith.constant 0 : i32
    return %c0_i32, %c0_i32_0, %c0_i32_1 : i32, i32, i32
  }
  func.func @transform_11(%arg0: i32) -> (i32, i32, i32) {
    %c0_i32 = arith.constant 0 : i32
    %c0_i32_0 = arith.constant 0 : i32
    %c0_i32_1 = arith.constant 0 : i32
    %c0_i32_2 = arith.constant 0 : i32
    return %c0_i32, %c0_i32_0, %c0_i32_1 : i32, i32, i32
  }
  func.func @transform_12(%arg0: i32) -> (i32, i32, i32) {
    %c0_i32 = arith.constant 0 : i32
    %c0_i32_0 = arith.constant 0 : i32
    %c0_i32_1 = arith.constant 0 : i32
    %c0_i32_2 = arith.constant 0 : i32
    return %c0_i32, %c0_i32_0, %c0_i32_1 : i32, i32, i32
  }
  func.func @transform_13(%arg0: i32) -> (i32, i32, i32) {
    %c0_i32 = arith.constant 0 : i32
    %c0_i32_0 = arith.constant 0 : i32
    %c0_i32_1 = arith.constant 0 : i32
    %c0_i32_2 = arith.constant 0 : i32
    return %c0_i32, %c0_i32_0, %c0_i32_1 : i32, i32, i32
  }
  func.func @transform_14(%arg0: i32) -> (i32, i32, i32) {
    %c0_i32 = arith.constant 0 : i32
    %c0_i32_0 = arith.constant 0 : i32
    %c0_i32_1 = arith.constant 0 : i32
    %c0_i32_2 = arith.constant 0 : i32
    return %c0_i32, %c0_i32_0, %c0_i32_1 : i32, i32, i32
  }
  func.func @transform_15(%arg0: i32) -> (i32, i32, i32) {
    %c0_i32 = arith.constant 0 : i32
    %c0_i32_0 = arith.constant 0 : i32
    %c0_i32_1 = arith.constant 0 : i32
    %c0_i32_2 = arith.constant 0 : i32
    return %c0_i32, %c0_i32_0, %c0_i32_1 : i32, i32, i32
  }
  func.func @transform_16(%arg0: i32) -> (i32, i32, i32) {
    %c0_i32 = arith.constant 0 : i32
    %c0_i32_0 = arith.constant 0 : i32
    %c0_i32_1 = arith.constant 0 : i32
    %c0_i32_2 = arith.constant 0 : i32
    return %c0_i32, %c0_i32_0, %c0_i32_1 : i32, i32, i32
  }
  func.func @transform_17(%arg0: i32) -> (i32, i32, i32) {
    %c0_i32 = arith.constant 0 : i32
    %c0_i32_0 = arith.constant 0 : i32
    %c0_i32_1 = arith.constant 0 : i32
    %c0_i32_2 = arith.constant 0 : i32
    return %c0_i32, %c0_i32_0, %c0_i32_1 : i32, i32, i32
  }
  func.func @transform_18(%arg0: i32) -> (i32, i32, i32) {
    %c0_i32 = arith.constant 0 : i32
    %c0_i32_0 = arith.constant 0 : i32
    %c0_i32_1 = arith.constant 0 : i32
    %c0_i32_2 = arith.constant 0 : i32
    return %c0_i32, %c0_i32_0, %c0_i32_1 : i32, i32, i32
  }
  func.func @transform_19(%arg0: i32) -> (i32, i32, i32) {
    %c0_i32 = arith.constant 0 : i32
    %c0_i32_0 = arith.constant 0 : i32
    %c0_i32_1 = arith.constant 0 : i32
    %c0_i32_2 = arith.constant 0 : i32
    return %c0_i32, %c0_i32_0, %c0_i32_1 : i32, i32, i32
  }
  func.func @transform_20(%arg0: i32) -> (i32, i32, i32) {
    %c0_i32 = arith.constant 0 : i32
    %c0_i32_0 = arith.constant 0 : i32
    %c0_i32_1 = arith.constant 0 : i32
    %c0_i32_2 = arith.constant 0 : i32
    return %c0_i32, %c0_i32_0, %c0_i32_1 : i32, i32, i32
  }
  func.func @transform_21(%arg0: i32) -> (i32, i32, i32) {
    %c0_i32 = arith.constant 0 : i32
    %c0_i32_0 = arith.constant 0 : i32
    %c0_i32_1 = arith.constant 0 : i32
    %c0_i32_2 = arith.constant 0 : i32
    return %c0_i32, %c0_i32_0, %c0_i32_1 : i32, i32, i32
  }
  func.func @transform_22(%arg0: i32) -> (i32, i32) {
    %c0_i32 = arith.constant 0 : i32
    %c0_i32_0 = arith.constant 0 : i32
    %c0_i32_1 = arith.constant 0 : i32
    return %c0_i32, %c0_i32_0 : i32, i32
  }
  func.func @transform_23(%arg0: i32) -> (i32, i32) {
    %c0_i32 = arith.constant 0 : i32
    %c0_i32_0 = arith.constant 0 : i32
    %c0_i32_1 = arith.constant 0 : i32
    return %c0_i32, %c0_i32_0 : i32, i32
  }
  func.func @transform_24(%arg0: i32) -> (i32, i32) {
    %c0_i32 = arith.constant 0 : i32
    %c0_i32_0 = arith.constant 0 : i32
    %c0_i32_1 = arith.constant 0 : i32
    return %c0_i32, %c0_i32_0 : i32, i32
  }
  func.func @transform_25(%arg0: i32) -> (i32, i32, i32) {
    %c0_i32 = arith.constant 0 : i32
    %c0_i32_0 = arith.constant 0 : i32
    %c0_i32_1 = arith.constant 0 : i32
    return %arg0, %c0_i32, %c0_i32_0 : i32, i32, i32
  }
}

</mosaic_0001>

<bundles_post_ra>
// kernel: pixart_dit_forward.1
= control target key start
LH: loop header
LB: loop body
LE: loop exit
PB: predicated region body
PF: predicated region fallthrough
CT: control target
= control target key end

     0   :  { %s10806_s29 = smov 0   ;;  %s13561_s0 = inlined_call_operand.vmem [shape: f32[2,64,16], index: 0, kind: input, shape index: {}]   ;;  %s13562_s1 = inlined_call_operand.vmem [shape: f32[2,6,32], index: 1, kind: input, shape index: {}]   ;;  %s13563_s2 = inlined_call_operand.vmem [shape: f32[2,8,32], index: 2, kind: input, shape index: {}]   ;;  %s13564_s3 = inlined_call_operand.vmem [shape: f32[2,1,32], index: 3, kind: input, shape index: {}]   ;;  %s13565_s4 = inlined_call_operand.vmem [shape: bf16[16,32], index: 4, kind: input, shape index: {}]   ;;  %s13566_s5 = inlined_call_operand.vmem [shape: f32[1,32], index: 5, kind: input, shape index: {}]   ;;  %s13567_s6 = inlined_call_operand.vmem [shape: f32[64,32], index: 6, kind: input, shape index: {}]   ;;  %s13568_s7 = inlined_call_operand.vmem [shape: f32[2,6,32], index: 7, kind: input, shape index: {}]   ;;  %s13569_s8 = inlined_call_operand.vmem [shape: bf16[2,32,96], index: 8, kind: input, shape index: {}]   ;;  %s13570_s9 = inlined_call_operand.vmem [shape: f32[2,1,96], index: 9, kind: input, shape index: {}]   ;;  %s13571_s10 = inlined_call_operand.vmem [shape: bf16[2,32,32], index: 10, kind: input, shape index: {}]   ;;  %s13572_s11 = inlined_call_operand.vmem [shape: f32[2,1,32], index: 11, kind: input, shape index: {}]   ;;  %s13573_s12 = inlined_call_operand.vmem [shape: bf16[2,32,32], index: 12, kind: input, shape index: {}]   ;;  %s13574_s13 = inlined_call_operand.vmem [shape: f32[2,1,32], index: 13, kind: input, shape index: {}]   ;;  %s13575_s14 = inlined_call_operand.vmem [shape: bf16[2,32,64], index: 14, kind: input, shape index: {}]   ;;  %s13576_s15 = inlined_call_operand.vmem [shape: f32[2,1,64], index: 15, kind: input, shape index: {}]   ;;  %s13577_s16 = inlined_call_operand.vmem [shape: bf16[2,32,32], index: 16, kind: input, shape index: {}]   ;;  %s13578_s17 = inlined_call_operand.vmem [shape: f32[2,1,32], index: 17, kind: input, shape index: {}]   ;;  %s13579_s18 = inlined_call_operand.vmem [shape: bf16[2,32,128], index: 18, kind: input, shape index: {}]   ;;  %s13580_s19 = inlined_call_operand.vmem [shape: f32[2,1,128], index: 19, kind: input, shape index: {}]   ;;  %s13581_s20 = inlined_call_operand.vmem [shape: bf16[2,128,32], index: 20, kind: input, shape index: {}]   ;;  %s13582_s21 = inlined_call_operand.vmem [shape: f32[2,1,32], index: 21, kind: input, shape index: {}]   ;;  %s13583_s22 = inlined_call_operand.vmem [shape: f32[2,32], index: 22, kind: input, shape index: {}]   ;;  %s13584_s23 = inlined_call_operand.vmem [shape: bf16[32,32], index: 23, kind: input, shape index: {}]   ;;  %s13585_s24 = inlined_call_operand.vmem [shape: f32[1,32], index: 24, kind: input, shape index: {}]   ;;  %s13586_s25 = inlined_call_operand.vmem [shape: f32[2,64,32], index: 25, kind: output, shape index: {}]  }
   0x1   :  { %13638 = sst [smem:[#allocation7_spill]] %s13561_s0 }
   0x2   :  { %13639 = sst [smem:[#allocation8_spill]] %s13562_s1 }
   0x3   :  { %13640 = sst [smem:[#allocation9_spill]] %s13563_s2 }
   0x4   :  { %13641 = sst [smem:[#allocation10_spill]] %s13564_s3 }
   0x5   :  { %13642 = sst [smem:[#allocation11_spill]] %s13565_s4 }
   0x6   :  { %13643 = sst [smem:[#allocation12_spill]] %s13566_s5 }
   0x7   :  { %13644 = sst [smem:[#allocation13_spill]] %s13567_s6 }
   0x8   :  { %13645 = sst [smem:[#allocation14_spill]] %s13568_s7 }
   0x9   :  { %13646 = sst [smem:[#allocation15_spill]] %s13569_s8 }
   0xa   :  { %13647 = sst [smem:[#allocation16_spill]] %s13570_s9 }
   0xb   :  { %13648 = sst [smem:[#allocation17_spill]] %s13577_s16 }
   0xc   :  { %13649 = sst [smem:[#allocation18_spill]] %s13578_s17 }
   0xd   :  { %13650 = sst [smem:[#allocation19_spill]] %s13579_s18 }
   0xe   :  { %13651 = sst [smem:[#allocation20_spill]] %s13583_s22 }
   0xf   :  { %13652 = sst [smem:[#allocation21_spill]] %s13584_s23 }
  0x10   :  { %13653 = sst [smem:[#allocation22_spill]] %s13585_s24 }
  0x11   :  { %13654 = sst [smem:[#allocation23_spill]] %s13586_s25 }
  0x12 LB: > { %13655 = sst [smem:[#allocation2_spill]] %s10658_s29  ;;  %s8432_s2 = sadd.s32 4294967295, %s10658_s29   ;;  %s10658_s29 = sphi %s10806_s29, %s35_s29  }
  0x13   : > { %p8436_p0 = scmp.ge.s32.totalorder %s10658_s29, 1  ;;  %p713_p1 = scmp.lt.s32.totalorder %s10658_s29, 3 }
  0x15   : > { %p714_p2 = pnand %p8436_p0, %p713_p1 }
  0x17   : > { %717 = sbr.rel (%p714_p2) target bundleno = 12022 (0x2ef6), region = 120 }
  0x1c   : > { %s13656_s7 = sld [smem:[#allocation11_spill]]  ;;  %p792_p3 = scmp.lt.s32.totalorder %s8432_s2, 1  ;;  %vm841_vm0 = vcmask 130048   ;;  %vm940_vm1 = vcmask 261120   ;;  %vm1208_vm2 = vcmask 64512   ;;  %vm1298_vm3 = vcmask 523264  }
  0x1d   : > { %s13658_s8 = sld [smem:[#allocation7_spill]]  ;;  %s13612_s0 = smov 96   ;;  %vm2454_vm4 = vcmask 195584   ;;  %vm10675_vm5 = vmmov 0   ;;  %vm2957_vm6 = vcmask 1043456  }
  0x1e   : > { %s13720_s2 = smov (!%p792_p3, %s8432_s2), 1  ;;  %s13659_s9 = sld [smem:[#allocation12_spill]] }
  0x1f   : > { %13657 = sst [smem:[#allocation3_spill]] %s13720_s2  ;;  %s13591_s3 = sshll.u32 %s13720_s2, 6 }
  0x20   : > { %s13660_s6 = sld [smem:[#allocation13_spill]]  ;;  %s13606_s26 = smov 88  }
  0x21   : > { %s13662_s30 = sld [smem:[#allocation8_spill]]  ;;  %s13622_s1 = smov 120  }
  0x22   : > { %v9984_v0 = vld [vmem:[%s13656_s7] sm:$0xff]   ;;  %s13666_s5 = sld [smem:[#allocation16_spill]]  ;;  %s13592_s4 = smov 56  }
  0x23   : > { %9042 = vmatprep.subr.bf16.mxu0 %v9984_v0  ;;  %s796_s27 = scalar_lea.vmem %s13658_s8, %s13591_s3  ;;  %s13663_s8 = sld [smem:[#allocation14_spill]] }
  0x24   : > { %9043 = vmatpush3.bf16.msra.mxu0 %v9984_v0  ;;  %v814_v1 = vld [vmem:[%s796_s27] sm:$0xff]  ;;  %v815_v2 = vld [vmem:[%s796_s27 + $0x8] sm:$0xff]  ;;  %v816_v4 = vld [vmem:[%s796_s27 + $0x10] sm:$0xff]  ;;  %s13602_s28 = smov 80   ;;  %s13616_s3 = smov 112  }
  0x25   : > { %v822_v3 = vpack.c.bf16 %v815_v2, %v814_v1  ;;  %v817_v5 = vld [vmem:[%s796_s27 + $0x18] sm:$0xff]  ;;  %v818_v7 = vld [vmem:[%s796_s27 + $0x20] sm:$0xff]  ;;  %v819_v8 = vld [vmem:[%s796_s27 + $0x28] sm:$0xff]  ;;  %s13681_s16 = sld [smem:[#allocation17_spill]]  ;;  %s13682_s23 = smov 24  }
  0x26   : > { %v823_v6 = vpack.c.bf16 %v817_v5, %v816_v4  ;;  %v824_v9 = vpack.c.bf16 %v819_v8, %v818_v7  ;;  %v820_v10 = vld [vmem:[%s796_s27 + $0x30] sm:$0xff]  ;;  %v821_v11 = vld [vmem:[%s796_s27 + $0x38] sm:$0xff]  ;;  %v8443_v13 = vld [vmem:[%s13659_s9] ss:$0 sm:$0xff]  ;;  %s13661_s27 = sld [smem:[#allocation15_spill]]  ;;  %s8439_s9 = sshll.u32 %s13720_s2, 3 }
  0x27   : > { %9044 = vmatprep.mubr.msk.bf16.mxu0 %vm841_vm0, %v822_v3  ;;  %v825_v12 = vpack.c.bf16 %v821_v11, %v820_v10  ;;  %v921_v15 = vld [vmem:[%s13660_s6 + $0x10] sm:$0xff]  ;;  %v919_v18 = vld [vmem:[%s13660_s6] sm:$0xff]  ;;  %v922_v22 = vld [vmem:[%s13660_s6 + $0x18] sm:$0xff]  ;;  %s10948_s7 = scalar_lea.vmem %s13662_s30, %s8439_s9  ;;  %s13596_s30 = smov 64  }
  0x28   : > { %9045 = vmatmul.mubr.msk.bf16.vlgmr.msra.gmra.mxu0 %vm841_vm0, %v823_v6  ;;  %v920_v27 = vld [vmem:[%s13660_s6 + $0x8] sm:$0xff]  ;;  %v923_v35 = vld [vmem:[%s13660_s6 + $0x20] sm:$0xff]  ;;  %v925_v39 = vld [vmem:[%s13660_s6 + $0x30] sm:$0xff]  ;;  %s13683_s17 = sld [smem:[#allocation18_spill]]  ;;  %s13688_s24 = smov 64  }
  0x29   : > { %9048 = vmatprep.mubr.msk.bf16.mxu0 %vm841_vm0, %v824_v9  ;;  %v924_v43 = vld [vmem:[%s13660_s6 + $0x28] sm:$0xff]  ;;  %v926_v48 = vld [vmem:[%s13660_s6 + $0x38] sm:$0xff]  ;;  %s13684_s18 = sld [smem:[#allocation19_spill]]  ;;  %s13690_s2 = smov 48  }
  0x2a   : > { %s13709_s22 = sld [smem:[#allocation3_spill]] }
  0x30   : > { %9049 = vmatmul.mubr.msk.bf16.gmra.mxu0 %vm841_vm0, %v825_v12  ;;  %s13716_s25 = sshll.u32 %s13709_s22, 6 }
  0xe8   : > { %v9046_v14 = vpop.f32.mrf.mxu0 }
  0xe9   : > { %v897_v16 = vadd.f32 %v9046_v14, %v8443_v13 }
  0xea   : > { %v888_v17 = vpop.f32.mrf.mxu0 }
  0xeb   : > { %v10838_v19 = vadd.f32 %v921_v15, %v897_v16  ;;  %v889_v20 = vadd.f32 %v8443_v13, %v888_v17 }
  0xec   : > { %v9047_v21 = vpop.f32.mrf.mxu0 }
  0xed   : > { %v10843_v23 = vadd.f32 %v919_v18, %v889_v20  ;;  %v900_v24 = vadd.f32 %v9047_v21, %v8443_v13  ;;  %v947_v25 = vsel %vm940_vm1, %v10838_v19, 0.0 }
  0xee   : > { %948 = vadd.xlane.f32.xlu1 %v947_v25  ;;  %v891_v26 = vpop.f32.mrf.mxu0 }
  0xef   : > { %v10850_v28 = vadd.f32 %v922_v22, %v900_v24  ;;  %v892_v29 = vadd.f32 %v8443_v13, %v891_v26  ;;  %v941_v30 = vsel %vm940_vm1, %v10843_v23, 0.0 }
  0xf0   : > { %v9050_v31 = vpop.f32.mrf.mxu0  ;;  %942 = vadd.xlane.f32.xlu0 %v941_v30 }
  0xf1   : > { %v10854_v32 = vadd.f32 %v920_v27, %v892_v29  ;;  %v950_v33 = vsel %vm940_vm1, %v10850_v28, 0.0  ;;  %v913_v36 = vadd.f32 %v9050_v31, %v8443_v13 }
  0xf2   : > { %951 = vadd.xlane.f32.xlu1 %v950_v33  ;;  %v904_v34 = vpop.f32.mrf.mxu0 }
  0xf3   : > { %v905_v37 = vadd.f32 %v8443_v13, %v904_v34  ;;  %v944_v38 = vsel %vm940_vm1, %v10854_v32, 0.0  ;;  %v10871_v44 = vadd.f32 %v925_v39, %v913_v36  ;;  %v9985_v34 = vld [vmem:[%s13661_s27 + $0x8] sm:$0xff]  }
  0xf4   : > { %v9051_v40 = vpop.f32.mrf.mxu0  ;;  %945 = vadd.xlane.f32.xlu0 %v944_v38  ;;  %9052 = vmatprep.subr.bf16.mxu1 %v9985_v34 }
  0xf5   : > { %v10866_v41 = vadd.f32 %v923_v35, %v905_v37  ;;  %v916_v45 = vadd.f32 %v9051_v40, %v8443_v13  ;;  %v959_v52 = vsel %vm940_vm1, %v10871_v44, 0.0  ;;  %v9986_v35 = vld [vmem:[%s13661_s27] sm:$0xff]   ;;  %9053 = vmatpush3.bf16.msra.mxu1 %v9985_v34 }
  0xf6   : > { %v907_v42 = vpop.f32.mrf.mxu0  ;;  %9054 = vmatprep.subr.bf16.mxu1 %v9986_v35 }
  0xf7   : > { %v908_v46 = vadd.f32 %v8443_v13, %v907_v42  ;;  %v953_v47 = vsel %vm940_vm1, %v10866_v41, 0.0  ;;  %v10880_v50 = vadd.f32 %v926_v48, %v916_v45  ;;  %v1047_v45 = vlaneseq  ;;  %v935_v48 = vld [vmem:[%s10948_s7] sm:$0x3f] }
  0xf8   : > { %954 = vadd.xlane.f32.xlu0 %v953_v47 }
  0xf9   : > { %v10878_v49 = vadd.f32 %v924_v43, %v908_v46  ;;  %v962_v53 = vsel %vm940_vm1, %v10880_v50, 0.0  ;;  %9055 = vmatpush3.bf16.msra.mxu1 %v9986_v35 }
  0xfb   : > { %v956_v51 = vsel %vm940_vm1, %v10878_v49, 0.0 }
  0xfc   : > { %957 = vadd.xlane.f32.xlu1 %v956_v51  ;;  %960 = vadd.xlane.f32.xlu0 %v959_v52  ;;  %v938_v51 = vld [vmem:[%s13663_s8] sm:$0x3f] }
 0x100   : > { %963 = vadd.xlane.f32.xlu1 %v962_v53 }
 0x177   : > { %v949_v54 = vpop.xlane.xlu1 %948 }
 0x178   : > { %v968_v55 = vmul.f32 0.03125, %v949_v54 }
 0x179   : > { %v943_v56 = vpop.xlane.xlu0 %942 }
 0x17a   : > { %v966_v57 = vmul.f32 0.03125, %v943_v56  ;;  %v10889_v59 = vsub.f32 %v10838_v19, %v968_v55  ;;  %v10954_v56 = vadd.f32 %v938_v51, %v935_v48 }
 0x17b   : > { %v952_v58 = vpop.xlane.xlu1 %951 }
 0x17c   : > { %v10892_v60 = vsub.f32 %v10843_v23, %v966_v57  ;;  %v969_v61 = vmul.f32 0.03125, %v952_v58  ;;  %v984_v4 = vmul.f32 %v10889_v59, %v10889_v59  ;;  %v10956_v57 = vshrl.u32 %v1047_v45, 7 }
 0x17d   : > { %v946_v62 = vpop.xlane.xlu0 %945 }
 0x17e   : > { %v967_v63 = vmul.f32 0.03125, %v946_v62  ;;  %v982_v0 = vmul.f32 %v10892_v60, %v10892_v60  ;;  %v10897_v1 = vsub.f32 %v10850_v28, %v969_v61  ;;  %v996_v9 = vsel %vm940_vm1, %v984_v4, 0.0 }
 0x17f   : > { %v10959_v4 = vsub.s32 1, %v10956_v57 }
 0x180   : > { %v10900_v2 = vsub.f32 %v10854_v32, %v967_v63  ;;  %v990_v3 = vsel %vm940_vm1, %v982_v0, 0.0  ;;  %v985_v11 = vmul.f32 %v10897_v1, %v10897_v1 }
 0x181   : > { %991 = vadd.xlane.f32.xlu0 %v990_v3  ;;  %v955_v5 = vpop.xlane.xlu0 %954  ;;  %13664 = vst [vmem:[#allocation4_spill] sm:$0xff] %v10959_v4 }
 0x182   : > { %v970_v6 = vmul.f32 0.03125, %v955_v5  ;;  %v983_v7 = vmul.f32 %v10900_v2, %v10900_v2  ;;  %v999_v20 = vsel %vm940_vm1, %v985_v11, 0.0 }
 0x184   : > { %v10908_v8 = vsub.f32 %v10866_v41, %v970_v6  ;;  %v993_v10 = vsel %vm940_vm1, %v983_v7, 0.0  ;;  %v10962_v7 = vadd.f32 1.0, %v10954_v56 }
 0x185   : > { %v958_v12 = vpop.xlane.xlu1 %957  ;;  %997 = vadd.xlane.f32.xlu0 %v996_v9  ;;  %994 = vadd.xlane.f32.xlu1 %v993_v10  ;;  %v961_v13 = vpop.xlane.xlu0 %960 }
 0x186   : > { %v971_v14 = vmul.f32 0.03125, %v958_v12  ;;  %v972_v15 = vmul.f32 0.03125, %v961_v13  ;;  %v986_v16 = vmul.f32 %v10908_v8, %v10908_v8  ;;  %v10965_v12 = vsub.s32 0, %v10956_v57 }
 0x188   : > { %v10917_v17 = vsub.f32 %v10878_v49, %v971_v14  ;;  %v10920_v18 = vsub.f32 %v10871_v44, %v972_v15  ;;  %v1002_v21 = vsel %vm940_vm1, %v986_v16, 0.0  ;;  %13665 = vst [vmem:[#allocation5_spill] sm:$0xff] %v10965_v12  ;;  %v1050_v15 = vrot.slane %v10962_v7, %v10959_v4 }
 0x189   : > { %v964_v22 = vpop.xlane.xlu1 %963  ;;  %1000 = vadd.xlane.f32.xlu1 %v999_v20  ;;  %1003 = vadd.xlane.f32.xlu0 %v1002_v21 }
 0x18a   : > { %v973_v24 = vmul.f32 0.03125, %v964_v22  ;;  %v987_v25 = vmul.f32 %v10917_v17, %v10917_v17  ;;  %v988_v26 = vmul.f32 %v10920_v18, %v10920_v18 }
 0x18c   : > { %v10929_v27 = vsub.f32 %v10880_v50, %v973_v24  ;;  %v1005_v29 = vsel %vm940_vm1, %v987_v25, 0.0  ;;  %v1008_v30 = vsel %vm940_vm1, %v988_v26, 0.0  ;;  %v1062_v24 = vrot.slane %v10954_v56, %v10965_v12 }
 0x18d   : > { %1006 = vadd.xlane.f32.xlu1 %v1005_v29  ;;  %1009 = vadd.xlane.f32.xlu0 %v1008_v30 }
 0x18e   : > { %v989_v31 = vmul.f32 %v10929_v27, %v10929_v27 }
 0x190   : > { %v1011_v33 = vsel %vm940_vm1, %v989_v31, 0.0 }
 0x191   : > { %1012 = vadd.xlane.f32.xlu1 %v1011_v33 }
 0x20a   : > { %v992_v36 = vpop.xlane.xlu0 %991 }
 0x20b   : > { %v1014_v37 = vmul.f32 0.03125, %v992_v36 }
 0x20d   : > { %v1022_v38 = vadd.f32 1e-06, %v1014_v37 }
 0x20e   : > { %v995_v39 = vpop.xlane.xlu1 %994  ;;  %v998_v40 = vpop.xlane.xlu0 %997 }
 0x20f   : > { %10027 = vrsqrt.f32 %v1022_v38  ;;  %v1015_v42 = vmul.f32 0.03125, %v995_v39  ;;  %v1016_v43 = vmul.f32 0.03125, %v998_v40 }
 0x211   : > { %v1023_v46 = vadd.f32 1e-06, %v1015_v42  ;;  %v1024_v47 = vadd.f32 1e-06, %v1016_v43 }
 0x212   : > { %v1001_v52 = vpop.xlane.xlu1 %1000  ;;  %v1004_v53 = vpop.xlane.xlu0 %1003 }
 0x213   : > { %10029 = vrsqrt.f32 %v1023_v46  ;;  %v1017_v54 = vmul.f32 0.03125, %v1001_v52  ;;  %v1018_v55 = vmul.f32 0.03125, %v1004_v53 }
 0x214   : > { %10031 = vrsqrt.f32 %v1024_v47 }
 0x215   : > { %v1025_v58 = vadd.f32 1e-06, %v1017_v54  ;;  %v1026_v61 = vadd.f32 1e-06, %v1018_v55 }
 0x216   : > { %v1007_v62 = vpop.xlane.xlu1 %1006  ;;  %v1010_v63 = vpop.xlane.xlu0 %1009 }
 0x217   : > { %10033 = vrsqrt.f32 %v1025_v58  ;;  %v1019_v0 = vmul.f32 0.03125, %v1007_v62  ;;  %v1020_v3 = vmul.f32 0.03125, %v1010_v63  ;;  %v8449_v58 = vld [vmem:[%s13666_s5] ss:$0 sm:$0xff] }
 0x218   : > { %10035 = vrsqrt.f32 %v1026_v61 }
 0x219   : > { %v1027_v5 = vadd.f32 1e-06, %v1019_v0  ;;  %v1028_v6 = vadd.f32 1e-06, %v1020_v3 }
 0x21a   : > { %v1013_v9 = vpop.xlane.xlu1 %1012 }
 0x21b   : > { %10037 = vrsqrt.f32 %v1027_v5  ;;  %v1021_v10 = vmul.f32 0.03125, %v1013_v9 }
 0x21c   : > { %v10028_v11 = vpop.eup %10027  ;;  %10039 = vrsqrt.f32 %v1028_v6 }
 0x21d   : > { %v1029_v13 = vadd.f32 1e-06, %v1021_v10  ;;  %v1038_v14 = vmul.f32 %v10028_v11, %v10892_v60 }
 0x21f   : > { %10041 = vrsqrt.f32 %v1029_v13  ;;  %v1051_v22 = vmul.f32 %v1050_v15, %v1038_v14 }
 0x220   : > { %v10030_v16 = vpop.eup %10029 }
 0x221   : > { %v10032_v20 = vpop.eup %10031  ;;  %v1039_v21 = vmul.f32 %v10030_v16, %v10900_v2  ;;  %v1063_v31 = vadd.f32 %v1062_v24, %v1051_v22 }
 0x222   : > { %v1040_v25 = vmul.f32 %v10032_v20, %v10889_v59 }
 0x223   : > { %v1052_v26 = vmul.f32 %v1050_v15, %v1039_v21 }
 0x224   : > { %v10034_v29 = vpop.eup %10033  ;;  %v1053_v34 = vmul.f32 %v1050_v15, %v1040_v25 }
 0x225   : > { %v10036_v30 = vpop.eup %10035  ;;  %v1064_v33 = vadd.f32 %v1062_v24, %v1052_v26  ;;  %v1041_v60 = vmul.f32 %v10034_v29, %v10897_v1 }
 0x226   : > { %v1042_v35 = vmul.f32 %v10036_v30, %v10908_v8  ;;  %v1065_v39 = vadd.f32 %v1062_v24, %v1053_v34 }
 0x227   : > { %v1071_v36 = vpack.c.bf16 %v1064_v33, %v1063_v31  ;;  %v1054_v37 = vmul.f32 %v1050_v15, %v1041_v60 }
 0x228   : > { %v10038_v38 = vpop.eup %10037  ;;  %v1055_v42 = vmul.f32 %v1050_v15, %v1042_v35 }
 0x229   : > { %v10040_v2 = vpop.eup %10039  ;;  %9056 = vmatprep.mubr.msk.bf16.mxu1 %vm940_vm1, %v1071_v36  ;;  %v1066_v40 = vadd.f32 %v1062_v24, %v1054_v37  ;;  %v1043_v59 = vmul.f32 %v10038_v38, %v10917_v17 }
 0x22a   : > { %v1044_v43 = vmul.f32 %v10040_v2, %v10920_v18  ;;  %v1067_v1 = vadd.f32 %v1062_v24, %v1055_v42 }
 0x22b   : > { %v1072_v45 = vpack.c.bf16 %v1066_v40, %v1065_v39  ;;  %v1056_v46 = vmul.f32 %v1050_v15, %v1043_v59 }
 0x22c   : > { %v10042_v47 = vpop.eup %10041  ;;  %v1057_v51 = vmul.f32 %v1050_v15, %v1044_v43 }
 0x22d   : > { %9057 = vmatmul.mubr.msk.bf16.vlgmr.msra.gmra.mxu1 %vm940_vm1, %v1072_v45  ;;  %v1068_v8 = vadd.f32 %v1062_v24, %v1056_v46  ;;  %v1045_v48 = vmul.f32 %v10042_v47, %v10929_v27 }
 0x22e   : > { %v1069_v54 = vadd.f32 %v1062_v24, %v1057_v51 }
 0x22f   : > { %v1073_v52 = vpack.c.bf16 %v1068_v8, %v1067_v1  ;;  %v1058_v53 = vmul.f32 %v1050_v15, %v1045_v48 }
 0x231   : > { %9060 = vmatprep.mubr.msk.bf16.mxu1 %vm940_vm1, %v1073_v52  ;;  %v1070_v55 = vadd.f32 %v1062_v24, %v1058_v53 }
 0x233   : > { %v1074_v17 = vpack.c.bf16 %v1070_v55, %v1069_v54 }
 0x235   : > { %9061 = vmatmul.mubr.msk.bf16.gmra.mxu1 %vm940_vm1, %v1074_v17 }
 0x2ed   : > { %v9058_v18 = vpop.f32.mrf.mxu1 }
 0x2ee   : > { %v1153_v62 = vadd.f32 %v9058_v18, %v8449_v58 }
 0x2ef   : > { %v1144_v61 = vpop.f32.mrf.mxu1 }
 0x2f0   : > { %v1145_v0 = vadd.f32 %v8449_v58, %v1144_v61  ;;  %v1177_v5 = vmul.f32 0.35355338, %v1153_v62 }
 0x2f1   : > { %v9059_v63 = vpop.f32.mrf.mxu1 }
 0x2f2   : > { %v1156_v27 = vadd.f32 %v9059_v63, %v8449_v58  ;;  %v1175_v11 = vmul.f32 0.35355338, %v1145_v0 }
 0x2f3   : > { %v1147_v3 = vpop.f32.mrf.mxu1 }
 0x2f4   : > { %v1178_v6 = vmul.f32 0.35355338, %v1156_v27  ;;  %v1148_v9 = vadd.f32 %v8449_v58, %v1147_v3  ;;  %v11004_v37 = vpack.c.bf16 %v1156_v27, %v1153_v62 }
 0x2f5   : > { %v9062_v10 = vpop.f32.mrf.mxu1 }
 0x2f6   : > { %v10986_v13 = vpack.c.bf16 %v1178_v6, %v1177_v5  ;;  %v1176_v14 = vmul.f32 0.35355338, %v1148_v9  ;;  %v1169_v20 = vadd.f32 %v9062_v10, %v8449_v58  ;;  %v11008_v38 = vpack.c.bf16 %v1148_v9, %v1145_v0 }
 0x2f7   : > { %v1160_v15 = vpop.f32.mrf.mxu1 }
 0x2f8   : > { %v10988_v16 = vpack.c.bf16 %v1176_v14, %v1175_v11  ;;  %v1161_v22 = vadd.f32 %v8449_v58, %v1160_v15  ;;  %v1181_v26 = vmul.f32 0.35355338, %v1169_v20 }
 0x2f9   : > { %v9063_v21 = vpop.f32.mrf.mxu1 }
 0x2fa   : > { %v1172_v24 = vadd.f32 %v9063_v21, %v8449_v58  ;;  %9072 = vmatprep.mubr.msk.bf16.mxu0 %vm1208_vm2, %v10988_v16  ;;  %v1179_v33 = vmul.f32 0.35355338, %v1161_v22 }
 0x2fb   : > { %v1163_v25 = vpop.f32.mrf.mxu1 }
 0x2fc   : > { %v1182_v29 = vmul.f32 0.35355338, %v1172_v24  ;;  %v10992_v30 = vpack.c.bf16 %v1172_v24, %v1169_v20  ;;  %v1164_v31 = vadd.f32 %v8449_v58, %v1163_v25 }
 0x2fe   : > { %v10994_v60 = vpack.c.bf16 %v1182_v29, %v1181_v26  ;;  %v1180_v34 = vmul.f32 0.35355338, %v1164_v31  ;;  %v10996_v35 = vpack.c.bf16 %v1164_v31, %v1161_v22  ;;  %1206 = vrot.lane.b32.xlu0 %v10992_v30, %s13612_s0 }
 0x300   : > { %v11000_v36 = vpack.c.bf16 %v1180_v34, %v1179_v33  ;;  %1204 = vrot.lane.b32.xlu1 %v10996_v35, %s13612_s0 }
 0x304   : > { %1202 = vrot.lane.b32.xlu1 %v11004_v37, %s13612_s0 }
 0x308   : > { %1200 = vrot.lane.b32.xlu1 %v11008_v38, %s13612_s0  ;;  %s13679_s0 = smov 8  }
 0x370   : > { %v1207_v2 = vpop.permute.xlu0 %1206 }
 0x371   : > { %9672 = vmatprep.subr.msk.bf16.mxu0 %vm1208_vm2, %v1207_v2  ;;  %v1231_v39 = vsel %vm1208_vm2, %v1207_v2, 0 }
 0x372   : > { %9065 = vmatpush3.bf16.xpose.msra.mxu0 %v1231_v39  ;;  %v1205_v40 = vpop.permute.xlu1 %1204 }
 0x373   : > { %9673 = vmatprep.subr.msk.bf16.mxu0 %vm1208_vm2, %v1205_v40  ;;  %v1228_v59 = vsel %vm1208_vm2, %v1205_v40, 0 }
 0x376   : > { %v1203_v42 = vpop.permute.xlu1 %1202 }
 0x377   : > { %v1225_v43 = vsel %vm1208_vm2, %v1203_v42, 0 }
 0x37a   : > { %9067 = vmatpush3.bf16.xpose.msra.mxu0 %v1228_v59  ;;  %v1201_v45 = vpop.permute.xlu1 %1200 }
 0x37b   : > { %9674 = vmatprep.subr.msk.bf16.mxu0 %vm1208_vm2, %v1203_v42  ;;  %v1222_v46 = vsel %vm1208_vm2, %v1201_v45, 0 }
 0x382   : > { %9069 = vmatpush3.bf16.xpose.msra.mxu0 %v1225_v43 }
 0x383   : > { %9675 = vmatprep.subr.msk.bf16.mxu0 %vm1208_vm2, %v1201_v45 }
 0x38a   : > { %9071 = vmatpush3.bf16.xpose.msra.mxu0 %v1222_v46 }
 0x391   : > { %9073 = vmatmul.mubr.msk.bf16.vlgmr.msra.gmra.mxu0 %vm1208_vm2, %v10986_v13 }
 0x392   : > { %9076 = vmatprep.mubr.msk.bf16.mxu0 %vm1208_vm2, %v11000_v36 }
 0x399   : > { %9077 = vmatmul.mubr.msk.bf16.gmra.mxu0 %vm1208_vm2, %v10994_v60 }
 0x451   : > { %v9074_v47 = vpop.f32.mrf.mxu0 }
 0x452   : > { %v1305_v52 = vsel %vm1298_vm3, %v9074_v47, -inf }
 0x453   : > { %v1267_v1 = vpop.f32.mrf.mxu0 }
 0x454   : > { %v1299_v8 = vsel %vm1298_vm3, %v1267_v1, -inf }
 0x455   : > { %1300 = vmax.xlane.f32.xlu0 %v1299_v8  ;;  %v9075_v48 = vpop.f32.mrf.mxu0 }
 0x456   : > { %v1308_v17 = vsel %vm1298_vm3, %v9075_v48, -inf }
 0x457   : > { %v1270_v51 = vpop.f32.mrf.mxu0 }
 0x458   : > { %v1302_v53 = vsel %vm1298_vm3, %v1270_v51, -inf }
 0x459   : > { %1306 = vmax.xlane.f32.xlu0 %v1305_v52  ;;  %1303 = vmax.xlane.f32.xlu1 %v1302_v53  ;;  %v9078_v54 = vpop.f32.mrf.mxu0 }
 0x45a   : > { %v1317_v62 = vsel %vm1298_vm3, %v9078_v54, -inf }
 0x45b   : > { %v1283_v55 = vpop.f32.mrf.mxu0 }
 0x45c   : > { %v1311_v0 = vsel %vm1298_vm3, %v1283_v55, -inf }
 0x45d   : > { %1309 = vmax.xlane.f32.xlu0 %v1308_v17  ;;  %v9079_v18 = vpop.f32.mrf.mxu0 }
 0x45e   : > { %v1320_v58 = vsel %vm1298_vm3, %v9079_v18, -inf }
 0x45f   : > { %1321 = vmax.xlane.f32.xlu1 %v1320_v58  ;;  %v1286_v61 = vpop.f32.mrf.mxu0 }
 0x460   : > { %v1314_v63 = vsel %vm1298_vm3, %v1286_v61, -inf }
 0x461   : > { %1318 = vmax.xlane.f32.xlu0 %v1317_v62 }
 0x463   : > { %1315 = vmax.xlane.f32.xlu1 %v1314_v63 }
 0x465   : > { %1312 = vmax.xlane.f32.xlu0 %v1311_v0 }
 0x474   : > { %1395 = vrot.lane.b32.xlu1 %v10996_v35, %s13596_s30 }
 0x478   : > { %1393 = vrot.lane.b32.xlu1 %v11004_v37, %s13596_s30 }
 0x47b   : > { %1397 = vrot.lane.b32.xlu0 %v10992_v30, %s13596_s30 }
 0x47c   : > { %1391 = vrot.lane.b32.xlu1 %v11008_v38, %s13596_s30  ;;  %s13614_s30 = smov 104  }
 0x4de   : > { %v1301_v27 = vpop.xlane.xlu0 %1300 }
 0x4df   : > { %v1323_v3 = vsub.f32 %v1267_v1, %v1301_v27 }
 0x4e1   : > { %v1331_v10 = vmul.f32 1.442695, %v1323_v3 }
 0x4e2   : > { %v1307_v5 = vpop.xlane.xlu0 %1306  ;;  %v1304_v6 = vpop.xlane.xlu1 %1303 }
 0x4e3   : > { %v1325_v9 = vsub.f32 %v9074_v47, %v1307_v5  ;;  %v1324_v14 = vsub.f32 %v1270_v51, %v1304_v6 }
 0x4e5   : > { %v1335_v11 = vmul.f32 1.442695, %v1325_v9  ;;  %v1333_v22 = vmul.f32 1.442695, %v1324_v14 }
 0x4e6   : > { %v1310_v15 = vpop.xlane.xlu0 %1309 }
 0x4e7   : > { %10043 = vpow2.f32 %v1335_v11  ;;  %v1326_v20 = vsub.f32 %v9075_v48, %v1310_v15 }
 0x4e8   : > { %v1322_v21 = vpop.xlane.xlu1 %1321  ;;  %10045 = vpow2.f32 %v1331_v10 }
 0x4e9   : > { %v1337_v24 = vmul.f32 1.442695, %v1326_v20  ;;  %v1330_v25 = vsub.f32 %v9079_v18, %v1322_v21 }
 0x4ea   : > { %v1319_v26 = vpop.xlane.xlu0 %1318 }
 0x4eb   : > { %10047 = vpow2.f32 %v1337_v24  ;;  %v1329_v29 = vsub.f32 %v9078_v54, %v1319_v26  ;;  %v1345_v33 = vmul.f32 1.442695, %v1330_v25 }
 0x4ec   : > { %v1316_v31 = vpop.xlane.xlu1 %1315  ;;  %10049 = vpow2.f32 %v1333_v22 }
 0x4ed   : > { %v1343_v34 = vmul.f32 1.442695, %v1329_v29  ;;  %v1328_v2 = vsub.f32 %v1286_v61, %v1316_v31 }
 0x4ee   : > { %v1313_v39 = vpop.xlane.xlu0 %1312 }
 0x4ef   : > { %10051 = vpow2.f32 %v1343_v34  ;;  %v1327_v40 = vsub.f32 %v1283_v55, %v1313_v39  ;;  %v1341_v42 = vmul.f32 1.442695, %v1328_v2 }
 0x4f0   : > { %v1396_v59 = vpop.permute.xlu1 %1395  ;;  %10053 = vpow2.f32 %v1345_v33 }
 0x4f1   : > { %v1339_v43 = vmul.f32 1.442695, %v1327_v40 }
 0x4f2   : > { %v1398_v45 = vpop.permute.xlu0 %1397 }
 0x4f3   : > { %10055 = vpow2.f32 %v1339_v43  ;;  %9080 = vmatprep.subr.bf16.mxu1 %v1398_v45 }
 0x4f4   : > { %v11042_v46 = vpop.eup %10043  ;;  %9081 = vmatpush3.bf16.msra.mxu1 %v1398_v45  ;;  %10057 = vpow2.f32 %v1341_v42  ;;  %v1394_v8 = vpop.permute.xlu1 %1393 }
 0x4f5   : > { %9082 = vmatprep.subr.bf16.mxu1 %v1396_v59  ;;  %v1353_v47 = vsel %vm1298_vm3, %v11042_v46, 0.0  ;;  %v10046_v1 = vpop.eup %10045 }
 0x4f6   : > { %1354 = vadd.xlane.f32.xlu0 %v1353_v47  ;;  %v1347_v51 = vsel %vm1298_vm3, %v10046_v1, 0.0 }
 0x4f8   : > { %v10048_v48 = vpop.eup %10047  ;;  %9083 = vmatpush3.bf16.msra.mxu1 %v1396_v59  ;;  %v1392_v55 = vpop.permute.xlu1 %1391 }
 0x4f9   : > { %9084 = vmatprep.subr.bf16.mxu1 %v1394_v8  ;;  %v1356_v52 = vsel %vm1298_vm3, %v10048_v48, 0.0  ;;  %v10050_v53 = vpop.eup %10049 }
 0x4fa   : > { %1348 = vadd.xlane.f32.xlu0 %v1347_v51  ;;  %1357 = vadd.xlane.f32.xlu1 %v1356_v52  ;;  %v1350_v18 = vsel %vm1298_vm3, %v10050_v53, 0.0 }
 0x4fc   : > { %v11048_v54 = vpop.eup %10051  ;;  %9085 = vmatpush3.bf16.msra.mxu1 %v1394_v8 }
 0x4fd   : > { %9086 = vmatprep.subr.bf16.mxu1 %v1392_v55  ;;  %v1365_v17 = vsel %vm1298_vm3, %v11048_v54, 0.0  ;;  %v10054_v58 = vpop.eup %10053 }
 0x4fe   : > { %1366 = vadd.xlane.f32.xlu0 %v1365_v17  ;;  %1351 = vadd.xlane.f32.xlu1 %v1350_v18  ;;  %v1368_v62 = vsel %vm1298_vm3, %v10054_v58, 0.0 }
 0x500   : > { %v10056_v61 = vpop.eup %10055  ;;  %9087 = vmatpush3.bf16.msra.mxu1 %v1392_v55 }
 0x501   : > { %v1359_v63 = vsel %vm1298_vm3, %v10056_v61, 0.0  ;;  %v10058_v0 = vpop.eup %10057 }
 0x502   : > { %1369 = vadd.xlane.f32.xlu0 %v1368_v62  ;;  %1360 = vadd.xlane.f32.xlu1 %v1359_v63  ;;  %v1362_v27 = vsel %vm1298_vm3, %v10058_v0, 0.0 }
 0x506   : > { %1363 = vadd.xlane.f32.xlu0 %v1362_v27 }
 0x513   : > { %1496 = vrot.lane.b32.xlu1 %v10996_v35, %s13606_s26 }
 0x517   : > { %1494 = vrot.lane.b32.xlu1 %v11004_v37, %s13606_s26 }
 0x51b   : > { %1492 = vrot.lane.b32.xlu1 %v11008_v38, %s13606_s26 }
 0x51c   : > { %1498 = vrot.lane.b32.xlu0 %v10992_v30, %s13606_s26  ;;  %s13620_s26 = smov 16  }
 0x51f   : > { %1486 = vrot.lane.b32.xlu1 %v10986_v13, %s13622_s1 }
 0x520   : > { %1484 = vrot.lane.b32.xlu0 %v10988_v16, %s13622_s1 }
 0x523   : > { %1490 = vrot.lane.b32.xlu1 %v10994_v60, %s13622_s1 }
 0x524   : > { %1488 = vrot.lane.b32.xlu0 %v11000_v36, %s13622_s1  ;;  %s13672_s1 = smov 120  }
 0x57f   : > { %v1355_v3 = vpop.xlane.xlu0 %1354 }
 0x583   : > { %v1349_v5 = vpop.xlane.xlu0 %1348  ;;  %v1358_v6 = vpop.xlane.xlu1 %1357 }
 0x584   : > { %10059 = vrcp.f32 %v1358_v6 }
 0x585   : > { %10061 = vrcp.f32 %v1349_v5 }
 0x586   : > { %10063 = vrcp.f32 %v1355_v3 }
 0x587   : > { %v1367_v9 = vpop.xlane.xlu0 %1366  ;;  %v1352_v10 = vpop.xlane.xlu1 %1351 }
 0x588   : > { %10065 = vrcp.f32 %v1352_v10 }
 0x58b   : > { %v1370_v11 = vpop.xlane.xlu0 %1369  ;;  %v1361_v14 = vpop.xlane.xlu1 %1360 }
 0x58c   : > { %10067 = vrcp.f32 %v1370_v11 }
 0x58d   : > { %10069 = vrcp.f32 %v1361_v14 }
 0x58e   : > { %10071 = vrcp.f32 %v1367_v9 }
 0x58f   : > { %v1364_v15 = vpop.xlane.xlu0 %1363  ;;  %v1497_v45 = vpop.permute.xlu1 %1496 }
 0x590   : > { %10073 = vrcp.f32 %v1364_v15 }
 0x591   : > { %v10060_v20 = vpop.eup %10059 }
 0x592   : > { %v10062_v22 = vpop.eup %10061  ;;  %v1382_v26 = vmul.f32 %v10060_v20, %v10048_v48 }
 0x593   : > { %v1499_v21 = vpop.permute.xlu0 %1498  ;;  %v10064_v24 = vpop.eup %10063  ;;  %v1379_v29 = vmul.f32 %v10062_v22, %v10046_v1 }
 0x594   : > { %9676 = vmatprep.subr.msk.bf16.mxu1 %vm1208_vm2, %v1499_v21  ;;  %v1381_v33 = vmul.f32 %v10064_v24, %v11042_v46  ;;  %v1522_v42 = vsel %vm1208_vm2, %v1499_v21, 0  ;;  %v1495_v55 = vpop.permute.xlu1 %1494 }
 0x595   : > { %v10066_v25 = vpop.eup %10065  ;;  %v1516_v17 = vsel %vm1208_vm2, %v1495_v55, 0 }
 0x596   : > { %v1380_v31 = vmul.f32 %v10066_v25, %v10050_v53  ;;  %v1388_v39 = vpack.c.bf16 %v1382_v26, %v1381_v33  ;;  %v1519_v53 = vsel %vm1208_vm2, %v1497_v45, 0 }
 0x597   : > { %v1485_v52 = vpop.permute.xlu0 %1484 }
 0x598   : > { %v1387_v34 = vpack.c.bf16 %v1380_v31, %v1379_v29  ;;  %v1493_v18 = vpop.permute.xlu1 %1492 }
 0x599   : > { %v10068_v2 = vpop.eup %10067 }
 0x59a   : > { %v10070_v40 = vpop.eup %10069  ;;  %9088 = vmatprep.mubr.msk.bf16.mxu1 %vm1298_vm3, %v1387_v34  ;;  %v1386_v8 = vmul.f32 %v10068_v2, %v10054_v58 }
 0x59b   : > { %v10072_v59 = vpop.eup %10071  ;;  %9089 = vmatmul.mubr.msk.bf16.vlgmr.msra.gmra.mxu1 %vm1298_vm3, %v1388_v39  ;;  %v1383_v47 = vmul.f32 %v10070_v40, %v10056_v61  ;;  %v1489_v61 = vpop.permute.xlu0 %1488 }
 0x59c   : > { %9097 = vmatpush3.bf16.xpose.msra.mxu1 %v1522_v42  ;;  %v1385_v48 = vmul.f32 %v10072_v59, %v11048_v54  ;;  %v1513_v54 = vsel %vm1208_vm2, %v1493_v18, 0  ;;  %v1487_v58 = vpop.permute.xlu1 %1486 }
 0x59d   : > { %v10074_v43 = vpop.eup %10073  ;;  %9677 = vmatprep.subr.msk.bf16.mxu1 %vm1208_vm2, %v1497_v45 }
 0x59e   : > { %v1384_v1 = vmul.f32 %v10074_v43, %v10058_v0  ;;  %v1390_v51 = vpack.c.bf16 %v1386_v8, %v1385_v48 }
 0x5a0   : > { %v1389_v46 = vpack.c.bf16 %v1384_v1, %v1383_v47  ;;  %v1491_v62 = vpop.permute.xlu1 %1490 }
 0x5a2   : > { %9092 = vmatprep.mubr.msk.bf16.mxu1 %vm1298_vm3, %v1389_v46 }
 0x5a3   : > { %9093 = vmatmul.mubr.msk.bf16.gmra.mxu1 %vm1298_vm3, %v1390_v51 }
 0x5a4   : > { %9099 = vmatpush3.bf16.xpose.msra.mxu1 %v1519_v53  ;;  %9104 = vmatprep.mubr.msk.bf16.mxu1 %vm1208_vm2, %v1485_v52 }
 0x5a5   : > { %9678 = vmatprep.subr.msk.bf16.mxu1 %vm1208_vm2, %v1495_v55 }
 0x5ac   : > { %9101 = vmatpush3.bf16.xpose.msra.mxu1 %v1516_v17 }
 0x5ad   : > { %9679 = vmatprep.subr.msk.bf16.mxu1 %vm1208_vm2, %v1493_v18 }
 0x5b4   : > { %9103 = vmatpush3.bf16.xpose.msra.mxu1 %v1513_v54 }
 0x5bb   : > { %9105 = vmatmul.mubr.msk.bf16.vlgmr.msra.gmra.mxu1 %vm1208_vm2, %v1487_v58 }
 0x5bc   : > { %9108 = vmatprep.mubr.msk.bf16.mxu1 %vm1208_vm2, %v1489_v61 }
 0x5c3   : > { %9109 = vmatmul.mubr.msk.bf16.gmra.mxu1 %vm1208_vm2, %v1491_v62 }
 0x65b   : > { %v11090_v63 = vpop.f32.mrf.mxu1 }
 0x65d   : > { %v11092_v0 = vpop.f32.mrf.mxu1 }
 0x65f   : > { %v11094_v27 = vpop.f32.mrf.mxu1 }
 0x661   : > { %v11096_v3 = vpop.f32.mrf.mxu1 }
 0x663   : > { %v11098_v5 = vpop.f32.mrf.mxu1 }
 0x665   : > { %v11100_v6 = vpop.f32.mrf.mxu1 }
 0x667   : > { %v11102_v9 = vpop.f32.mrf.mxu1 }
 0x669   : > { %v11104_v10 = vpop.f32.mrf.mxu1 }
 0x67b   : > { %v9106_v11 = vpop.f32.mrf.mxu1 }
 0x67c   : > { %v1595_v22 = vsel %vm1298_vm3, %v9106_v11, -inf }
 0x67d   : > { %v1558_v14 = vpop.f32.mrf.mxu1 }
 0x67e   : > { %v1589_v15 = vsel %vm1298_vm3, %v1558_v14, -inf }
 0x67f   : > { %1590 = vmax.xlane.f32.xlu0 %v1589_v15  ;;  %v9107_v20 = vpop.f32.mrf.mxu1 }
 0x680   : > { %v1598_v29 = vsel %vm1298_vm3, %v9107_v20, -inf }
 0x681   : > { %v1561_v21 = vpop.f32.mrf.mxu1 }
 0x682   : > { %v1592_v24 = vsel %vm1298_vm3, %v1561_v21, -inf }
 0x683   : > { %1596 = vmax.xlane.f32.xlu0 %v1595_v22  ;;  %1593 = vmax.xlane.f32.xlu1 %v1592_v24  ;;  %v9110_v25 = vpop.f32.mrf.mxu1 }
 0x684   : > { %v1607_v2 = vsel %vm1298_vm3, %v9110_v25, -inf }
 0x685   : > { %v1574_v26 = vpop.f32.mrf.mxu1 }
 0x686   : > { %v1601_v40 = vsel %vm1298_vm3, %v1574_v26, -inf }
 0x687   : > { %1599 = vmax.xlane.f32.xlu0 %v1598_v29  ;;  %v9111_v31 = vpop.f32.mrf.mxu1 }
 0x688   : > { %v1610_v33 = vsel %vm1298_vm3, %v9111_v31, -inf }
 0x689   : > { %1611 = vmax.xlane.f32.xlu1 %v1610_v33  ;;  %v1577_v34 = vpop.f32.mrf.mxu1 }
 0x68a   : > { %v1604_v39 = vsel %vm1298_vm3, %v1577_v34, -inf }
 0x68b   : > { %1608 = vmax.xlane.f32.xlu0 %v1607_v2 }
 0x68d   : > { %1605 = vmax.xlane.f32.xlu1 %v1604_v39 }
 0x68f   : > { %1602 = vmax.xlane.f32.xlu0 %v1601_v40 }
 0x69e   : > { %1685 = vrot.lane.b32.xlu1 %v10996_v35, %s13592_s4 }
 0x6a2   : > { %1683 = vrot.lane.b32.xlu1 %v11004_v37, %s13592_s4 }
 0x6a5   : > { %1687 = vrot.lane.b32.xlu0 %v10992_v30, %s13592_s4 }
 0x6a6   : > { %1681 = vrot.lane.b32.xlu1 %v11008_v38, %s13592_s4  ;;  %s13594_s4 = smov 48  }
 0x708   : > { %v1591_v59 = vpop.xlane.xlu0 %1590 }
 0x709   : > { %v1613_v42 = vsub.f32 %v1558_v14, %v1591_v59 }
 0x70b   : > { %v1621_v1 = vmul.f32 1.442695, %v1613_v42 }
 0x70c   : > { %v1597_v43 = vpop.xlane.xlu0 %1596  ;;  %v1594_v45 = vpop.xlane.xlu1 %1593 }
 0x70d   : > { %v1615_v47 = vsub.f32 %v9106_v11, %v1597_v43  ;;  %v1614_v46 = vsub.f32 %v1561_v21, %v1594_v45 }
 0x70f   : > { %v1625_v8 = vmul.f32 1.442695, %v1615_v47  ;;  %v1623_v53 = vmul.f32 1.442695, %v1614_v46 }
 0x710   : > { %v1600_v48 = vpop.xlane.xlu0 %1599 }
 0x711   : > { %10075 = vpow2.f32 %v1625_v8  ;;  %v1616_v51 = vsub.f32 %v9107_v20, %v1600_v48 }
 0x712   : > { %v1612_v52 = vpop.xlane.xlu1 %1611  ;;  %10077 = vpow2.f32 %v1621_v1 }
 0x713   : > { %v1627_v55 = vmul.f32 1.442695, %v1616_v51  ;;  %v1620_v17 = vsub.f32 %v9111_v31, %v1612_v52 }
 0x714   : > { %v1609_v18 = vpop.xlane.xlu0 %1608 }
 0x715   : > { %10079 = vpow2.f32 %v1627_v55  ;;  %v1619_v54 = vsub.f32 %v9110_v25, %v1609_v18  ;;  %v1635_v61 = vmul.f32 1.442695, %v1620_v17 }
 0x716   : > { %v1606_v58 = vpop.xlane.xlu1 %1605  ;;  %10081 = vpow2.f32 %v1623_v53 }
 0x717   : > { %v1633_v62 = vmul.f32 1.442695, %v1619_v54  ;;  %v1618_v14 = vsub.f32 %v1577_v34, %v1606_v58 }
 0x718   : > { %v1603_v11 = vpop.xlane.xlu0 %1602 }
 0x719   : > { %10083 = vpow2.f32 %v1633_v62  ;;  %v1617_v15 = vsub.f32 %v1574_v26, %v1603_v11  ;;  %v1631_v22 = vmul.f32 1.442695, %v1618_v14 }
 0x71a   : > { %v1686_v21 = vpop.permute.xlu1 %1685  ;;  %10085 = vpow2.f32 %v1635_v61 }
 0x71b   : > { %v1629_v20 = vmul.f32 1.442695, %v1617_v15 }
 0x71c   : > { %v1688_v24 = vpop.permute.xlu0 %1687 }
 0x71d   : > { %10087 = vpow2.f32 %v1629_v20  ;;  %9112 = vmatprep.subr.bf16.mxu0 %v1688_v24 }
 0x71e   : > { %v11122_v29 = vpop.eup %10075  ;;  %9113 = vmatpush3.bf16.msra.mxu0 %v1688_v24  ;;  %10089 = vpow2.f32 %v1631_v22  ;;  %v1684_v33 = vpop.permute.xlu1 %1683 }
 0x71f   : > { %9114 = vmatprep.subr.bf16.mxu0 %v1686_v21  ;;  %v1643_v25 = vsel %vm1298_vm3, %v11122_v29, 0.0  ;;  %v10078_v31 = vpop.eup %10077 }
 0x720   : > { %1644 = vadd.xlane.f32.xlu0 %v1643_v25  ;;  %v1637_v26 = vsel %vm1298_vm3, %v10078_v31, 0.0 }
 0x722   : > { %v10080_v34 = vpop.eup %10079  ;;  %9115 = vmatpush3.bf16.msra.mxu0 %v1686_v21  ;;  %v1682_v59 = vpop.permute.xlu1 %1681 }
 0x723   : > { %9116 = vmatprep.subr.bf16.mxu0 %v1684_v33  ;;  %v1646_v2 = vsel %vm1298_vm3, %v10080_v34, 0.0  ;;  %v10082_v39 = vpop.eup %10081 }
 0x724   : > { %1638 = vadd.xlane.f32.xlu0 %v1637_v26  ;;  %1647 = vadd.xlane.f32.xlu1 %v1646_v2  ;;  %v1640_v43 = vsel %vm1298_vm3, %v10082_v39, 0.0 }
 0x726   : > { %v11128_v40 = vpop.eup %10083  ;;  %9117 = vmatpush3.bf16.msra.mxu0 %v1684_v33 }
 0x727   : > { %9118 = vmatprep.subr.bf16.mxu0 %v1682_v59  ;;  %v1655_v42 = vsel %vm1298_vm3, %v11128_v40, 0.0  ;;  %v10086_v45 = vpop.eup %10085 }
 0x728   : > { %1656 = vadd.xlane.f32.xlu0 %v1655_v42  ;;  %1641 = vadd.xlane.f32.xlu1 %v1640_v43  ;;  %v1658_v8 = vsel %vm1298_vm3, %v10086_v45, 0.0 }
 0x72a   : > { %v10088_v47 = vpop.eup %10087  ;;  %9119 = vmatpush3.bf16.msra.mxu0 %v1682_v59 }
 0x72b   : > { %v1649_v1 = vsel %vm1298_vm3, %v10088_v47, 0.0  ;;  %v10090_v46 = vpop.eup %10089 }
 0x72c   : > { %1650 = vadd.xlane.f32.xlu1 %v1649_v1  ;;  %1659 = vadd.xlane.f32.xlu0 %v1658_v8  ;;  %v1652_v48 = vsel %vm1298_vm3, %v10090_v46, 0.0 }
 0x730   : > { %1653 = vadd.xlane.f32.xlu0 %v1652_v48 }
 0x73d   : > { %1782 = vrot.lane.b32.xlu1 %v10996_v35, %s13602_s28 }
 0x741   : > { %1780 = vrot.lane.b32.xlu1 %v11004_v37, %s13602_s28 }
 0x745   : > { %1778 = vrot.lane.b32.xlu1 %v11008_v38, %s13602_s28 }
 0x746   : > { %1784 = vrot.lane.b32.xlu0 %v10992_v30, %s13602_s28  ;;  %s13608_s28 = smov 40  }
 0x749   : > { %1772 = vrot.lane.b32.xlu1 %v10986_v13, %s13616_s3 }
 0x74a   : > { %1770 = vrot.lane.b32.xlu0 %v10988_v16, %s13616_s3 }
 0x74d   : > { %1776 = vrot.lane.b32.xlu1 %v10994_v60, %s13616_s3 }
 0x74e   : > { %1774 = vrot.lane.b32.xlu0 %v11000_v36, %s13616_s3  ;;  %s13618_s3 = smov 24  }
 0x7a9   : > { %v1645_v51 = vpop.xlane.xlu0 %1644 }
 0x7ad   : > { %v1639_v52 = vpop.xlane.xlu0 %1638  ;;  %v1648_v53 = vpop.xlane.xlu1 %1647 }
 0x7ae   : > { %10091 = vrcp.f32 %v1648_v53 }
 0x7af   : > { %10093 = vrcp.f32 %v1639_v52 }
 0x7b0   : > { %10095 = vrcp.f32 %v1645_v51 }
 0x7b1   : > { %v1657_v55 = vpop.xlane.xlu0 %1656  ;;  %v1642_v17 = vpop.xlane.xlu1 %1641 }
 0x7b2   : > { %10097 = vrcp.f32 %v1642_v17 }
 0x7b5   : > { %v1660_v18 = vpop.xlane.xlu0 %1659  ;;  %v1651_v54 = vpop.xlane.xlu1 %1650 }
 0x7b6   : > { %10099 = vrcp.f32 %v1660_v18 }
 0x7b7   : > { %10101 = vrcp.f32 %v1651_v54 }
 0x7b8   : > { %10103 = vrcp.f32 %v1657_v55 }
 0x7b9   : > { %v1654_v58 = vpop.xlane.xlu0 %1653  ;;  %v1783_v1 = vpop.permute.xlu1 %1782 }
 0x7ba   : > { %10105 = vrcp.f32 %v1654_v58  ;;  %v1805_v52 = vsel %vm1208_vm2, %v1783_v1, 0 }
 0x7bb   : > { %v10092_v61 = vpop.eup %10091 }
 0x7bc   : > { %v10094_v14 = vpop.eup %10093  ;;  %v1672_v21 = vmul.f32 %v10092_v61, %v10080_v34 }
 0x7bd   : > { %v1785_v62 = vpop.permute.xlu0 %1784  ;;  %v10096_v11 = vpop.eup %10095  ;;  %v1669_v22 = vmul.f32 %v10094_v14, %v10078_v31 }
 0x7be   : > { %9680 = vmatprep.subr.msk.bf16.mxu0 %vm1208_vm2, %v1785_v62  ;;  %v1671_v24 = vmul.f32 %v10096_v11, %v11122_v29  ;;  %v1808_v42 = vsel %vm1208_vm2, %v1785_v62, 0  ;;  %v1781_v53 = vpop.permute.xlu1 %1780 }
 0x7bf   : > { %v10098_v15 = vpop.eup %10097 }
 0x7c0   : > { %v1670_v20 = vmul.f32 %v10098_v15, %v10082_v39  ;;  %v1678_v26 = vpack.c.bf16 %v1672_v21, %v1671_v24 }
 0x7c1   : > { %v1771_v51 = vpop.permute.xlu0 %1770 }
 0x7c2   : > { %v1677_v25 = vpack.c.bf16 %v1670_v20, %v1669_v22 }
 0x7c3   : > { %v10100_v33 = vpop.eup %10099 }
 0x7c4   : > { %v10102_v2 = vpop.eup %10101  ;;  %9120 = vmatprep.mubr.msk.bf16.mxu0 %vm1298_vm3, %v1677_v25  ;;  %v1676_v39 = vmul.f32 %v10100_v33, %v10086_v45  ;;  %v1779_v45 = vpop.permute.xlu1 %1778 }
 0x7c5   : > { %v10104_v59 = vpop.eup %10103  ;;  %9121 = vmatmul.mubr.msk.bf16.vlgmr.msra.gmra.mxu0 %vm1298_vm3, %v1678_v26  ;;  %v1673_v31 = vmul.f32 %v10102_v2, %v10088_v47  ;;  %v1802_v47 = vsel %vm1208_vm2, %v1781_v53, 0  ;;  %v1775_v55 = vpop.permute.xlu0 %1774 }
 0x7c6   : > { %9129 = vmatpush3.bf16.xpose.msra.mxu0 %v1808_v42  ;;  %v1675_v8 = vmul.f32 %v10104_v59, %v11128_v40  ;;  %v1799_v40 = vsel %vm1208_vm2, %v1779_v45, 0 }
 0x7c7   : > { %v10106_v43 = vpop.eup %10105  ;;  %9681 = vmatprep.subr.msk.bf16.mxu0 %vm1208_vm2, %v1783_v1 }
 0x7c8   : > { %v1674_v34 = vmul.f32 %v10106_v43, %v10090_v46  ;;  %v1680_v48 = vpack.c.bf16 %v1676_v39, %v1675_v8  ;;  %v1773_v46 = vpop.permute.xlu1 %1772 }
 0x7ca   : > { %v1679_v29 = vpack.c.bf16 %v1674_v34, %v1673_v31 }
 0x7cc   : > { %9124 = vmatprep.mubr.msk.bf16.mxu0 %vm1298_vm3, %v1679_v29  ;;  %v1777_v17 = vpop.permute.xlu1 %1776 }
 0x7cd   : > { %9125 = vmatmul.mubr.msk.bf16.gmra.mxu0 %vm1298_vm3, %v1680_v48 }
 0x7ce   : > { %9131 = vmatpush3.bf16.xpose.msra.mxu0 %v1805_v52  ;;  %9136 = vmatprep.mubr.msk.bf16.mxu0 %vm1208_vm2, %v1771_v51 }
 0x7cf   : > { %9682 = vmatprep.subr.msk.bf16.mxu0 %vm1208_vm2, %v1781_v53 }
 0x7d6   : > { %9133 = vmatpush3.bf16.xpose.msra.mxu0 %v1802_v47 }
 0x7d7   : > { %9683 = vmatprep.subr.msk.bf16.mxu0 %vm1208_vm2, %v1779_v45 }
 0x7de   : > { %9135 = vmatpush3.bf16.xpose.msra.mxu0 %v1799_v40 }
 0x7e5   : > { %9137 = vmatmul.mubr.msk.bf16.vlgmr.msra.gmra.mxu0 %vm1208_vm2, %v1773_v46 }
 0x7e6   : > { %9140 = vmatprep.mubr.msk.bf16.mxu0 %vm1208_vm2, %v1775_v55 }
 0x7ed   : > { %9141 = vmatmul.mubr.msk.bf16.gmra.mxu0 %vm1208_vm2, %v1777_v17 }
 0x885   : > { %v11170_v18 = vpop.f32.mrf.mxu0 }
 0x887   : > { %v11172_v54 = vpop.f32.mrf.mxu0 }
 0x889   : > { %v11174_v58 = vpop.f32.mrf.mxu0 }
 0x88b   : > { %v11178_v62 = vpop.f32.mrf.mxu0 }
 0x88d   : > { %v11180_v14 = vpop.f32.mrf.mxu0 }
 0x88f   : > { %v11182_v11 = vpop.f32.mrf.mxu0 }
 0x891   : > { %v11184_v15 = vpop.f32.mrf.mxu0 }
 0x893   : > { %v11188_v22 = vpop.f32.mrf.mxu0 }
 0x8a5   : > { %v9138_v20 = vpop.f32.mrf.mxu0 }
 0x8a6   : > { %v1881_v2 = vsel %vm1298_vm3, %v9138_v20, -inf }
 0x8a7   : > { %v1844_v24 = vpop.f32.mrf.mxu0 }
 0x8a8   : > { %v1875_v25 = vsel %vm1298_vm3, %v1844_v24, -inf }
 0x8a9   : > { %1876 = vmax.xlane.f32.xlu0 %v1875_v25  ;;  %v9139_v33 = vpop.f32.mrf.mxu0 }
 0x8aa   : > { %v1884_v1 = vsel %vm1298_vm3, %v9139_v33, -inf }
 0x8ab   : > { %v1847_v26 = vpop.f32.mrf.mxu0 }
 0x8ac   : > { %v1878_v59 = vsel %vm1298_vm3, %v1847_v26, -inf }
 0x8ad   : > { %1882 = vmax.xlane.f32.xlu0 %v1881_v2  ;;  %1879 = vmax.xlane.f32.xlu1 %v1878_v59  ;;  %v9142_v42 = vpop.f32.mrf.mxu0 }
 0x8ae   : > { %v1893_v29 = vsel %vm1298_vm3, %v9142_v42, -inf }
 0x8af   : > { %v1860_v43 = vpop.f32.mrf.mxu0 }
 0x8b0   : > { %v1887_v48 = vsel %vm1298_vm3, %v1860_v43, -inf }
 0x8b1   : > { %1885 = vmax.xlane.f32.xlu0 %v1884_v1  ;;  %v9143_v31 = vpop.f32.mrf.mxu0 }
 0x8b2   : > { %v1896_v34 = vsel %vm1298_vm3, %v9143_v31, -inf }
 0x8b3   : > { %1897 = vmax.xlane.f32.xlu1 %v1896_v34  ;;  %v1863_v39 = vpop.f32.mrf.mxu0 }
 0x8b4   : > { %v1890_v8 = vsel %vm1298_vm3, %v1863_v39, -inf }
 0x8b5   : > { %1894 = vmax.xlane.f32.xlu0 %v1893_v29 }
 0x8b7   : > { %1891 = vmax.xlane.f32.xlu1 %v1890_v8 }
 0x8b9   : > { %1888 = vmax.xlane.f32.xlu0 %v1887_v48 }
 0x8c8   : > { %1971 = vrot.lane.b32.xlu1 %v10996_v35, %s13594_s4 }
 0x8cc   : > { %1969 = vrot.lane.b32.xlu1 %v11004_v37, %s13594_s4 }
 0x8cf   : > { %1973 = vrot.lane.b32.xlu0 %v10992_v30, %s13594_s4 }
 0x8d0   : > { %1967 = vrot.lane.b32.xlu1 %v11008_v38, %s13594_s4  ;;  %s13604_s4 = smov 72  }
 0x932   : > { %v1877_v51 = vpop.xlane.xlu0 %1876 }
 0x933   : > { %v1899_v52 = vsub.f32 %v1844_v24, %v1877_v51 }
 0x935   : > { %v1907_v40 = vmul.f32 1.442695, %v1899_v52 }
 0x936   : > { %v1883_v53 = vpop.xlane.xlu0 %1882  ;;  %v1880_v47 = vpop.xlane.xlu1 %1879 }
 0x937   : > { %v1901_v45 = vsub.f32 %v9138_v20, %v1883_v53  ;;  %v1900_v55 = vsub.f32 %v1847_v26, %v1880_v47 }
 0x939   : > { %v1911_v46 = vmul.f32 1.442695, %v1901_v45  ;;  %v1909_v59 = vmul.f32 1.442695, %v1900_v55 }
 0x93a   : > { %v1886_v17 = vpop.xlane.xlu0 %1885 }
 0x93b   : > { %10107 = vpow2.f32 %v1911_v46  ;;  %v1902_v25 = vsub.f32 %v9139_v33, %v1886_v17 }
 0x93c   : > { %v1898_v2 = vpop.xlane.xlu1 %1897  ;;  %10109 = vpow2.f32 %v1907_v40 }
 0x93d   : > { %v1913_v1 = vmul.f32 1.442695, %v1902_v25  ;;  %v1906_v34 = vsub.f32 %v9143_v31, %v1898_v2 }
 0x93e   : > { %v1895_v29 = vpop.xlane.xlu0 %1894 }
 0x93f   : > { %10111 = vpow2.f32 %v1913_v1  ;;  %v1905_v8 = vsub.f32 %v9142_v42, %v1895_v29  ;;  %v1921_v24 = vmul.f32 1.442695, %v1906_v34 }
 0x940   : > { %v1892_v48 = vpop.xlane.xlu1 %1891  ;;  %10113 = vpow2.f32 %v1909_v59 }
 0x941   : > { %v1919_v51 = vmul.f32 1.442695, %v1905_v8  ;;  %v1904_v21 = vsub.f32 %v1863_v39, %v1892_v48 }
 0x942   : > { %v1889_v20 = vpop.xlane.xlu0 %1888 }
 0x943   : > { %10115 = vpow2.f32 %v1919_v51  ;;  %v1903_v52 = vsub.f32 %v1860_v43, %v1889_v20  ;;  %v1917_v53 = vmul.f32 1.442695, %v1904_v21 }
 0x944   : > { %v1972_v26 = vpop.permute.xlu1 %1971  ;;  %10117 = vpow2.f32 %v1921_v24 }
 0x945   : > { %v1915_v33 = vmul.f32 1.442695, %v1903_v52 }
 0x946   : > { %v1974_v47 = vpop.permute.xlu0 %1973 }
 0x947   : > { %10119 = vpow2.f32 %v1915_v33  ;;  %9144 = vmatprep.subr.bf16.mxu1 %v1974_v47 }
 0x948   : > { %v11206_v45 = vpop.eup %10107  ;;  %9145 = vmatpush3.bf16.msra.mxu1 %v1974_v47  ;;  %10121 = vpow2.f32 %v1917_v53  ;;  %v1970_v39 = vpop.permute.xlu1 %1969 }
 0x949   : > { %9146 = vmatprep.subr.bf16.mxu1 %v1972_v26  ;;  %v1929_v42 = vsel %vm1298_vm3, %v11206_v45, 0.0  ;;  %v10110_v31 = vpop.eup %10109 }
 0x94a   : > { %1930 = vadd.xlane.f32.xlu0 %v1929_v42  ;;  %v1923_v21 = vsel %vm1298_vm3, %v10110_v31, 0.0 }
 0x94c   : > { %v10112_v40 = vpop.eup %10111  ;;  %9147 = vmatpush3.bf16.msra.mxu1 %v1972_v26  ;;  %v1968_v17 = vpop.permute.xlu1 %1967 }
 0x94d   : > { %9148 = vmatprep.subr.bf16.mxu1 %v1970_v39  ;;  %v1932_v43 = vsel %vm1298_vm3, %v10112_v40, 0.0  ;;  %v10114_v46 = vpop.eup %10113 }
 0x94e   : > { %1924 = vadd.xlane.f32.xlu0 %v1923_v21  ;;  %1933 = vadd.xlane.f32.xlu1 %v1932_v43  ;;  %v1926_v2 = vsel %vm1298_vm3, %v10114_v46, 0.0 }
 0x950   : > { %v11212_v55 = vpop.eup %10115  ;;  %9149 = vmatpush3.bf16.msra.mxu1 %v1970_v39 }
 0x951   : > { %9150 = vmatprep.subr.bf16.mxu1 %v1968_v17  ;;  %v1941_v25 = vsel %vm1298_vm3, %v11212_v55, 0.0  ;;  %v10118_v59 = vpop.eup %10117 }
 0x952   : > { %1942 = vadd.xlane.f32.xlu0 %v1941_v25  ;;  %1927 = vadd.xlane.f32.xlu1 %v1926_v2  ;;  %v1944_v29 = vsel %vm1298_vm3, %v10118_v59, 0.0 }
 0x954   : > { %v10120_v1 = vpop.eup %10119  ;;  %9151 = vmatpush3.bf16.msra.mxu1 %v1968_v17 }
 0x955   : > { %v1935_v34 = vsel %vm1298_vm3, %v10120_v1, 0.0  ;;  %v10122_v8 = vpop.eup %10121 }
 0x956   : > { %1936 = vadd.xlane.f32.xlu1 %v1935_v34  ;;  %1945 = vadd.xlane.f32.xlu0 %v1944_v29  ;;  %v1938_v48 = vsel %vm1298_vm3, %v10122_v8, 0.0 }
 0x95a   : > { %1939 = vadd.xlane.f32.xlu0 %v1938_v48 }
 0x967   : > { %2068 = vrot.lane.b32.xlu1 %v10996_v35, %s13604_s4 }
 0x96b   : > { %2066 = vrot.lane.b32.xlu1 %v11004_v37, %s13604_s4 }
 0x96f   : > { %2064 = vrot.lane.b32.xlu1 %v11008_v38, %s13604_s4 }
 0x970   : > { %2070 = vrot.lane.b32.xlu0 %v10992_v30, %s13604_s4  ;;  %s13610_s4 = smov 8  }
 0x973   : > { %2058 = vrot.lane.b32.xlu1 %v10986_v13, %s13614_s30 }
 0x974   : > { %2056 = vrot.lane.b32.xlu0 %v10988_v16, %s13614_s30 }
 0x977   : > { %2062 = vrot.lane.b32.xlu1 %v10994_v60, %s13614_s30 }
 0x978   : > { %2060 = vrot.lane.b32.xlu0 %v11000_v36, %s13614_s30  ;;  %s13680_s30 = smov 16  }
 0x9d3   : > { %v1931_v24 = vpop.xlane.xlu0 %1930 }
 0x9d7   : > { %v1925_v51 = vpop.xlane.xlu0 %1924  ;;  %v1934_v20 = vpop.xlane.xlu1 %1933 }
 0x9d8   : > { %10123 = vrcp.f32 %v1934_v20 }
 0x9d9   : > { %10125 = vrcp.f32 %v1925_v51 }
 0x9da   : > { %10127 = vrcp.f32 %v1931_v24 }
 0x9db   : > { %v1943_v52 = vpop.xlane.xlu0 %1942  ;;  %v1928_v26 = vpop.xlane.xlu1 %1927 }
 0x9dc   : > { %10129 = vrcp.f32 %v1928_v26 }
 0x9df   : > { %v1946_v53 = vpop.xlane.xlu0 %1945  ;;  %v1937_v13 = vpop.xlane.xlu1 %1936 }
 0x9e0   : > { %10131 = vrcp.f32 %v1946_v53 }
 0x9e1   : > { %10133 = vrcp.f32 %v1937_v13 }
 0x9e2   : > { %10135 = vrcp.f32 %v1943_v52 }
 0x9e3   : > { %v1940_v16 = vpop.xlane.xlu0 %1939  ;;  %v2069_v20 = vpop.permute.xlu1 %2068 }
 0x9e4   : > { %10137 = vrcp.f32 %v1940_v16  ;;  %v2091_v13 = vsel %vm1208_vm2, %v2069_v20, 0 }
 0x9e5   : > { %v10124_v60 = vpop.eup %10123 }
 0x9e6   : > { %v10126_v47 = vpop.eup %10125  ;;  %v1958_v39 = vmul.f32 %v10124_v60, %v10112_v40 }
 0x9e7   : > { %v2071_v33 = vpop.permute.xlu0 %2070  ;;  %v10128_v36 = vpop.eup %10127  ;;  %v1955_v21 = vmul.f32 %v10126_v47, %v10110_v31 }
 0x9e8   : > { %9684 = vmatprep.subr.msk.bf16.mxu1 %vm1208_vm2, %v2071_v33  ;;  %v1957_v17 = vmul.f32 %v10128_v36, %v11206_v45  ;;  %v2094_v24 = vsel %vm1208_vm2, %v2071_v33, 0  ;;  %v2067_v16 = vpop.permute.xlu1 %2066 }
 0x9e9   : > { %v10130_v42 = vpop.eup %10129 }
 0x9ea   : > { %v1956_v43 = vmul.f32 %v10130_v42, %v10114_v46  ;;  %v1964_v34 = vpack.c.bf16 %v1958_v39, %v1957_v17 }
 0x9eb   : > { %v2057_v53 = vpop.permute.xlu0 %2056 }
 0x9ec   : > { %v1963_v25 = vpack.c.bf16 %v1956_v43, %v1955_v21 }
 0x9ed   : > { %v10132_v2 = vpop.eup %10131 }
 0x9ee   : > { %v10134_v29 = vpop.eup %10133  ;;  %9152 = vmatprep.mubr.msk.bf16.mxu1 %vm1298_vm3, %v1963_v25  ;;  %v1962_v46 = vmul.f32 %v10132_v2, %v10118_v59  ;;  %v2065_v59 = vpop.permute.xlu1 %2064 }
 0x9ef   : > { %v10136_v48 = vpop.eup %10135  ;;  %9153 = vmatmul.mubr.msk.bf16.vlgmr.msra.gmra.mxu1 %vm1298_vm3, %v1964_v34  ;;  %v1959_v31 = vmul.f32 %v10134_v29, %v10120_v1  ;;  %v2088_v1 = vsel %vm1208_vm2, %v2067_v16, 0  ;;  %v2061_v60 = vpop.permute.xlu0 %2060 }
 0x9f0   : > { %9161 = vmatpush3.bf16.xpose.msra.mxu1 %v2094_v24  ;;  %v1961_v52 = vmul.f32 %v10136_v48, %v11212_v55  ;;  %v2085_v55 = vsel %vm1208_vm2, %v2065_v59, 0 }
 0x9f1   : > { %v10138_v51 = vpop.eup %10137  ;;  %9685 = vmatprep.subr.msk.bf16.mxu1 %vm1208_vm2, %v2069_v20 }
 0x9f2   : > { %v1960_v40 = vmul.f32 %v10138_v51, %v10122_v8  ;;  %v1966_v26 = vpack.c.bf16 %v1962_v46, %v1961_v52  ;;  %v2059_v8 = vpop.permute.xlu1 %2058 }
 0x9f4   : > { %v1965_v45 = vpack.c.bf16 %v1960_v40, %v1959_v31 }
 0x9f6   : > { %9156 = vmatprep.mubr.msk.bf16.mxu1 %vm1298_vm3, %v1965_v45  ;;  %v2063_v33 = vpop.permute.xlu1 %2062 }
 0x9f7   : > { %9157 = vmatmul.mubr.msk.bf16.gmra.mxu1 %vm1298_vm3, %v1966_v26 }
 0x9f8   : > { %9163 = vmatpush3.bf16.xpose.msra.mxu1 %v2091_v13  ;;  %9168 = vmatprep.mubr.msk.bf16.mxu1 %vm1208_vm2, %v2057_v53 }
 0x9f9   : > { %9686 = vmatprep.subr.msk.bf16.mxu1 %vm1208_vm2, %v2067_v16 }
 0xa00   : > { %9165 = vmatpush3.bf16.xpose.msra.mxu1 %v2088_v1 }
 0xa01   : > { %9687 = vmatprep.subr.msk.bf16.mxu1 %vm1208_vm2, %v2065_v59 }
 0xa08   : > { %9167 = vmatpush3.bf16.xpose.msra.mxu1 %v2085_v55 }
 0xa0f   : > { %9169 = vmatmul.mubr.msk.bf16.vlgmr.msra.gmra.mxu1 %vm1208_vm2, %v2059_v8 }
 0xa10   : > { %9172 = vmatprep.mubr.msk.bf16.mxu1 %vm1208_vm2, %v2061_v60 }
 0xa17   : > { %9173 = vmatmul.mubr.msk.bf16.gmra.mxu1 %vm1208_vm2, %v2063_v33 }
 0xaaf   : > { %v11254_v47 = vpop.f32.mrf.mxu1 }
 0xab1   : > { %v11256_v36 = vpop.f32.mrf.mxu1 }
 0xab3   : > { %v11258_v42 = vpop.f32.mrf.mxu1 }
 0xab5   : > { %v11262_v21 = vpop.f32.mrf.mxu1 }
 0xab7   : > { %v11264_v43 = vpop.f32.mrf.mxu1 }
 0xab9   : > { %v11266_v17 = vpop.f32.mrf.mxu1 }
 0xabb   : > { %v11268_v25 = vpop.f32.mrf.mxu1 }
 0xabd   : > { %v11272_v34 = vpop.f32.mrf.mxu1 }
 0xacf   : > { %v9170_v29 = vpop.f32.mrf.mxu1 }
 0xad0   : > { %v2167_v31 = vsel %vm1298_vm3, %v9170_v29, -inf }
 0xad1   : > { %v2130_v48 = vpop.f32.mrf.mxu1 }
 0xad2   : > { %v2161_v24 = vsel %vm1298_vm3, %v2130_v48, -inf }
 0xad3   : > { %2162 = vmax.xlane.f32.xlu0 %v2161_v24  ;;  %v9171_v51 = vpop.f32.mrf.mxu1 }
 0xad4   : > { %v2170_v52 = vsel %vm1298_vm3, %v9171_v51, -inf }
 0xad5   : > { %v2133_v20 = vpop.f32.mrf.mxu1 }
 0xad6   : > { %v2164_v40 = vsel %vm1298_vm3, %v2133_v20, -inf }
 0xad7   : > { %2168 = vmax.xlane.f32.xlu0 %v2167_v31  ;;  %2165 = vmax.xlane.f32.xlu1 %v2164_v40  ;;  %v9174_v46 = vpop.f32.mrf.mxu1 }
 0xad8   : > { %v2179_v1 = vsel %vm1298_vm3, %v9174_v46, -inf }
 0xad9   : > { %v2146_v45 = vpop.f32.mrf.mxu1 }
 0xada   : > { %v2173_v13 = vsel %vm1298_vm3, %v2146_v45, -inf }
 0xadb   : > { %2171 = vmax.xlane.f32.xlu0 %v2170_v52  ;;  %v11278_v26 = vpop.f32.mrf.mxu1 }
 0xadc   : > { %v2182_v59 = vsel %vm1298_vm3, %v11278_v26, -inf }
 0xadd   : > { %v11280_v53 = vpop.f32.mrf.mxu1 }
 0xade   : > { %v2176_v16 = vsel %vm1298_vm3, %v11280_v53, -inf }
 0xadf   : > { %2174 = vmax.xlane.f32.xlu0 %v2173_v13  ;;  %2177 = vmax.xlane.f32.xlu1 %v2176_v16 }
 0xae3   : > { %2180 = vmax.xlane.f32.xlu0 %v2179_v1  ;;  %2183 = vmax.xlane.f32.xlu1 %v2182_v59 }
 0xb5c   : > { %v2163_v55 = vpop.xlane.xlu0 %2162 }
 0xb5d   : > { %v2185_v8 = vsub.f32 %v2130_v48, %v2163_v55 }
 0xb5f   : > { %v2193_v31 = vmul.f32 1.442695, %v2185_v8 }
 0xb60   : > { %v2169_v60 = vpop.xlane.xlu0 %2168  ;;  %v2166_v33 = vpop.xlane.xlu1 %2165 }
 0xb61   : > { %v2187_v24 = vsub.f32 %v9170_v29, %v2169_v60  ;;  %v2186_v52 = vsub.f32 %v2133_v20, %v2166_v33 }
 0xb63   : > { %v2197_v40 = vmul.f32 1.442695, %v2187_v24  ;;  %v2195_v13 = vmul.f32 1.442695, %v2186_v52  ;;  %v9744_v24 = vpack.i.bf16 %v11178_v62, %v11172_v54 }
 0xb64   : > { %v2172_v2 = vpop.xlane.xlu0 %2171 }
 0xb65   : > { %10139 = vpow2.f32 %v2197_v40  ;;  %v2188_v39 = vsub.f32 %v9171_v51, %v2172_v2  ;;  %v9754_v40 = vpack.i.bf16 %v11262_v21, %v11256_v36  ;;  %v13669_v21 = vpack.i.bf16 %v11184_v15, %v11180_v14 }
 0xb66   : > { %10141 = vpow2.f32 %v2193_v31 }
 0xb67   : > { %v2199_v16 = vmul.f32 1.442695, %v2188_v39 }
 0xb68   : > { %v2175_v61 = vpop.xlane.xlu0 %2174  ;;  %v2178_v60 = vpop.xlane.xlu1 %2177 }
 0xb69   : > { %10143 = vpow2.f32 %v2199_v16  ;;  %v2189_v12 = vsub.f32 %v2146_v45, %v2175_v61 }
 0xb6a   : > { %10145 = vpow2.f32 %v2195_v13 }
 0xb6b   : > { %v2201_v4 = vmul.f32 1.442695, %v2189_v12 }
 0xb6c   : > { %v2181_v1 = vpop.xlane.xlu0 %2180  ;;  %v2184_v33 = vpop.xlane.xlu1 %2183 }
 0xb6d   : > { %v2191_v59 = vsub.f32 %v9174_v46, %v2181_v1  ;;  %v2192_v31 = vsub.f32 %v11278_v26, %v2184_v33 }
 0xb6f   : > { %v2205_v48 = vmul.f32 1.442695, %v2191_v59  ;;  %v2207_v52 = vmul.f32 1.442695, %v2192_v31 }
 0xb71   : > { %10147 = vpow2.f32 %v2205_v48 }
 0xb72   : > { %v11288_v55 = vpop.eup %10139  ;;  %10149 = vpow2.f32 %v2201_v4 }
 0xb73   : > { %v2215_v29 = vsel %vm1298_vm3, %v11288_v55, 0.0  ;;  %v11292_v20 = vpop.eup %10141  ;;  %10151 = vpow2.f32 %v2207_v52 }
 0xb74   : > { %2216 = vadd.xlane.f32.xlu0 %v2215_v29  ;;  %v2209_v39 = vsel %vm1298_vm3, %v11292_v20, 0.0 }
 0xb76   : > { %v11294_v2 = vpop.eup %10143 }
 0xb77   : > { %v2218_v61 = vsel %vm1298_vm3, %v11294_v2, 0.0  ;;  %v10146_v12 = vpop.eup %10145 }
 0xb78   : > { %2210 = vadd.xlane.f32.xlu0 %v2209_v39  ;;  %2219 = vadd.xlane.f32.xlu1 %v2218_v61  ;;  %v2212_v51 = vsel %vm1298_vm3, %v10146_v12, 0.0 }
 0xb7c   : > { %2213 = vadd.xlane.f32.xlu1 %v2212_v51 }
 0xb7e   : > { %v11301_v4 = vpop.eup %10147 }
 0xb7f   : > { %v2227_v46 = vsel %vm1298_vm3, %v11301_v4, 0.0  ;;  %v11305_v45 = vpop.eup %10149 }
 0xb80   : > { %2228 = vadd.xlane.f32.xlu0 %v2227_v46  ;;  %v2221_v8 = vsel %vm1298_vm3, %v11305_v45, 0.0  ;;  %v10152_v54 = vpop.eup %10151 }
 0xb81   : > { %v2230_v62 = vsel %vm1298_vm3, %v10152_v54, 0.0 }
 0xb84   : > { %2222 = vadd.xlane.f32.xlu0 %v2221_v8 }
 0xb8d   : > { %2257 = vrot.lane.b32.xlu1 %v10996_v35, %s13608_s28  ;;  %v2190_v35 = vsub.f32 %v11280_v53, %v2178_v60 }
 0xb91   : > { %2255 = vrot.lane.b32.xlu1 %v11004_v37, %s13608_s28  ;;  %v2203_v37 = vmul.f32 1.442695, %v2190_v35 }
 0xb93   : > { %10153 = vpow2.f32 %v2203_v37 }
 0xb9a   : > { %2259 = vrot.lane.b32.xlu0 %v10992_v30, %s13608_s28  ;;  %v9764_v30 = vpack.i.bf16 %v11188_v22, %v11182_v11  ;;  %v13667_v11 = vpack.i.bf16 %v11174_v58, %v11170_v18  ;;  %v13668_v22 = vpack.i.bf16 %v11258_v42, %v11254_v47 }
 0xb9e   : > { %9745 = vrot.lane.b32.xlu0 %v9744_v24, %s13610_s4 }
 0xba0   : > { %v10154_v26 = vpop.eup %10153 }
 0xba1   : > { %v2224_v36 = vsel %vm1298_vm3, %v10154_v26, 0.0 }
 0xba2   : > { %9755 = vrot.lane.b32.xlu0 %v9754_v40, %s13620_s26 }
 0xba6   : > { %9765 = vrot.lane.b32.xlu0 %v9764_v30, %s13610_s4 }
 0xbb5   : > { %2231 = vadd.xlane.f32.xlu1 %v2230_v62 }
 0xbb9   : > { %2225 = vadd.xlane.f32.xlu1 %v2224_v36 }
 0xbca   : > { %2253 = vrot.lane.b32.xlu1 %v11008_v38, %s13608_s28  ;;  %s13671_s28 = sld [smem:[#allocation9_spill]] }
 0xbce   : > { %9750 = vrot.lane.b32.xlu1 %v13667_v11, %s13610_s4 }
 0xbd0   : > { %s804_s6 = scalar_lea.vmem %s13671_s28, %s8439_s9  ;;  %s13674_s28 = smov 104  }
 0xbd1   : > { %s13678_s9 = smov 80  }
 0xbd2   : > { %9760 = vrot.lane.b32.xlu1 %v13668_v22, %s13620_s26 }
 0xbd6   : > { %9770 = vrot.lane.b32.xlu1 %v13669_v21, %s13610_s4  ;;  %v9784_v21 = vpack.i.bf16 %v11272_v34, %v11266_v17  ;;  %s13673_s4 = smov 112  }
 0xbfd   : > { %v2217_v53 = vpop.xlane.xlu0 %2216 }
 0xc01   : > { %v2211_v13 = vpop.xlane.xlu0 %2210  ;;  %v2220_v16 = vpop.xlane.xlu1 %2219 }
 0xc02   : > { %10155 = vrcp.f32 %v2211_v13  ;;  %v13670_v13 = vpack.i.bf16 %v11268_v25, %v11264_v43 }
 0xc05   : > { %v2214_v38 = vpop.xlane.xlu1 %2213 }
 0xc06   : > { %10157 = vrcp.f32 %v2214_v38 }
 0xc07   : > { %10159 = vrcp.f32 %v2220_v16 }
 0xc08   : > { %10161 = vrcp.f32 %v2217_v53 }
 0xc09   : > { %v2229_v1 = vpop.xlane.xlu0 %2228  ;;  %v2258_v58 = vpop.permute.xlu1 %2257 }
 0xc0d   : > { %v2223_v59 = vpop.xlane.xlu0 %2222  ;;  %v2256_v29 = vpop.permute.xlu1 %2255 }
 0xc0f   : > { %v10156_v18 = vpop.eup %10155 }
 0xc10   : > { %v2241_v14 = vmul.f32 %v10156_v18, %v11292_v20 }
 0xc11   : > { %v2260_v48 = vpop.permute.xlu0 %2259 }
 0xc12   : > { %9176 = vmatprep.subr.bf16.mxu0 %v2260_v48  ;;  %9664 = vmatprep.subr.bf16.mxu1 %v2260_v48 }
 0xc13   : > { %v10158_v47 = vpop.eup %10157  ;;  %9177 = vmatpush3.bf16.msra.mxu0 %v2260_v48  ;;  %9668 = vmatpush3.bf16.msra.mxu1 %v2260_v48 }
 0xc14   : > { %9178 = vmatprep.subr.bf16.mxu0 %v2258_v58  ;;  %9665 = vmatprep.subr.bf16.mxu1 %v2258_v58  ;;  %v2242_v15 = vmul.f32 %v10158_v47, %v10146_v12  ;;  %v10160_v61 = vpop.eup %10159 }
 0xc15   : > { %v10162_v20 = vpop.eup %10161  ;;  %v2244_v12 = vmul.f32 %v10160_v61, %v11294_v2  ;;  %v9746_v48 = vpop.permute.xlu0 %9745 }
 0xc16   : > { %v2249_v42 = vpack.c.bf16 %v2242_v15, %v2241_v14  ;;  %v2243_v8 = vmul.f32 %v10162_v20, %v11288_v55  ;;  %v9987_v55 = vld [vmem:[%s13571_s10 + $0x8] sm:$0xff]   ;;  %v9748_v14 = vunpack.i.h.bf16 %v9746_v48  ;;  %v9747_v15 = vunpack.i.l.bf16 %v9746_v48 }
 0xc17   : > { %9179 = vmatpush3.bf16.msra.mxu0 %v2258_v58  ;;  %9669 = vmatpush3.bf16.msra.mxu1 %v2258_v58 }
 0xc18   : > { %9180 = vmatprep.subr.bf16.mxu0 %v2256_v29  ;;  %9666 = vmatprep.subr.bf16.mxu1 %v2256_v29  ;;  %v2250_v60 = vpack.c.bf16 %v2244_v12, %v2243_v8  ;;  %v2439_v8 = vsel %vm1208_vm2, %v11096_v3, %v9748_v14 }
 0xc19   : > { %9184 = vmatprep.mubr.msk.bf16.mxu0 %vm1298_vm3, %v2249_v42  ;;  %v9756_v34 = vpop.permute.xlu0 %9755 }
 0xc1a   : > { %v9758_v61 = vunpack.i.h.bf16 %v9756_v34 }
 0xc1b   : > { %9181 = vmatpush3.bf16.msra.mxu0 %v2256_v29  ;;  %9670 = vmatpush3.bf16.msra.mxu1 %v2256_v29 }
 0xc1c   : > { %v2447_v3 = vsel %vm841_vm0, %v2439_v8, %v9758_v61  ;;  %v9990_v61 = vld [vmem:[%s13575_s14 + $0x8] sm:$0xff]  }
 0xc1d   : > { %v9766_v43 = vpop.permute.xlu0 %9765 }
 0xc3e   : > { %v2232_v39 = vpop.xlane.xlu1 %2231 }
 0xc3f   : > { %10163 = vrcp.f32 %v2232_v39 }
 0xc40   : > { %10165 = vrcp.f32 %v2223_v59 }
 0xc41   : > { %10167 = vrcp.f32 %v2229_v1 }
 0xc42   : > { %v2226_v51 = vpop.xlane.xlu1 %2225 }
 0xc43   : > { %10169 = vrcp.f32 %v2226_v51  ;;  %v9757_v51 = vunpack.i.l.bf16 %v9756_v34 }
 0xc46   : > { %v2254_v46 = vpop.permute.xlu1 %2253 }
 0xc47   : > { %9182 = vmatprep.subr.bf16.mxu0 %v2254_v46  ;;  %9667 = vmatprep.subr.bf16.mxu1 %v2254_v46 }
 0xc48   : > { %9183 = vmatpush3.bf16.msra.mxu0 %v2254_v46  ;;  %9671 = vmatpush3.bf16.msra.mxu1 %v2254_v46 }
 0xc49   : > { %9192 = vmatprep.subr.bf16.mxu0 %v9987_v55 }
 0xc4a   : > { %v9751_v58 = vpop.permute.xlu1 %9750 }
 0xc4b   : > { %9185 = vmatmul.mubr.msk.bf16.vlgmr.msra.gmra.mxu0 %vm1298_vm3, %v2250_v60  ;;  %v9753_v25 = vunpack.i.h.bf16 %v9751_v58  ;;  %v9752_v42 = vunpack.i.l.bf16 %v9751_v58  ;;  %v2438_v60 = vsel %vm1208_vm2, %v11092_v0, %v9747_v15 }
 0xc4c   : > { %v10164_v33 = vpop.eup %10163  ;;  %9193 = vmatpush3.bf16.msra.mxu0 %v9987_v55 }
 0xc4d   : > { %v10166_v24 = vpop.eup %10165  ;;  %v2248_v35 = vmul.f32 %v10164_v33, %v10152_v54  ;;  %v9988_v54 = vld [vmem:[%s13571_s10] sm:$0xff]   ;;  %v2441_v33 = vsel %vm1208_vm2, %v11094_v27, %v9753_v25 }
 0xc4e   : > { %v10168_v31 = vpop.eup %10167  ;;  %v2245_v52 = vmul.f32 %v10166_v24, %v11305_v45  ;;  %9194 = vmatprep.subr.bf16.mxu0 %v9988_v54  ;;  %v9761_v17 = vpop.permute.xlu1 %9760  ;;  %v2440_v24 = vsel %vm1208_vm2, %v11090_v63, %v9752_v42 }
 0xc4f   : > { %v2247_v2 = vmul.f32 %v10168_v31, %v11301_v4  ;;  %v9763_v29 = vunpack.i.h.bf16 %v9761_v17  ;;  %v9762_v39 = vunpack.i.l.bf16 %v9761_v17 }
 0xc50   : > { %v10170_v40 = vpop.eup %10169  ;;  %9195 = vmatpush3.bf16.msra.mxu0 %v9988_v54 }
 0xc51   : > { %v2246_v30 = vmul.f32 %v10170_v40, %v10154_v26  ;;  %v2252_v62 = vpack.c.bf16 %v2248_v35, %v2247_v2  ;;  %v2448_v40 = vsel %vm841_vm0, %v2440_v24, %v9762_v39  ;;  %v2449_v35 = vsel %vm841_vm0, %v2441_v33, %v9763_v29  ;;  %v9989_v39 = vld [vmem:[%s13573_s12 + $0x8] sm:$0xff]   ;;  %v8488_v24 = vld [vmem:[%s13572_s11] ss:$0 sm:$0xff] }
 0xc52   : > { %v9771_v47 = vpop.permute.xlu1 %9770  ;;  %v2446_v2 = vsel %vm841_vm0, %v2438_v60, %v9757_v51  ;;  %9204 = vmatprep.subr.bf16.mxu1 %v9989_v39  ;;  %v13635_v51 = vmov 0.0   ;;  %v13634_v33 = vsub.s32 2, %v10956_v57 }
 0xc53   : > { %v2251_v37 = vpack.c.bf16 %v2246_v30, %v2245_v52  ;;  %9216 = vmatprep.subr.bf16.mxu0 %v13635_v51 }
 0xc55   : > { %9188 = vmatprep.mubr.msk.bf16.mxu1 %vm1298_vm3, %v2251_v37 }
 0xc56   : > { %9189 = vmatmul.mubr.msk.bf16.vlgmr.msra.gmra.mxu1 %vm1298_vm3, %v2252_v62 }
 0xc57   : > { %9205 = vmatpush3.bf16.msra.mxu1 %v9989_v39 }
 0xd0b   : > { %v9186_v45 = vpop.f32.mrf.mxu0 }
 0xd0d   : > { %v2311_v4 = vpop.f32.mrf.mxu0 }
 0xd0f   : > { %v9187_v26 = vpop.f32.mrf.mxu0 }
 0xd10   : > { %v9774_v36 = vpack.i.bf16 %v9187_v26, %v9186_v45  ;;  %v9767_v26 = vunpack.i.l.bf16 %v9766_v43 }
 0xd11   : > { %v2314_v11 = vpop.f32.mrf.mxu0 }
 0xd12   : > { %v9779_v22 = vpack.i.bf16 %v2314_v11, %v2311_v4  ;;  %9775 = vrot.lane.b32.xlu1 %v9774_v36, %s13618_s3  ;;  %v9768_v4 = vunpack.i.h.bf16 %v9766_v43  ;;  %v9773_v36 = vunpack.i.h.bf16 %v9771_v47  ;;  %v9772_v11 = vunpack.i.l.bf16 %v9771_v47 }
 0xd14   : > { %9780 = vrot.lane.b32.xlu0 %v9779_v22, %s13618_s3  ;;  %v2445_v58 = vsel %vm1208_vm2, %v11102_v9, %v9773_v36  ;;  %v2444_v48 = vsel %vm1208_vm2, %v11098_v5, %v9772_v11 }
 0xd16   : > { %v9190_v53 = vpop.f32.mrf.mxu1  ;;  %9790 = vrot.lane.b32.xlu1 %v13670_v13, %s13620_s26 }
 0xd18   : > { %v2327_v16 = vpop.f32.mrf.mxu1  ;;  %9785 = vrot.lane.b32.xlu0 %v9784_v21, %s13620_s26  ;;  %s13676_s26 = smov 88  }
 0xd1a   : > { %v9191_v38 = vpop.f32.mrf.mxu1 }
 0xd1b   : > { %v9799_v1 = vpack.i.bf16 %v9191_v38, %v9190_v53 }
 0xd1c   : > { %v2330_v59 = vpop.f32.mrf.mxu1 }
 0xd1d   : > { %v9794_v18 = vpack.i.bf16 %v2330_v59, %v2327_v16  ;;  %9800 = vrot.lane.b32.xlu1 %v9799_v1, %s13618_s3  ;;  %v2443_v59 = vsel %vm1208_vm2, %v11104_v10, %v9768_v4 }
 0xd1f   : > { %9795 = vrot.lane.b32.xlu0 %v9794_v18, %s13618_s3  ;;  %v2442_v18 = vsel %vm1208_vm2, %v11100_v6, %v9767_v26  ;;  %s13675_s3 = smov 96  }
 0xd84   : > { %v9776_v20 = vpop.permute.xlu1 %9775 }
 0xd85   : > { %v9778_v12 = vunpack.i.h.bf16 %v9776_v20  ;;  %v9777_v46 = vunpack.i.l.bf16 %v9776_v20  ;;  %v9991_v20 = vld [vmem:[%s13573_s12] sm:$0xff]  }
 0xd86   : > { %v9781_v31 = vpop.permute.xlu0 %9780  ;;  %9206 = vmatprep.subr.bf16.mxu1 %v9991_v20 }
 0xd87   : > { %v9783_v52 = vunpack.i.h.bf16 %v9781_v31  ;;  %v9782_v30 = vunpack.i.l.bf16 %v9781_v31  ;;  %v2457_v37 = vsel %vm2454_vm4, %v2448_v40, %v9777_v46  ;;  %v2458_v0 = vsel %vm2454_vm4, %v2449_v35, %v9778_v12  ;;  %v9992_v12 = vld [vmem:[%s13575_s14] sm:$0xff]   ;;  %9207 = vmatpush3.bf16.msra.mxu1 %v9991_v20 }
 0xd88   : > { %v2464_v55 = vpack.c.bf16 %v2458_v0, %v2457_v37  ;;  %v9791_v54 = vpop.permute.xlu1 %9790  ;;  %v936_v46 = vld [vmem:[%s804_s6] sm:$0xff]  ;;  %s13677_s6 = smov 72  }
 0xd89   : > { %v2456_v27 = vsel %vm2454_vm4, %v2447_v3, %v9783_v52  ;;  %v2455_v62 = vsel %vm2454_vm4, %v2446_v2, %v9782_v30  ;;  %v9793_v22 = vunpack.i.h.bf16 %v9791_v54  ;;  %v9792_v21 = vunpack.i.l.bf16 %v9791_v54 }
 0xd8a   : > { %v2463_v63 = vpack.c.bf16 %v2456_v27, %v2455_v62  ;;  %v9786_v45 = vpop.permute.xlu0 %9785  ;;  %v11423_v8 = vpack.c.bf16 %v936_v46, %v936_v46  ;;  %v2565_v52 = vrot.slane %v10954_v56, %v13634_v33 }
 0xd8b   : > { %v9788_v53 = vunpack.i.h.bf16 %v9786_v45  ;;  %v9787_v13 = vunpack.i.l.bf16 %v9786_v45  ;;  %v2452_v34 = vsel %vm841_vm0, %v2444_v48, %v9792_v21  ;;  %v2453_v47 = vsel %vm841_vm0, %v2445_v58, %v9793_v22 }
 0xd8c   : > { %9196 = vmatprep.mubr.msk.bf16.mxu0 %vm940_vm1, %v2463_v63 }
 0xd8d   : > { %9197 = vmatmul.mubr.msk.bf16.vlgmr.msra.gmra.mxu0 %vm940_vm1, %v2464_v55  ;;  %v2451_v43 = vsel %vm841_vm0, %v2443_v59, %v9788_v53  ;;  %v2450_v10 = vsel %vm841_vm0, %v2442_v18, %v9787_v13 }
 0xd8e   : > { %9217 = vmatpush3.bf16.msra.mxu0 %v9990_v61 }
 0xd8f   : > { %v9801_v16 = vpop.permute.xlu1 %9800  ;;  %9218 = vmatprep.subr.bf16.mxu0 %v13635_v51 }
 0xd90   : > { %v9803_v38 = vunpack.i.h.bf16 %v9801_v16  ;;  %v9802_v1 = vunpack.i.l.bf16 %v9801_v16 }
 0xd91   : > { %v9796_v17 = vpop.permute.xlu0 %9795 }
 0xd92   : > { %v9798_v14 = vunpack.i.h.bf16 %v9796_v17  ;;  %v9797_v15 = vunpack.i.l.bf16 %v9796_v17  ;;  %v2461_v25 = vsel %vm2454_vm4, %v2452_v34, %v9802_v1  ;;  %v2462_v6 = vsel %vm2454_vm4, %v2453_v47, %v9803_v38  ;;  %9219 = vmatpush3.bf16.msra.mxu0 %v9992_v12 }
 0xd93   : > { %v2466_v29 = vpack.c.bf16 %v2462_v6, %v2461_v25  ;;  %v8495_v6 = vld [vmem:[%s13574_s13] ss:$0 sm:$0xff] }
 0xd94   : > { %v2459_v9 = vsel %vm2454_vm4, %v2450_v10, %v9797_v15  ;;  %v2460_v42 = vsel %vm2454_vm4, %v2451_v43, %v9798_v14 }
 0xd95   : > { %v2465_v5 = vpack.c.bf16 %v2460_v42, %v2459_v9 }
 0xd97   : > { %9200 = vmatprep.mubr.msk.bf16.mxu0 %vm940_vm1, %v2465_v5 }
 0xd98   : > { %9201 = vmatmul.mubr.msk.bf16.gmra.mxu0 %vm940_vm1, %v2466_v29 }
 0xd99   : > { %9220 = vmatprep.mubr.msk.bf16.mxu0 %vm10675_vm5, %v13635_v51 }
 0xda0   : > { %9221 = vmatmul.mubr.msk.bf16.vlgmr.msra.gmra.mxu0 %vm940_vm1, %v11423_v8 }
 0xe4d   : > { %v9198_v60 = vpop.f32.mrf.mxu0 }
 0xe4e   : > { %v2540_v35 = vadd.f32 %v9198_v60, %v8488_v24 }
 0xe4f   : > { %v2531_v31 = vpop.f32.mrf.mxu0 }
 0xe50   : > { %v2532_v40 = vadd.f32 %v8488_v24, %v2531_v31  ;;  %v2568_v62 = vmul.f32 %v2565_v52, %v2540_v35 }
 0xe51   : > { %v9199_v30 = vpop.f32.mrf.mxu0 }
 0xe52   : > { %v2543_v2 = vadd.f32 %v9199_v30, %v8488_v24  ;;  %v2566_v37 = vmul.f32 %v2565_v52, %v2532_v40  ;;  %v11446_v26 = vadd.f32 %v2568_v62, %v10838_v19 }
 0xe53   : > { %v2534_v3 = vpop.f32.mrf.mxu0 }
 0xe54   : > { %v2569_v0 = vmul.f32 %v2565_v52, %v2543_v2  ;;  %v2535_v27 = vadd.f32 %v8488_v24, %v2534_v3  ;;  %v11440_v54 = vadd.f32 %v2566_v37, %v10843_v23 }
 0xe56   : > { %v2567_v63 = vmul.f32 %v2565_v52, %v2535_v27  ;;  %v11437_v55 = vadd.f32 %v2569_v0, %v10850_v28 }
 0xe58   : > { %v11443_v45 = vadd.f32 %v2567_v63, %v10854_v32  ;;  %v9202_v4 = vpop.f32.mrf.mxu0  ;;  %v2583_v22 = vpack.c.bf16 %v11437_v55, %v11446_v26 }
 0xe59   : > { %v2556_v28 = vadd.f32 %v9202_v4, %v8488_v24 }
 0xe5a   : > { %v2547_v36 = vpop.f32.mrf.mxu0  ;;  %v2582_v11 = vpack.c.bf16 %v11443_v45, %v11440_v54 }
 0xe5b   : > { %v2548_v21 = vadd.f32 %v8488_v24, %v2547_v36  ;;  %v2572_v38 = vmul.f32 %v2565_v52, %v2556_v28 }
 0xe5c   : > { %v9203_v53 = vpop.f32.mrf.mxu0  ;;  %9208 = vmatprep.mubr.msk.bf16.mxu1 %vm940_vm1, %v2582_v11 }
 0xe5d   : > { %v2559_v23 = vadd.f32 %v9203_v53, %v8488_v24  ;;  %9209 = vmatmul.mubr.msk.bf16.vlgmr.msra.gmra.mxu1 %vm940_vm1, %v2583_v22  ;;  %v2570_v13 = vmul.f32 %v2565_v52, %v2548_v21  ;;  %v11464_v48 = vadd.f32 %v2572_v38, %v10871_v44 }
 0xe5e   : > { %v2550_v32 = vpop.f32.mrf.mxu0 }
 0xe5f   : > { %v2573_v16 = vmul.f32 %v2565_v52, %v2559_v23  ;;  %v2551_v19 = vadd.f32 %v8488_v24, %v2550_v32  ;;  %v11458_v18 = vadd.f32 %v2570_v13, %v10866_v41  ;;  %v8502_v41 = vld [vmem:[%s13576_s15] ss:$0 sm:$0xff] }
 0xe61   : > { %v2571_v1 = vmul.f32 %v2565_v52, %v2551_v19  ;;  %v11455_v59 = vadd.f32 %v2573_v16, %v10880_v50  ;;  %v2754_v50 = vpop.f32.mrf.mxu0 }
 0xe63   : > { %v11461_v58 = vadd.f32 %v2571_v1, %v10878_v49  ;;  %v2585_v34 = vpack.c.bf16 %v11455_v59, %v11464_v48  ;;  %v2755_v49 = vadd.f32 %v8502_v41, %v2754_v50  ;;  %v9222_v47 = vpop.f32.mrf.mxu0 }
 0xe65   : > { %v2584_v17 = vpack.c.bf16 %v11461_v58, %v11458_v18  ;;  %v11475_v14 = vpack.c.bf16 %v2755_v49, %v2755_v49  ;;  %v2757_v44 = vpop.f32.mrf.mxu0 }
 0xe67   : > { %9212 = vmatprep.mubr.msk.bf16.mxu1 %vm940_vm1, %v2584_v17  ;;  %3038 = vrot.lane.b32.xlu0 %v11475_v14, %s13672_s1  ;;  %v2783_v15 = vsel %vm1208_vm2, %v11475_v14, 0  ;;  %v9223_v43 = vpop.f32.mrf.mxu0 }
 0xe68   : > { %9213 = vmatmul.mubr.msk.bf16.gmra.mxu1 %vm940_vm1, %v2585_v34  ;;  %9688 = vmatprep.subr.msk.bf16.mxu1 %vm1208_vm2, %v11475_v14 }
 0xe69   : > { %9225 = vmatpush3.bf16.xpose.msra.mxu1 %v2783_v15 }
 0xed9   : > { %v3039_v10 = vpop.permute.xlu0 %3038 }
 0xeda   : > { %9690 = vmatprep.subr.msk.bf16.mxu1 %vm1208_vm2, %v3039_v10  ;;  %v3053_v52 = vsel %vm1208_vm2, %v3039_v10, 0 }
 0xf1d   : > { %v9210_v25 = vpop.f32.mrf.mxu1 }
 0xf1e   : > { %v2664_v42 = vadd.f32 %v9210_v25, %v8495_v6 }
 0xf1f   : > { %v2655_v9 = vpop.f32.mrf.mxu1 }
 0xf20   : > { %v2656_v29 = vadd.f32 %v8495_v6, %v2655_v9  ;;  %v2688_v20 = vmul.f32 0.35355338, %v2664_v42 }
 0xf21   : > { %v9211_v5 = vpop.f32.mrf.mxu1 }
 0xf22   : > { %v2667_v39 = vadd.f32 %v9211_v5, %v8495_v6  ;;  %v2686_v60 = vmul.f32 0.35355338, %v2656_v29 }
 0xf23   : > { %v2658_v61 = vpop.f32.mrf.mxu1 }
 0xf24   : > { %v2689_v12 = vmul.f32 0.35355338, %v2667_v39  ;;  %v2659_v46 = vadd.f32 %v8495_v6, %v2658_v61 }
 0xf26   : > { %v2766_v24 = vpack.c.bf16 %v2689_v12, %v2688_v20  ;;  %v2687_v31 = vmul.f32 0.35355338, %v2659_v46 }
 0xf28   : > { %v2765_v40 = vpack.c.bf16 %v2687_v31, %v2686_v60  ;;  %3032 = vrot.lane.b32.xlu0 %v2766_v24, %s13672_s1  ;;  %v9214_v35 = vpop.f32.mrf.mxu1 }
 0xf29   : > { %v2680_v2 = vadd.f32 %v9214_v35, %v8495_v6 }
 0xf2a   : > { %v2671_v30 = vpop.f32.mrf.mxu1  ;;  %3030 = vrot.lane.b32.xlu1 %v2765_v40, %s13672_s1  ;;  %9226 = vmatprep.mubr.msk.bf16.mxu1 %vm1208_vm2, %v2765_v40 }
 0xf2b   : > { %9227 = vmatmul.mubr.msk.bf16.vlgmr.msra.gmra.mxu1 %vm1208_vm2, %v2766_v24  ;;  %v2672_v37 = vadd.f32 %v8495_v6, %v2671_v30  ;;  %v2692_v62 = vmul.f32 0.35355338, %v2680_v2 }
 0xf2c   : > { %v9215_v3 = vpop.f32.mrf.mxu1  ;;  %9245 = vmatpush3.bf16.xpose.msra.mxu1 %v3053_v52 }
 0xf2d   : > { %v2683_v0 = vadd.f32 %v9215_v3, %v8495_v6  ;;  %v2690_v36 = vmul.f32 0.35355338, %v2672_v37 }
 0xf2e   : > { %v2674_v27 = vpop.f32.mrf.mxu1 }
 0xf2f   : > { %v2693_v63 = vmul.f32 0.35355338, %v2683_v0  ;;  %v2675_v4 = vadd.f32 %v8495_v6, %v2674_v27 }
 0xf31   : > { %v2768_v11 = vpack.c.bf16 %v2693_v63, %v2692_v62  ;;  %v2691_v22 = vmul.f32 0.35355338, %v2675_v4 }
 0xf33   : > { %v2767_v21 = vpack.c.bf16 %v2691_v22, %v2690_v36  ;;  %3036 = vrot.lane.b32.xlu0 %v2768_v11, %s13672_s1 }
 0xf35   : > { %3034 = vrot.lane.b32.xlu1 %v2767_v21, %s13672_s1  ;;  %9230 = vmatprep.mubr.msk.bf16.mxu1 %vm1208_vm2, %v2767_v21 }
 0xf36   : > { %9231 = vmatmul.mubr.msk.bf16.gmra.mxu1 %vm1208_vm2, %v2768_v11 }
 0xf37   : > { %3294 = vrot.lane.b32.xlu0 %v2765_v40, %s13673_s4 }
 0xf39   : > { %3302 = vrot.lane.b32.xlu1 %v11475_v14, %s13673_s4 }
 0xf3b   : > { %3298 = vrot.lane.b32.xlu0 %v2767_v21, %s13673_s4 }
 0xf3d   : > { %3296 = vrot.lane.b32.xlu1 %v2766_v24, %s13673_s4 }
 0xf3f   : > { %3566 = vrot.lane.b32.xlu0 %v11475_v14, %s13674_s28 }
 0xf41   : > { %3300 = vrot.lane.b32.xlu1 %v2768_v11, %s13673_s4 }
 0xf43   : > { %3560 = vrot.lane.b32.xlu0 %v2766_v24, %s13674_s28 }
 0xf45   : > { %3558 = vrot.lane.b32.xlu1 %v2765_v40, %s13674_s28 }
 0xf47   : > { %3564 = vrot.lane.b32.xlu0 %v2768_v11, %s13674_s28 }
 0xf49   : > { %3562 = vrot.lane.b32.xlu1 %v2767_v21, %s13674_s28 }
 0xf4d   : > { %2943 = vrot.lane.b32.xlu1 %v11475_v14, %s13675_s3 }
 0xf9a   : > { %v3033_v53 = vpop.permute.xlu0 %3032 }
 0xf9c   : > { %v3031_v28 = vpop.permute.xlu1 %3030 }
 0xf9d   : > { %9246 = vmatprep.mubr.msk.bf16.mxu1 %vm1208_vm2, %v3031_v28 }
 0xf9e   : > { %9247 = vmatmul.mubr.msk.bf16.vlgmr.msra.gmra.mxu1 %vm1208_vm2, %v3033_v53 }
 0xfa5   : > { %v3037_v23 = vpop.permute.xlu0 %3036 }
 0xfa7   : > { %v3035_v32 = vpop.permute.xlu1 %3034 }
 0xfa8   : > { %9250 = vmatprep.mubr.msk.bf16.mxu1 %vm1208_vm2, %v3035_v32 }
 0xfa9   : > { %v3295_v13 = vpop.permute.xlu0 %3294  ;;  %9251 = vmatmul.mubr.msk.bf16.gmra.mxu1 %vm1208_vm2, %v3037_v23 }
 0xfaa   : > { %9266 = vmatprep.mubr.msk.bf16.mxu1 %vm1208_vm2, %v3295_v13 }
 0xfab   : > { %v3303_v16 = vpop.permute.xlu1 %3302 }
 0xfac   : > { %9692 = vmatprep.subr.msk.bf16.mxu1 %vm1208_vm2, %v3303_v16  ;;  %v3317_v19 = vsel %vm1208_vm2, %v3303_v16, 0 }
 0xfad   : > { %v3299_v38 = vpop.permute.xlu0 %3298  ;;  %9265 = vmatpush3.bf16.xpose.msra.mxu1 %v3317_v19 }
 0xfaf   : > { %v3297_v1 = vpop.permute.xlu1 %3296 }
 0xfb1   : > { %v3567_v17 = vpop.permute.xlu0 %3566 }
 0xfb2   : > { %9694 = vmatprep.subr.msk.bf16.mxu1 %vm1208_vm2, %v3567_v17  ;;  %v3581_v41 = vsel %vm1208_vm2, %v3567_v17, 0 }
 0xfb3   : > { %v3301_v34 = vpop.permute.xlu1 %3300 }
 0xfb4   : > { %9267 = vmatmul.mubr.msk.bf16.vlgmr.msra.gmra.mxu1 %vm1208_vm2, %v3297_v1 }
 0xfb5   : > { %9270 = vmatprep.mubr.msk.bf16.mxu1 %vm1208_vm2, %v3299_v38  ;;  %9285 = vmatpush3.bf16.xpose.msra.mxu1 %v3581_v41  ;;  %v3561_v15 = vpop.permute.xlu0 %3560 }
 0xfb7   : > { %v3559_v50 = vpop.permute.xlu1 %3558 }
 0xfb9   : > { %v3565_v43 = vpop.permute.xlu0 %3564 }
 0xfbb   : > { %v3563_v49 = vpop.permute.xlu1 %3562 }
 0xfbc   : > { %9271 = vmatmul.mubr.msk.bf16.gmra.mxu1 %vm1208_vm2, %v3301_v34 }
 0xfbd   : > { %9286 = vmatprep.mubr.msk.bf16.mxu1 %vm1208_vm2, %v3559_v50 }
 0xfbf   : > { %v2944_v47 = vpop.permute.xlu1 %2943 }
 0xfc0   : > { %9689 = vmatprep.subr.msk.bf16.mxu0 %vm2957_vm6, %v2944_v47  ;;  %v2959_v44 = vsel %vm2957_vm6, %v2944_v47, 0 }
 0xfc1   : > { %9235 = vmatpush3.bf16.msra.mxu0 %v2959_v44 }
 0xfc4   : > { %9287 = vmatmul.mubr.msk.bf16.vlgmr.msra.gmra.mxu1 %vm1208_vm2, %v3561_v15 }
 0xfc5   : > { %9290 = vmatprep.mubr.msk.bf16.mxu1 %vm1208_vm2, %v3563_v49 }
 0xfcc   : > { %9291 = vmatmul.mubr.msk.bf16.gmra.mxu1 %vm1208_vm2, %v3565_v43 }
 0xfeb   : > { %v11528_v10 = vpop.f32.mrf.mxu1 }
 0xfec   : > { %v2856_v25 = vsel %vm1208_vm2, %v11528_v10, -inf }
 0xfed   : > { %2857 = vmax.xlane.f32.xlu0 %v2856_v25  ;;  %v11532_v6 = vpop.f32.mrf.mxu1 }
 0xfee   : > { %v2850_v9 = vsel %vm1208_vm2, %v11532_v6, -inf }
 0xfef   : > { %2851 = vmax.xlane.f32.xlu1 %v2850_v9  ;;  %v11536_v42 = vpop.f32.mrf.mxu1 }
 0xff0   : > { %v2859_v5 = vsel %vm1208_vm2, %v11536_v42, -inf }
 0xff1   : > { %2860 = vmax.xlane.f32.xlu0 %v2859_v5  ;;  %v11540_v29 = vpop.f32.mrf.mxu1 }
 0xff2   : > { %v2853_v39 = vsel %vm1208_vm2, %v11540_v29, -inf }
 0xff5   : > { %2854 = vmax.xlane.f32.xlu0 %v2853_v39 }
 0xff6   : > { %v11544_v61 = vpop.f32.mrf.mxu1 }
 0xff7   : > { %v2868_v20 = vsel %vm1208_vm2, %v11544_v61, -inf }
 0xff8   : > { %2869 = vmax.xlane.f32.xlu1 %v2868_v20  ;;  %v11548_v12 = vpop.f32.mrf.mxu1 }
 0xff9   : > { %v2862_v60 = vsel %vm1208_vm2, %v11548_v12, -inf }
 0xffa   : > { %v11550_v46 = vpop.f32.mrf.mxu1 }
 0xffb   : > { %v2871_v24 = vsel %vm1208_vm2, %v11550_v46, -inf }
 0xffc   : > { %2863 = vmax.xlane.f32.xlu1 %v2862_v60  ;;  %2872 = vmax.xlane.f32.xlu0 %v2871_v24  ;;  %v11556_v31 = vpop.f32.mrf.mxu1 }
 0xffd   : > { %v2865_v40 = vsel %vm1208_vm2, %v11556_v31, -inf }
0x1000   : > { %2866 = vmax.xlane.f32.xlu0 %v2865_v40 }
0x105e   : > { %v11560_v35 = vpop.f32.mrf.mxu1 }
0x105f   : > { %v3126_v52 = vsel %vm1208_vm2, %v11560_v35, -inf }
0x1060   : > { %3127 = vmax.xlane.f32.xlu1 %v3126_v52  ;;  %v11564_v30 = vpop.f32.mrf.mxu1 }
0x1061   : > { %v3120_v3 = vsel %vm1208_vm2, %v11564_v30, -inf }
0x1062   : > { %v11566_v2 = vpop.f32.mrf.mxu1 }
0x1063   : > { %v3129_v37 = vsel %vm1208_vm2, %v11566_v2, -inf }
0x1064   : > { %3121 = vmax.xlane.f32.xlu1 %v3120_v3  ;;  %v11572_v0 = vpop.f32.mrf.mxu1  ;;  %3130 = vmax.xlane.f32.xlu0 %v3129_v37 }
0x1065   : > { %v3123_v27 = vsel %vm1208_vm2, %v11572_v0, -inf }
0x1068   : > { %3124 = vmax.xlane.f32.xlu0 %v3123_v27 }
0x1069   : > { %v11576_v62 = vpop.f32.mrf.mxu1 }
0x106a   : > { %v3138_v63 = vsel %vm1208_vm2, %v11576_v62, -inf }
0x106b   : > { %3139 = vmax.xlane.f32.xlu1 %v3138_v63  ;;  %v11580_v4 = vpop.f32.mrf.mxu1 }
0x106c   : > { %v3132_v11 = vsel %vm1208_vm2, %v11580_v4, -inf }
0x106d   : > { %v11582_v36 = vpop.f32.mrf.mxu1 }
0x106e   : > { %v3141_v22 = vsel %vm1208_vm2, %v11582_v36, -inf }
0x106f   : > { %3133 = vmax.xlane.f32.xlu1 %v3132_v11  ;;  %v11588_v21 = vpop.f32.mrf.mxu1  ;;  %3142 = vmax.xlane.f32.xlu0 %v3141_v22 }
0x1070   : > { %v3135_v28 = vsel %vm1208_vm2, %v11588_v21, -inf }
0x1073   : > { %3136 = vmax.xlane.f32.xlu0 %v3135_v28 }
0x1074   : > { %v11592_v53 = vpop.f32.mrf.mxu1 }
0x1075   : > { %v3390_v23 = vsel %vm1208_vm2, %v11592_v53, -inf }
0x1076   : > { %3391 = vmax.xlane.f32.xlu1 %v3390_v23  ;;  %v11596_v32 = vpop.f32.mrf.mxu1  ;;  %v2858_v38 = vpop.xlane.xlu0 %2857 }
0x1077   : > { %v3384_v16 = vsel %vm1208_vm2, %v11596_v32, -inf  ;;  %v2876_v34 = vsub.f32 %v11528_v10, %v2858_v38 }
0x1078   : > { %v11598_v13 = vpop.f32.mrf.mxu1  ;;  %v2852_v41 = vpop.xlane.xlu1 %2851 }
0x1079   : > { %v3393_v19 = vsel %vm1208_vm2, %v11598_v13, -inf  ;;  %v2874_v44 = vsub.f32 %v11532_v6, %v2852_v41  ;;  %v2886_v43 = vmul.f32 1.442695, %v2876_v34 }
0x107a   : > { %3385 = vmax.xlane.f32.xlu1 %v3384_v16  ;;  %v11604_v1 = vpop.f32.mrf.mxu1  ;;  %3394 = vmax.xlane.f32.xlu0 %v3393_v19 }
0x107b   : > { %v3387_v49 = vsel %vm1208_vm2, %v11604_v1, -inf  ;;  %v2882_v39 = vmul.f32 1.442695, %v2874_v44  ;;  %10171 = vpow2.f32 %v2886_v43 }
0x107c   : > { %v11606_v17 = vpop.f32.mrf.mxu1 }
0x107d   : > { %v3402_v50 = vsel %vm1208_vm2, %v11606_v17, -inf  ;;  %10173 = vpow2.f32 %v2882_v39 }
0x107e   : > { %3403 = vmax.xlane.f32.xlu1 %v3402_v50  ;;  %v11613_v47 = vpop.f32.mrf.mxu1  ;;  %3388 = vmax.xlane.f32.xlu0 %v3387_v49 }
0x107f   : > { %v3396_v10 = vsel %vm1208_vm2, %v11613_v47, -inf }
0x1080   : > { %v11616_v15 = vpop.f32.mrf.mxu1 }
0x1081   : > { %v2870_v25 = vpop.xlane.xlu1 %2869  ;;  %v3405_v9 = vsel %vm1208_vm2, %v11616_v15, -inf }
0x1082   : > { %3397 = vmax.xlane.f32.xlu1 %v3396_v10  ;;  %v11622_v5 = vpop.f32.mrf.mxu1  ;;  %3406 = vmax.xlane.f32.xlu0 %v3405_v9  ;;  %v2880_v6 = vsub.f32 %v11544_v61, %v2870_v25 }
0x1083   : > { %v3399_v24 = vsel %vm1208_vm2, %v11622_v5, -inf }
0x1084   : > { %v11624_v20 = vpop.f32.mrf.mxu1  ;;  %v2894_v37 = vmul.f32 1.442695, %v2880_v6 }
0x1085   : > { %v3654_v60 = vsel %vm1208_vm2, %v11624_v20, -inf  ;;  %v2864_v40 = vpop.xlane.xlu1 %2863 }
0x1086   : > { %3655 = vmax.xlane.f32.xlu1 %v3654_v60  ;;  %v11631_v52 = vpop.f32.mrf.mxu1  ;;  %3400 = vmax.xlane.f32.xlu0 %v3399_v24  ;;  %v2878_v27 = vsub.f32 %v11548_v12, %v2864_v40  ;;  %10175 = vpow2.f32 %v2894_v37  ;;  %v2861_v60 = vpop.xlane.xlu0 %2860 }
0x1087   : > { %v3648_v61 = vsel %vm1208_vm2, %v11631_v52, -inf  ;;  %v2877_v40 = vsub.f32 %v11536_v42, %v2861_v60 }
0x1088   : > { %v11633_v3 = vpop.f32.mrf.mxu1  ;;  %v2890_v28 = vmul.f32 1.442695, %v2878_v27  ;;  %v11656_v41 = vpop.eup %10171 }
0x1089   : > { %v3657_v63 = vsel %vm1208_vm2, %v11633_v3, -inf  ;;  %v2904_v44 = vsel %vm1208_vm2, %v11656_v41, 0.0  ;;  %v2888_v27 = vmul.f32 1.442695, %v2877_v40 }
0x108a   : > { %3649 = vmax.xlane.f32.xlu1 %v3648_v61  ;;  %v11640_v11 = vpop.f32.mrf.mxu1  ;;  %3658 = vmax.xlane.f32.xlu0 %v3657_v63  ;;  %10177 = vpow2.f32 %v2890_v28  ;;  %v11660_v49 = vpop.eup %10173 }
0x108b   : > { %v3651_v12 = vsel %vm1208_vm2, %v11640_v11, -inf  ;;  %v2898_v25 = vsel %vm1208_vm2, %v11660_v49, 0.0  ;;  %v2855_v24 = vpop.xlane.xlu0 %2854  ;;  %10179 = vpow2.f32 %v2888_v27 }
0x108c   : > { %v11642_v22 = vpop.f32.mrf.mxu1  ;;  %v2875_v61 = vsub.f32 %v11540_v29, %v2855_v24 }
0x108d   : > { %v3666_v23 = vsel %vm1208_vm2, %v11642_v22, -inf }
0x108e   : > { %3667 = vmax.xlane.f32.xlu1 %v3666_v23  ;;  %v11648_v16 = vpop.f32.mrf.mxu1  ;;  %3652 = vmax.xlane.f32.xlu0 %v3651_v12  ;;  %v2884_v63 = vmul.f32 1.442695, %v2875_v61 }
0x108f   : > { %v3660_v38 = vsel %vm1208_vm2, %v11648_v16, -inf  ;;  %v2873_v37 = vpop.xlane.xlu0 %2872 }
0x1090   : > { %v11650_v19 = vpop.f32.mrf.mxu1  ;;  %v2881_v28 = vsub.f32 %v11550_v46, %v2873_v37  ;;  %10181 = vpow2.f32 %v2884_v63 }
0x1091   : > { %v3669_v34 = vsel %vm1208_vm2, %v11650_v19, -inf }
0x1092   : > { %3661 = vmax.xlane.f32.xlu1 %v3660_v38  ;;  %v11658_v50 = vpop.f32.mrf.mxu1  ;;  %3670 = vmax.xlane.f32.xlu0 %v3669_v34  ;;  %v2896_v12 = vmul.f32 1.442695, %v2881_v28 }
0x1093   : > { %v3663_v43 = vsel %vm1208_vm2, %v11658_v50, -inf  ;;  %v11668_v10 = vpop.eup %10175  ;;  %v2867_v23 = vpop.xlane.xlu0 %2866 }
0x1094   : > { %v2916_v9 = vsel %vm1208_vm2, %v11668_v10, 0.0  ;;  %v2879_v38 = vsub.f32 %v11556_v31, %v2867_v23  ;;  %10183 = vpow2.f32 %v2896_v12 }
0x1096   : > { %2905 = vadd.xlane.f32.xlu1 %v2904_v44  ;;  %3664 = vmax.xlane.f32.xlu0 %v3663_v43  ;;  %v2892_v34 = vmul.f32 1.442695, %v2879_v38 }
0x1097   : > { %v11672_v39 = vpop.eup %10177 }
0x1098   : > { %v2910_v6 = vsel %vm1208_vm2, %v11672_v39, 0.0  ;;  %10185 = vpow2.f32 %v2892_v34  ;;  %v11682_v44 = vpop.eup %10179 }
0x1099   : > { %v2907_v42 = vsel %vm1208_vm2, %v11682_v44, 0.0 }
0x109a   : > { %2899 = vadd.xlane.f32.xlu1 %v2898_v25 }
0x109d   : > { %v11686_v43 = vpop.eup %10181 }
0x109e   : > { %2917 = vadd.xlane.f32.xlu1 %v2916_v9  ;;  %v2901_v29 = vsel %vm1208_vm2, %v11686_v43, 0.0 }
0x10a1   : > { %v11690_v46 = vpop.eup %10183 }
0x10a2   : > { %2911 = vadd.xlane.f32.xlu1 %v2910_v6  ;;  %v2919_v31 = vsel %vm1208_vm2, %v11690_v46, 0.0 }
0x10a5   : > { %v11694_v25 = vpop.eup %10185 }
0x10a6   : > { %v2913_v9 = vsel %vm1208_vm2, %v11694_v25, 0.0 }
0x10ac   : > { %3212 = vrot.lane.b32.xlu0 %v11475_v14, %s13676_s26 }
0x10cb   : > { %2908 = vadd.xlane.f32.xlu0 %v2907_v42 }
0x10cf   : > { %2902 = vadd.xlane.f32.xlu0 %v2901_v29 }
0x10d3   : > { %2920 = vadd.xlane.f32.xlu0 %v2919_v31 }
0x10d7   : > { %2914 = vadd.xlane.f32.xlu0 %v2913_v9 }
0x10e9   : > { %v3128_v6 = vpop.xlane.xlu1 %3127 }
0x10ea   : > { %v3146_v60 = vsub.f32 %v11560_v35, %v3128_v6 }
0x10ec   : > { %v3156_v24 = vmul.f32 1.442695, %v3146_v60 }
0x10ed   : > { %v3122_v40 = vpop.xlane.xlu1 %3121  ;;  %v3131_v37 = vpop.xlane.xlu0 %3130 }
0x10ee   : > { %10187 = vpow2.f32 %v3156_v24  ;;  %v3144_v27 = vsub.f32 %v11564_v30, %v3122_v40  ;;  %v3147_v61 = vsub.f32 %v11566_v2, %v3131_v37 }
0x10f0   : > { %v3152_v63 = vmul.f32 1.442695, %v3144_v27  ;;  %v3158_v28 = vmul.f32 1.442695, %v3147_v61 }
0x10f1   : > { %v3125_v23 = vpop.xlane.xlu0 %3124 }
0x10f2   : > { %10189 = vpow2.f32 %v3152_v63  ;;  %v3145_v12 = vsub.f32 %v11572_v0, %v3125_v23 }
0x10f3   : > { %10191 = vpow2.f32 %v3158_v28 }
0x10f4   : > { %v3154_v38 = vmul.f32 1.442695, %v3145_v12  ;;  %v3140_v34 = vpop.xlane.xlu1 %3139 }
0x10f5   : > { %v3150_v42 = vsub.f32 %v11576_v62, %v3140_v34 }
0x10f6   : > { %10193 = vpow2.f32 %v3154_v38 }
0x10f7   : > { %v3164_v35 = vmul.f32 1.442695, %v3150_v42 }
0x10f8   : > { %v3134_v29 = vpop.xlane.xlu1 %3133  ;;  %v3143_v31 = vpop.xlane.xlu0 %3142 }
0x10f9   : > { %10195 = vpow2.f32 %v3164_v35  ;;  %v3148_v30 = vsub.f32 %v11580_v4, %v3134_v29  ;;  %v3151_v2 = vsub.f32 %v11582_v36, %v3143_v31 }
0x10fb   : > { %v11705_v9 = vpop.eup %10187  ;;  %v3160_v6 = vmul.f32 1.442695, %v3148_v30  ;;  %v3166_v60 = vmul.f32 1.442695, %v3151_v2 }
0x10fc   : > { %v3137_v24 = vpop.xlane.xlu0 %3136  ;;  %v3174_v0 = vsel %vm1208_vm2, %v11705_v9, 0.0 }
0x10fd   : > { %10197 = vpow2.f32 %v3160_v6  ;;  %v3149_v62 = vsub.f32 %v11588_v21, %v3137_v24  ;;  %3175 = vadd.xlane.f32.xlu1 %v3174_v0 }
0x10fe   : > { %10199 = vpow2.f32 %v3166_v60 }
0x10ff   : > { %v11710_v40 = vpop.eup %10189  ;;  %v3162_v37 = vmul.f32 1.442695, %v3149_v62  ;;  %v3392_v27 = vpop.xlane.xlu1 %3391 }
0x1100   : > { %v11712_v4 = vpop.eup %10191  ;;  %v3410_v36 = vsub.f32 %v11592_v53, %v3392_v27  ;;  %v3168_v61 = vsel %vm1208_vm2, %v11710_v40, 0.0 }
0x1101   : > { %10201 = vpow2.f32 %v3162_v37  ;;  %3169 = vadd.xlane.f32.xlu1 %v3168_v61  ;;  %v3177_v63 = vsel %vm1208_vm2, %v11712_v4, 0.0 }
0x1102   : > { %v3420_v28 = vmul.f32 1.442695, %v3410_v36  ;;  %3178 = vadd.xlane.f32.xlu0 %v3177_v63 }
0x1103   : > { %v11719_v21 = vpop.eup %10193  ;;  %v3386_v23 = vpop.xlane.xlu1 %3385 }
0x1104   : > { %v3395_v12 = vpop.xlane.xlu0 %3394  ;;  %10203 = vpow2.f32 %v3420_v28  ;;  %v3408_v38 = vsub.f32 %v11596_v32, %v3386_v23  ;;  %v3171_v53 = vsel %vm1208_vm2, %v11719_v21, 0.0 }
0x1105   : > { %v3411_v34 = vsub.f32 %v11598_v13, %v3395_v12 }
0x1106   : > { %v11725_v42 = vpop.eup %10195  ;;  %v3416_v35 = vmul.f32 1.442695, %v3408_v38  ;;  %3172 = vadd.xlane.f32.xlu0 %v3171_v53 }
0x1107   : > { %v3404_v29 = vpop.xlane.xlu1 %3403  ;;  %v3186_v30 = vsel %vm1208_vm2, %v11725_v42, 0.0  ;;  %v3422_v2 = vmul.f32 1.442695, %v3411_v34 }
0x1108   : > { %v3389_v31 = vpop.xlane.xlu0 %3388  ;;  %10205 = vpow2.f32 %v3416_v35  ;;  %3187 = vadd.xlane.f32.xlu1 %v3186_v30  ;;  %v3414_v60 = vsub.f32 %v11606_v17, %v3404_v29 }
0x1109   : > { %v3409_v6 = vsub.f32 %v11604_v1, %v3389_v31  ;;  %10207 = vpow2.f32 %v3422_v2 }
0x110a   : > { %v11730_v32 = vpop.eup %10197  ;;  %v3428_v63 = vmul.f32 1.442695, %v3414_v60 }
0x110b   : > { %v11732_v13 = vpop.eup %10199  ;;  %v3418_v24 = vmul.f32 1.442695, %v3409_v6  ;;  %v3398_v0 = vpop.xlane.xlu1 %3397  ;;  %v3180_v37 = vsel %vm1208_vm2, %v11730_v32, 0.0 }
0x110c   : > { %v3407_v62 = vpop.xlane.xlu0 %3406  ;;  %v3412_v27 = vsub.f32 %v11613_v47, %v3398_v0  ;;  %3181 = vadd.xlane.f32.xlu1 %v3180_v37  ;;  %v3189_v1 = vsel %vm1208_vm2, %v11732_v13, 0.0 }
0x110d   : > { %3190 = vadd.xlane.f32.xlu0 %v3189_v1  ;;  %10209 = vpow2.f32 %v3418_v24  ;;  %v3415_v17 = vsub.f32 %v11616_v15, %v3407_v62 }
0x110e   : > { %v11740_v36 = vpop.eup %10201  ;;  %v3424_v61 = vmul.f32 1.442695, %v3412_v27 }
0x110f   : > { %v3656_v28 = vpop.xlane.xlu1 %3655  ;;  %v3183_v12 = vsel %vm1208_vm2, %v11740_v36, 0.0  ;;  %v3430_v35 = vmul.f32 1.442695, %v3415_v17 }
0x1110   : > { %v3401_v23 = vpop.xlane.xlu0 %3400  ;;  %10211 = vpow2.f32 %v3424_v61  ;;  %v3674_v47 = vsub.f32 %v11624_v20, %v3656_v28 }
0x1111   : > { %v11746_v38 = vpop.eup %10203  ;;  %3184 = vadd.xlane.f32.xlu0 %v3183_v12  ;;  %10213 = vpow2.f32 %v3428_v63  ;;  %v3413_v15 = vsub.f32 %v11622_v5, %v3401_v23 }
0x1112   : > { %v3684_v34 = vmul.f32 1.442695, %v3674_v47  ;;  %v3438_v53 = vsel %vm1208_vm2, %v11746_v38, 0.0 }
0x1113   : > { %v3650_v29 = vpop.xlane.xlu1 %3649  ;;  %v3426_v37 = vmul.f32 1.442695, %v3413_v15 }
0x1114   : > { %v3659_v31 = vpop.xlane.xlu0 %3658  ;;  %10215 = vpow2.f32 %v3684_v34  ;;  %v3672_v30 = vsub.f32 %v11631_v52, %v3650_v29 }
0x1115   : > { %v3675_v2 = vsub.f32 %v11633_v3, %v3659_v31  ;;  %v11753_v6 = vpop.eup %10205  ;;  %3439 = vadd.xlane.f32.xlu0 %v3438_v53  ;;  %10217 = vpow2.f32 %v3430_v35 }
0x1116   : > { %v3680_v20 = vmul.f32 1.442695, %v3672_v30  ;;  %v3432_v24 = vsel %vm1208_vm2, %v11753_v6, 0.0  ;;  %v11759_v52 = vpop.eup %10207 }
0x1117   : > { %v3686_v60 = vmul.f32 1.442695, %v3675_v2  ;;  %v3668_v0 = vpop.xlane.xlu1 %3667  ;;  %v3441_v23 = vsel %vm1208_vm2, %v11759_v52, 0.0 }
0x1118   : > { %v3653_v62 = vpop.xlane.xlu0 %3652  ;;  %10219 = vpow2.f32 %v3680_v20  ;;  %v3678_v27 = vsub.f32 %v11642_v22, %v3668_v0 }
0x1119   : > { %v3673_v5 = vsub.f32 %v11640_v11, %v3653_v62  ;;  %3433 = vadd.xlane.f32.xlu0 %v3432_v24  ;;  %10221 = vpow2.f32 %v3686_v60 }
0x111a   : > { %v3692_v3 = vmul.f32 1.442695, %v3678_v27  ;;  %v11761_v63 = vpop.eup %10209  ;;  %10223 = vpow2.f32 %v3426_v37 }
0x111b   : > { %v3662_v1 = vpop.xlane.xlu1 %3661  ;;  %v3682_v17 = vmul.f32 1.442695, %v3673_v5 }
0x111c   : > { %v3671_v61 = vpop.xlane.xlu0 %3670  ;;  %v3676_v28 = vsub.f32 %v11648_v16, %v3662_v1  ;;  %10225 = vpow2.f32 %v3692_v3  ;;  %v3435_v16 = vsel %vm1208_vm2, %v11761_v63, 0.0 }
0x111d   : > { %v11766_v12 = vpop.eup %10211  ;;  %3442 = vadd.xlane.f32.xlu0 %v3441_v23  ;;  %v3679_v22 = vsub.f32 %v11650_v19, %v3671_v61  ;;  %10227 = vpow2.f32 %v3682_v17 }
0x111e   : > { %v3688_v11 = vmul.f32 1.442695, %v3676_v28  ;;  %v3444_v47 = vsel %vm1208_vm2, %v11766_v12, 0.0  ;;  %v11771_v53 = vpop.eup %10213 }
0x111f   : > { %3445 = vadd.xlane.f32.xlu1 %v3444_v47  ;;  %v3694_v29 = vmul.f32 1.442695, %v3679_v22  ;;  %v3450_v2 = vsel %vm1208_vm2, %v11771_v53, 0.0 }
0x1120   : > { %v3665_v34 = vpop.xlane.xlu0 %3664  ;;  %10229 = vpow2.f32 %v3688_v11 }
0x1121   : > { %v11775_v35 = vpop.eup %10215  ;;  %3436 = vadd.xlane.f32.xlu0 %v3435_v16  ;;  %v3677_v31 = vsub.f32 %v11658_v50, %v3665_v34  ;;  %10231 = vpow2.f32 %v3694_v29  ;;  %v2906_v34 = vpop.xlane.xlu1 %2905 }
0x1122   : > { %v3702_v19 = vsel %vm1208_vm2, %v11775_v35, 0.0  ;;  %v11782_v30 = vpop.eup %10217 }
0x1123   : > { %3703 = vadd.xlane.f32.xlu1 %v3702_v19  ;;  %v3690_v60 = vmul.f32 1.442695, %v3677_v31  ;;  %v3453_v0 = vsel %vm1208_vm2, %v11782_v30, 0.0 }
0x1124   : > { %v11780_v15 = vpop.permute.xlu0 %3212 }
0x1125   : > { %9691 = vmatprep.subr.msk.bf16.mxu0 %vm2957_vm6, %v11780_v15  ;;  %v11788_v20 = vpop.eup %10219  ;;  %3451 = vadd.xlane.f32.xlu0 %v3450_v2  ;;  %10233 = vpow2.f32 %v3690_v60  ;;  %v2900_v16 = vpop.xlane.xlu1 %2899 }
0x1126   : > { %v3696_v50 = vsel %vm1208_vm2, %v11788_v20, 0.0  ;;  %v11792_v24 = vpop.eup %10221 }
0x1127   : > { %3697 = vadd.xlane.f32.xlu1 %v3696_v50  ;;  %v11796_v62 = vpop.eup %10223  ;;  %v3705_v37 = vsel %vm1208_vm2, %v11792_v24, 0.0 }
0x1128   : > { %v3447_v5 = vsel %vm1208_vm2, %v11796_v62, 0.0 }
0x1129   : > { %3454 = vadd.xlane.f32.xlu0 %v3453_v0  ;;  %v11800_v27 = vpop.eup %10225  ;;  %v2918_v31 = vpop.xlane.xlu1 %2917 }
0x112a   : > { %v11804_v3 = vpop.eup %10227  ;;  %v3714_v1 = vsel %vm1208_vm2, %v11800_v27, 0.0 }
0x112b   : > { %3706 = vadd.xlane.f32.xlu1 %v3705_v37  ;;  %v3699_v17 = vsel %vm1208_vm2, %v11804_v3, 0.0 }
0x112d   : > { %3448 = vadd.xlane.f32.xlu0 %v3447_v5  ;;  %v11808_v61 = vpop.eup %10229  ;;  %v2912_v2 = vpop.xlane.xlu1 %2911 }
0x112e   : > { %v3708_v28 = vsel %vm1208_vm2, %v11808_v61, 0.0  ;;  %v11814_v23 = vpop.eup %10231 }
0x112f   : > { %3715 = vadd.xlane.f32.xlu1 %v3714_v1  ;;  %v3717_v11 = vsel %vm1208_vm2, %v11814_v23, 0.0 }
0x1131   : > { %3700 = vadd.xlane.f32.xlu0 %v3699_v17 }
0x1132   : > { %v11818_v22 = vpop.eup %10233 }
0x1133   : > { %3709 = vadd.xlane.f32.xlu1 %v3708_v28  ;;  %v3711_v47 = vsel %vm1208_vm2, %v11818_v22, 0.0 }
0x1137   : > { %3718 = vadd.xlane.f32.xlu1 %v3717_v11 }
0x113b   : > { %3712 = vadd.xlane.f32.xlu1 %v3711_v47 }
0x1147   : > { %3740 = vrot.lane.b32.xlu0 %v11475_v14, %s13677_s6 }
0x114c   : > { %3476 = vrot.lane.b32.xlu1 %v11475_v14, %s13678_s9 }
0x1154   : > { %v2909_v29 = vpop.xlane.xlu0 %2908 }
0x1155   : > { %10235 = vrcp.f32 %v2909_v29 }
0x1156   : > { %10237 = vrcp.f32 %v2900_v16 }
0x1157   : > { %10239 = vrcp.f32 %v2906_v34 }
0x1158   : > { %v2903_v19 = vpop.xlane.xlu0 %2902 }
0x1159   : > { %10241 = vrcp.f32 %v2903_v19 }
0x115c   : > { %v2921_v60 = vpop.xlane.xlu0 %2920 }
0x115d   : > { %10243 = vrcp.f32 %v2921_v60 }
0x115e   : > { %10245 = vrcp.f32 %v2912_v2 }
0x115f   : > { %10247 = vrcp.f32 %v2918_v31  ;;  %v3227_v31 = vsel %vm2957_vm6, %v11780_v15, 0 }
0x1160   : > { %v2915_v50 = vpop.xlane.xlu0 %2914 }
0x1161   : > { %10249 = vrcp.f32 %v2915_v50 }
0x1162   : > { %v10236_v0 = vpop.eup %10235 }
0x1163   : > { %v10238_v37 = vpop.eup %10237  ;;  %v2933_v14 = vmul.f32 %v10236_v0, %v11682_v44 }
0x1164   : > { %v10240_v5 = vpop.eup %10239  ;;  %v2930_v17 = vmul.f32 %v10238_v37, %v11660_v49 }
0x1165   : > { %v2932_v11 = vmul.f32 %v10240_v5, %v11656_v41 }
0x1166   : > { %v10242_v1 = vpop.eup %10241 }
0x1167   : > { %v2931_v28 = vmul.f32 %v10242_v1, %v11686_v43  ;;  %v2939_v34 = vpack.c.bf16 %v2933_v14, %v2932_v11 }
0x1169   : > { %v2938_v47 = vpack.c.bf16 %v2931_v28, %v2930_v17 }
0x116a   : > { %v10244_v16 = vpop.eup %10243 }
0x116b   : > { %9236 = vmatprep.mubr.msk.bf16.mxu0 %vm1208_vm2, %v2938_v47  ;;  %v10246_v29 = vpop.eup %10245  ;;  %v2937_v49 = vmul.f32 %v10244_v16, %v11690_v46 }
0x116c   : > { %9237 = vmatmul.mubr.msk.bf16.vlgmr.msra.gmra.mxu0 %vm1208_vm2, %v2939_v34  ;;  %v10248_v19 = vpop.eup %10247  ;;  %v2934_v43 = vmul.f32 %v10246_v29, %v11672_v39 }
0x116d   : > { %9255 = vmatpush3.bf16.msra.mxu0 %v3227_v31  ;;  %v2936_v2 = vmul.f32 %v10248_v19, %v11668_v10 }
0x116e   : > { %v10250_v44 = vpop.eup %10249 }
0x116f   : > { %v2935_v41 = vmul.f32 %v10250_v44, %v11694_v25  ;;  %v2941_v50 = vpack.c.bf16 %v2937_v49, %v2936_v2 }
0x1171   : > { %v2940_v60 = vpack.c.bf16 %v2935_v41, %v2934_v43 }
0x1173   : > { %9240 = vmatprep.mubr.msk.bf16.mxu0 %vm1208_vm2, %v2940_v60 }
0x1174   : > { %9241 = vmatmul.mubr.msk.bf16.gmra.mxu0 %vm1208_vm2, %v2941_v50 }
0x1186   : > { %v3176_v0 = vpop.xlane.xlu1 %3175 }
0x118a   : > { %v3170_v37 = vpop.xlane.xlu1 %3169 }
0x118b   : > { %v3179_v15 = vpop.xlane.xlu0 %3178 }
0x118c   : > { %10251 = vrcp.f32 %v3179_v15 }
0x118d   : > { %10253 = vrcp.f32 %v3170_v37 }
0x118e   : > { %10255 = vrcp.f32 %v3176_v0 }
0x118f   : > { %v3173_v5 = vpop.xlane.xlu0 %3172 }
0x1190   : > { %10257 = vrcp.f32 %v3173_v5 }
0x1191   : > { %v3188_v46 = vpop.xlane.xlu1 %3187 }
0x1195   : > { %v3182_v39 = vpop.xlane.xlu1 %3181 }
0x1196   : > { %v3191_v1 = vpop.xlane.xlu0 %3190 }
0x1197   : > { %10259 = vrcp.f32 %v3191_v1 }
0x1198   : > { %10261 = vrcp.f32 %v3182_v39 }
0x1199   : > { %v10252_v10 = vpop.eup %10251  ;;  %10263 = vrcp.f32 %v3188_v46 }
0x119a   : > { %v3185_v25 = vpop.xlane.xlu0 %3184  ;;  %v10254_v14 = vpop.eup %10253  ;;  %v3203_v11 = vmul.f32 %v10252_v10, %v11712_v4 }
0x119b   : > { %10265 = vrcp.f32 %v3185_v25  ;;  %v10256_v17 = vpop.eup %10255  ;;  %v3200_v34 = vmul.f32 %v10254_v14, %v11710_v40 }
0x119c   : > { %v3202_v29 = vmul.f32 %v10256_v17, %v11705_v9 }
0x119d   : > { %v10258_v28 = vpop.eup %10257 }
0x119e   : > { %v3440_v47 = vpop.xlane.xlu0 %3439  ;;  %v3201_v16 = vmul.f32 %v10258_v28, %v11719_v21  ;;  %v3209_v19 = vpack.c.bf16 %v3203_v11, %v3202_v29 }
0x11a0   : > { %v3208_v31 = vpack.c.bf16 %v3201_v16, %v3200_v34 }
0x11a2   : > { %9256 = vmatprep.mubr.msk.bf16.mxu0 %vm1208_vm2, %v3208_v31  ;;  %v3434_v44 = vpop.xlane.xlu0 %3433 }
0x11a3   : > { %9257 = vmatmul.mubr.msk.bf16.vlgmr.msra.gmra.mxu0 %vm1208_vm2, %v3209_v19  ;;  %10267 = vrcp.f32 %v3434_v44 }
0x11a4   : > { %v10260_v49 = vpop.eup %10259 }
0x11a5   : > { %v10262_v43 = vpop.eup %10261  ;;  %v3207_v50 = vmul.f32 %v10260_v49, %v11732_v13 }
0x11a6   : > { %v3443_v41 = vpop.xlane.xlu0 %3442  ;;  %v10264_v2 = vpop.eup %10263  ;;  %v3204_v40 = vmul.f32 %v10262_v43, %v11730_v32 }
0x11a7   : > { %v3206_v0 = vmul.f32 %v10264_v2, %v11725_v42 }
0x11a8   : > { %v10266_v60 = vpop.eup %10265  ;;  %v3446_v4 = vpop.xlane.xlu1 %3445 }
0x11a9   : > { %v3205_v9 = vmul.f32 %v10266_v60, %v11740_v36  ;;  %v3211_v5 = vpack.c.bf16 %v3207_v50, %v3206_v0 }
0x11aa   : > { %v3437_v21 = vpop.xlane.xlu0 %3436 }
0x11ab   : > { %10269 = vrcp.f32 %v3437_v21  ;;  %v3210_v37 = vpack.c.bf16 %v3205_v9, %v3204_v40 }
0x11ac   : > { %v3704_v15 = vpop.xlane.xlu1 %3703  ;;  %10271 = vrcp.f32 %v3443_v41 }
0x11ad   : > { %9260 = vmatprep.mubr.msk.bf16.mxu0 %vm1208_vm2, %v3210_v37 }
0x11ae   : > { %9261 = vmatmul.mubr.msk.bf16.gmra.mxu0 %vm1208_vm2, %v3211_v5  ;;  %v3452_v46 = vpop.xlane.xlu0 %3451 }
0x11b0   : > { %v3698_v39 = vpop.xlane.xlu1 %3697  ;;  %v10268_v10 = vpop.eup %10267 }
0x11b1   : > { %v3464_v42 = vmul.f32 %v10268_v10, %v11753_v6 }
0x11b2   : > { %v3455_v1 = vpop.xlane.xlu0 %3454 }
0x11b4   : > { %v3707_v13 = vpop.xlane.xlu1 %3706 }
0x11b6   : > { %v3449_v25 = vpop.xlane.xlu0 %3448 }
0x11b7   : > { %10273 = vrcp.f32 %v3449_v25 }
0x11b8   : > { %v10270_v32 = vpop.eup %10269  ;;  %v3716_v36 = vpop.xlane.xlu1 %3715  ;;  %10275 = vrcp.f32 %v3440_v47 }
0x11b9   : > { %v3465_v14 = vmul.f32 %v10270_v32, %v11761_v63  ;;  %10277 = vrcp.f32 %v3446_v4  ;;  %v10272_v16 = vpop.eup %10271 }
0x11ba   : > { %v3701_v11 = vpop.xlane.xlu0 %3700  ;;  %10279 = vrcp.f32 %v3455_v1  ;;  %v3467_v6 = vmul.f32 %v10272_v16, %v11759_v52 }
0x11bb   : > { %v3472_v17 = vpack.c.bf16 %v3465_v14, %v3464_v42  ;;  %10281 = vrcp.f32 %v3701_v11 }
0x11bc   : > { %v3710_v28 = vpop.xlane.xlu1 %3709  ;;  %10283 = vrcp.f32 %v3452_v46 }
0x11bd   : > { %9276 = vmatprep.mubr.msk.bf16.mxu0 %vm1208_vm2, %v3472_v17  ;;  %10285 = vrcp.f32 %v3698_v39 }
0x11be   : > { %10287 = vrcp.f32 %v3707_v13  ;;  %v3741_v41 = vpop.permute.xlu0 %3740 }
0x11c0   : > { %v3719_v34 = vpop.xlane.xlu1 %3718 }
0x11c4   : > { %v3713_v29 = vpop.xlane.xlu1 %3712  ;;  %v10274_v31 = vpop.eup %10273 }
0x11c5   : > { %v10276_v19 = vpop.eup %10275  ;;  %10289 = vrcp.f32 %v3713_v29  ;;  %v3469_v44 = vmul.f32 %v10274_v31, %v11796_v62 }
0x11c6   : > { %v10278_v47 = vpop.eup %10277  ;;  %v3466_v49 = vmul.f32 %v10276_v19, %v11746_v38  ;;  %10291 = vrcp.f32 %v3704_v15  ;;  %v3755_v38 = vsel %vm2957_vm6, %v3741_v41, 0 }
0x11c7   : > { %10293 = vrcp.f32 %v3710_v28  ;;  %v3468_v2 = vmul.f32 %v10278_v47, %v11766_v12  ;;  %v10280_v60 = vpop.eup %10279 }
0x11c8   : > { %v3477_v63 = vpop.permute.xlu1 %3476  ;;  %v3473_v52 = vpack.c.bf16 %v3467_v6, %v3466_v49  ;;  %v10282_v50 = vpop.eup %10281  ;;  %10295 = vrcp.f32 %v3719_v34  ;;  %v3471_v9 = vmul.f32 %v10280_v60, %v11782_v30 }
0x11c9   : > { %9693 = vmatprep.subr.msk.bf16.mxu0 %vm2957_vm6, %v3477_v63  ;;  %v3491_v43 = vsel %vm2957_vm6, %v3477_v63, 0  ;;  %v3474_v4 = vpack.c.bf16 %v3469_v44, %v3468_v2  ;;  %v10284_v62 = vpop.eup %10283  ;;  %v3729_v12 = vmul.f32 %v10282_v50, %v11804_v3  ;;  %10297 = vrcp.f32 %v3716_v36 }
0x11ca   : > { %9275 = vmatpush3.bf16.msra.mxu0 %v3491_v43  ;;  %v10286_v40 = vpop.eup %10285  ;;  %v3470_v21 = vmul.f32 %v10284_v62, %v11771_v53 }
0x11cb   : > { %9695 = vmatprep.subr.msk.bf16.mxu0 %vm2957_vm6, %v3741_v41  ;;  %v3728_v0 = vmul.f32 %v10286_v40, %v11788_v20  ;;  %v10288_v15 = vpop.eup %10287  ;;  %v9993_v40 = vld [vmem:[%s13681_s16 + $0x8] sm:$0xff]  }
0x11cc   : > { %v3475_v37 = vpack.c.bf16 %v3471_v9, %v3470_v21  ;;  %v3731_v13 = vmul.f32 %v10288_v15, %v11792_v24  ;;  %9304 = vmatprep.subr.bf16.mxu1 %v9993_v40  ;;  %v9994_v21 = vld [vmem:[%s13681_s16] sm:$0xff]   ;;  %s13691_s16 = smov 40  }
0x11cd   : > { %9277 = vmatmul.mubr.msk.bf16.vlgmr.msra.gmra.mxu0 %vm1208_vm2, %v3473_v52  ;;  %v3736_v5 = vpack.c.bf16 %v3729_v12, %v3728_v0  ;;  %9305 = vmatpush3.bf16.msra.mxu1 %v9993_v40 }
0x11ce   : > { %9280 = vmatprep.mubr.msk.bf16.mxu0 %vm1208_vm2, %v3474_v4  ;;  %9295 = vmatpush3.bf16.msra.mxu0 %v3755_v38 }
0x11cf   : > { %9306 = vmatprep.subr.bf16.mxu1 %v9994_v21 }
0x11d1   : > { %9307 = vmatpush3.bf16.msra.mxu1 %v9994_v21 }
0x11d2   : > { %v10290_v46 = vpop.eup %10289 }
0x11d3   : > { %v10292_v39 = vpop.eup %10291  ;;  %v3733_v30 = vmul.f32 %v10290_v46, %v11818_v22 }
0x11d4   : > { %v10294_v1 = vpop.eup %10293  ;;  %v3730_v3 = vmul.f32 %v10292_v39, %v11775_v35 }
0x11d5   : > { %9281 = vmatmul.mubr.msk.bf16.gmra.mxu0 %vm1208_vm2, %v3475_v37  ;;  %v3732_v53 = vmul.f32 %v10294_v1, %v11808_v61  ;;  %v10296_v20 = vpop.eup %10295 }
0x11d6   : > { %9296 = vmatprep.mubr.msk.bf16.mxu0 %vm1208_vm2, %v3736_v5  ;;  %v3737_v10 = vpack.c.bf16 %v3731_v13, %v3730_v3  ;;  %v10298_v32 = vpop.eup %10297  ;;  %v3735_v36 = vmul.f32 %v10296_v20, %v11814_v23 }
0x11d7   : > { %v3738_v25 = vpack.c.bf16 %v3733_v30, %v3732_v53  ;;  %v3734_v42 = vmul.f32 %v10298_v32, %v11800_v27 }
0x11d9   : > { %v3739_v14 = vpack.c.bf16 %v3735_v36, %v3734_v42 }
0x11dd   : > { %9297 = vmatmul.mubr.msk.bf16.vlgmr.msra.gmra.mxu0 %vm1208_vm2, %v3737_v10 }
0x11de   : > { %9300 = vmatprep.mubr.msk.bf16.mxu0 %vm1208_vm2, %v3738_v25 }
0x11e5   : > { %9301 = vmatmul.mubr.msk.bf16.gmra.mxu0 %vm1208_vm2, %v3739_v14 }
0x122c   : > { %v11880_v24 = vpop.f32.mrf.mxu0 }
0x122e   : > { %v11882_v35 = vpop.f32.mrf.mxu0 }
0x1230   : > { %v11884_v61 = vpop.f32.mrf.mxu0 }
0x1232   : > { %v11886_v22 = vpop.f32.mrf.mxu0 }
0x1234   : > { %v11888_v17 = vpop.f32.mrf.mxu0 }
0x1236   : > { %v11890_v28 = vpop.f32.mrf.mxu0 }
0x1238   : > { %v11892_v11 = vpop.f32.mrf.mxu0 }
0x123a   : > { %v11894_v23 = vpop.f32.mrf.mxu0 }
0x1263   : > { %v9258_v27 = vpop.f32.mrf.mxu0 }
0x1265   : > { %v3263_v34 = vpop.f32.mrf.mxu0 }
0x1267   : > { %v9259_v16 = vpop.f32.mrf.mxu0 }
0x1268   : > { %v9804_v29 = vpack.i.bf16 %v9259_v16, %v9258_v27 }
0x1269   : > { %v3266_v31 = vpop.f32.mrf.mxu0 }
0x126a   : > { %9805 = vrot.lane.b32.xlu1 %v9804_v29, %s13679_s0  ;;  %v9809_v19 = vpack.i.bf16 %v3266_v31, %v3263_v34 }
0x126e   : > { %9810 = vrot.lane.b32.xlu1 %v9809_v19, %s13679_s0  ;;  %v9262_v47 = vpop.f32.mrf.mxu0 }
0x1270   : > { %v3279_v6 = vpop.f32.mrf.mxu0 }
0x1272   : > { %v9263_v63 = vpop.f32.mrf.mxu0 }
0x1273   : > { %v9814_v44 = vpack.i.bf16 %v9263_v63, %v9262_v47 }
0x1274   : > { %v3282_v49 = vpop.f32.mrf.mxu0 }
0x1275   : > { %v9819_v43 = vpack.i.bf16 %v3282_v49, %v3279_v6  ;;  %9815 = vrot.lane.b32.xlu0 %v9814_v44, %s13679_s0 }
0x1277   : > { %9820 = vrot.lane.b32.xlu1 %v9819_v43, %s13679_s0 }
0x128d   : > { %v9278_v41 = vpop.f32.mrf.mxu0 }
0x128f   : > { %v3527_v2 = vpop.f32.mrf.mxu0 }
0x1291   : > { %v9279_v52 = vpop.f32.mrf.mxu0 }
0x1292   : > { %v9824_v60 = vpack.i.bf16 %v9279_v52, %v9278_v41 }
0x1293   : > { %v3530_v4 = vpop.f32.mrf.mxu0 }
0x1294   : > { %v9829_v50 = vpack.i.bf16 %v3530_v4, %v3527_v2  ;;  %9825 = vrot.lane.b32.xlu0 %v9824_v60, %s13680_s30 }
0x1295   : > { %v9282_v38 = vpop.f32.mrf.mxu0 }
0x1296   : > { %9830 = vrot.lane.b32.xlu1 %v9829_v50, %s13680_s30 }
0x1297   : > { %v3543_v62 = vpop.f32.mrf.mxu0 }
0x1299   : > { %v9283_v9 = vpop.f32.mrf.mxu0 }
0x129a   : > { %v9849_v13 = vpack.i.bf16 %v9283_v9, %v9282_v38 }
0x129b   : > { %v3546_v12 = vpop.f32.mrf.mxu0 }
0x129c   : > { %v9844_v3 = vpack.i.bf16 %v3546_v12, %v3543_v62 }
0x129d   : > { %v9298_v0 = vpop.f32.mrf.mxu0 }
0x129f   : > { %v3791_v37 = vpop.f32.mrf.mxu0 }
0x12a1   : > { %v9299_v15 = vpop.f32.mrf.mxu0 }
0x12a2   : > { %v9834_v5 = vpack.i.bf16 %v9299_v15, %v9298_v0 }
0x12a3   : > { %v3794_v46 = vpop.f32.mrf.mxu0 }
0x12a4   : > { %v9839_v39 = vpack.i.bf16 %v3794_v46, %v3791_v37  ;;  %9835 = vrot.lane.b32.xlu0 %v9834_v5, %s13682_s23 }
0x12a5   : > { %v9302_v1 = vpop.f32.mrf.mxu0 }
0x12a6   : > { %9840 = vrot.lane.b32.xlu1 %v9839_v39, %s13682_s23 }
0x12a7   : > { %v3807_v30 = vpop.f32.mrf.mxu0 }
0x12a8   : > { %9850 = vrot.lane.b32.xlu0 %v9849_v13, %s13680_s30 }
0x12a9   : > { %v9303_v53 = vpop.f32.mrf.mxu0 }
0x12aa   : > { %v9859_v10 = vpack.i.bf16 %v9303_v53, %v9302_v1  ;;  %9845 = vrot.lane.b32.xlu1 %v9844_v3, %s13680_s30 }
0x12ab   : > { %v3810_v20 = vpop.f32.mrf.mxu0 }
0x12ac   : > { %v9854_v25 = vpack.i.bf16 %v3810_v20, %v3807_v30  ;;  %9860 = vrot.lane.b32.xlu0 %v9859_v10, %s13682_s23 }
0x12ae   : > { %9855 = vrot.lane.b32.xlu1 %v9854_v25, %s13682_s23 }
0x12dc   : > { %v9806_v32 = vpop.permute.xlu1 %9805 }
0x12dd   : > { %v9808_v16 = vunpack.i.h.bf16 %v9806_v32  ;;  %v9807_v29 = vunpack.i.l.bf16 %v9806_v32 }
0x12df   : > { %v3921_v2 = vsel %vm1208_vm2, %v11884_v61, %v9808_v16  ;;  %v3920_v52 = vsel %vm1208_vm2, %v11880_v24, %v9807_v29 }
0x12e0   : > { %v9811_v36 = vpop.permute.xlu1 %9810 }
0x12e1   : > { %v9813_v31 = vunpack.i.h.bf16 %v9811_v36  ;;  %v9812_v19 = vunpack.i.l.bf16 %v9811_v36 }
0x12e3   : > { %v3919_v60 = vsel %vm1208_vm2, %v11886_v22, %v9813_v31  ;;  %v3918_v4 = vsel %vm1208_vm2, %v11882_v35, %v9812_v19 }
0x12e7   : > { %v9816_v42 = vpop.permute.xlu0 %9815 }
0x12e8   : > { %v9818_v22 = vunpack.i.h.bf16 %v9816_v42  ;;  %v9817_v15 = vunpack.i.l.bf16 %v9816_v42 }
0x12e9   : > { %v9821_v14 = vpop.permute.xlu1 %9820 }
0x12ea   : > { %v9823_v5 = vunpack.i.h.bf16 %v9821_v14  ;;  %v9822_v46 = vunpack.i.l.bf16 %v9821_v14  ;;  %v3925_v36 = vsel %vm1208_vm2, %v11892_v11, %v9818_v22  ;;  %v3924_v42 = vsel %vm1208_vm2, %v11888_v17, %v9817_v15 }
0x12ec   : > { %v3923_v14 = vsel %vm1208_vm2, %v11894_v23, %v9823_v5 }
0x1306   : > { %v9826_v27 = vpop.permute.xlu0 %9825 }
0x1307   : > { %v9828_v47 = vunpack.i.h.bf16 %v9826_v27  ;;  %v9827_v6 = vunpack.i.l.bf16 %v9826_v27  ;;  %v3922_v27 = vsel %vm1208_vm2, %v11890_v28, %v9822_v46 }
0x1308   : > { %v9831_v34 = vpop.permute.xlu1 %9830 }
0x1309   : > { %v9833_v63 = vunpack.i.h.bf16 %v9831_v34  ;;  %v9832_v44 = vunpack.i.l.bf16 %v9831_v34  ;;  %v3929_v38 = vsel %vm841_vm0, %v3921_v2, %v9828_v47  ;;  %v3928_v62 = vsel %vm841_vm0, %v3920_v52, %v9827_v6 }
0x130b   : > { %v3927_v12 = vsel %vm841_vm0, %v3919_v60, %v9833_v63  ;;  %v3926_v61 = vsel %vm841_vm0, %v3918_v4, %v9832_v44 }
0x1316   : > { %v9836_v49 = vpop.permute.xlu0 %9835 }
0x1317   : > { %v9838_v43 = vunpack.i.h.bf16 %v9836_v49  ;;  %v9837_v41 = vunpack.i.l.bf16 %v9836_v49  ;;  %v8538_v49 = vld [vmem:[%s13683_s17] ss:$0 sm:$0xff]  ;;  %s13704_s17 = sld [smem:[#allocation19_spill]] }
0x1318   : > { %v9841_v50 = vpop.permute.xlu1 %9840 }
0x1319   : > { %v9843_v40 = vunpack.i.h.bf16 %v9841_v50  ;;  %v9842_v9 = vunpack.i.l.bf16 %v9841_v50  ;;  %v3936_v21 = vsel %vm2454_vm4, %v3928_v62, %v9837_v41  ;;  %v3937_v24 = vsel %vm2454_vm4, %v3929_v38, %v9838_v43 }
0x131a   : > { %v9851_v0 = vpop.permute.xlu0 %9850  ;;  %v3943_v13 = vpack.c.bf16 %v3937_v24, %v3936_v21 }
0x131b   : > { %v3935_v37 = vsel %vm2454_vm4, %v3927_v12, %v9843_v40  ;;  %v3934_v35 = vsel %vm2454_vm4, %v3926_v61, %v9842_v9  ;;  %v9853_v30 = vunpack.i.h.bf16 %v9851_v0  ;;  %v9852_v3 = vunpack.i.l.bf16 %v9851_v0 }
0x131c   : > { %v9846_v39 = vpop.permute.xlu1 %9845  ;;  %v3942_v1 = vpack.c.bf16 %v3935_v37, %v3934_v35 }
0x131d   : > { %v9848_v53 = vunpack.i.h.bf16 %v9846_v39  ;;  %v9847_v10 = vunpack.i.l.bf16 %v9846_v39  ;;  %v3932_v16 = vsel %vm841_vm0, %v3924_v42, %v9852_v3  ;;  %v3933_v29 = vsel %vm841_vm0, %v3925_v36, %v9853_v30 }
0x131e   : > { %9308 = vmatprep.mubr.msk.bf16.mxu1 %vm940_vm1, %v3942_v1  ;;  %v9861_v20 = vpop.permute.xlu0 %9860 }
0x131f   : > { %v9863_v25 = vunpack.i.h.bf16 %v9861_v20  ;;  %v9862_v32 = vunpack.i.l.bf16 %v9861_v20  ;;  %9309 = vmatmul.mubr.msk.bf16.vlgmr.msra.gmra.mxu1 %vm940_vm1, %v3943_v13  ;;  %v3931_v47 = vsel %vm841_vm0, %v3923_v14, %v9848_v53  ;;  %v3930_v11 = vsel %vm841_vm0, %v3922_v27, %v9847_v10 }
0x1320   : > { %v9856_v34 = vpop.permute.xlu1 %9855 }
0x1321   : > { %v9858_v31 = vunpack.i.h.bf16 %v9856_v34  ;;  %v9857_v19 = vunpack.i.l.bf16 %v9856_v34  ;;  %v3940_v6 = vsel %vm2454_vm4, %v3932_v16, %v9862_v32  ;;  %v3941_v17 = vsel %vm2454_vm4, %v3933_v29, %v9863_v25 }
0x1322   : > { %v3945_v44 = vpack.c.bf16 %v3941_v17, %v3940_v6 }
0x1323   : > { %v3939_v23 = vsel %vm2454_vm4, %v3931_v47, %v9858_v31  ;;  %v3938_v63 = vsel %vm2454_vm4, %v3930_v11, %v9857_v19 }
0x1324   : > { %v3944_v28 = vpack.c.bf16 %v3939_v23, %v3938_v63 }
0x1326   : > { %9312 = vmatprep.mubr.msk.bf16.mxu1 %vm940_vm1, %v3944_v28 }
0x1327   : > { %9313 = vmatmul.mubr.msk.bf16.gmra.mxu1 %vm940_vm1, %v3945_v44 }
0x13df   : > { %v9310_v43 = vpop.f32.mrf.mxu1 }
0x13e0   : > { %v4019_v41 = vadd.f32 %v9310_v43, %v8538_v49 }
0x13e1   : > { %v4010_v2 = vpop.f32.mrf.mxu1 }
0x13e2   : > { %v11954_v52 = vadd.f32 %v4019_v41, %v11446_v26  ;;  %v4011_v60 = vadd.f32 %v8538_v49, %v4010_v2 }
0x13e3   : > { %v9311_v4 = vpop.f32.mrf.mxu1 }
0x13e4   : > { %v11957_v50 = vadd.f32 %v4011_v60, %v11440_v54  ;;  %v4055_v38 = vsel %vm940_vm1, %v11954_v52, 0.0  ;;  %v4022_v62 = vadd.f32 %v9311_v4, %v8538_v49 }
0x13e5   : > { %4056 = vadd.xlane.f32.xlu0 %v4055_v38  ;;  %v4013_v40 = vpop.f32.mrf.mxu1 }
0x13e6   : > { %v4014_v9 = vadd.f32 %v8538_v49, %v4013_v40  ;;  %v4049_v12 = vsel %vm940_vm1, %v11957_v50, 0.0  ;;  %v11967_v21 = vadd.f32 %v4022_v62, %v11437_v55 }
0x13e7   : > { %4050 = vadd.xlane.f32.xlu1 %v4049_v12  ;;  %v9314_v61 = vpop.f32.mrf.mxu1 }
0x13e8   : > { %v11964_v26 = vadd.f32 %v4014_v9, %v11443_v45  ;;  %v4035_v24 = vadd.f32 %v9314_v61, %v8538_v49  ;;  %v4058_v5 = vsel %vm940_vm1, %v11967_v21, 0.0 }
0x13e9   : > { %v4026_v54 = vpop.f32.mrf.mxu1 }
0x13ea   : > { %v4027_v0 = vadd.f32 %v8538_v49, %v4026_v54  ;;  %v4052_v22 = vsel %vm940_vm1, %v11964_v26, 0.0  ;;  %v11977_v45 = vadd.f32 %v4035_v24, %v11464_v48 }
0x13eb   : > { %4053 = vadd.xlane.f32.xlu0 %v4052_v22  ;;  %v9315_v37 = vpop.f32.mrf.mxu1  ;;  %v9995_v22 = vld [vmem:[%s13684_s18 + $0x8] sm:$0xff]  }
0x13ec   : > { %v11972_v35 = vadd.f32 %v4027_v0, %v11458_v18  ;;  %v4038_v55 = vadd.f32 %v9315_v37, %v8538_v49  ;;  %v4067_v48 = vsel %vm940_vm1, %v11977_v45, 0.0  ;;  %9316 = vmatprep.subr.bf16.mxu0 %v9995_v22  ;;  %v9996_v37 = vld [vmem:[%s13684_s18] sm:$0xff]   ;;  %s13689_s18 = smov 56  }
0x13ed   : > { %v4029_v15 = vpop.f32.mrf.mxu1  ;;  %9317 = vmatpush3.bf16.msra.mxu0 %v9995_v22 }
0x13ee   : > { %v4030_v46 = vadd.f32 %v8538_v49, %v4029_v15  ;;  %v4061_v39 = vsel %vm940_vm1, %v11972_v35, 0.0  ;;  %v11985_v18 = vadd.f32 %v4038_v55, %v11455_v59  ;;  %9318 = vmatprep.subr.bf16.mxu0 %v9996_v37 }
0x13ef   : > { %4059 = vadd.xlane.f32.xlu0 %v4058_v5  ;;  %4062 = vadd.xlane.f32.xlu1 %v4061_v39 }
0x13f0   : > { %v11982_v1 = vadd.f32 %v4030_v46, %v11461_v58  ;;  %v4070_v30 = vsel %vm940_vm1, %v11985_v18, 0.0 }
0x13f1   : > { %9319 = vmatpush3.bf16.msra.mxu0 %v9996_v37 }
0x13f2   : > { %v4064_v13 = vsel %vm940_vm1, %v11982_v1, 0.0 }
0x13f3   : > { %4065 = vadd.xlane.f32.xlu0 %v4064_v13  ;;  %4068 = vadd.xlane.f32.xlu1 %v4067_v48 }
0x13f7   : > { %4071 = vadd.xlane.f32.xlu0 %v4070_v30 }
0x146e   : > { %v4057_v3 = vpop.xlane.xlu0 %4056 }
0x146f   : > { %v4075_v53 = vmul.f32 0.03125, %v4057_v3 }
0x1470   : > { %v4051_v10 = vpop.xlane.xlu1 %4050 }
0x1471   : > { %v4073_v58 = vmul.f32 0.03125, %v4051_v10  ;;  %v11994_v20 = vsub.f32 %v11954_v52, %v4075_v53 }
0x1473   : > { %v11997_v59 = vsub.f32 %v11957_v50, %v4073_v58  ;;  %v4091_v27 = vmul.f32 %v11994_v20, %v11994_v20 }
0x1474   : > { %v4054_v25 = vpop.xlane.xlu0 %4053 }
0x1475   : > { %v4074_v32 = vmul.f32 0.03125, %v4054_v25  ;;  %v4089_v36 = vmul.f32 %v11997_v59, %v11997_v59  ;;  %v4103_v17 = vsel %vm940_vm1, %v4091_v27, 0.0 }
0x1477   : > { %v12002_v42 = vsub.f32 %v11964_v26, %v4074_v32  ;;  %v4097_v14 = vsel %vm940_vm1, %v4089_v36, 0.0 }
0x1478   : > { %v4060_v34 = vpop.xlane.xlu0 %4059  ;;  %4098 = vadd.xlane.f32.xlu1 %v4097_v14  ;;  %v4063_v16 = vpop.xlane.xlu1 %4062 }
0x1479   : > { %v4076_v29 = vmul.f32 0.03125, %v4060_v34  ;;  %v4077_v31 = vmul.f32 0.03125, %v4063_v16  ;;  %v4090_v19 = vmul.f32 %v12002_v42, %v12002_v42 }
0x147b   : > { %v12010_v47 = vsub.f32 %v11967_v21, %v4076_v29  ;;  %v12013_v11 = vsub.f32 %v11972_v35, %v4077_v31  ;;  %v4100_v6 = vsel %vm940_vm1, %v4090_v19, 0.0  ;;  %v13633_v29 = vsub.s32 4, %v10956_v57 }
0x147c   : > { %4101 = vadd.xlane.f32.xlu0 %v4100_v6  ;;  %v4066_v23 = vpop.xlane.xlu0 %4065  ;;  %4104 = vadd.xlane.f32.xlu1 %v4103_v17  ;;  %v4069_v63 = vpop.xlane.xlu1 %4068 }
0x147d   : > { %v4078_v28 = vmul.f32 0.03125, %v4066_v23  ;;  %v4079_v44 = vmul.f32 0.03125, %v4069_v63  ;;  %v4092_v49 = vmul.f32 %v12010_v47, %v12010_v47  ;;  %v4093_v43 = vmul.f32 %v12013_v11, %v12013_v11 }
0x147e   : > { %v13632_v63 = vsub.s32 3, %v10956_v57 }
0x147f   : > { %v12022_v41 = vsub.f32 %v11982_v1, %v4078_v28  ;;  %v12025_v2 = vsub.f32 %v11977_v45, %v4079_v44  ;;  %v4106_v60 = vsel %vm940_vm1, %v4092_v49, 0.0  ;;  %v4109_v4 = vsel %vm940_vm1, %v4093_v43, 0.0 }
0x1480   : > { %4107 = vadd.xlane.f32.xlu0 %v4106_v60  ;;  %v4072_v38 = vpop.xlane.xlu0 %4071  ;;  %4110 = vadd.xlane.f32.xlu1 %v4109_v4  ;;  %v4156_v28 = vrot.slane %v10962_v7, %v13633_v29 }
0x1481   : > { %v4080_v62 = vmul.f32 0.03125, %v4072_v38  ;;  %v4094_v40 = vmul.f32 %v12022_v41, %v12022_v41  ;;  %v4095_v9 = vmul.f32 %v12025_v2, %v12025_v2 }
0x1483   : > { %v12034_v12 = vsub.f32 %v11985_v18, %v4080_v62  ;;  %v4112_v61 = vsel %vm940_vm1, %v4094_v40, 0.0  ;;  %v4115_v54 = vsel %vm940_vm1, %v4095_v9, 0.0  ;;  %v4168_v62 = vrot.slane %v10954_v56, %v13632_v63 }
0x1484   : > { %4113 = vadd.xlane.f32.xlu0 %v4112_v61  ;;  %4116 = vadd.xlane.f32.xlu1 %v4115_v54 }
0x1485   : > { %v4096_v24 = vmul.f32 %v12034_v12, %v12034_v12 }
0x1487   : > { %v4118_v0 = vsel %vm940_vm1, %v4096_v24, 0.0 }
0x1488   : > { %4119 = vadd.xlane.f32.xlu0 %v4118_v0 }
0x1501   : > { %v4099_v15 = vpop.xlane.xlu1 %4098 }
0x1502   : > { %v4121_v5 = vmul.f32 0.03125, %v4099_v15 }
0x1504   : > { %v4129_v55 = vadd.f32 1e-06, %v4121_v5 }
0x1505   : > { %v4102_v46 = vpop.xlane.xlu0 %4101  ;;  %v4105_v39 = vpop.xlane.xlu1 %4104 }
0x1506   : > { %10299 = vrsqrt.f32 %v4129_v55  ;;  %v4122_v13 = vmul.f32 0.03125, %v4102_v46  ;;  %v4123_v48 = vmul.f32 0.03125, %v4105_v39 }
0x1508   : > { %v4130_v30 = vadd.f32 1e-06, %v4122_v13  ;;  %v4131_v3 = vadd.f32 1e-06, %v4123_v48 }
0x1509   : > { %v4108_v53 = vpop.xlane.xlu0 %4107  ;;  %v4111_v10 = vpop.xlane.xlu1 %4110 }
0x150a   : > { %10301 = vrsqrt.f32 %v4130_v30  ;;  %v4124_v58 = vmul.f32 0.03125, %v4108_v53  ;;  %v4125_v25 = vmul.f32 0.03125, %v4111_v10 }
0x150b   : > { %10303 = vrsqrt.f32 %v4131_v3 }
0x150c   : > { %v4132_v32 = vadd.f32 1e-06, %v4124_v58  ;;  %v4133_v36 = vadd.f32 1e-06, %v4125_v25 }
0x150d   : > { %v4114_v14 = vpop.xlane.xlu0 %4113  ;;  %v4117_v27 = vpop.xlane.xlu1 %4116 }
0x150e   : > { %10305 = vrsqrt.f32 %v4132_v32  ;;  %v4126_v34 = vmul.f32 0.03125, %v4114_v14  ;;  %v4127_v16 = vmul.f32 0.03125, %v4117_v27  ;;  %v9999_v14 = vld [vmem:[%s13581_s20 + $0x28] sm:$0xff]   ;;  %v10000_v27 = vld [vmem:[%s13581_s20 + $0x20] sm:$0xff]  }
0x150f   : > { %10307 = vrsqrt.f32 %v4133_v36 }
0x1510   : > { %v4134_v31 = vadd.f32 1e-06, %v4126_v34  ;;  %v4135_v19 = vadd.f32 1e-06, %v4127_v16  ;;  %v10001_v34 = vld [vmem:[%s13581_s20 + $0x18] sm:$0xff]   ;;  %v10002_v16 = vld [vmem:[%s13581_s20 + $0x10] sm:$0xff]  }
0x1511   : > { %v4120_v6 = vpop.xlane.xlu0 %4119 }
0x1512   : > { %10309 = vrsqrt.f32 %v4134_v31  ;;  %v4128_v17 = vmul.f32 0.03125, %v4120_v6  ;;  %v10003_v31 = vld [vmem:[%s13581_s20 + $0x8] sm:$0xff]   ;;  %v8545_v6 = vld [vmem:[%s13580_s19] ss:$0 sm:$0xff] }
0x1513   : > { %v10300_v23 = vpop.eup %10299  ;;  %10311 = vrsqrt.f32 %v4135_v19  ;;  %v10004_v19 = vld [vmem:[%s13581_s20] sm:$0xff]  }
0x1514   : > { %v4136_v44 = vadd.f32 1e-06, %v4128_v17  ;;  %v4145_v49 = vmul.f32 %v10300_v23, %v11997_v59 }
0x1516   : > { %10313 = vrsqrt.f32 %v4136_v44  ;;  %v4157_v38 = vmul.f32 %v4156_v28, %v4145_v49 }
0x1517   : > { %v10302_v43 = vpop.eup %10301 }
0x1518   : > { %v10304_v60 = vpop.eup %10303  ;;  %v4146_v4 = vmul.f32 %v10302_v43, %v12002_v42  ;;  %v4169_v0 = vadd.f32 %v4168_v62, %v4157_v38 }
0x1519   : > { %v4147_v40 = vmul.f32 %v10304_v60, %v11994_v20 }
0x151a   : > { %v4158_v9 = vmul.f32 %v4156_v28, %v4146_v4 }
0x151b   : > { %v10306_v61 = vpop.eup %10305  ;;  %v4159_v24 = vmul.f32 %v4156_v28, %v4147_v40 }
0x151c   : > { %v10308_v54 = vpop.eup %10307  ;;  %v4148_v7 = vmul.f32 %v10306_v61, %v12010_v47  ;;  %v4170_v59 = vadd.f32 %v4168_v62, %v4158_v9 }
0x151d   : > { %v4149_v22 = vmul.f32 %v10308_v54, %v12013_v11  ;;  %v4171_v55 = vadd.f32 %v4168_v62, %v4159_v24 }
0x151e   : > { %v4160_v37 = vmul.f32 %v4156_v28, %v4148_v7  ;;  %v4177_v15 = vpack.c.bf16 %v4170_v59, %v4169_v0 }
0x151f   : > { %v10310_v42 = vpop.eup %10309  ;;  %v4161_v39 = vmul.f32 %v4156_v28, %v4149_v22 }
0x1520   : > { %v10312_v5 = vpop.eup %10311  ;;  %9320 = vmatprep.mubr.msk.bf16.mxu0 %vm940_vm1, %v4177_v15  ;;  %v4172_v46 = vadd.f32 %v4168_v62, %v4160_v37  ;;  %v4150_v20 = vmul.f32 %v10310_v42, %v12022_v41 }
0x1521   : > { %v4151_v13 = vmul.f32 %v10312_v5, %v12025_v2  ;;  %v4173_v3 = vadd.f32 %v4168_v62, %v4161_v39  ;;  %v9997_v2 = vld [vmem:[%s13581_s20 + $0x38] sm:$0xff]  }
0x1522   : > { %v4178_v48 = vpack.c.bf16 %v4172_v46, %v4171_v55  ;;  %v4162_v30 = vmul.f32 %v4156_v28, %v4150_v20  ;;  %9328 = vmatprep.subr.bf16.mxu1 %v9997_v2 }
0x1523   : > { %v10314_v47 = vpop.eup %10313  ;;  %v4163_v10 = vmul.f32 %v4156_v28, %v4151_v13  ;;  %9329 = vmatpush3.bf16.msra.mxu1 %v9997_v2 }
0x1524   : > { %9321 = vmatmul.mubr.msk.bf16.vlgmr.msra.gmra.mxu0 %vm940_vm1, %v4178_v48  ;;  %v4174_v11 = vadd.f32 %v4168_v62, %v4162_v30  ;;  %v4152_v53 = vmul.f32 %v10314_v47, %v12034_v12  ;;  %v9998_v12 = vld [vmem:[%s13581_s20 + $0x30] sm:$0xff]  }
0x1525   : > { %v4175_v32 = vadd.f32 %v4168_v62, %v4163_v10  ;;  %9330 = vmatprep.subr.bf16.mxu1 %v9998_v12 }
0x1526   : > { %v4179_v58 = vpack.c.bf16 %v4174_v11, %v4173_v3  ;;  %v4164_v25 = vmul.f32 %v4156_v28, %v4152_v53 }
0x1527   : > { %9331 = vmatpush3.bf16.msra.mxu1 %v9998_v12 }
0x1528   : > { %9324 = vmatprep.mubr.msk.bf16.mxu0 %vm940_vm1, %v4179_v58  ;;  %v4176_v36 = vadd.f32 %v4168_v62, %v4164_v25  ;;  %9332 = vmatprep.subr.bf16.mxu1 %v9999_v14 }
0x152a   : > { %v4180_v41 = vpack.c.bf16 %v4176_v36, %v4175_v32 }
0x152b   : > { %9333 = vmatpush3.bf16.msra.mxu1 %v9999_v14 }
0x152c   : > { %9325 = vmatmul.mubr.msk.bf16.gmra.mxu0 %vm940_vm1, %v4180_v41  ;;  %9334 = vmatprep.subr.bf16.mxu1 %v10000_v27 }
0x152f   : > { %9335 = vmatpush3.bf16.msra.mxu1 %v10000_v27 }
0x1530   : > { %9336 = vmatprep.subr.bf16.mxu1 %v10001_v34 }
0x1533   : > { %9337 = vmatpush3.bf16.msra.mxu1 %v10001_v34 }
0x1534   : > { %9338 = vmatprep.subr.bf16.mxu1 %v10002_v16 }
0x1537   : > { %9339 = vmatpush3.bf16.msra.mxu1 %v10002_v16 }
0x1538   : > { %9340 = vmatprep.subr.bf16.mxu1 %v10003_v31 }
0x153b   : > { %9341 = vmatpush3.bf16.msra.mxu1 %v10003_v31 }
0x153c   : > { %9342 = vmatprep.subr.bf16.mxu1 %v10004_v19 }
0x153f   : > { %9343 = vmatpush3.bf16.msra.mxu1 %v10004_v19 }
0x15e4   : > { %v9322_v17 = vpop.f32.mrf.mxu0 }
0x15e5   : > { %v12094_v23 = vadd.f32 %v9322_v17, %v8545_v6 }
0x15e6   : > { %v4250_v28 = vpop.f32.mrf.mxu0 }
0x15e7   : > { %v4283_v44 = vmul.f32 %v12094_v23, %v12094_v23  ;;  %v12098_v49 = vadd.f32 %v8545_v6, %v4250_v28 }
0x15e8   : > { %v9323_v43 = vpop.f32.mrf.mxu0 }
0x15e9   : > { %v4291_v60 = vmul.f32 %v4283_v44, %v12094_v23  ;;  %v4281_v4 = vmul.f32 %v12098_v49, %v12098_v49  ;;  %v12103_v38 = vadd.f32 %v9323_v43, %v8545_v6 }
0x15ea   : > { %v4253_v62 = vpop.f32.mrf.mxu0 }
0x15eb   : > { %v4299_v40 = vmul.f32 0.044715, %v4291_v60  ;;  %v4289_v9 = vmul.f32 %v4281_v4, %v12098_v49  ;;  %v4284_v61 = vmul.f32 %v12103_v38, %v12103_v38  ;;  %v12108_v54 = vadd.f32 %v8545_v6, %v4253_v62 }
0x15ec   : > { %v9326_v24 = vpop.f32.mrf.mxu0 }
0x15ed   : > { %v4307_v7 = vadd.f32 %v4299_v40, %v12094_v23  ;;  %v4297_v0 = vmul.f32 0.044715, %v4289_v9  ;;  %v4292_v59 = vmul.f32 %v4284_v61, %v12103_v38  ;;  %v4282_v22 = vmul.f32 %v12108_v54, %v12108_v54 }
0x15ee   : > { %v12114_v37 = vadd.f32 %v9326_v24, %v8545_v6  ;;  %v4266_v15 = vpop.f32.mrf.mxu0 }
0x15ef   : > { %v4315_v42 = vmul.f32 0.7978846, %v4307_v7  ;;  %v4305_v5 = vadd.f32 %v4297_v0, %v12098_v49  ;;  %v4300_v55 = vmul.f32 0.044715, %v4292_v59  ;;  %v4290_v46 = vmul.f32 %v4282_v22, %v12108_v54 }
0x15f0   : > { %v4287_v20 = vmul.f32 %v12114_v37, %v12114_v37  ;;  %v12120_v39 = vadd.f32 %v8545_v6, %v4266_v15  ;;  %v9327_v13 = vpop.f32.mrf.mxu0 }
0x15f1   : > { %v4313_v48 = vmul.f32 0.7978846, %v4305_v5  ;;  %v4308_v30 = vadd.f32 %v4300_v55, %v12103_v38  ;;  %v4298_v47 = vmul.f32 0.044715, %v4290_v46  ;;  %10315 = vtanh.f32 %v4315_v42 }
0x15f2   : > { %v4295_v3 = vmul.f32 %v4287_v20, %v12114_v37  ;;  %v4285_v11 = vmul.f32 %v12120_v39, %v12120_v39  ;;  %v4278_v53 = vadd.f32 %v9327_v13, %v8545_v6  ;;  %v4269_v10 = vpop.f32.mrf.mxu0 }
0x15f3   : > { %10317 = vtanh.f32 %v4313_v48  ;;  %v4316_v58 = vmul.f32 0.7978846, %v4308_v30  ;;  %v4306_v25 = vadd.f32 %v4298_v47, %v12108_v54  ;;  %v4270_v32 = vadd.f32 %v8545_v6, %v4269_v10 }
0x15f4   : > { %v4303_v36 = vmul.f32 0.044715, %v4295_v3  ;;  %v4293_v41 = vmul.f32 %v4285_v11, %v12120_v39  ;;  %v4288_v2 = vmul.f32 %v4278_v53, %v4278_v53 }
0x15f5   : > { %10319 = vtanh.f32 %v4316_v58  ;;  %v4314_v12 = vmul.f32 0.7978846, %v4306_v25  ;;  %v4286_v14 = vmul.f32 %v4270_v32, %v4270_v32 }
0x15f6   : > { %v4311_v27 = vadd.f32 %v4303_v36, %v12114_v37  ;;  %v4301_v34 = vmul.f32 0.044715, %v4293_v41  ;;  %v4296_v16 = vmul.f32 %v4288_v2, %v4278_v53 }
0x15f7   : > { %10321 = vtanh.f32 %v4314_v12  ;;  %v4294_v31 = vmul.f32 %v4286_v14, %v4270_v32 }
0x15f8   : > { %v4319_v19 = vmul.f32 0.7978846, %v4311_v27  ;;  %v4309_v17 = vadd.f32 %v4301_v34, %v12120_v39  ;;  %v4304_v28 = vmul.f32 0.044715, %v4296_v16 }
0x15f9   : > { %v4302_v44 = vmul.f32 0.044715, %v4294_v31 }
0x15fa   : > { %10323 = vtanh.f32 %v4319_v19  ;;  %v4317_v6 = vmul.f32 0.7978846, %v4309_v17  ;;  %v4312_v43 = vadd.f32 %v4304_v28, %v4278_v53  ;;  %v13631_v19 = vsub.s32 5, %v10956_v57  ;;  %v8552_v17 = vld [vmem:[%s13582_s21] ss:$0 sm:$0xff] }
0x15fb   : > { %v4310_v60 = vadd.f32 %v4302_v44, %v4270_v32 }
0x15fc   : > { %10325 = vtanh.f32 %v4317_v6  ;;  %v4320_v4 = vmul.f32 0.7978846, %v4312_v43 }
0x15fd   : > { %v4318_v62 = vmul.f32 0.7978846, %v4310_v60 }
0x15fe   : > { %10327 = vtanh.f32 %v4320_v4  ;;  %v10316_v40 = vpop.eup %10315 }
0x15ff   : > { %10329 = vtanh.f32 %v4318_v62  ;;  %v4331_v7 = vadd.f32 1.0, %v10316_v40 }
0x1600   : > { %v10318_v9 = vpop.eup %10317 }
0x1601   : > { %v4329_v61 = vadd.f32 1.0, %v10318_v9  ;;  %v4339_v5 = vmul.f32 0.5, %v4331_v7 }
0x1602   : > { %v10320_v24 = vpop.eup %10319 }
0x1603   : > { %v4332_v0 = vadd.f32 1.0, %v10320_v24  ;;  %v4337_v42 = vmul.f32 0.5, %v4329_v61  ;;  %v4347_v47 = vmul.f32 %v4339_v5, %v12094_v23 }
0x1604   : > { %v10322_v59 = vpop.eup %10321 }
0x1605   : > { %v4340_v22 = vmul.f32 0.5, %v4332_v0  ;;  %v4330_v15 = vadd.f32 1.0, %v10322_v59  ;;  %v4345_v48 = vmul.f32 %v4337_v42, %v12098_v49 }
0x1607   : > { %v10324_v55 = vpop.eup %10323  ;;  %v4338_v46 = vmul.f32 0.5, %v4330_v15  ;;  %v4348_v20 = vmul.f32 %v4340_v22, %v12103_v38 }
0x1608   : > { %v4335_v11 = vadd.f32 1.0, %v10324_v55 }
0x1609   : > { %v10326_v13 = vpop.eup %10325  ;;  %v4346_v30 = vmul.f32 %v4338_v46, %v12108_v54  ;;  %v4354_v36 = vpack.c.bf16 %v4348_v20, %v4347_v47 }
0x160a   : > { %v4333_v3 = vadd.f32 1.0, %v10326_v13  ;;  %v4343_v14 = vmul.f32 0.5, %v4335_v11 }
0x160b   : > { %v10328_v10 = vpop.eup %10327  ;;  %v4353_v58 = vpack.c.bf16 %v4346_v30, %v4345_v48 }
0x160c   : > { %v10330_v25 = vpop.eup %10329  ;;  %v4336_v41 = vadd.f32 1.0, %v10328_v10  ;;  %v4341_v12 = vmul.f32 0.5, %v4333_v3  ;;  %v4351_v23 = vmul.f32 %v4343_v14, %v12114_v37 }
0x160d   : > { %9344 = vmatprep.mubr.bf16.mxu1 %v4353_v58  ;;  %v4334_v2 = vadd.f32 1.0, %v10330_v25 }
0x160e   : > { %9345 = vmatmul.mubr.bf16.vlgmr.msra.gmra.mxu1 %v4354_v36  ;;  %v4344_v38 = vmul.f32 0.5, %v4336_v41  ;;  %v4349_v49 = vmul.f32 %v4341_v12, %v12120_v39 }
0x160f   : > { %v4342_v27 = vmul.f32 0.5, %v4334_v2 }
0x1610   : > { %v4352_v34 = vmul.f32 %v4344_v38, %v4278_v53  ;;  %v4496_v53 = vrot.slane %v10954_v56, %v13631_v19 }
0x1611   : > { %v4350_v54 = vmul.f32 %v4342_v27, %v4270_v32 }
0x1612   : > { %v4356_v31 = vpack.c.bf16 %v4352_v34, %v4351_v23 }
0x1613   : > { %v4355_v16 = vpack.c.bf16 %v4350_v54, %v4349_v49 }
0x1615   : > { %9348 = vmatprep.mubr.bf16.mxu1 %v4355_v16 }
0x1616   : > { %9349 = vmatmul.mubr.bf16.gmra.mxu1 %v4356_v31 }
0x16ce   : > { %v9346_v28 = vpop.f32.mrf.mxu1 }
0x16cf   : > { %v4471_v44 = vadd.f32 %v9346_v28, %v8552_v17 }
0x16d0   : > { %v4462_v39 = vpop.f32.mrf.mxu1 }
0x16d1   : > { %v4463_v32 = vadd.f32 %v8552_v17, %v4462_v39  ;;  %v4499_v6 = vmul.f32 %v4496_v53, %v4471_v44 }
0x16d2   : > { %v9347_v37 = vpop.f32.mrf.mxu1 }
0x16d3   : > { %v4497_v43 = vmul.f32 %v4496_v53, %v4463_v32  ;;  %v4474_v60 = vadd.f32 %v9347_v37, %v8552_v17  ;;  %v12147_v9 = vadd.f32 %v4499_v6, %v11954_v52 }
0x16d4   : > { %v4465_v4 = vpop.f32.mrf.mxu1 }
0x16d5   : > { %v12144_v62 = vadd.f32 %v4497_v43, %v11957_v50  ;;  %v4466_v40 = vadd.f32 %v8552_v17, %v4465_v4  ;;  %v4500_v61 = vmul.f32 %v4496_v53, %v4474_v60  ;;  %v4522_v52 = vsel %vm940_vm1, %v12147_v9, 0.0 }
0x16d6   : > { %v9350_v24 = vpop.f32.mrf.mxu1 }
0x16d7   : > { %v4498_v7 = vmul.f32 %v4496_v53, %v4466_v40  ;;  %v4487_v0 = vadd.f32 %v9350_v24, %v8552_v17  ;;  %v4516_v56 = vsel %vm940_vm1, %v12144_v62, 0.0  ;;  %v12155_v50 = vadd.f32 %v4500_v61, %v11967_v21 }
0x16d8   : > { %4517 = vadd.xlane.f32.xlu1 %v4516_v56  ;;  %v4478_v59 = vpop.f32.mrf.mxu1 }
0x16d9   : > { %v12152_v22 = vadd.f32 %v4498_v7, %v11964_v26  ;;  %v4479_v15 = vadd.f32 %v8552_v17, %v4478_v59  ;;  %v4503_v5 = vmul.f32 %v4496_v53, %v4487_v0  ;;  %v4525_v21 = vsel %vm940_vm1, %v12155_v50, 0.0 }
0x16da   : > { %v9351_v42 = vpop.f32.mrf.mxu1 }
0x16db   : > { %v4501_v55 = vmul.f32 %v4496_v53, %v4479_v15  ;;  %v4490_v46 = vadd.f32 %v9351_v42, %v8552_v17  ;;  %v4519_v20 = vsel %vm940_vm1, %v12152_v22, 0.0  ;;  %v12167_v30 = vadd.f32 %v4503_v5, %v11977_v45 }
0x16dc   : > { %4520 = vadd.xlane.f32.xlu0 %v4519_v20  ;;  %4523 = vadd.xlane.f32.xlu1 %v4522_v52  ;;  %v4481_v13 = vpop.f32.mrf.mxu1 }
0x16dd   : > { %v12162_v26 = vadd.f32 %v4501_v55, %v11972_v35  ;;  %v4482_v48 = vadd.f32 %v8552_v17, %v4481_v13  ;;  %v4504_v47 = vmul.f32 %v4496_v53, %v4490_v46  ;;  %v4534_v45 = vsel %vm940_vm1, %v12167_v30, 0.0  ;;  %v10005_v13 = vld [vmem:[%s13661_s27 + $0x18] sm:$0xff]  }
0x16de   : > { %9352 = vmatprep.subr.bf16.mxu0 %v10005_v13 }
0x16df   : > { %v4502_v3 = vmul.f32 %v4496_v53, %v4482_v48  ;;  %v4528_v11 = vsel %vm940_vm1, %v12162_v26, 0.0  ;;  %v12175_v35 = vadd.f32 %v4504_v47, %v11985_v18  ;;  %v10006_v48 = vld [vmem:[%s13661_s27 + $0x10] sm:$0xff]   ;;  %9353 = vmatpush3.bf16.msra.mxu0 %v10005_v13 }
0x16e0   : > { %4526 = vadd.xlane.f32.xlu0 %v4525_v21  ;;  %4529 = vadd.xlane.f32.xlu1 %v4528_v11 }
0x16e1   : > { %v12172_v10 = vadd.f32 %v4502_v3, %v11982_v1  ;;  %v4537_v25 = vsel %vm940_vm1, %v12175_v35, 0.0  ;;  %9354 = vmatprep.subr.bf16.mxu0 %v10006_v48 }
0x16e3   : > { %v4531_v58 = vsel %vm940_vm1, %v12172_v10, 0.0  ;;  %9355 = vmatpush3.bf16.msra.mxu0 %v10006_v48 }
0x16e4   : > { %4532 = vadd.xlane.f32.xlu0 %v4531_v58  ;;  %4535 = vadd.xlane.f32.xlu1 %v4534_v45 }
0x16e8   : > { %4538 = vadd.xlane.f32.xlu0 %v4537_v25 }
0x1761   : > { %v4518_v36 = vpop.xlane.xlu1 %4517 }
0x1762   : > { %v4540_v41 = vmul.f32 0.03125, %v4518_v36 }
0x1764   : > { %v12184_v1 = vsub.f32 %v12144_v62, %v4540_v41 }
0x1765   : > { %v4521_v2 = vpop.xlane.xlu0 %4520  ;;  %v4524_v18 = vpop.xlane.xlu1 %4523 }
0x1766   : > { %v4541_v12 = vmul.f32 0.03125, %v4521_v2  ;;  %v4542_v14 = vmul.f32 0.03125, %v4524_v18  ;;  %v4556_v38 = vmul.f32 %v12184_v1, %v12184_v1  ;;  %v8561_v2 = vld [vmem:[%s13663_s8 + $0x8] sm:$0x3f] }
0x1768   : > { %v12189_v27 = vsub.f32 %v12152_v22, %v4541_v12  ;;  %v12192_v34 = vsub.f32 %v12147_v9, %v4542_v14  ;;  %v4564_v49 = vsel %vm940_vm1, %v4556_v38, 0.0 }
0x1769   : > { %v4527_v54 = vpop.xlane.xlu0 %4526  ;;  %4565 = vadd.xlane.f32.xlu1 %v4564_v49  ;;  %v4530_v23 = vpop.xlane.xlu1 %4529  ;;  %v10651_v49 = vld [vmem:[%s10948_s7] sm:$0x3f] }
0x176a   : > { %v4543_v16 = vmul.f32 0.03125, %v4527_v54  ;;  %v4544_v31 = vmul.f32 0.03125, %v4530_v23  ;;  %v4557_v17 = vmul.f32 %v12189_v27, %v12189_v27  ;;  %v4558_v28 = vmul.f32 %v12192_v34, %v12192_v34 }
0x176b   : > { %v12241_v54 = vadd.f32 %v10651_v49, %v8561_v2 }
0x176c   : > { %v12200_v53 = vsub.f32 %v12155_v50, %v4543_v16  ;;  %v12203_v44 = vsub.f32 %v12162_v26, %v4544_v31  ;;  %v4567_v39 = vsel %vm940_vm1, %v4557_v17, 0.0  ;;  %v4570_v32 = vsel %vm940_vm1, %v4558_v28, 0.0 }
0x176d   : > { %4568 = vadd.xlane.f32.xlu0 %v4567_v39  ;;  %v4533_v6 = vpop.xlane.xlu0 %4532  ;;  %4571 = vadd.xlane.f32.xlu1 %v4570_v32  ;;  %v4536_v37 = vpop.xlane.xlu1 %4535  ;;  %v12244_v32 = vadd.f32 1.0, %v12241_v54 }
0x176e   : > { %v4545_v43 = vmul.f32 0.03125, %v4533_v6  ;;  %v4546_v60 = vmul.f32 0.03125, %v4536_v37  ;;  %v4559_v4 = vmul.f32 %v12200_v53, %v12200_v53  ;;  %v4560_v40 = vmul.f32 %v12203_v44, %v12203_v44 }
0x176f   : > { %13685 = vst [vmem:[#allocation6_spill] sm:$0xff] %v12244_v32 }
0x1770   : > { %v12212_v61 = vsub.f32 %v12172_v10, %v4545_v43  ;;  %v12215_v24 = vsub.f32 %v12167_v30, %v4546_v60  ;;  %v4573_v7 = vsel %vm940_vm1, %v4559_v4, 0.0  ;;  %v4576_v0 = vsel %vm940_vm1, %v4560_v40, 0.0  ;;  %v13686_v40 = vld [vmem:[#allocation4_spill] sm:$0xff] }
0x1771   : > { %4574 = vadd.xlane.f32.xlu0 %v4573_v7  ;;  %v4539_v56 = vpop.xlane.xlu0 %4538  ;;  %4577 = vadd.xlane.f32.xlu1 %v4576_v0  ;;  %v4624_v7 = vrot.slane %v12244_v32, %v13686_v40 }
0x1772   : > { %v4547_v59 = vmul.f32 0.03125, %v4539_v56  ;;  %v4561_v15 = vmul.f32 %v12212_v61, %v12212_v61  ;;  %v4562_v42 = vmul.f32 %v12215_v24, %v12215_v24 }
0x1774   : > { %v12224_v52 = vsub.f32 %v12175_v35, %v4547_v59  ;;  %v4579_v5 = vsel %vm940_vm1, %v4561_v15, 0.0  ;;  %v4582_v55 = vsel %vm940_vm1, %v4562_v42, 0.0  ;;  %v13687_v42 = vld [vmem:[#allocation5_spill] sm:$0xff] }
0x1775   : > { %4580 = vadd.xlane.f32.xlu0 %v4579_v5  ;;  %4583 = vadd.xlane.f32.xlu1 %v4582_v55  ;;  %v4636_v5 = vrot.slane %v12241_v54, %v13687_v42 }
0x1776   : > { %v4563_v46 = vmul.f32 %v12224_v52, %v12224_v52 }
0x1778   : > { %v4585_v20 = vsel %vm940_vm1, %v4563_v46, 0.0 }
0x1779   : > { %4586 = vadd.xlane.f32.xlu0 %v4585_v20 }
0x17f2   : > { %v4566_v21 = vpop.xlane.xlu1 %4565 }
0x17f3   : > { %v4588_v47 = vmul.f32 0.03125, %v4566_v21 }
0x17f5   : > { %v4596_v3 = vadd.f32 1e-06, %v4588_v47 }
0x17f6   : > { %v4569_v11 = vpop.xlane.xlu0 %4568  ;;  %v4572_v58 = vpop.xlane.xlu1 %4571 }
0x17f7   : > { %10331 = vrsqrt.f32 %v4596_v3  ;;  %v4589_v45 = vmul.f32 0.03125, %v4569_v11  ;;  %v4590_v25 = vmul.f32 0.03125, %v4572_v58 }
0x17f9   : > { %v4597_v36 = vadd.f32 1e-06, %v4589_v45  ;;  %v4598_v41 = vadd.f32 1e-06, %v4590_v25 }
0x17fa   : > { %v4575_v18 = vpop.xlane.xlu0 %4574  ;;  %v4578_v12 = vpop.xlane.xlu1 %4577 }
0x17fb   : > { %10333 = vrsqrt.f32 %v4597_v36  ;;  %v4591_v14 = vmul.f32 0.03125, %v4575_v18  ;;  %v4592_v38 = vmul.f32 0.03125, %v4578_v12 }
0x17fc   : > { %10335 = vrsqrt.f32 %v4598_v41 }
0x17fd   : > { %v4599_v23 = vadd.f32 1e-06, %v4591_v14  ;;  %v4600_v16 = vadd.f32 1e-06, %v4592_v38 }
0x17fe   : > { %v4581_v31 = vpop.xlane.xlu0 %4580  ;;  %v4584_v17 = vpop.xlane.xlu1 %4583 }
0x17ff   : > { %10337 = vrsqrt.f32 %v4599_v23  ;;  %v4593_v28 = vmul.f32 0.03125, %v4581_v31  ;;  %v4594_v39 = vmul.f32 0.03125, %v4584_v17 }
0x1800   : > { %10339 = vrsqrt.f32 %v4600_v16 }
0x1801   : > { %v4601_v6 = vadd.f32 1e-06, %v4593_v28  ;;  %v4602_v37 = vadd.f32 1e-06, %v4594_v39 }
0x1802   : > { %v4587_v43 = vpop.xlane.xlu0 %4586 }
0x1803   : > { %10341 = vrsqrt.f32 %v4601_v6  ;;  %v4595_v60 = vmul.f32 0.03125, %v4587_v43  ;;  %v8567_v6 = vld [vmem:[%s13666_s5 + $0x1] ss:$0 sm:$0xff] }
0x1804   : > { %v10332_v4 = vpop.eup %10331  ;;  %10343 = vrsqrt.f32 %v4602_v37 }
0x1805   : > { %v4603_v0 = vadd.f32 1e-06, %v4595_v60  ;;  %v4612_v56 = vmul.f32 %v10332_v4, %v12184_v1 }
0x1807   : > { %10345 = vrsqrt.f32 %v4603_v0  ;;  %v4625_v46 = vmul.f32 %v4624_v7, %v4612_v56 }
0x1808   : > { %v10334_v59 = vpop.eup %10333 }
0x1809   : > { %v10336_v15 = vpop.eup %10335  ;;  %v4613_v55 = vmul.f32 %v10334_v59, %v12189_v27  ;;  %v4637_v11 = vadd.f32 %v4636_v5, %v4625_v46 }
0x180a   : > { %v4614_v20 = vmul.f32 %v10336_v15, %v12192_v34 }
0x180b   : > { %v4626_v13 = vmul.f32 %v4624_v7, %v4613_v55 }
0x180c   : > { %v10338_v48 = vpop.eup %10337  ;;  %v4627_v47 = vmul.f32 %v4624_v7, %v4614_v20 }
0x180d   : > { %v10340_v21 = vpop.eup %10339  ;;  %v4615_v3 = vmul.f32 %v10338_v48, %v12200_v53  ;;  %v4638_v58 = vadd.f32 %v4636_v5, %v4626_v13 }
0x180e   : > { %v4616_v1 = vmul.f32 %v10340_v21, %v12203_v44  ;;  %v4639_v27 = vadd.f32 %v4636_v5, %v4627_v47 }
0x180f   : > { %v4628_v45 = vmul.f32 %v4624_v7, %v4615_v3  ;;  %v4645_v25 = vpack.c.bf16 %v4638_v58, %v4637_v11 }
0x1810   : > { %v10342_v36 = vpop.eup %10341  ;;  %v4629_v18 = vmul.f32 %v4624_v7, %v4616_v1 }
0x1811   : > { %v10344_v41 = vpop.eup %10343  ;;  %9356 = vmatprep.mubr.msk.bf16.mxu0 %vm940_vm1, %v4645_v25  ;;  %v4640_v2 = vadd.f32 %v4636_v5, %v4628_v45  ;;  %v4617_v34 = vmul.f32 %v10342_v36, %v12212_v61 }
0x1812   : > { %v4618_v12 = vmul.f32 %v10344_v41, %v12215_v24  ;;  %v4641_v49 = vadd.f32 %v4636_v5, %v4629_v18 }
0x1813   : > { %v4646_v14 = vpack.c.bf16 %v4640_v2, %v4639_v27  ;;  %v4630_v38 = vmul.f32 %v4624_v7, %v4617_v34 }
0x1814   : > { %v10346_v53 = vpop.eup %10345  ;;  %v4631_v16 = vmul.f32 %v4624_v7, %v4618_v12 }
0x1815   : > { %9357 = vmatmul.mubr.msk.bf16.vlgmr.msra.gmra.mxu0 %vm940_vm1, %v4646_v14  ;;  %v4642_v44 = vadd.f32 %v4636_v5, %v4630_v38  ;;  %v4619_v23 = vmul.f32 %v10346_v53, %v12224_v52 }
0x1816   : > { %v4643_v28 = vadd.f32 %v4636_v5, %v4631_v16 }
0x1817   : > { %v4647_v31 = vpack.c.bf16 %v4642_v44, %v4641_v49  ;;  %v4632_v17 = vmul.f32 %v4624_v7, %v4619_v23 }
0x1819   : > { %9360 = vmatprep.mubr.msk.bf16.mxu0 %vm940_vm1, %v4647_v31  ;;  %v4644_v39 = vadd.f32 %v4636_v5, %v4632_v17 }
0x181b   : > { %v4648_v61 = vpack.c.bf16 %v4644_v39, %v4643_v28 }
0x181d   : > { %9361 = vmatmul.mubr.msk.bf16.gmra.mxu0 %vm940_vm1, %v4648_v61 }
0x18d5   : > { %v9358_v24 = vpop.f32.mrf.mxu0 }
0x18d6   : > { %v4729_v43 = vadd.f32 %v9358_v24, %v8567_v6 }
0x18d7   : > { %v4720_v37 = vpop.f32.mrf.mxu0 }
0x18d8   : > { %v4721_v4 = vadd.f32 %v8567_v6, %v4720_v37  ;;  %v4753_v56 = vmul.f32 0.35355338, %v4729_v43 }
0x18d9   : > { %v9359_v60 = vpop.f32.mrf.mxu0 }
0x18da   : > { %v4732_v52 = vadd.f32 %v9359_v60, %v8567_v6  ;;  %v4751_v55 = vmul.f32 0.35355338, %v4721_v4 }
0x18db   : > { %v4723_v0 = vpop.f32.mrf.mxu0 }
0x18dc   : > { %v4754_v7 = vmul.f32 0.35355338, %v4732_v52  ;;  %v4724_v59 = vadd.f32 %v8567_v6, %v4723_v0  ;;  %v12279_v34 = vpack.c.bf16 %v4732_v52, %v4729_v43 }
0x18dd   : > { %v9362_v15 = vpop.f32.mrf.mxu0 }
0x18de   : > { %v12265_v5 = vpack.c.bf16 %v4754_v7, %v4753_v56  ;;  %v4752_v46 = vmul.f32 0.35355338, %v4724_v59  ;;  %v4745_v48 = vadd.f32 %v9362_v15, %v8567_v6  ;;  %v12287_v12 = vpack.c.bf16 %v4724_v59, %v4721_v4 }
0x18df   : > { %v4736_v20 = vpop.f32.mrf.mxu0 }
0x18e0   : > { %v12267_v13 = vpack.c.bf16 %v4752_v46, %v4751_v55  ;;  %v4737_v47 = vadd.f32 %v8567_v6, %v4736_v20  ;;  %v4757_v58 = vmul.f32 0.35355338, %v4745_v48 }
0x18e1   : > { %v9363_v21 = vpop.f32.mrf.mxu0 }
0x18e2   : > { %v4748_v3 = vadd.f32 %v9363_v21, %v8567_v6  ;;  %9372 = vmatprep.mubr.msk.bf16.mxu0 %vm1208_vm2, %v12267_v13  ;;  %v4755_v36 = vmul.f32 0.35355338, %v4737_v47 }
0x18e3   : > { %v4739_v11 = vpop.f32.mrf.mxu0 }
0x18e4   : > { %v4758_v1 = vmul.f32 0.35355338, %v4748_v3  ;;  %v12271_v45 = vpack.c.bf16 %v4748_v3, %v4745_v48  ;;  %v4740_v25 = vadd.f32 %v8567_v6, %v4739_v11 }
0x18e6   : > { %v12273_v41 = vpack.c.bf16 %v4758_v1, %v4757_v58  ;;  %v4756_v27 = vmul.f32 0.35355338, %v4740_v25  ;;  %v12275_v2 = vpack.c.bf16 %v4740_v25, %v4737_v47  ;;  %4784 = vrot.lane.b32.xlu1 %v12271_v45, %s13675_s3 }
0x18e8   : > { %v12281_v18 = vpack.c.bf16 %v4756_v27, %v4755_v36  ;;  %4782 = vrot.lane.b32.xlu0 %v12275_v2, %s13675_s3 }
0x18ea   : > { %4780 = vrot.lane.b32.xlu1 %v12279_v34, %s13675_s3 }
0x18ee   : > { %4778 = vrot.lane.b32.xlu1 %v12287_v12, %s13675_s3 }
0x18f2   : > { %4973 = vrot.lane.b32.xlu1 %v12271_v45, %s13688_s24 }
0x1958   : > { %v4785_v14 = vpop.permute.xlu1 %4784 }
0x1959   : > { %9696 = vmatprep.subr.msk.bf16.mxu0 %vm1208_vm2, %v4785_v14  ;;  %v4808_v38 = vsel %vm1208_vm2, %v4785_v14, 0 }
0x195a   : > { %9365 = vmatpush3.bf16.xpose.msra.mxu0 %v4808_v38  ;;  %v4783_v53 = vpop.permute.xlu0 %4782 }
0x195b   : > { %9697 = vmatprep.subr.msk.bf16.mxu0 %vm1208_vm2, %v4783_v53  ;;  %v4805_v23 = vsel %vm1208_vm2, %v4783_v53, 0 }
0x195c   : > { %v4781_v49 = vpop.permute.xlu1 %4780 }
0x195d   : > { %v4802_v31 = vsel %vm1208_vm2, %v4781_v49, 0 }
0x1960   : > { %v4779_v44 = vpop.permute.xlu1 %4778 }
0x1961   : > { %v4799_v17 = vsel %vm1208_vm2, %v4779_v44, 0 }
0x1962   : > { %9367 = vmatpush3.bf16.xpose.msra.mxu0 %v4805_v23 }
0x1963   : > { %9698 = vmatprep.subr.msk.bf16.mxu0 %vm1208_vm2, %v4781_v49 }
0x1964   : > { %v4974_v16 = vpop.permute.xlu1 %4973 }
0x1965   : > { %9380 = vmatprep.subr.bf16.mxu1 %v4974_v16 }
0x1966   : > { %9381 = vmatpush3.bf16.msra.mxu1 %v4974_v16 }
0x196a   : > { %9369 = vmatpush3.bf16.xpose.msra.mxu0 %v4802_v31 }
0x196b   : > { %9699 = vmatprep.subr.msk.bf16.mxu0 %vm1208_vm2, %v4779_v44 }
0x1972   : > { %9371 = vmatpush3.bf16.xpose.msra.mxu0 %v4799_v17 }
0x1979   : > { %9373 = vmatmul.mubr.msk.bf16.vlgmr.msra.gmra.mxu0 %vm1208_vm2, %v12265_v5 }
0x197a   : > { %9376 = vmatprep.mubr.msk.bf16.mxu0 %vm1208_vm2, %v12281_v18 }
0x1981   : > { %9377 = vmatmul.mubr.msk.bf16.gmra.mxu0 %vm1208_vm2, %v12273_v41 }
0x1a39   : > { %v9374_v28 = vpop.f32.mrf.mxu0 }
0x1a3a   : > { %v4881_v39 = vsel %vm1298_vm3, %v9374_v28, -inf }
0x1a3b   : > { %4882 = vmax.xlane.f32.xlu0 %v4881_v39  ;;  %v4844_v61 = vpop.f32.mrf.mxu0 }
0x1a3c   : > { %v4875_v24 = vsel %vm1298_vm3, %v4844_v61, -inf }
0x1a3d   : > { %4876 = vmax.xlane.f32.xlu1 %v4875_v24  ;;  %v9375_v6 = vpop.f32.mrf.mxu0 }
0x1a3e   : > { %v4884_v37 = vsel %vm1298_vm3, %v9375_v6, -inf }
0x1a3f   : > { %4885 = vmax.xlane.f32.xlu0 %v4884_v37  ;;  %v4847_v43 = vpop.f32.mrf.mxu0 }
0x1a40   : > { %v4878_v4 = vsel %vm1298_vm3, %v4847_v43, -inf }
0x1a41   : > { %v9378_v60 = vpop.f32.mrf.mxu0 }
0x1a42   : > { %v4893_v52 = vsel %vm1298_vm3, %v9378_v60, -inf }
0x1a43   : > { %4879 = vmax.xlane.f32.xlu0 %v4878_v4  ;;  %4894 = vmax.xlane.f32.xlu1 %v4893_v52  ;;  %v4860_v0 = vpop.f32.mrf.mxu0 }
0x1a44   : > { %v4887_v7 = vsel %vm1298_vm3, %v4860_v0, -inf }
0x1a45   : > { %v9379_v56 = vpop.f32.mrf.mxu0 }
0x1a46   : > { %v4896_v59 = vsel %vm1298_vm3, %v9379_v56, -inf }
0x1a47   : > { %4888 = vmax.xlane.f32.xlu1 %v4887_v7  ;;  %4897 = vmax.xlane.f32.xlu0 %v4896_v59  ;;  %v4863_v15 = vpop.f32.mrf.mxu0 }
0x1a48   : > { %v4890_v55 = vsel %vm1298_vm3, %v4863_v15, -inf }
0x1a4b   : > { %4891 = vmax.xlane.f32.xlu0 %v4890_v55 }
0x1a58   : > { %4969 = vrot.lane.b32.xlu1 %v12279_v34, %s13688_s24 }
0x1a61   : > { %4971 = vrot.lane.b32.xlu0 %v12275_v2, %s13688_s24 }
0x1ac4   : > { %v4883_v46 = vpop.xlane.xlu0 %4882 }
0x1ac5   : > { %v4901_v20 = vsub.f32 %v9374_v28, %v4883_v46 }
0x1ac6   : > { %v4877_v48 = vpop.xlane.xlu1 %4876 }
0x1ac7   : > { %v4911_v21 = vmul.f32 1.442695, %v4901_v20  ;;  %v4899_v47 = vsub.f32 %v4844_v61, %v4877_v48 }
0x1ac8   : > { %v4886_v3 = vpop.xlane.xlu0 %4885 }
0x1ac9   : > { %10347 = vpow2.f32 %v4911_v21  ;;  %v4907_v11 = vmul.f32 1.442695, %v4899_v47  ;;  %v4902_v58 = vsub.f32 %v9375_v6, %v4886_v3 }
0x1acb   : > { %10349 = vpow2.f32 %v4907_v11  ;;  %v4913_v1 = vmul.f32 1.442695, %v4902_v58 }
0x1acc   : > { %v4880_v25 = vpop.xlane.xlu0 %4879  ;;  %v4895_v27 = vpop.xlane.xlu1 %4894 }
0x1acd   : > { %10351 = vpow2.f32 %v4913_v1  ;;  %v4900_v36 = vsub.f32 %v4847_v43, %v4880_v25  ;;  %v4905_v37 = vsub.f32 %v9378_v60, %v4895_v27 }
0x1acf   : > { %v4909_v14 = vmul.f32 1.442695, %v4900_v36  ;;  %v4919_v4 = vmul.f32 1.442695, %v4905_v37 }
0x1ad0   : > { %v4898_v38 = vpop.xlane.xlu0 %4897  ;;  %v4889_v53 = vpop.xlane.xlu1 %4888 }
0x1ad1   : > { %10353 = vpow2.f32 %v4909_v14  ;;  %v4903_v43 = vsub.f32 %v4860_v0, %v4889_v53  ;;  %v4906_v52 = vsub.f32 %v9379_v56, %v4898_v38 }
0x1ad2   : > { %10355 = vpow2.f32 %v4919_v4 }
0x1ad3   : > { %v4915_v7 = vmul.f32 1.442695, %v4903_v43  ;;  %v4921_v55 = vmul.f32 1.442695, %v4906_v52 }
0x1ad4   : > { %v4892_v49 = vpop.xlane.xlu0 %4891  ;;  %v4970_v28 = vpop.permute.xlu1 %4969 }
0x1ad5   : > { %v4904_v59 = vsub.f32 %v4863_v15, %v4892_v49  ;;  %10357 = vpow2.f32 %v4915_v7 }
0x1ad6   : > { %v12319_v44 = vpop.eup %10347  ;;  %10359 = vpow2.f32 %v4921_v55 }
0x1ad7   : > { %v4929_v23 = vsel %vm1298_vm3, %v12319_v44, 0.0  ;;  %v4917_v46 = vmul.f32 1.442695, %v4904_v59 }
0x1ad8   : > { %v12323_v16 = vpop.eup %10349  ;;  %4930 = vadd.xlane.f32.xlu1 %v4929_v23  ;;  %v4972_v31 = vpop.permute.xlu0 %4971 }
0x1ad9   : > { %9382 = vmatprep.subr.bf16.mxu1 %v4972_v31  ;;  %v4923_v39 = vsel %vm1298_vm3, %v12323_v16, 0.0  ;;  %10361 = vpow2.f32 %v4917_v46 }
0x1ada   : > { %v12325_v17 = vpop.eup %10351  ;;  %9383 = vmatpush3.bf16.msra.mxu1 %v4972_v31 }
0x1adb   : > { %9384 = vmatprep.subr.bf16.mxu1 %v4970_v28  ;;  %v4932_v61 = vsel %vm1298_vm3, %v12325_v17, 0.0 }
0x1adc   : > { %4924 = vadd.xlane.f32.xlu1 %v4923_v39  ;;  %4933 = vadd.xlane.f32.xlu0 %v4932_v61 }
0x1ade   : > { %v10354_v24 = vpop.eup %10353  ;;  %9385 = vmatpush3.bf16.msra.mxu1 %v4970_v28 }
0x1adf   : > { %v4926_v6 = vsel %vm1298_vm3, %v10354_v24, 0.0  ;;  %v12338_v20 = vpop.eup %10355 }
0x1ae0   : > { %4927 = vadd.xlane.f32.xlu0 %v4926_v6  ;;  %v4941_v0 = vsel %vm1298_vm3, %v12338_v20, 0.0 }
0x1ae2   : > { %v12340_v48 = vpop.eup %10357 }
0x1ae3   : > { %v12342_v21 = vpop.eup %10359  ;;  %v4935_v60 = vsel %vm1298_vm3, %v12340_v48, 0.0 }
0x1ae4   : > { %v4944_v15 = vsel %vm1298_vm3, %v12342_v21, 0.0 }
0x1ae6   : > { %v12348_v56 = vpop.eup %10361 }
0x1ae7   : > { %v4938_v47 = vsel %vm1298_vm3, %v12348_v56, 0.0 }
0x1aed   : > { %5074 = vrot.lane.b32.xlu1 %v12271_v45, %s13676_s26 }
0x1af1   : > { %5072 = vrot.lane.b32.xlu1 %v12275_v2, %s13676_s26 }
0x1af6   : > { %4967 = vrot.lane.b32.xlu0 %v12287_v12, %s13688_s24  ;;  %s13717_s24 = sld [smem:[#allocation23_spill]] }
0x1b15   : > { %4936 = vadd.xlane.f32.xlu1 %v4935_v60  ;;  %4942 = vadd.xlane.f32.xlu0 %v4941_v0 }
0x1b19   : > { %4945 = vadd.xlane.f32.xlu1 %v4944_v15  ;;  %4939 = vadd.xlane.f32.xlu0 %v4938_v47 }
0x1b2a   : > { %5070 = vrot.lane.b32.xlu1 %v12279_v34, %s13676_s26 }
0x1b2e   : > { %5060 = vrot.lane.b32.xlu1 %v12267_v13, %s13672_s1 }
0x1b2f   : > { %5068 = vrot.lane.b32.xlu0 %v12287_v12, %s13676_s26 }
0x1b32   : > { %5064 = vrot.lane.b32.xlu1 %v12281_v18, %s13672_s1 }
0x1b33   : > { %5062 = vrot.lane.b32.xlu0 %v12265_v5, %s13672_s1 }
0x1b36   : > { %5263 = vrot.lane.b32.xlu1 %v12271_v45, %s13689_s18 }
0x1b37   : > { %5066 = vrot.lane.b32.xlu0 %v12273_v41, %s13672_s1 }
0x1b61   : > { %v4931_v3 = vpop.xlane.xlu1 %4930 }
0x1b65   : > { %v4925_v11 = vpop.xlane.xlu1 %4924  ;;  %v4934_v58 = vpop.xlane.xlu0 %4933 }
0x1b66   : > { %10363 = vrcp.f32 %v4934_v58 }
0x1b67   : > { %10365 = vrcp.f32 %v4925_v11 }
0x1b68   : > { %10367 = vrcp.f32 %v4931_v3 }
0x1b69   : > { %v4928_v1 = vpop.xlane.xlu0 %4927  ;;  %v5075_v36 = vpop.permute.xlu1 %5074 }
0x1b6a   : > { %10369 = vrcp.f32 %v4928_v1  ;;  %v5098_v6 = vsel %vm1208_vm2, %v5075_v36, 0 }
0x1b6d   : > { %v4968_v25 = vpop.permute.xlu0 %4967  ;;  %v5073_v37 = vpop.permute.xlu1 %5072 }
0x1b6e   : > { %9386 = vmatprep.subr.bf16.mxu1 %v4968_v25  ;;  %v5095_v43 = vsel %vm1208_vm2, %v5073_v37, 0 }
0x1b6f   : > { %9387 = vmatpush3.bf16.msra.mxu1 %v4968_v25 }
0x1b70   : > { %9700 = vmatprep.subr.msk.bf16.mxu1 %vm1208_vm2, %v5075_v36 }
0x1b73   : > { %v10364_v27 = vpop.eup %10363 }
0x1b74   : > { %v10366_v14 = vpop.eup %10365  ;;  %v4958_v49 = vmul.f32 %v10364_v27, %v12325_v17 }
0x1b75   : > { %v10368_v38 = vpop.eup %10367  ;;  %v4955_v23 = vmul.f32 %v10366_v14, %v12323_v16 }
0x1b76   : > { %v4957_v28 = vmul.f32 %v10368_v38, %v12319_v44 }
0x1b77   : > { %v10370_v53 = vpop.eup %10369 }
0x1b78   : > { %v4956_v31 = vmul.f32 %v10370_v53, %v10354_v24  ;;  %v4964_v61 = vpack.c.bf16 %v4958_v49, %v4957_v28 }
0x1b7a   : > { %v4963_v39 = vpack.c.bf16 %v4956_v31, %v4955_v23 }
0x1b7c   : > { %9388 = vmatprep.mubr.msk.bf16.mxu1 %vm1298_vm3, %v4963_v39 }
0x1b7d   : > { %9389 = vmatmul.mubr.msk.bf16.vlgmr.msra.gmra.mxu1 %vm1298_vm3, %v4964_v61 }
0x1b7e   : > { %9397 = vmatpush3.bf16.xpose.msra.mxu1 %v5098_v6 }
0x1b7f   : > { %9701 = vmatprep.subr.msk.bf16.mxu1 %vm1208_vm2, %v5073_v37 }
0x1b86   : > { %9399 = vmatpush3.bf16.xpose.msra.mxu1 %v5095_v43 }
0x1b9e   : > { %v4937_v17 = vpop.xlane.xlu1 %4936  ;;  %v4943_v16 = vpop.xlane.xlu0 %4942 }
0x1b9f   : > { %10371 = vrcp.f32 %v4943_v16 }
0x1ba0   : > { %10373 = vrcp.f32 %v4937_v17 }
0x1ba2   : > { %v4946_v44 = vpop.xlane.xlu1 %4945  ;;  %v4940_v24 = vpop.xlane.xlu0 %4939 }
0x1ba3   : > { %10375 = vrcp.f32 %v4946_v44 }
0x1ba4   : > { %10377 = vrcp.f32 %v4940_v24 }
0x1ba6   : > { %v5071_v4 = vpop.permute.xlu1 %5070  ;;  %v5069_v7 = vpop.permute.xlu0 %5068 }
0x1ba7   : > { %9702 = vmatprep.subr.msk.bf16.mxu1 %vm1208_vm2, %v5071_v4  ;;  %v5092_v52 = vsel %vm1208_vm2, %v5071_v4, 0  ;;  %v5089_v0 = vsel %vm1208_vm2, %v5069_v7, 0 }
0x1ba8   : > { %9401 = vmatpush3.bf16.xpose.msra.mxu1 %v5092_v52 }
0x1ba9   : > { %9703 = vmatprep.subr.msk.bf16.mxu1 %vm1208_vm2, %v5069_v7 }
0x1baa   : > { %v5061_v59 = vpop.permute.xlu1 %5060  ;;  %v5063_v14 = vpop.permute.xlu0 %5062 }
0x1bac   : > { %v10372_v55 = vpop.eup %10371 }
0x1bad   : > { %v10374_v60 = vpop.eup %10373  ;;  %v4961_v3 = vmul.f32 %v10372_v55, %v12338_v20 }
0x1bae   : > { %v5065_v46 = vpop.permute.xlu1 %5064  ;;  %v4959_v1 = vmul.f32 %v10374_v60, %v12340_v48  ;;  %v5067_v20 = vpop.permute.xlu0 %5066 }
0x1bb0   : > { %v10376_v15 = vpop.eup %10375  ;;  %9403 = vmatpush3.bf16.xpose.msra.mxu1 %v5089_v0 }
0x1bb1   : > { %v10378_v47 = vpop.eup %10377  ;;  %v4962_v11 = vmul.f32 %v10376_v15, %v12342_v21 }
0x1bb2   : > { %v5264_v58 = vpop.permute.xlu1 %5263  ;;  %v4960_v25 = vmul.f32 %v10378_v47, %v12348_v56 }
0x1bb3   : > { %9412 = vmatprep.subr.bf16.mxu0 %v5264_v58  ;;  %v4966_v36 = vpack.c.bf16 %v4962_v11, %v4961_v3 }
0x1bb4   : > { %9413 = vmatpush3.bf16.msra.mxu0 %v5264_v58  ;;  %v4965_v27 = vpack.c.bf16 %v4960_v25, %v4959_v1 }
0x1bb6   : > { %9392 = vmatprep.mubr.msk.bf16.mxu1 %vm1298_vm3, %v4965_v27 }
0x1bb7   : > { %9393 = vmatmul.mubr.msk.bf16.gmra.mxu1 %vm1298_vm3, %v4966_v36 }
0x1bb8   : > { %9404 = vmatprep.mubr.msk.bf16.mxu1 %vm1208_vm2, %v5061_v59 }
0x1bbf   : > { %9405 = vmatmul.mubr.msk.bf16.vlgmr.msra.gmra.mxu1 %vm1208_vm2, %v5063_v14 }
0x1bc0   : > { %9408 = vmatprep.mubr.msk.bf16.mxu1 %vm1208_vm2, %v5065_v46 }
0x1bc7   : > { %9409 = vmatmul.mubr.msk.bf16.gmra.mxu1 %vm1208_vm2, %v5067_v20 }
0x1c3d   : > { %v12391_v48 = vpop.f32.mrf.mxu1 }
0x1c3f   : > { %v12393_v21 = vpop.f32.mrf.mxu1 }
0x1c41   : > { %v12395_v56 = vpop.f32.mrf.mxu1 }
0x1c43   : > { %v12397_v38 = vpop.f32.mrf.mxu1 }
0x1c77   : > { %v12399_v53 = vpop.f32.mrf.mxu1 }
0x1c79   : > { %v12401_v49 = vpop.f32.mrf.mxu1 }
0x1c7b   : > { %v12403_v23 = vpop.f32.mrf.mxu1 }
0x1c7d   : > { %v12405_v31 = vpop.f32.mrf.mxu1 }
0x1c7f   : > { %v9406_v28 = vpop.f32.mrf.mxu1 }
0x1c80   : > { %v5171_v39 = vsel %vm1298_vm3, %v9406_v28, -inf }
0x1c81   : > { %5172 = vmax.xlane.f32.xlu0 %v5171_v39  ;;  %v5134_v61 = vpop.f32.mrf.mxu1 }
0x1c82   : > { %v5165_v6 = vsel %vm1298_vm3, %v5134_v61, -inf }
0x1c83   : > { %5166 = vmax.xlane.f32.xlu1 %v5165_v6  ;;  %v9407_v37 = vpop.f32.mrf.mxu1 }
0x1c84   : > { %v5174_v43 = vsel %vm1298_vm3, %v9407_v37, -inf }
0x1c85   : > { %5175 = vmax.xlane.f32.xlu0 %v5174_v43  ;;  %v5137_v17 = vpop.f32.mrf.mxu1 }
0x1c86   : > { %v5168_v44 = vsel %vm1298_vm3, %v5137_v17, -inf }
0x1c87   : > { %v9410_v16 = vpop.f32.mrf.mxu1 }
0x1c88   : > { %v5183_v24 = vsel %vm1298_vm3, %v9410_v16, -inf }
0x1c89   : > { %5169 = vmax.xlane.f32.xlu0 %v5168_v44  ;;  %5184 = vmax.xlane.f32.xlu1 %v5183_v24  ;;  %v5150_v4 = vpop.f32.mrf.mxu1 }
0x1c8a   : > { %v5177_v7 = vsel %vm1298_vm3, %v5150_v4, -inf }
0x1c8b   : > { %v9411_v52 = vpop.f32.mrf.mxu1 }
0x1c8c   : > { %v5186_v59 = vsel %vm1298_vm3, %v9411_v52, -inf }
0x1c8d   : > { %5178 = vmax.xlane.f32.xlu1 %v5177_v7  ;;  %5187 = vmax.xlane.f32.xlu0 %v5186_v59  ;;  %v5153_v55 = vpop.f32.mrf.mxu1 }
0x1c8e   : > { %v5180_v46 = vsel %vm1298_vm3, %v5153_v55, -inf }
0x1c91   : > { %5181 = vmax.xlane.f32.xlu0 %v5180_v46 }
0x1c9e   : > { %5259 = vrot.lane.b32.xlu1 %v12279_v34, %s13689_s18 }
0x1ca7   : > { %5261 = vrot.lane.b32.xlu0 %v12275_v2, %s13689_s18 }
0x1d0a   : > { %v5173_v60 = vpop.xlane.xlu0 %5172 }
0x1d0b   : > { %v5191_v0 = vsub.f32 %v9406_v28, %v5173_v60 }
0x1d0c   : > { %v5167_v15 = vpop.xlane.xlu1 %5166 }
0x1d0d   : > { %v5201_v47 = vmul.f32 1.442695, %v5191_v0  ;;  %v5189_v3 = vsub.f32 %v5134_v61, %v5167_v15 }
0x1d0e   : > { %v5176_v11 = vpop.xlane.xlu0 %5175 }
0x1d0f   : > { %10379 = vpow2.f32 %v5201_v47  ;;  %v5197_v58 = vmul.f32 1.442695, %v5189_v3  ;;  %v5192_v1 = vsub.f32 %v9407_v37, %v5176_v11 }
0x1d11   : > { %10381 = vpow2.f32 %v5197_v58  ;;  %v5203_v25 = vmul.f32 1.442695, %v5192_v1 }
0x1d12   : > { %v5170_v36 = vpop.xlane.xlu0 %5169  ;;  %v5185_v14 = vpop.xlane.xlu1 %5184 }
0x1d13   : > { %10383 = vpow2.f32 %v5203_v25  ;;  %v5190_v27 = vsub.f32 %v5137_v17, %v5170_v36  ;;  %v5195_v15 = vsub.f32 %v9410_v16, %v5185_v14 }
0x1d15   : > { %v5199_v20 = vmul.f32 1.442695, %v5190_v27  ;;  %v5209_v11 = vmul.f32 1.442695, %v5195_v15 }
0x1d16   : > { %v5188_v39 = vpop.xlane.xlu0 %5187  ;;  %v5179_v6 = vpop.xlane.xlu1 %5178 }
0x1d17   : > { %10385 = vpow2.f32 %v5199_v20  ;;  %v5193_v0 = vsub.f32 %v5150_v4, %v5179_v6  ;;  %v5196_v3 = vsub.f32 %v9411_v52, %v5188_v39 }
0x1d19   : > { %v5205_v47 = vmul.f32 1.442695, %v5193_v0  ;;  %v5211_v1 = vmul.f32 1.442695, %v5196_v3 }
0x1d1a   : > { %v5182_v43 = vpop.xlane.xlu0 %5181  ;;  %v5260_v7 = vpop.permute.xlu1 %5259 }
0x1d1b   : > { %v5194_v58 = vsub.f32 %v5153_v55, %v5182_v43  ;;  %10387 = vpow2.f32 %v5205_v47 }
0x1d1c   : > { %v12419_v44 = vpop.eup %10379  ;;  %10389 = vpow2.f32 %v5209_v11 }
0x1d1d   : > { %v5219_v28 = vsel %vm1298_vm3, %v12419_v44, 0.0  ;;  %v5207_v25 = vmul.f32 1.442695, %v5194_v58  ;;  %10391 = vpow2.f32 %v5211_v1 }
0x1d1e   : > { %v12423_v61 = vpop.eup %10381  ;;  %5220 = vadd.xlane.f32.xlu1 %v5219_v28  ;;  %v5262_v37 = vpop.permute.xlu0 %5261 }
0x1d1f   : > { %9414 = vmatprep.subr.bf16.mxu0 %v5262_v37  ;;  %v5213_v17 = vsel %vm1298_vm3, %v12423_v61, 0.0  ;;  %10393 = vpow2.f32 %v5207_v25 }
0x1d20   : > { %v12425_v24 = vpop.eup %10383  ;;  %9415 = vmatpush3.bf16.msra.mxu0 %v5262_v37 }
0x1d21   : > { %9416 = vmatprep.subr.bf16.mxu0 %v5260_v7  ;;  %v5222_v59 = vsel %vm1298_vm3, %v12425_v24, 0.0 }
0x1d22   : > { %5214 = vadd.xlane.f32.xlu1 %v5213_v17  ;;  %5223 = vadd.xlane.f32.xlu0 %v5222_v59 }
0x1d24   : > { %9417 = vmatpush3.bf16.msra.mxu0 %v5260_v7  ;;  %v10386_v46 = vpop.eup %10385 }
0x1d25   : > { %v5216_v60 = vsel %vm1298_vm3, %v10386_v46, 0.0 }
0x1d26   : > { %5217 = vadd.xlane.f32.xlu0 %v5216_v60 }
0x1d28   : > { %v12438_v36 = vpop.eup %10387 }
0x1d29   : > { %v12440_v27 = vpop.eup %10389  ;;  %v5225_v20 = vsel %vm1298_vm3, %v12438_v36, 0.0 }
0x1d2a   : > { %v12444_v28 = vpop.eup %10391  ;;  %v5231_v16 = vsel %vm1298_vm3, %v12440_v27, 0.0 }
0x1d2b   : > { %v5234_v52 = vsel %vm1298_vm3, %v12444_v28, 0.0 }
0x1d2c   : > { %v12448_v4 = vpop.eup %10393 }
0x1d2d   : > { %v5228_v55 = vsel %vm1298_vm3, %v12448_v4, 0.0 }
0x1d33   : > { %5360 = vrot.lane.b32.xlu1 %v12271_v45, %s13678_s9 }
0x1d37   : > { %5358 = vrot.lane.b32.xlu1 %v12275_v2, %s13678_s9 }
0x1d3c   : > { %5257 = vrot.lane.b32.xlu0 %v12287_v12, %s13689_s18  ;;  %s812_s18 = scalar_lea.vmem %s13717_s24, %s13716_s25 }
0x1d5b   : > { %5226 = vadd.xlane.f32.xlu1 %v5225_v20  ;;  %5232 = vadd.xlane.f32.xlu0 %v5231_v16 }
0x1d5f   : > { %5235 = vadd.xlane.f32.xlu1 %v5234_v52  ;;  %5229 = vadd.xlane.f32.xlu0 %v5228_v55 }
0x1d70   : > { %5356 = vrot.lane.b32.xlu1 %v12279_v34, %s13678_s9 }
0x1d74   : > { %5346 = vrot.lane.b32.xlu1 %v12267_v13, %s13673_s4 }
0x1d75   : > { %5354 = vrot.lane.b32.xlu0 %v12287_v12, %s13678_s9 }
0x1d78   : > { %5350 = vrot.lane.b32.xlu1 %v12281_v18, %s13673_s4 }
0x1d79   : > { %5348 = vrot.lane.b32.xlu0 %v12265_v5, %s13673_s4 }
0x1d7c   : > { %5549 = vrot.lane.b32.xlu1 %v12271_v45, %s13690_s2 }
0x1d7d   : > { %5352 = vrot.lane.b32.xlu0 %v12273_v41, %s13673_s4 }
0x1da7   : > { %v5221_v14 = vpop.xlane.xlu1 %5220 }
0x1dab   : > { %v5224_v39 = vpop.xlane.xlu0 %5223  ;;  %v5215_v6 = vpop.xlane.xlu1 %5214 }
0x1dac   : > { %10395 = vrcp.f32 %v5224_v39 }
0x1dad   : > { %10397 = vrcp.f32 %v5215_v6 }
0x1dae   : > { %10399 = vrcp.f32 %v5221_v14 }
0x1daf   : > { %v5218_v43 = vpop.xlane.xlu0 %5217  ;;  %v5361_v7 = vpop.permute.xlu1 %5360 }
0x1db0   : > { %10401 = vrcp.f32 %v5218_v43  ;;  %v5384_v25 = vsel %vm1208_vm2, %v5361_v7, 0 }
0x1db3   : > { %v5258_v37 = vpop.permute.xlu0 %5257  ;;  %v5359_v20 = vpop.permute.xlu1 %5358 }
0x1db4   : > { %9418 = vmatprep.subr.bf16.mxu0 %v5258_v37  ;;  %v5381_v16 = vsel %vm1208_vm2, %v5359_v20, 0 }
0x1db5   : > { %9419 = vmatpush3.bf16.msra.mxu0 %v5258_v37 }
0x1db6   : > { %9704 = vmatprep.subr.msk.bf16.mxu0 %vm1208_vm2, %v5361_v7 }
0x1db9   : > { %v10396_v17 = vpop.eup %10395 }
0x1dba   : > { %v10398_v59 = vpop.eup %10397  ;;  %v5248_v15 = vmul.f32 %v10396_v17, %v12425_v24 }
0x1dbb   : > { %v10400_v60 = vpop.eup %10399  ;;  %v5245_v47 = vmul.f32 %v10398_v59, %v12423_v61 }
0x1dbc   : > { %v5247_v11 = vmul.f32 %v10400_v60, %v12419_v44 }
0x1dbd   : > { %v10402_v0 = vpop.eup %10401 }
0x1dbe   : > { %v5246_v3 = vmul.f32 %v10402_v0, %v10386_v46  ;;  %v5254_v1 = vpack.c.bf16 %v5248_v15, %v5247_v11 }
0x1dc0   : > { %v5253_v58 = vpack.c.bf16 %v5246_v3, %v5245_v47 }
0x1dc2   : > { %9420 = vmatprep.mubr.msk.bf16.mxu0 %vm1298_vm3, %v5253_v58 }
0x1dc3   : > { %9421 = vmatmul.mubr.msk.bf16.vlgmr.msra.gmra.mxu0 %vm1298_vm3, %v5254_v1 }
0x1dc4   : > { %9429 = vmatpush3.bf16.xpose.msra.mxu0 %v5384_v25 }
0x1dc5   : > { %9705 = vmatprep.subr.msk.bf16.mxu0 %vm1208_vm2, %v5359_v20 }
0x1dcc   : > { %9431 = vmatpush3.bf16.xpose.msra.mxu0 %v5381_v16 }
0x1de4   : > { %v5227_v24 = vpop.xlane.xlu1 %5226  ;;  %v5233_v61 = vpop.xlane.xlu0 %5232 }
0x1de5   : > { %10403 = vrcp.f32 %v5233_v61 }
0x1de6   : > { %10405 = vrcp.f32 %v5227_v24 }
0x1de8   : > { %v5236_v44 = vpop.xlane.xlu1 %5235  ;;  %v5230_v46 = vpop.xlane.xlu0 %5229 }
0x1de9   : > { %10407 = vrcp.f32 %v5236_v44 }
0x1dea   : > { %10409 = vrcp.f32 %v5230_v46 }
0x1dec   : > { %v5357_v52 = vpop.permute.xlu1 %5356  ;;  %v5355_v14 = vpop.permute.xlu0 %5354 }
0x1ded   : > { %9706 = vmatprep.subr.msk.bf16.mxu0 %vm1208_vm2, %v5357_v52  ;;  %v5378_v55 = vsel %vm1208_vm2, %v5357_v52, 0  ;;  %v5375_v7 = vsel %vm1208_vm2, %v5355_v14, 0 }
0x1dee   : > { %9433 = vmatpush3.bf16.xpose.msra.mxu0 %v5378_v55 }
0x1def   : > { %9707 = vmatprep.subr.msk.bf16.mxu0 %vm1208_vm2, %v5355_v14 }
0x1df0   : > { %v5347_v39 = vpop.permute.xlu1 %5346  ;;  %v5349_v1 = vpop.permute.xlu0 %5348 }
0x1df2   : > { %v10404_v6 = vpop.eup %10403 }
0x1df3   : > { %v10406_v37 = vpop.eup %10405  ;;  %v5251_v60 = vmul.f32 %v10404_v6, %v12440_v27 }
0x1df4   : > { %v5351_v43 = vpop.permute.xlu1 %5350  ;;  %v5249_v47 = vmul.f32 %v10406_v37, %v12438_v36  ;;  %v5353_v27 = vpop.permute.xlu0 %5352 }
0x1df6   : > { %v10408_v17 = vpop.eup %10407  ;;  %9435 = vmatpush3.bf16.xpose.msra.mxu0 %v5375_v7 }
0x1df7   : > { %v10410_v59 = vpop.eup %10409  ;;  %v5252_v0 = vmul.f32 %v10408_v17, %v12444_v28 }
0x1df8   : > { %v5550_v15 = vpop.permute.xlu1 %5549  ;;  %v5250_v3 = vmul.f32 %v10410_v59, %v12448_v4 }
0x1df9   : > { %9444 = vmatprep.subr.bf16.mxu1 %v5550_v15  ;;  %v5256_v11 = vpack.c.bf16 %v5252_v0, %v5251_v60 }
0x1dfa   : > { %9445 = vmatpush3.bf16.msra.mxu1 %v5550_v15  ;;  %v5255_v58 = vpack.c.bf16 %v5250_v3, %v5249_v47 }
0x1dfc   : > { %9424 = vmatprep.mubr.msk.bf16.mxu0 %vm1298_vm3, %v5255_v58 }
0x1dfd   : > { %9425 = vmatmul.mubr.msk.bf16.gmra.mxu0 %vm1298_vm3, %v5256_v11 }
0x1dfe   : > { %9436 = vmatprep.mubr.msk.bf16.mxu0 %vm1208_vm2, %v5347_v39 }
0x1e05   : > { %9437 = vmatmul.mubr.msk.bf16.vlgmr.msra.gmra.mxu0 %vm1208_vm2, %v5349_v1 }
0x1e06   : > { %9440 = vmatprep.mubr.msk.bf16.mxu0 %vm1208_vm2, %v5351_v43 }
0x1e0d   : > { %9441 = vmatmul.mubr.msk.bf16.gmra.mxu0 %vm1208_vm2, %v5353_v27 }
0x1e83   : > { %v12491_v36 = vpop.f32.mrf.mxu0 }
0x1e85   : > { %v12493_v28 = vpop.f32.mrf.mxu0 }
0x1e87   : > { %v12495_v4 = vpop.f32.mrf.mxu0 }
0x1e89   : > { %v12499_v20 = vpop.f32.mrf.mxu0 }
0x1ebd   : > { %v12503_v24 = vpop.f32.mrf.mxu0 }
0x1ebf   : > { %v12505_v61 = vpop.f32.mrf.mxu0 }
0x1ec1   : > { %v12507_v44 = vpop.f32.mrf.mxu0 }
0x1ec3   : > { %v12511_v52 = vpop.f32.mrf.mxu0 }
0x1ec5   : > { %v9438_v14 = vpop.f32.mrf.mxu0 }
0x1ec6   : > { %v5457_v39 = vsel %vm1298_vm3, %v9438_v14, -inf }
0x1ec7   : > { %5458 = vmax.xlane.f32.xlu0 %v5457_v39  ;;  %v5420_v6 = vpop.f32.mrf.mxu0 }
0x1ec8   : > { %v5451_v43 = vsel %vm1298_vm3, %v5420_v6, -inf }
0x1ec9   : > { %5452 = vmax.xlane.f32.xlu1 %v5451_v43  ;;  %v9439_v37 = vpop.f32.mrf.mxu0 }
0x1eca   : > { %v5460_v7 = vsel %vm1298_vm3, %v9439_v37, -inf }
0x1ecb   : > { %5461 = vmax.xlane.f32.xlu0 %v5460_v7  ;;  %v5423_v17 = vpop.f32.mrf.mxu0 }
0x1ecc   : > { %v5454_v60 = vsel %vm1298_vm3, %v5423_v17, -inf }
0x1ecd   : > { %v9442_v59 = vpop.f32.mrf.mxu0 }
0x1ece   : > { %v5469_v0 = vsel %vm1298_vm3, %v9442_v59, -inf }
0x1ecf   : > { %5455 = vmax.xlane.f32.xlu0 %v5454_v60  ;;  %5470 = vmax.xlane.f32.xlu1 %v5469_v0  ;;  %v5436_v15 = vpop.f32.mrf.mxu0 }
0x1ed0   : > { %v5463_v3 = vsel %vm1298_vm3, %v5436_v15, -inf }
0x1ed1   : > { %v9443_v47 = vpop.f32.mrf.mxu0 }
0x1ed2   : > { %v5472_v11 = vsel %vm1298_vm3, %v9443_v47, -inf }
0x1ed3   : > { %5464 = vmax.xlane.f32.xlu1 %v5463_v3  ;;  %5473 = vmax.xlane.f32.xlu0 %v5472_v11  ;;  %v5439_v58 = vpop.f32.mrf.mxu0 }
0x1ed4   : > { %v5466_v1 = vsel %vm1298_vm3, %v5439_v58, -inf }
0x1ed7   : > { %5467 = vmax.xlane.f32.xlu0 %v5466_v1 }
0x1ee4   : > { %5545 = vrot.lane.b32.xlu1 %v12279_v34, %s13690_s2 }
0x1eed   : > { %5547 = vrot.lane.b32.xlu0 %v12275_v2, %s13690_s2 }
0x1f50   : > { %v5459_v27 = vpop.xlane.xlu0 %5458 }
0x1f51   : > { %v5477_v39 = vsub.f32 %v9438_v14, %v5459_v27 }
0x1f52   : > { %v5453_v43 = vpop.xlane.xlu1 %5452 }
0x1f53   : > { %v5487_v7 = vmul.f32 1.442695, %v5477_v39  ;;  %v5475_v60 = vsub.f32 %v5420_v6, %v5453_v43 }
0x1f54   : > { %v5462_v0 = vpop.xlane.xlu0 %5461 }
0x1f55   : > { %10411 = vpow2.f32 %v5487_v7  ;;  %v5483_v19 = vmul.f32 1.442695, %v5475_v60  ;;  %v5478_v3 = vsub.f32 %v9439_v37, %v5462_v0 }
0x1f57   : > { %10413 = vpow2.f32 %v5483_v19  ;;  %v5489_v11 = vmul.f32 1.442695, %v5478_v3 }
0x1f58   : > { %v5456_v63 = vpop.xlane.xlu0 %5455  ;;  %v5471_v29 = vpop.xlane.xlu1 %5470 }
0x1f59   : > { %10415 = vpow2.f32 %v5489_v11  ;;  %v5476_v1 = vsub.f32 %v5423_v17, %v5456_v63  ;;  %v5481_v7 = vsub.f32 %v9442_v59, %v5471_v29 }
0x1f5b   : > { %v5485_v33 = vmul.f32 1.442695, %v5476_v1  ;;  %v5495_v3 = vmul.f32 1.442695, %v5481_v7 }
0x1f5c   : > { %v5474_v51 = vpop.xlane.xlu0 %5473  ;;  %v5465_v46 = vpop.xlane.xlu1 %5464 }
0x1f5d   : > { %10417 = vpow2.f32 %v5485_v33  ;;  %v5479_v43 = vsub.f32 %v5436_v15, %v5465_v46  ;;  %v5482_v0 = vsub.f32 %v9443_v47, %v5474_v51 }
0x1f5f   : > { %v5491_v60 = vmul.f32 1.442695, %v5479_v43  ;;  %v5497_v1 = vmul.f32 1.442695, %v5482_v0 }
0x1f60   : > { %v5468_v55 = vpop.xlane.xlu0 %5467  ;;  %v5546_v27 = vpop.permute.xlu1 %5545 }
0x1f61   : > { %v5480_v11 = vsub.f32 %v5439_v58, %v5468_v55  ;;  %10419 = vpow2.f32 %v5491_v60 }
0x1f62   : > { %v12527_v25 = vpop.eup %10411  ;;  %10421 = vpow2.f32 %v5495_v3 }
0x1f63   : > { %v5505_v14 = vsel %vm1298_vm3, %v12527_v25, 0.0  ;;  %10423 = vpow2.f32 %v5497_v1 }
0x1f64   : > { %v12531_v6 = vpop.eup %10413  ;;  %5506 = vadd.xlane.f32.xlu1 %v5505_v14  ;;  %v5548_v37 = vpop.permute.xlu0 %5547  ;;  %v5493_v14 = vmul.f32 1.442695, %v5480_v11 }
0x1f65   : > { %9446 = vmatprep.subr.bf16.mxu1 %v5548_v37  ;;  %v5499_v63 = vsel %vm1298_vm3, %v12531_v6, 0.0 }
0x1f66   : > { %v10416_v19 = vpop.eup %10415  ;;  %9447 = vmatpush3.bf16.msra.mxu1 %v5548_v37  ;;  %10425 = vpow2.f32 %v5493_v14 }
0x1f67   : > { %9448 = vmatprep.subr.bf16.mxu1 %v5546_v27  ;;  %v5508_v33 = vsel %vm1298_vm3, %v10416_v19, 0.0 }
0x1f68   : > { %5500 = vadd.xlane.f32.xlu1 %v5499_v63  ;;  %5509 = vadd.xlane.f32.xlu0 %v5508_v33 }
0x1f6a   : > { %9449 = vmatpush3.bf16.msra.mxu1 %v5546_v27  ;;  %v10418_v17 = vpop.eup %10417 }
0x1f6b   : > { %v5502_v39 = vsel %vm1298_vm3, %v10418_v17, 0.0 }
0x1f6c   : > { %5503 = vadd.xlane.f32.xlu0 %v5502_v39 }
0x1f6e   : > { %v12543_v37 = vpop.eup %10419 }
0x1f6f   : > { %v12545_v27 = vpop.eup %10421  ;;  %v5511_v63 = vsel %vm1298_vm3, %v12543_v37, 0.0 }
0x1f70   : > { %v12549_v33 = vpop.eup %10423  ;;  %v5517_v51 = vsel %vm1298_vm3, %v12545_v27, 0.0 }
0x1f71   : > { %v5520_v46 = vsel %vm1298_vm3, %v12549_v33, 0.0 }
0x1f73   : > { %v12553_v29 = vpop.eup %10425 }
0x1f74   : > { %v5514_v55 = vsel %vm1298_vm3, %v12553_v29, 0.0 }
0x1f79   : > { %5646 = vrot.lane.b32.xlu1 %v12271_v45, %s13677_s6 }
0x1f7d   : > { %5644 = vrot.lane.b32.xlu1 %v12275_v2, %s13677_s6 }
0x1f82   : > { %5543 = vrot.lane.b32.xlu0 %v12287_v12, %s13690_s2  ;;  %s13710_s2 = sld [smem:[#allocation21_spill]] }
0x1fa1   : > { %5512 = vadd.xlane.f32.xlu1 %v5511_v63  ;;  %5518 = vadd.xlane.f32.xlu0 %v5517_v51 }
0x1fa5   : > { %5521 = vadd.xlane.f32.xlu1 %v5520_v46  ;;  %5515 = vadd.xlane.f32.xlu0 %v5514_v55 }
0x1fb6   : > { %5642 = vrot.lane.b32.xlu1 %v12279_v34, %s13677_s6 }
0x1fba   : > { %5632 = vrot.lane.b32.xlu1 %v12267_v13, %s13674_s28 }
0x1fbb   : > { %5640 = vrot.lane.b32.xlu0 %v12287_v12, %s13677_s6 }
0x1fbe   : > { %5636 = vrot.lane.b32.xlu1 %v12281_v18, %s13674_s28 }
0x1fbf   : > { %5634 = vrot.lane.b32.xlu0 %v12265_v5, %s13674_s28 }
0x1fc3   : > { %5638 = vrot.lane.b32.xlu0 %v12273_v41, %s13674_s28 }
0x1fed   : > { %v5507_v59 = vpop.xlane.xlu1 %5506 }
0x1ff1   : > { %v5510_v15 = vpop.xlane.xlu0 %5509  ;;  %v5501_v47 = vpop.xlane.xlu1 %5500 }
0x1ff2   : > { %10427 = vrcp.f32 %v5510_v15 }
0x1ff3   : > { %10429 = vrcp.f32 %v5501_v47 }
0x1ff4   : > { %10431 = vrcp.f32 %v5507_v59 }
0x1ff5   : > { %v5504_v58 = vpop.xlane.xlu0 %5503  ;;  %v5647_v39 = vpop.permute.xlu1 %5646 }
0x1ff6   : > { %10433 = vrcp.f32 %v5504_v58  ;;  %v5670_v14 = vsel %vm1208_vm2, %v5647_v39, 0 }
0x1ff9   : > { %v5544_v13 = vpop.permute.xlu0 %5543  ;;  %v5645_v63 = vpop.permute.xlu1 %5644 }
0x1ffa   : > { %9450 = vmatprep.subr.bf16.mxu1 %v5544_v13  ;;  %v5667_v51 = vsel %vm1208_vm2, %v5645_v63, 0 }
0x1ffb   : > { %9451 = vmatpush3.bf16.msra.mxu1 %v5544_v13 }
0x1ffc   : > { %9708 = vmatprep.subr.msk.bf16.mxu1 %vm1208_vm2, %v5647_v39 }
0x1fff   : > { %v10428_v18 = vpop.eup %10427 }
0x2000   : > { %v10430_v43 = vpop.eup %10429  ;;  %v5534_v60 = vmul.f32 %v10428_v18, %v10416_v19 }
0x2001   : > { %v10432_v5 = vpop.eup %10431  ;;  %v5531_v41 = vmul.f32 %v10430_v43, %v12531_v6 }
0x2002   : > { %v5533_v3 = vmul.f32 %v10432_v5, %v12527_v25 }
0x2003   : > { %v10434_v7 = vpop.eup %10433 }
0x2004   : > { %v5532_v0 = vmul.f32 %v10434_v7, %v10418_v17  ;;  %v5540_v1 = vpack.c.bf16 %v5534_v60, %v5533_v3 }
0x2006   : > { %v5539_v11 = vpack.c.bf16 %v5532_v0, %v5531_v41 }
0x2008   : > { %9452 = vmatprep.mubr.msk.bf16.mxu1 %vm1298_vm3, %v5539_v11 }
0x2009   : > { %9453 = vmatmul.mubr.msk.bf16.vlgmr.msra.gmra.mxu1 %vm1298_vm3, %v5540_v1 }
0x200a   : > { %9461 = vmatpush3.bf16.xpose.msra.mxu1 %v5670_v14 }
0x200b   : > { %9709 = vmatprep.subr.msk.bf16.mxu1 %vm1208_vm2, %v5645_v63 }
0x2012   : > { %9463 = vmatpush3.bf16.xpose.msra.mxu1 %v5667_v51 }
0x202a   : > { %v5513_v19 = vpop.xlane.xlu1 %5512  ;;  %v5519_v6 = vpop.xlane.xlu0 %5518 }
0x202b   : > { %10435 = vrcp.f32 %v5519_v6 }
0x202c   : > { %10437 = vrcp.f32 %v5513_v19 }
0x202e   : > { %v5522_v25 = vpop.xlane.xlu1 %5521  ;;  %v5516_v17 = vpop.xlane.xlu0 %5515 }
0x202f   : > { %10439 = vrcp.f32 %v5522_v25 }
0x2030   : > { %10441 = vrcp.f32 %v5516_v17 }
0x2032   : > { %v5643_v46 = vpop.permute.xlu1 %5642  ;;  %v5641_v59 = vpop.permute.xlu0 %5640 }
0x2033   : > { %9710 = vmatprep.subr.msk.bf16.mxu1 %vm1208_vm2, %v5643_v46  ;;  %v5664_v55 = vsel %vm1208_vm2, %v5643_v46, 0  ;;  %v5661_v58 = vsel %vm1208_vm2, %v5641_v59, 0 }
0x2034   : > { %9465 = vmatpush3.bf16.xpose.msra.mxu1 %v5664_v55 }
0x2035   : > { %9711 = vmatprep.subr.msk.bf16.mxu1 %vm1208_vm2, %v5641_v59 }
0x2036   : > { %v5633_v0 = vpop.permute.xlu1 %5632  ;;  %v5635_v3 = vpop.permute.xlu0 %5634 }
0x2038   : > { %v10436_v15 = vpop.eup %10435 }
0x2039   : > { %v10438_v47 = vpop.eup %10437  ;;  %v5537_v18 = vmul.f32 %v10436_v15, %v12545_v27 }
0x203a   : > { %v5535_v5 = vmul.f32 %v10438_v47, %v12543_v37  ;;  %v5637_v11 = vpop.permute.xlu1 %5636  ;;  %v5639_v27 = vpop.permute.xlu0 %5638 }
0x203c   : > { %v10440_v13 = vpop.eup %10439  ;;  %9467 = vmatpush3.bf16.xpose.msra.mxu1 %v5661_v58 }
0x203d   : > { %v10442_v39 = vpop.eup %10441  ;;  %v5538_v43 = vmul.f32 %v10440_v13, %v12549_v33 }
0x203e   : > { %v5536_v7 = vmul.f32 %v10442_v39, %v12553_v29 }
0x203f   : > { %v5542_v60 = vpack.c.bf16 %v5538_v43, %v5537_v18 }
0x2040   : > { %v5541_v41 = vpack.c.bf16 %v5536_v7, %v5535_v5 }
0x2042   : > { %9456 = vmatprep.mubr.msk.bf16.mxu1 %vm1298_vm3, %v5541_v41 }
0x2043   : > { %9457 = vmatmul.mubr.msk.bf16.gmra.mxu1 %vm1298_vm3, %v5542_v60 }
0x2044   : > { %9468 = vmatprep.mubr.msk.bf16.mxu1 %vm1208_vm2, %v5633_v0 }
0x204b   : > { %9469 = vmatmul.mubr.msk.bf16.vlgmr.msra.gmra.mxu1 %vm1208_vm2, %v5635_v3 }
0x204c   : > { %9472 = vmatprep.mubr.msk.bf16.mxu1 %vm1208_vm2, %v5637_v11 }
0x2053   : > { %9473 = vmatmul.mubr.msk.bf16.gmra.mxu1 %vm1208_vm2, %v5639_v27 }
0x20c9   : > { %v12593_v37 = vpop.f32.mrf.mxu1 }
0x20cb   : > { %v12595_v33 = vpop.f32.mrf.mxu1 }
0x20cd   : > { %v12597_v29 = vpop.f32.mrf.mxu1 }
0x20cf   : > { %v12601_v14 = vpop.f32.mrf.mxu1 }
0x2103   : > { %v12605_v51 = vpop.f32.mrf.mxu1 }
0x2105   : > { %v12607_v19 = vpop.f32.mrf.mxu1 }
0x2107   : > { %v12609_v6 = vpop.f32.mrf.mxu1 }
0x2109   : > { %v12613_v17 = vpop.f32.mrf.mxu1 }
0x210b   : > { %v9470_v55 = vpop.f32.mrf.mxu1 }
0x210c   : > { %v5743_v59 = vsel %vm1298_vm3, %v9470_v55, -inf }
0x210d   : > { %5744 = vmax.xlane.f32.xlu0 %v5743_v59  ;;  %v5706_v15 = vpop.f32.mrf.mxu1 }
0x210e   : > { %v5737_v47 = vsel %vm1298_vm3, %v5706_v15, -inf }
0x210f   : > { %5738 = vmax.xlane.f32.xlu1 %v5737_v47  ;;  %v9471_v58 = vpop.f32.mrf.mxu1 }
0x2110   : > { %v5746_v5 = vsel %vm1298_vm3, %v9471_v58, -inf }
0x2111   : > { %v5709_v13 = vpop.f32.mrf.mxu1 }
0x2112   : > { %v5740_v39 = vsel %vm1298_vm3, %v5709_v13, -inf }
0x2113   : > { %5741 = vmax.xlane.f32.xlu0 %v5740_v39  ;;  %v9474_v18 = vpop.f32.mrf.mxu1 }
0x2114   : > { %v5755_v0 = vsel %vm1298_vm3, %v9474_v18, -inf }
0x2115   : > { %v5722_v43 = vpop.f32.mrf.mxu1 }
0x2116   : > { %v5749_v7 = vsel %vm1298_vm3, %v5722_v43, -inf }
0x2117   : > { %5747 = vmax.xlane.f32.xlu0 %v5746_v5  ;;  %5750 = vmax.xlane.f32.xlu1 %v5749_v7  ;;  %v9475_v60 = vpop.f32.mrf.mxu1 }
0x2118   : > { %v5758_v11 = vsel %vm1298_vm3, %v9475_v60, -inf }
0x2119   : > { %v5725_v41 = vpop.f32.mrf.mxu1 }
0x211a   : > { %v5752_v3 = vsel %vm1298_vm3, %v5725_v41, -inf }
0x211b   : > { %5756 = vmax.xlane.f32.xlu1 %v5755_v0  ;;  %5753 = vmax.xlane.f32.xlu0 %v5752_v3 }
0x211f   : > { %5759 = vmax.xlane.f32.xlu0 %v5758_v11 }
0x212c   : > { %5835 = vrot.lane.b32.xlu1 %v12271_v45, %s13691_s16 }
0x2196   : > { %v5745_v27 = vpop.xlane.xlu0 %5744 }
0x2197   : > { %v5763_v59 = vsub.f32 %v9470_v55, %v5745_v27 }
0x2198   : > { %v5739_v47 = vpop.xlane.xlu1 %5738 }
0x2199   : > { %v5773_v39 = vmul.f32 1.442695, %v5763_v59  ;;  %v5761_v5 = vsub.f32 %v5706_v15, %v5739_v47 }
0x219b   : > { %10443 = vpow2.f32 %v5773_v39  ;;  %v5769_v7 = vmul.f32 1.442695, %v5761_v5 }
0x219c   : > { %v5742_v46 = vpop.xlane.xlu0 %5741 }
0x219d   : > { %10445 = vpow2.f32 %v5769_v7  ;;  %v5762_v25 = vsub.f32 %v5709_v13, %v5742_v46 }
0x219f   : > { %v5771_v42 = vmul.f32 1.442695, %v5762_v25 }
0x21a0   : > { %v5751_v1 = vpop.xlane.xlu1 %5750  ;;  %v5748_v63 = vpop.xlane.xlu0 %5747 }
0x21a1   : > { %v5764_v0 = vsub.f32 %v9471_v58, %v5748_v63  ;;  %v5765_v3 = vsub.f32 %v5722_v43, %v5751_v1 }
0x21a3   : > { %v5775_v16 = vmul.f32 1.442695, %v5764_v0  ;;  %v5777_v45 = vmul.f32 1.442695, %v5765_v3  ;;  %v13692_v3 = vpack.i.bf16 %v12499_v20, %v12493_v28  ;;  %v13696_v28 = vpack.i.bf16 %v12597_v29, %v12593_v37 }
0x21a4   : > { %v5757_v11 = vpop.xlane.xlu1 %5756  ;;  %v5754_v40 = vpop.xlane.xlu0 %5753 }
0x21a5   : > { %v5767_v32 = vsub.f32 %v9474_v18, %v5757_v11  ;;  %10447 = vpow2.f32 %v5775_v16  ;;  %v5766_v15 = vsub.f32 %v5725_v41, %v5754_v40  ;;  %v13693_v11 = vpack.i.bf16 %v12601_v14, %v12595_v33 }
0x21a6   : > { %10449 = vpow2.f32 %v5771_v42 }
0x21a7   : > { %v5781_v55 = vmul.f32 1.442695, %v5767_v32  ;;  %v5779_v16 = vmul.f32 1.442695, %v5766_v15 }
0x21a8   : > { %v12627_v27 = vpop.eup %10443  ;;  %v5836_v59 = vpop.permute.xlu1 %5835 }
0x21a9   : > { %v5760_v47 = vpop.xlane.xlu0 %5759  ;;  %10451 = vpow2.f32 %v5781_v55  ;;  %9476 = vmatprep.subr.bf16.mxu0 %v5836_v59  ;;  %v5791_v1 = vsel %vm1298_vm3, %v12627_v27, 0.0 }
0x21aa   : > { %v5768_v46 = vsub.f32 %v9475_v60, %v5760_v47  ;;  %v10446_v63 = vpop.eup %10445  ;;  %9477 = vmatpush3.bf16.msra.mxu0 %v5836_v59  ;;  %5792 = vadd.xlane.f32.xlu1 %v5791_v1  ;;  %10453 = vpow2.f32 %v5777_v45 }
0x21ab   : > { %v5785_v32 = vsel %vm1298_vm3, %v10446_v63, 0.0 }
0x21ac   : > { %v5783_v25 = vmul.f32 1.442695, %v5768_v46 }
0x21ae   : > { %10455 = vpow2.f32 %v5783_v25  ;;  %5786 = vadd.xlane.f32.xlu1 %v5785_v32 }
0x21af   : > { %10457 = vpow2.f32 %v5779_v16 }
0x21b2   : > { %v10448_v40 = vpop.eup %10447 }
0x21b3   : > { %v5794_v42 = vsel %vm1298_vm3, %v10448_v40, 0.0  ;;  %v10450_v58 = vpop.eup %10449 }
0x21b4   : > { %5795 = vadd.xlane.f32.xlu0 %v5794_v42  ;;  %v5788_v60 = vsel %vm1298_vm3, %v10450_v58, 0.0 }
0x21b6   : > { %v12633_v13 = vpop.eup %10451 }
0x21b7   : > { %v5803_v18 = vsel %vm1298_vm3, %v12633_v13, 0.0  ;;  %v10454_v43 = vpop.eup %10453 }
0x21b8   : > { %5804 = vadd.xlane.f32.xlu1 %v5803_v18  ;;  %5789 = vadd.xlane.f32.xlu0 %v5788_v60  ;;  %v5797_v39 = vsel %vm1298_vm3, %v10454_v43, 0.0 }
0x21bb   : > { %v10456_v41 = vpop.eup %10455 }
0x21bc   : > { %v5806_v5 = vsel %vm1298_vm3, %v10456_v41, 0.0  ;;  %5798 = vadd.xlane.f32.xlu1 %v5797_v39  ;;  %v10458_v7 = vpop.eup %10457 }
0x21bd   : > { %5807 = vadd.xlane.f32.xlu0 %v5806_v5  ;;  %v5800_v0 = vsel %vm1298_vm3, %v10458_v7, 0.0 }
0x21c1   : > { %5801 = vadd.xlane.f32.xlu0 %v5800_v0 }
0x21cd   : > { %5831 = vrot.lane.b32.xlu1 %v12279_v34, %s13691_s16  ;;  %v13694_v34 = vpack.i.bf16 %v12495_v4, %v12491_v36 }
0x21d1   : > { %5829 = vrot.lane.b32.xlu1 %v12287_v12, %s13691_s16  ;;  %v13695_v12 = vpack.i.bf16 %v12511_v52, %v12505_v61 }
0x21d5   : > { %9865 = vrot.lane.b32.xlu1 %v13692_v3, %s13679_s0 }
0x21d7   : > { %5833 = vrot.lane.b32.xlu0 %v12275_v2, %s13691_s16  ;;  %v13697_v2 = vpack.i.bf16 %v12507_v44, %v12503_v24 }
0x21d9   : > { %9875 = vrot.lane.b32.xlu1 %v13693_v11, %s13680_s30  ;;  %v13698_v11 = vmov 0.0  }
0x21db   : > { %9870 = vrot.lane.b32.xlu0 %v13694_v34, %s13679_s0 }
0x21dd   : > { %9885 = vrot.lane.b32.xlu1 %v13695_v12, %s13679_s0 }
0x21df   : > { %9880 = vrot.lane.b32.xlu0 %v13696_v28, %s13680_s30 }
0x21e3   : > { %9890 = vrot.lane.b32.xlu0 %v13697_v2, %s13679_s0 }
0x2233   : > { %v5793_v20 = vpop.xlane.xlu1 %5792 }
0x2237   : > { %v5787_v33 = vpop.xlane.xlu1 %5786 }
0x2238   : > { %10459 = vrcp.f32 %v5787_v33  ;;  %v13699_v33 = vpack.i.bf16 %v12609_v6, %v12605_v51 }
0x223d   : > { %v5796_v14 = vpop.xlane.xlu0 %5795 }
0x2241   : > { %v5805_v36 = vpop.xlane.xlu1 %5804  ;;  %v5790_v4 = vpop.xlane.xlu0 %5789 }
0x2242   : > { %10461 = vrcp.f32 %v5790_v4  ;;  %v13700_v4 = vpack.i.bf16 %v12613_v17, %v12607_v19 }
0x2243   : > { %10463 = vrcp.f32 %v5796_v14 }
0x2244   : > { %10465 = vrcp.f32 %v5793_v20 }
0x2245   : > { %v5799_v61 = vpop.xlane.xlu1 %5798  ;;  %v10460_v37 = vpop.eup %10459 }
0x2246   : > { %v5808_v52 = vpop.xlane.xlu0 %5807  ;;  %10467 = vrcp.f32 %v5799_v61  ;;  %v5817_v44 = vmul.f32 %v10460_v37, %v10446_v63 }
0x2249   : > { %v5832_v29 = vpop.permute.xlu1 %5831 }
0x224a   : > { %v5802_v45 = vpop.xlane.xlu0 %5801 }
0x224b   : > { %10469 = vrcp.f32 %v5802_v45 }
0x224c   : > { %10471 = vrcp.f32 %v5808_v52 }
0x224d   : > { %10473 = vrcp.f32 %v5805_v36  ;;  %v5830_v1 = vpop.permute.xlu1 %5829 }
0x224e   : > { %v5834_v55 = vpop.permute.xlu0 %5833 }
0x224f   : > { %9478 = vmatprep.subr.bf16.mxu0 %v5834_v55  ;;  %v10462_v24 = vpop.eup %10461 }
0x2250   : > { %9479 = vmatpush3.bf16.msra.mxu0 %v5834_v55  ;;  %v5818_v15 = vmul.f32 %v10462_v24, %v10450_v58  ;;  %v10464_v59 = vpop.eup %10463 }
0x2251   : > { %9480 = vmatprep.subr.bf16.mxu0 %v5832_v29  ;;  %v10466_v46 = vpop.eup %10465  ;;  %v5820_v25 = vmul.f32 %v10464_v59, %v10448_v40  ;;  %v9866_v37 = vpop.permute.xlu1 %9865 }
0x2252   : > { %v5825_v47 = vpack.c.bf16 %v5818_v15, %v5817_v44  ;;  %v5819_v32 = vmul.f32 %v10466_v46, %v12627_v27  ;;  %v10007_v27 = vld [vmem:[%s13571_s10 + $0x18] sm:$0xff]   ;;  %v9871_v45 = vpop.permute.xlu0 %9870  ;;  %v9868_v51 = vunpack.i.h.bf16 %v9866_v37  ;;  %v9867_v6 = vunpack.i.l.bf16 %v9866_v37 }
0x2253   : > { %v10468_v16 = vpop.eup %10467  ;;  %v9873_v44 = vunpack.i.h.bf16 %v9871_v45  ;;  %v9872_v15 = vunpack.i.l.bf16 %v9871_v45 }
0x2254   : > { %9481 = vmatpush3.bf16.msra.mxu0 %v5832_v29  ;;  %9484 = vmatprep.mubr.msk.bf16.mxu0 %vm1298_vm3, %v5825_v47  ;;  %v5826_v18 = vpack.c.bf16 %v5820_v25, %v5819_v32  ;;  %v5821_v60 = vmul.f32 %v10468_v16, %v10454_v43  ;;  %v10008_v43 = vld [vmem:[%s13571_s10 + $0x10] sm:$0xff]   ;;  %v6015_v32 = vsel %vm1208_vm2, %v12397_v38, %v9868_v51 }
0x2255   : > { %9482 = vmatprep.subr.bf16.mxu0 %v5830_v1  ;;  %v9876_v55 = vpop.permute.xlu1 %9875 }
0x2256   : > { %v9881_v29 = vpop.permute.xlu0 %9880  ;;  %v9878_v19 = vunpack.i.h.bf16 %v9876_v55  ;;  %v9877_v17 = vunpack.i.l.bf16 %v9876_v55 }
0x2257   : > { %v9883_v47 = vunpack.i.h.bf16 %v9881_v29  ;;  %v9882_v46 = vunpack.i.l.bf16 %v9881_v29 }
0x2258   : > { %v10470_v42 = vpop.eup %10469  ;;  %9483 = vmatpush3.bf16.msra.mxu0 %v5830_v1  ;;  %v6023_v38 = vsel %vm841_vm0, %v6015_v32, %v9878_v19  ;;  %v10009_v19 = vld [vmem:[%s13575_s14 + $0x18] sm:$0xff]  }
0x2259   : > { %v5822_v39 = vmul.f32 %v10470_v42, %v10458_v7  ;;  %v10472_v5 = vpop.eup %10471  ;;  %9492 = vmatprep.subr.bf16.mxu0 %v10007_v27  ;;  %v9886_v59 = vpop.permute.xlu1 %9885  ;;  %v6014_v42 = vsel %vm1208_vm2, %v12393_v21, %v9867_v6 }
0x225a   : > { %v10474_v58 = vpop.eup %10473  ;;  %v5824_v0 = vmul.f32 %v10472_v5, %v10456_v41  ;;  %v9891_v24 = vpop.permute.xlu0 %9890 }
0x225b   : > { %9485 = vmatmul.mubr.msk.bf16.vlgmr.msra.gmra.mxu0 %vm1298_vm3, %v5826_v18  ;;  %v5827_v63 = vpack.c.bf16 %v5822_v39, %v5821_v60  ;;  %v5823_v40 = vmul.f32 %v10474_v58, %v12633_v13  ;;  %v6017_v18 = vsel %vm1208_vm2, %v12395_v56, %v9873_v44  ;;  %v6016_v60 = vsel %vm1208_vm2, %v12391_v48, %v9872_v15 }
0x225c   : > { %9493 = vmatpush3.bf16.msra.mxu0 %v10007_v27  ;;  %v6024_v5 = vsel %vm841_vm0, %v6016_v60, %v9882_v46  ;;  %v9888_v56 = vunpack.i.h.bf16 %v9886_v59  ;;  %v13701_v60 = vsub.s32 2, %v10956_v57 }
0x225d   : > { %9488 = vmatprep.mubr.msk.bf16.mxu0 %vm1298_vm3, %v5827_v63  ;;  %v5828_v3 = vpack.c.bf16 %v5824_v0, %v5823_v40  ;;  %9494 = vmatprep.subr.bf16.mxu0 %v10008_v43  ;;  %v6025_v63 = vsel %vm841_vm0, %v6017_v18, %v9883_v47  ;;  %v6022_v40 = vsel %vm841_vm0, %v6014_v42, %v9877_v17  ;;  %v10010_v17 = vld [vmem:[%s13573_s12 + $0x18] sm:$0xff]  }
0x225e   : > { %9504 = vmatprep.subr.bf16.mxu1 %v10010_v17 }
0x225f   : > { %9505 = vmatpush3.bf16.msra.mxu1 %v10010_v17 }
0x2260   : > { %9495 = vmatpush3.bf16.msra.mxu0 %v10008_v43 }
0x2261   : > { %9516 = vmatprep.subr.bf16.mxu0 %v13698_v11 }
0x2263   : > { %9489 = vmatmul.mubr.msk.bf16.gmra.mxu0 %vm1298_vm3, %v5828_v3 }
0x231b   : > { %v9486_v7 = vpop.f32.mrf.mxu0 }
0x231d   : > { %v5887_v41 = vpop.f32.mrf.mxu0 }
0x231f   : > { %v9487_v13 = vpop.f32.mrf.mxu0 }
0x2320   : > { %v9894_v34 = vpack.i.bf16 %v9487_v13, %v9486_v7  ;;  %v9887_v7 = vunpack.i.l.bf16 %v9886_v59  ;;  %v9892_v13 = vunpack.i.l.bf16 %v9891_v24 }
0x2321   : > { %v5890_v12 = vpop.f32.mrf.mxu0 }
0x2322   : > { %v9899_v28 = vpack.i.bf16 %v5890_v12, %v5887_v41  ;;  %9895 = vrot.lane.b32.xlu0 %v9894_v34, %s13682_s23  ;;  %v9893_v41 = vunpack.i.h.bf16 %v9891_v24  ;;  %v6018_v45 = vsel %vm1208_vm2, %v12401_v49, %v9887_v7  ;;  %v6020_v29 = vsel %vm1208_vm2, %v12399_v53, %v9892_v13 }
0x2323   : > { %v9490_v2 = vpop.f32.mrf.mxu0 }
0x2324   : > { %9900 = vrot.lane.b32.xlu1 %v9899_v28, %s13682_s23  ;;  %v6021_v37 = vsel %vm1208_vm2, %v12403_v23, %v9893_v41 }
0x2325   : > { %v5903_v20 = vpop.f32.mrf.mxu0 }
0x2326   : > { %9910 = vrot.lane.b32.xlu0 %v13699_v33, %s13680_s30 }
0x2327   : > { %v9491_v14 = vpop.f32.mrf.mxu0 }
0x2328   : > { %v9919_v36 = vpack.i.bf16 %v9491_v14, %v9490_v2  ;;  %9905 = vrot.lane.b32.xlu1 %v13700_v4, %s13680_s30 }
0x2329   : > { %v5906_v61 = vpop.f32.mrf.mxu0 }
0x232a   : > { %v9914_v52 = vpack.i.bf16 %v5906_v61, %v5903_v20  ;;  %9920 = vrot.lane.b32.xlu0 %v9919_v36, %s13682_s23 }
0x232c   : > { %9915 = vrot.lane.b32.xlu1 %v9914_v52, %s13682_s23  ;;  %v6019_v52 = vsel %vm1208_vm2, %v12405_v31, %v9888_v56 }
0x2394   : > { %v9896_v1 = vpop.permute.xlu0 %9895 }
0x2395   : > { %v9898_v25 = vunpack.i.h.bf16 %v9896_v1  ;;  %v9897_v16 = vunpack.i.l.bf16 %v9896_v1  ;;  %v10011_v1 = vld [vmem:[%s13575_s14 + $0x10] sm:$0xff]  }
0x2396   : > { %v9901_v39 = vpop.permute.xlu1 %9900 }
0x2397   : > { %v9903_v58 = vunpack.i.h.bf16 %v9901_v39  ;;  %v9902_v0 = vunpack.i.l.bf16 %v9901_v39  ;;  %v6032_v3 = vsel %vm2454_vm4, %v6024_v5, %v9897_v16  ;;  %v6033_v21 = vsel %vm2454_vm4, %v6025_v63, %v9898_v25  ;;  %v10012_v25 = vld [vmem:[%s13573_s12 + $0x10] sm:$0xff]  }
0x2398   : > { %v9911_v27 = vpop.permute.xlu0 %9910  ;;  %v6039_v28 = vpack.c.bf16 %v6033_v21, %v6032_v3  ;;  %9506 = vmatprep.subr.bf16.mxu1 %v10012_v25  ;;  %v6140_v39 = vrot.slane %v12241_v54, %v13701_v60 }
0x2399   : > { %v6031_v43 = vsel %vm2454_vm4, %v6023_v38, %v9903_v58  ;;  %v6030_v48 = vsel %vm2454_vm4, %v6022_v40, %v9902_v0  ;;  %v9913_v2 = vunpack.i.h.bf16 %v9911_v27  ;;  %v9912_v20 = vunpack.i.l.bf16 %v9911_v27  ;;  %9507 = vmatpush3.bf16.msra.mxu1 %v10012_v25 }
0x239a   : > { %v9906_v34 = vpop.permute.xlu1 %9905  ;;  %v6038_v12 = vpack.c.bf16 %v6031_v43, %v6030_v48 }
0x239b   : > { %v9908_v33 = vunpack.i.h.bf16 %v9906_v34  ;;  %v9907_v14 = vunpack.i.l.bf16 %v9906_v34  ;;  %v6028_v24 = vsel %vm841_vm0, %v6020_v29, %v9912_v20  ;;  %v6029_v51 = vsel %vm841_vm0, %v6021_v37, %v9913_v2 }
0x239c   : > { %9496 = vmatprep.mubr.msk.bf16.mxu0 %vm940_vm1, %v6038_v12  ;;  %v9921_v36 = vpop.permute.xlu0 %9920 }
0x239d   : > { %v9923_v4 = vunpack.i.h.bf16 %v9921_v36  ;;  %v9922_v61 = vunpack.i.l.bf16 %v9921_v36  ;;  %9497 = vmatmul.mubr.msk.bf16.vlgmr.msra.gmra.mxu0 %vm940_vm1, %v6039_v28  ;;  %v6027_v15 = vsel %vm841_vm0, %v6019_v52, %v9908_v33  ;;  %v6026_v31 = vsel %vm841_vm0, %v6018_v45, %v9907_v14 }
0x239e   : > { %v9916_v55 = vpop.permute.xlu1 %9915  ;;  %9517 = vmatpush3.bf16.msra.mxu0 %v10009_v19 }
0x239f   : > { %v9918_v6 = vunpack.i.h.bf16 %v9916_v55  ;;  %v9917_v44 = vunpack.i.l.bf16 %v9916_v55  ;;  %v6036_v59 = vsel %vm2454_vm4, %v6028_v24, %v9922_v61  ;;  %v6037_v49 = vsel %vm2454_vm4, %v6029_v51, %v9923_v4  ;;  %9518 = vmatprep.subr.bf16.mxu0 %v13698_v11 }
0x23a0   : > { %v6041_v46 = vpack.c.bf16 %v6037_v49, %v6036_v59 }
0x23a1   : > { %v6035_v23 = vsel %vm2454_vm4, %v6027_v15, %v9918_v6  ;;  %v6034_v47 = vsel %vm2454_vm4, %v6026_v31, %v9917_v44  ;;  %v8623_v44 = vld [vmem:[%s13574_s13 + $0x1] ss:$0 sm:$0xff] }
0x23a2   : > { %v6040_v53 = vpack.c.bf16 %v6035_v23, %v6034_v47  ;;  %9519 = vmatpush3.bf16.msra.mxu0 %v10011_v1 }
0x23a4   : > { %9500 = vmatprep.mubr.msk.bf16.mxu0 %vm940_vm1, %v6040_v53 }
0x23a5   : > { %9501 = vmatmul.mubr.msk.bf16.gmra.mxu0 %vm940_vm1, %v6041_v46 }
0x23a6   : > { %9520 = vmatprep.mubr.msk.bf16.mxu0 %vm10675_vm5, %v13698_v11  ;;  %v8611_v11 = vld [vmem:[%s13572_s11 + $0x1] ss:$0 sm:$0xff] }
0x23ad   : > { %9521 = vmatmul.mubr.msk.bf16.vlgmr.msra.gmra.mxu0 %vm940_vm1, %v11423_v8 }
0x245d   : > { %v9498_v16 = vpop.f32.mrf.mxu0 }
0x245e   : > { %v6115_v18 = vadd.f32 %v9498_v16, %v8611_v11 }
0x245f   : > { %v6106_v32 = vpop.f32.mrf.mxu0 }
0x2460   : > { %v6107_v42 = vadd.f32 %v8611_v11, %v6106_v32  ;;  %v6143_v3 = vmul.f32 %v6140_v39, %v6115_v18 }
0x2461   : > { %v9499_v5 = vpop.f32.mrf.mxu0 }
0x2462   : > { %v6118_v63 = vadd.f32 %v9499_v5, %v8611_v11  ;;  %v6141_v0 = vmul.f32 %v6140_v39, %v6107_v42  ;;  %v12765_v41 = vadd.f32 %v6143_v3, %v12147_v9 }
0x2463   : > { %v6109_v58 = vpop.f32.mrf.mxu0 }
0x2464   : > { %v6144_v40 = vmul.f32 %v6140_v39, %v6118_v63  ;;  %v6110_v38 = vadd.f32 %v8611_v11, %v6109_v58  ;;  %v12759_v43 = vadd.f32 %v6141_v0, %v12144_v62 }
0x2465   : > { %v9502_v8 = vpop.f32.mrf.mxu0 }
0x2466   : > { %v6142_v21 = vmul.f32 %v6140_v39, %v6110_v38  ;;  %v12756_v27 = vadd.f32 %v6144_v40, %v12155_v50  ;;  %v6131_v13 = vadd.f32 %v9502_v8, %v8611_v11 }
0x2467   : > { %v6122_v56 = vpop.f32.mrf.mxu0 }
0x2468   : > { %v12762_v48 = vadd.f32 %v6142_v21, %v12152_v22  ;;  %v6123_v7 = vadd.f32 %v8611_v11, %v6122_v56  ;;  %v6158_v50 = vpack.c.bf16 %v12756_v27, %v12765_v41  ;;  %v6147_v22 = vmul.f32 %v6140_v39, %v6131_v13 }
0x2469   : > { %v9503_v34 = vpop.f32.mrf.mxu0 }
0x246a   : > { %v6157_v12 = vpack.c.bf16 %v12762_v48, %v12759_v43  ;;  %v6134_v28 = vadd.f32 %v9503_v34, %v8611_v11  ;;  %v6145_v20 = vmul.f32 %v6140_v39, %v6123_v7  ;;  %v12783_v61 = vadd.f32 %v6147_v22, %v12167_v30 }
0x246b   : > { %v6125_v2 = vpop.f32.mrf.mxu0 }
0x246c   : > { %v6148_v62 = vmul.f32 %v6140_v39, %v6134_v28  ;;  %v6126_v33 = vadd.f32 %v8611_v11, %v6125_v2  ;;  %9508 = vmatprep.mubr.msk.bf16.mxu1 %vm940_vm1, %v6157_v12  ;;  %v12777_v36 = vadd.f32 %v6145_v20, %v12162_v26  ;;  %v8635_v26 = vld [vmem:[%s13576_s15 + $0x1] ss:$0 sm:$0xff] }
0x246d   : > { %9509 = vmatmul.mubr.msk.bf16.vlgmr.msra.gmra.mxu1 %vm940_vm1, %v6158_v50 }
0x246e   : > { %v6146_v9 = vmul.f32 %v6140_v39, %v6126_v33  ;;  %v12774_v14 = vadd.f32 %v6148_v62, %v12175_v35  ;;  %v6330_v35 = vpop.f32.mrf.mxu0 }
0x2470   : > { %v12780_v4 = vadd.f32 %v6146_v9, %v12172_v10  ;;  %v6160_v45 = vpack.c.bf16 %v12774_v14, %v12783_v61  ;;  %v6331_v10 = vadd.f32 %v8635_v26, %v6330_v35  ;;  %v9522_v37 = vpop.f32.mrf.mxu0 }
0x2472   : > { %v6159_v52 = vpack.c.bf16 %v12780_v4, %v12777_v36  ;;  %v12794_v29 = vpack.c.bf16 %v6331_v10, %v6331_v10  ;;  %v6333_v30 = vpop.f32.mrf.mxu0 }
0x2474   : > { %9512 = vmatprep.mubr.msk.bf16.mxu1 %vm940_vm1, %v6159_v52  ;;  %6615 = vrot.lane.b32.xlu1 %v12794_v29, %s13672_s1  ;;  %v9523_v55 = vpop.f32.mrf.mxu0  ;;  %v6361_v24 = vsel %vm1208_vm2, %v12794_v29, 0 }
0x2475   : > { %9513 = vmatmul.mubr.msk.bf16.gmra.mxu1 %vm940_vm1, %v6160_v45  ;;  %9712 = vmatprep.subr.msk.bf16.mxu0 %vm1208_vm2, %v12794_v29 }
0x2476   : > { %9525 = vmatpush3.bf16.xpose.msra.mxu0 %v6361_v24 }
0x24e6   : > { %v6616_v51 = vpop.permute.xlu1 %6615 }
0x24e7   : > { %9714 = vmatprep.subr.msk.bf16.mxu0 %vm1208_vm2, %v6616_v51  ;;  %v6630_v60 = vsel %vm1208_vm2, %v6616_v51, 0 }
0x252d   : > { %v9510_v6 = vpop.f32.mrf.mxu1 }
0x252e   : > { %v6241_v31 = vadd.f32 %v9510_v6, %v8623_v44 }
0x252f   : > { %v6232_v15 = vpop.f32.mrf.mxu1 }
0x2530   : > { %v6233_v49 = vadd.f32 %v8623_v44, %v6232_v15  ;;  %v6265_v53 = vmul.f32 0.35355338, %v6241_v31 }
0x2531   : > { %v9511_v59 = vpop.f32.mrf.mxu1 }
0x2532   : > { %v6244_v23 = vadd.f32 %v9511_v59, %v8623_v44  ;;  %v6263_v1 = vmul.f32 0.35355338, %v6233_v49 }
0x2533   : > { %v6235_v47 = vpop.f32.mrf.mxu1 }
0x2534   : > { %v6266_v46 = vmul.f32 0.35355338, %v6244_v23  ;;  %v6236_v19 = vadd.f32 %v8623_v44, %v6235_v47 }
0x2535   : > { %v9514_v17 = vpop.f32.mrf.mxu1 }
0x2536   : > { %v6344_v25 = vpack.c.bf16 %v6266_v46, %v6265_v53  ;;  %v6264_v16 = vmul.f32 0.35355338, %v6236_v19  ;;  %v6257_v42 = vadd.f32 %v9514_v17, %v8623_v44 }
0x2537   : > { %v6248_v11 = vpop.f32.mrf.mxu1 }
0x2538   : > { %v6343_v32 = vpack.c.bf16 %v6264_v16, %v6263_v1  ;;  %6609 = vrot.lane.b32.xlu1 %v6344_v25, %s13672_s1  ;;  %v6249_v39 = vadd.f32 %v8623_v44, %v6248_v11  ;;  %v6269_v58 = vmul.f32 0.35355338, %v6257_v42 }
0x2539   : > { %v9515_v18 = vpop.f32.mrf.mxu1 }
0x253a   : > { %v6260_v5 = vadd.f32 %v9515_v18, %v8623_v44  ;;  %6607 = vrot.lane.b32.xlu0 %v6343_v32, %s13672_s1  ;;  %9526 = vmatprep.mubr.msk.bf16.mxu0 %vm1208_vm2, %v6343_v32  ;;  %v6267_v38 = vmul.f32 0.35355338, %v6249_v39 }
0x253b   : > { %v6251_v63 = vpop.f32.mrf.mxu1  ;;  %9527 = vmatmul.mubr.msk.bf16.vlgmr.msra.gmra.mxu0 %vm1208_vm2, %v6344_v25 }
0x253c   : > { %v6270_v0 = vmul.f32 0.35355338, %v6260_v5  ;;  %v6252_v40 = vadd.f32 %v8623_v44, %v6251_v63  ;;  %9545 = vmatpush3.bf16.xpose.msra.mxu0 %v6630_v60 }
0x253e   : > { %v6346_v3 = vpack.c.bf16 %v6270_v0, %v6269_v58  ;;  %v6268_v8 = vmul.f32 0.35355338, %v6252_v40 }
0x2540   : > { %v6345_v21 = vpack.c.bf16 %v6268_v8, %v6267_v38  ;;  %6613 = vrot.lane.b32.xlu1 %v6346_v3, %s13672_s1 }
0x2542   : > { %6611 = vrot.lane.b32.xlu0 %v6345_v21, %s13672_s1  ;;  %9530 = vmatprep.mubr.msk.bf16.mxu0 %vm1208_vm2, %v6345_v21 }
0x2543   : > { %9531 = vmatmul.mubr.msk.bf16.gmra.mxu0 %vm1208_vm2, %v6346_v3 }
0x2544   : > { %6871 = vrot.lane.b32.xlu1 %v6343_v32, %s13673_s4 }
0x2546   : > { %6879 = vrot.lane.b32.xlu0 %v12794_v29, %s13673_s4 }
0x2548   : > { %6875 = vrot.lane.b32.xlu1 %v6345_v21, %s13673_s4 }
0x254a   : > { %6873 = vrot.lane.b32.xlu0 %v6344_v25, %s13673_s4 }
0x254c   : > { %7143 = vrot.lane.b32.xlu1 %v12794_v29, %s13674_s28 }
0x254e   : > { %6877 = vrot.lane.b32.xlu0 %v6346_v3, %s13673_s4 }
0x2550   : > { %7137 = vrot.lane.b32.xlu1 %v6344_v25, %s13674_s28 }
0x2552   : > { %7135 = vrot.lane.b32.xlu0 %v6343_v32, %s13674_s28 }
0x2554   : > { %7141 = vrot.lane.b32.xlu1 %v6346_v3, %s13674_s28 }
0x2556   : > { %7139 = vrot.lane.b32.xlu0 %v6345_v21, %s13674_s28  ;;  %s13702_s28 = sld [smem:[#allocation17_spill]] }
0x255a   : > { %6521 = vrot.lane.b32.xlu0 %v12794_v29, %s13675_s3  ;;  %s13711_s3 = sld [smem:[#allocation10_spill]] }
0x25aa   : > { %v6610_v7 = vpop.permute.xlu1 %6609 }
0x25ac   : > { %v6608_v56 = vpop.permute.xlu0 %6607 }
0x25ad   : > { %9546 = vmatprep.mubr.msk.bf16.mxu0 %vm1208_vm2, %v6608_v56 }
0x25ae   : > { %9547 = vmatmul.mubr.msk.bf16.vlgmr.msra.gmra.mxu0 %vm1208_vm2, %v6610_v7 }
0x25b2   : > { %v6614_v13 = vpop.permute.xlu1 %6613 }
0x25b4   : > { %v6612_v34 = vpop.permute.xlu0 %6611 }
0x25b5   : > { %9550 = vmatprep.mubr.msk.bf16.mxu0 %vm1208_vm2, %v6612_v34 }
0x25b6   : > { %v6872_v12 = vpop.permute.xlu1 %6871  ;;  %9551 = vmatmul.mubr.msk.bf16.gmra.mxu0 %vm1208_vm2, %v6614_v13 }
0x25b7   : > { %9566 = vmatprep.mubr.msk.bf16.mxu0 %vm1208_vm2, %v6872_v12 }
0x25b8   : > { %v6880_v28 = vpop.permute.xlu0 %6879 }
0x25b9   : > { %9716 = vmatprep.subr.msk.bf16.mxu0 %vm1208_vm2, %v6880_v28  ;;  %v6894_v50 = vsel %vm1208_vm2, %v6880_v28, 0 }
0x25ba   : > { %v6876_v2 = vpop.permute.xlu1 %6875  ;;  %9565 = vmatpush3.bf16.xpose.msra.mxu0 %v6894_v50 }
0x25bc   : > { %v6874_v20 = vpop.permute.xlu0 %6873 }
0x25be   : > { %v7144_v62 = vpop.permute.xlu1 %7143 }
0x25bf   : > { %9718 = vmatprep.subr.msk.bf16.mxu0 %vm1208_vm2, %v7144_v62  ;;  %v7158_v22 = vsel %vm1208_vm2, %v7144_v62, 0 }
0x25c0   : > { %v6878_v33 = vpop.permute.xlu0 %6877 }
0x25c1   : > { %9567 = vmatmul.mubr.msk.bf16.vlgmr.msra.gmra.mxu0 %vm1208_vm2, %v6874_v20 }
0x25c2   : > { %9570 = vmatprep.mubr.msk.bf16.mxu0 %vm1208_vm2, %v6876_v2  ;;  %9585 = vmatpush3.bf16.xpose.msra.mxu0 %v7158_v22  ;;  %v7138_v35 = vpop.permute.xlu1 %7137 }
0x25c4   : > { %v7136_v9 = vpop.permute.xlu0 %7135 }
0x25c6   : > { %v7142_v10 = vpop.permute.xlu1 %7141 }
0x25c8   : > { %v7140_v52 = vpop.permute.xlu0 %7139 }
0x25c9   : > { %9571 = vmatmul.mubr.msk.bf16.gmra.mxu0 %vm1208_vm2, %v6878_v33 }
0x25ca   : > { %9586 = vmatprep.mubr.msk.bf16.mxu0 %vm1208_vm2, %v7136_v9 }
0x25cc   : > { %v6522_v45 = vpop.permute.xlu0 %6521 }
0x25cd   : > { %9713 = vmatprep.subr.msk.bf16.mxu1 %vm2957_vm6, %v6522_v45  ;;  %v6536_v26 = vsel %vm2957_vm6, %v6522_v45, 0 }
0x25ce   : > { %9535 = vmatpush3.bf16.msra.mxu1 %v6536_v26 }
0x25d1   : > { %9587 = vmatmul.mubr.msk.bf16.vlgmr.msra.gmra.mxu0 %vm1208_vm2, %v7138_v35 }
0x25d2   : > { %9590 = vmatprep.mubr.msk.bf16.mxu0 %vm1208_vm2, %v7140_v52 }
0x25d9   : > { %9591 = vmatmul.mubr.msk.bf16.gmra.mxu0 %vm1208_vm2, %v7142_v10 }
0x25fb   : > { %v12847_v37 = vpop.f32.mrf.mxu0 }
0x25fc   : > { %v6434_v30 = vsel %vm1208_vm2, %v12847_v37, -inf }
0x25fd   : > { %6435 = vmax.xlane.f32.xlu0 %v6434_v30  ;;  %v12851_v55 = vpop.f32.mrf.mxu0 }
0x25fe   : > { %v6428_v51 = vsel %vm1208_vm2, %v12851_v55, -inf }
0x25ff   : > { %v12853_v24 = vpop.f32.mrf.mxu0 }
0x2600   : > { %v6437_v31 = vsel %vm1208_vm2, %v12853_v24, -inf }
0x2601   : > { %6429 = vmax.xlane.f32.xlu0 %v6428_v51  ;;  %v12857_v6 = vpop.f32.mrf.mxu0 }
0x2602   : > { %v6431_v44 = vsel %vm1208_vm2, %v12857_v6, -inf }
0x2603   : > { %6432 = vmax.xlane.f32.xlu1 %v6431_v44  ;;  %v12861_v15 = vpop.f32.mrf.mxu0 }
0x2604   : > { %v6446_v23 = vsel %vm1208_vm2, %v12861_v15, -inf }
0x2605   : > { %6438 = vmax.xlane.f32.xlu0 %v6437_v31  ;;  %v12865_v59 = vpop.f32.mrf.mxu0 }
0x2606   : > { %v6440_v46 = vsel %vm1208_vm2, %v12865_v59, -inf }
0x2607   : > { %v12867_v49 = vpop.f32.mrf.mxu0 }
0x2608   : > { %v6449_v47 = vsel %vm1208_vm2, %v12867_v49, -inf }
0x2609   : > { %6447 = vmax.xlane.f32.xlu0 %v6446_v23  ;;  %6450 = vmax.xlane.f32.xlu1 %v6449_v47  ;;  %v12873_v53 = vpop.f32.mrf.mxu0 }
0x260a   : > { %v6443_v19 = vsel %vm1208_vm2, %v12873_v53, -inf }
0x260d   : > { %6441 = vmax.xlane.f32.xlu0 %v6440_v46  ;;  %6444 = vmax.xlane.f32.xlu1 %v6443_v19 }
0x266e   : > { %v12879_v17 = vpop.f32.mrf.mxu0 }
0x266f   : > { %v6703_v1 = vsel %vm1208_vm2, %v12879_v17, -inf }
0x2670   : > { %6704 = vmax.xlane.f32.xlu0 %v6703_v1  ;;  %v12883_v25 = vpop.f32.mrf.mxu0 }
0x2671   : > { %v6697_v11 = vsel %vm1208_vm2, %v12883_v25, -inf }
0x2672   : > { %v12885_v16 = vpop.f32.mrf.mxu0 }
0x2673   : > { %v6706_v32 = vsel %vm1208_vm2, %v12885_v16, -inf }
0x2674   : > { %6698 = vmax.xlane.f32.xlu0 %v6697_v11  ;;  %v12891_v42 = vpop.f32.mrf.mxu0  ;;  %6707 = vmax.xlane.f32.xlu1 %v6706_v32 }
0x2675   : > { %v6700_v39 = vsel %vm1208_vm2, %v12891_v42, -inf }
0x2676   : > { %v12893_v18 = vpop.f32.mrf.mxu0 }
0x2677   : > { %v6715_v60 = vsel %vm1208_vm2, %v12893_v18, -inf }
0x2678   : > { %6716 = vmax.xlane.f32.xlu0 %v6715_v60  ;;  %v12899_v5 = vpop.f32.mrf.mxu0  ;;  %6701 = vmax.xlane.f32.xlu1 %v6700_v39 }
0x2679   : > { %v6709_v58 = vsel %vm1208_vm2, %v12899_v5, -inf }
0x267a   : > { %v12901_v63 = vpop.f32.mrf.mxu0 }
0x267b   : > { %v6718_v0 = vsel %vm1208_vm2, %v12901_v63, -inf }
0x267c   : > { %6710 = vmax.xlane.f32.xlu0 %v6709_v58  ;;  %v12907_v40 = vpop.f32.mrf.mxu0  ;;  %6719 = vmax.xlane.f32.xlu1 %v6718_v0 }
0x267d   : > { %v6712_v38 = vsel %vm1208_vm2, %v12907_v40, -inf }
0x2680   : > { %6713 = vmax.xlane.f32.xlu1 %v6712_v38 }
0x2681   : > { %v12911_v3 = vpop.f32.mrf.mxu0 }
0x2682   : > { %v6967_v8 = vsel %vm1208_vm2, %v12911_v3, -inf }
0x2683   : > { %6968 = vmax.xlane.f32.xlu0 %v6967_v8  ;;  %v12915_v21 = vpop.f32.mrf.mxu0 }
0x2684   : > { %v6961_v13 = vsel %vm1208_vm2, %v12915_v21, -inf }
0x2685   : > { %v12917_v56 = vpop.f32.mrf.mxu0 }
0x2686   : > { %v6436_v7 = vpop.xlane.xlu0 %6435  ;;  %v6970_v34 = vsel %vm1208_vm2, %v12917_v56, -inf }
0x2687   : > { %6962 = vmax.xlane.f32.xlu0 %v6961_v13  ;;  %v12923_v12 = vpop.f32.mrf.mxu0  ;;  %6971 = vmax.xlane.f32.xlu1 %v6970_v34  ;;  %v6454_v50 = vsub.f32 %v12847_v37, %v6436_v7 }
0x2688   : > { %v6964_v62 = vsel %vm1208_vm2, %v12923_v12, -inf }
0x2689   : > { %v12925_v28 = vpop.f32.mrf.mxu0  ;;  %v6464_v9 = vmul.f32 1.442695, %v6454_v50 }
0x268a   : > { %v6430_v2 = vpop.xlane.xlu0 %6429  ;;  %v6979_v20 = vsel %vm1208_vm2, %v12925_v28, -inf }
0x268b   : > { %6980 = vmax.xlane.f32.xlu0 %v6979_v20  ;;  %v12932_v33 = vpop.f32.mrf.mxu0  ;;  %6965 = vmax.xlane.f32.xlu1 %v6964_v62  ;;  %v6452_v52 = vsub.f32 %v12851_v55, %v6430_v2  ;;  %10475 = vpow2.f32 %v6464_v9 }
0x268c   : > { %v6973_v26 = vsel %vm1208_vm2, %v12932_v33, -inf }
0x268d   : > { %v12934_v22 = vpop.f32.mrf.mxu0  ;;  %v6460_v30 = vmul.f32 1.442695, %v6452_v52 }
0x268e   : > { %v6439_v45 = vpop.xlane.xlu0 %6438  ;;  %v6982_v35 = vsel %vm1208_vm2, %v12934_v22, -inf }
0x268f   : > { %6974 = vmax.xlane.f32.xlu0 %v6973_v26  ;;  %v12941_v10 = vpop.f32.mrf.mxu0  ;;  %6983 = vmax.xlane.f32.xlu1 %v6982_v35  ;;  %10477 = vpow2.f32 %v6460_v30  ;;  %v6433_v30 = vpop.xlane.xlu1 %6432 }
0x2690   : > { %v6976_v55 = vsel %vm1208_vm2, %v12941_v10, -inf }
0x2691   : > { %v12943_v37 = vpop.f32.mrf.mxu0 }
0x2692   : > { %v6448_v51 = vpop.xlane.xlu0 %6447  ;;  %v7231_v44 = vsel %vm1208_vm2, %v12943_v37, -inf }
0x2693   : > { %v6458_v31 = vsub.f32 %v12861_v15, %v6448_v51  ;;  %7232 = vmax.xlane.f32.xlu0 %v7231_v44  ;;  %v12950_v23 = vpop.f32.mrf.mxu0  ;;  %6977 = vmax.xlane.f32.xlu1 %v6976_v55  ;;  %v6455_v51 = vsub.f32 %v12853_v24, %v6439_v45  ;;  %v6451_v44 = vpop.xlane.xlu1 %6450  ;;  %v6453_v55 = vsub.f32 %v12857_v6, %v6433_v30 }
0x2694   : > { %v7225_v1 = vsel %vm1208_vm2, %v12950_v23, -inf }
0x2695   : > { %v12952_v47 = vpop.f32.mrf.mxu0  ;;  %v6472_v46 = vmul.f32 1.442695, %v6458_v31  ;;  %v6466_v31 = vmul.f32 1.442695, %v6455_v51 }
0x2696   : > { %v6442_v19 = vpop.xlane.xlu0 %6441  ;;  %v7234_v11 = vsel %vm1208_vm2, %v12952_v47, -inf }
0x2697   : > { %v6456_v32 = vsub.f32 %v12865_v59, %v6442_v19  ;;  %7226 = vmax.xlane.f32.xlu0 %v7225_v1  ;;  %v12959_v60 = vpop.f32.mrf.mxu0  ;;  %7235 = vmax.xlane.f32.xlu1 %v7234_v11  ;;  %10479 = vpow2.f32 %v6472_v46  ;;  %v6462_v46 = vmul.f32 1.442695, %v6453_v55  ;;  %v6459_v19 = vsub.f32 %v12867_v49, %v6451_v44  ;;  %v6445_v1 = vpop.xlane.xlu1 %6444 }
0x2698   : > { %v7228_v0 = vsel %vm1208_vm2, %v12959_v60, -inf  ;;  %v12975_v13 = vpop.eup %10475 }
0x2699   : > { %v12961_v15 = vpop.f32.mrf.mxu0  ;;  %v6468_v39 = vmul.f32 1.442695, %v6456_v32  ;;  %v6482_v50 = vsel %vm1208_vm2, %v12975_v13, 0.0  ;;  %v6474_v11 = vmul.f32 1.442695, %v6459_v19  ;;  %v6457_v32 = vsub.f32 %v12873_v53, %v6445_v1 }
0x269a   : > { %v7243_v58 = vsel %vm1208_vm2, %v12961_v15, -inf }
0x269b   : > { %7244 = vmax.xlane.f32.xlu0 %v7243_v58  ;;  %v12967_v38 = vpop.f32.mrf.mxu0  ;;  %7229 = vmax.xlane.f32.xlu1 %v7228_v0  ;;  %10481 = vpow2.f32 %v6468_v39  ;;  %v6470_v39 = vmul.f32 1.442695, %v6457_v32 }
0x269c   : > { %v7237_v59 = vsel %vm1208_vm2, %v12967_v38, -inf  ;;  %v12983_v20 = vpop.eup %10477  ;;  %10483 = vpow2.f32 %v6466_v31 }
0x269d   : > { %v12969_v8 = vpop.f32.mrf.mxu0  ;;  %v6476_v62 = vsel %vm1208_vm2, %v12983_v20, 0.0  ;;  %10485 = vpow2.f32 %v6462_v46 }
0x269e   : > { %v7246_v7 = vsel %vm1208_vm2, %v12969_v8, -inf  ;;  %10487 = vpow2.f32 %v6474_v11 }
0x269f   : > { %7238 = vmax.xlane.f32.xlu0 %v7237_v59  ;;  %v12977_v34 = vpop.f32.mrf.mxu0  ;;  %7247 = vmax.xlane.f32.xlu1 %v7246_v7  ;;  %10489 = vpow2.f32 %v6470_v39 }
0x26a0   : > { %v7240_v2 = vsel %vm1208_vm2, %v12977_v34, -inf }
0x26a3   : > { %6483 = vadd.xlane.f32.xlu0 %v6482_v50  ;;  %7241 = vmax.xlane.f32.xlu1 %v7240_v2 }
0x26a4   : > { %v12987_v9 = vpop.eup %10479 }
0x26a5   : > { %v6494_v52 = vsel %vm1208_vm2, %v12987_v9, 0.0 }
0x26a7   : > { %6477 = vadd.xlane.f32.xlu0 %v6476_v62 }
0x26a8   : > { %v12991_v26 = vpop.eup %10481 }
0x26a9   : > { %v6488_v35 = vsel %vm1208_vm2, %v12991_v26, 0.0  ;;  %v13001_v58 = vpop.eup %10483 }
0x26aa   : > { %v6485_v24 = vsel %vm1208_vm2, %v13001_v58, 0.0  ;;  %v13005_v45 = vpop.eup %10485 }
0x26ab   : > { %6495 = vadd.xlane.f32.xlu0 %v6494_v52  ;;  %v6479_v6 = vsel %vm1208_vm2, %v13005_v45, 0.0  ;;  %v13009_v49 = vpop.eup %10487 }
0x26ac   : > { %v6497_v53 = vsel %vm1208_vm2, %v13009_v49, 0.0  ;;  %v13013_v0 = vpop.eup %10489 }
0x26ad   : > { %v6491_v59 = vsel %vm1208_vm2, %v13013_v0, 0.0 }
0x26af   : > { %6489 = vadd.xlane.f32.xlu0 %v6488_v35 }
0x26b4   : > { %6789 = vrot.lane.b32.xlu1 %v12794_v29, %s13676_s26  ;;  %s807_s26 = scalar_lea.vmem %s13711_s3, %s13709_s22 }
0x26d8   : > { %6486 = vadd.xlane.f32.xlu1 %v6485_v24 }
0x26dc   : > { %6480 = vadd.xlane.f32.xlu1 %v6479_v6 }
0x26e0   : > { %6498 = vadd.xlane.f32.xlu1 %v6497_v53 }
0x26e4   : > { %6492 = vadd.xlane.f32.xlu1 %v6491_v59 }
0x26f9   : > { %v6705_v7 = vpop.xlane.xlu0 %6704 }
0x26fa   : > { %v6723_v50 = vsub.f32 %v12879_v17, %v6705_v7 }
0x26fc   : > { %v6733_v2 = vmul.f32 1.442695, %v6723_v50 }
0x26fd   : > { %v6699_v62 = vpop.xlane.xlu0 %6698  ;;  %v6708_v52 = vpop.xlane.xlu1 %6707 }
0x26fe   : > { %10491 = vpow2.f32 %v6733_v2  ;;  %v6721_v35 = vsub.f32 %v12883_v25, %v6699_v62  ;;  %v6724_v30 = vsub.f32 %v12885_v16, %v6708_v52 }
0x2700   : > { %v6729_v51 = vmul.f32 1.442695, %v6721_v35  ;;  %v6735_v44 = vmul.f32 1.442695, %v6724_v30 }
0x2701   : > { %v6717_v55 = vpop.xlane.xlu0 %6716  ;;  %v6702_v31 = vpop.xlane.xlu1 %6701 }
0x2702   : > { %10493 = vpow2.f32 %v6729_v51  ;;  %v6727_v46 = vsub.f32 %v12893_v18, %v6717_v55  ;;  %v6722_v19 = vsub.f32 %v12891_v42, %v6702_v31 }
0x2703   : > { %10495 = vpow2.f32 %v6735_v44 }
0x2704   : > { %v6741_v1 = vmul.f32 1.442695, %v6727_v46  ;;  %v6731_v17 = vmul.f32 1.442695, %v6722_v19 }
0x2705   : > { %v6711_v11 = vpop.xlane.xlu0 %6710  ;;  %v6720_v32 = vpop.xlane.xlu1 %6719 }
0x2706   : > { %10497 = vpow2.f32 %v6741_v1  ;;  %v6725_v39 = vsub.f32 %v12899_v5, %v6711_v11  ;;  %v6728_v25 = vsub.f32 %v12901_v63, %v6720_v32 }
0x2707   : > { %10499 = vpow2.f32 %v6731_v17 }
0x2708   : > { %v6737_v16 = vmul.f32 1.442695, %v6725_v39  ;;  %v6743_v24 = vmul.f32 1.442695, %v6728_v25 }
0x2709   : > { %v6714_v6 = vpop.xlane.xlu1 %6713 }
0x270a   : > { %10501 = vpow2.f32 %v6737_v16  ;;  %v6726_v53 = vsub.f32 %v12907_v40, %v6714_v6 }
0x270b   : > { %v13025_v18 = vpop.eup %10491  ;;  %10503 = vpow2.f32 %v6743_v24 }
0x270c   : > { %v6739_v42 = vmul.f32 1.442695, %v6726_v53  ;;  %v6969_v59 = vpop.xlane.xlu0 %6968  ;;  %v6751_v7 = vsel %vm1208_vm2, %v13025_v18, 0.0 }
0x270d   : > { %v6987_v50 = vsub.f32 %v12911_v3, %v6969_v59  ;;  %6752 = vadd.xlane.f32.xlu0 %v6751_v7 }
0x270e   : > { %10505 = vpow2.f32 %v6739_v42 }
0x270f   : > { %v13030_v5 = vpop.eup %10493  ;;  %v6997_v63 = vmul.f32 1.442695, %v6987_v50 }
0x2710   : > { %v13032_v2 = vpop.eup %10495  ;;  %v6963_v62 = vpop.xlane.xlu0 %6962  ;;  %v6745_v40 = vsel %vm1208_vm2, %v13030_v5, 0.0 }
0x2711   : > { %v6972_v52 = vpop.xlane.xlu1 %6971  ;;  %10507 = vpow2.f32 %v6997_v63  ;;  %v6985_v35 = vsub.f32 %v12915_v21, %v6963_v62  ;;  %6746 = vadd.xlane.f32.xlu0 %v6745_v40  ;;  %v6754_v3 = vsel %vm1208_vm2, %v13032_v2, 0.0 }
0x2712   : > { %v6988_v30 = vsub.f32 %v12917_v56, %v6972_v52  ;;  %6755 = vadd.xlane.f32.xlu1 %v6754_v3 }
0x2713   : > { %v13040_v51 = vpop.eup %10497  ;;  %v6993_v44 = vmul.f32 1.442695, %v6985_v35 }
0x2714   : > { %v13042_v55 = vpop.eup %10499  ;;  %v6999_v31 = vmul.f32 1.442695, %v6988_v30  ;;  %v6981_v46 = vpop.xlane.xlu0 %6980  ;;  %v6763_v1 = vsel %vm1208_vm2, %v13040_v51, 0.0 }
0x2715   : > { %v6966_v19 = vpop.xlane.xlu1 %6965  ;;  %10509 = vpow2.f32 %v6993_v44  ;;  %v6991_v21 = vsub.f32 %v12925_v28, %v6981_v46  ;;  %6764 = vadd.xlane.f32.xlu0 %v6763_v1  ;;  %v6748_v17 = vsel %vm1208_vm2, %v13042_v55, 0.0 }
0x2716   : > { %v6986_v56 = vsub.f32 %v12923_v12, %v6966_v19  ;;  %6749 = vadd.xlane.f32.xlu1 %v6748_v17  ;;  %10511 = vpow2.f32 %v6999_v31 }
0x2717   : > { %v13050_v11 = vpop.eup %10501  ;;  %v7005_v32 = vmul.f32 1.442695, %v6991_v21 }
0x2718   : > { %v13052_v39 = vpop.eup %10503  ;;  %v6975_v25 = vpop.xlane.xlu0 %6974  ;;  %v6757_v24 = vsel %vm1208_vm2, %v13050_v11, 0.0  ;;  %v6995_v28 = vmul.f32 1.442695, %v6986_v56 }
0x2719   : > { %v6984_v16 = vpop.xlane.xlu1 %6983  ;;  %10513 = vpow2.f32 %v7005_v32  ;;  %v6989_v12 = vsub.f32 %v12932_v33, %v6975_v25  ;;  %6758 = vadd.xlane.f32.xlu0 %v6757_v24  ;;  %v6766_v6 = vsel %vm1208_vm2, %v13052_v39, 0.0 }
0x271a   : > { %6767 = vadd.xlane.f32.xlu1 %v6766_v6  ;;  %v6992_v59 = vsub.f32 %v12934_v22, %v6984_v16  ;;  %10515 = vpow2.f32 %v6995_v28 }
0x271b   : > { %v13059_v53 = vpop.eup %10505  ;;  %v7001_v42 = vmul.f32 1.442695, %v6989_v12 }
0x271c   : > { %v7233_v7 = vpop.xlane.xlu0 %7232  ;;  %v6760_v63 = vsel %vm1208_vm2, %v13059_v53, 0.0  ;;  %v7007_v35 = vmul.f32 1.442695, %v6992_v59 }
0x271d   : > { %v6978_v50 = vpop.xlane.xlu1 %6977  ;;  %v7251_v62 = vsub.f32 %v12943_v37, %v7233_v7  ;;  %10517 = vpow2.f32 %v7001_v42 }
0x271e   : > { %v13065_v52 = vpop.eup %10507  ;;  %6761 = vadd.xlane.f32.xlu1 %v6760_v63  ;;  %v6990_v22 = vsub.f32 %v12941_v10, %v6978_v50 }
0x271f   : > { %v7261_v33 = vmul.f32 1.442695, %v7251_v62  ;;  %v7015_v40 = vsel %vm1208_vm2, %v13065_v52, 0.0 }
0x2720   : > { %v7227_v30 = vpop.xlane.xlu0 %7226  ;;  %v7003_v56 = vmul.f32 1.442695, %v6990_v22 }
0x2721   : > { %v7236_v3 = vpop.xlane.xlu1 %7235  ;;  %10519 = vpow2.f32 %v7261_v33  ;;  %v7249_v17 = vsub.f32 %v12950_v23, %v7227_v30 }
0x2722   : > { %v7252_v44 = vsub.f32 %v12952_v47, %v7236_v3  ;;  %v13071_v31 = vpop.eup %10509  ;;  %7016 = vadd.xlane.f32.xlu1 %v7015_v40  ;;  %10521 = vpow2.f32 %v7007_v35 }
0x2723   : > { %v7009_v46 = vsel %vm1208_vm2, %v13071_v31, 0.0  ;;  %v13075_v21 = vpop.eup %10511  ;;  %v7257_v6 = vmul.f32 1.442695, %v7249_v17 }
0x2724   : > { %v7263_v37 = vmul.f32 1.442695, %v7252_v44  ;;  %v7245_v19 = vpop.xlane.xlu0 %7244 }
0x2725   : > { %v7230_v1 = vpop.xlane.xlu1 %7229  ;;  %v7255_v32 = vsub.f32 %v12961_v15, %v7245_v19  ;;  %v7018_v15 = vsel %vm1208_vm2, %v13075_v21, 0.0 }
0x2726   : > { %v7250_v10 = vsub.f32 %v12959_v60, %v7230_v1  ;;  %v13080_v47 = vpop.eup %10513  ;;  %10523 = vpow2.f32 %v7263_v37  ;;  %7010 = vadd.xlane.f32.xlu1 %v7009_v46 }
0x2727   : > { %v7027_v16 = vsel %vm1208_vm2, %v13080_v47, 0.0  ;;  %v7269_v24 = vmul.f32 1.442695, %v7255_v32  ;;  %10525 = vpow2.f32 %v7003_v56  ;;  %v13087_v60 = vpop.eup %10515 }
0x2728   : > { %v7259_v25 = vmul.f32 1.442695, %v7250_v10  ;;  %7028 = vadd.xlane.f32.xlu0 %v7027_v16  ;;  %v7239_v28 = vpop.xlane.xlu0 %7238  ;;  %v7012_v63 = vsel %vm1208_vm2, %v13087_v60, 0.0 }
0x2729   : > { %v7248_v12 = vpop.xlane.xlu1 %7247  ;;  %v7253_v23 = vsub.f32 %v12967_v38, %v7239_v28 }
0x272a   : > { %10527 = vpow2.f32 %v7259_v25  ;;  %7019 = vadd.xlane.f32.xlu1 %v7018_v15  ;;  %v7256_v59 = vsub.f32 %v12969_v8, %v7248_v12  ;;  %v13090_v50 = vpop.eup %10517 }
0x272b   : > { %10529 = vpow2.f32 %v7269_v24  ;;  %v7265_v42 = vmul.f32 1.442695, %v7253_v23  ;;  %v7021_v30 = vsel %vm1208_vm2, %v13090_v50, 0.0 }
0x272c   : > { %10531 = vpow2.f32 %v7257_v6  ;;  %v7271_v33 = vmul.f32 1.442695, %v7256_v59  ;;  %v6484_v23 = vpop.xlane.xlu0 %6483 }
0x272d   : > { %v7242_v7 = vpop.xlane.xlu1 %7241  ;;  %10533 = vpow2.f32 %v7265_v42 }
0x272e   : > { %v13094_v62 = vpop.eup %10519  ;;  %7013 = vadd.xlane.f32.xlu1 %v7012_v63  ;;  %v7254_v40 = vsub.f32 %v12977_v34, %v7242_v7  ;;  %10535 = vpow2.f32 %v7271_v33 }
0x272f   : > { %v7279_v38 = vsel %vm1208_vm2, %v13094_v62, 0.0  ;;  %v13101_v8 = vpop.eup %10521 }
0x2730   : > { %7280 = vadd.xlane.f32.xlu0 %v7279_v38  ;;  %v7267_v22 = vmul.f32 1.442695, %v7254_v40  ;;  %v7030_v34 = vsel %vm1208_vm2, %v13101_v8, 0.0  ;;  %v6478_v15 = vpop.xlane.xlu0 %6477 }
0x2731   : > { %v13099_v35 = vpop.permute.xlu1 %6789 }
0x2732   : > { %9715 = vmatprep.subr.msk.bf16.mxu1 %vm2957_vm6, %v13099_v35  ;;  %7022 = vadd.xlane.f32.xlu1 %v7021_v30  ;;  %10537 = vpow2.f32 %v7267_v22 }
0x2733   : > { %v13107_v3 = vpop.eup %10523 }
0x2734   : > { %v7282_v44 = vsel %vm1208_vm2, %v13107_v3, 0.0  ;;  %v13113_v37 = vpop.eup %10525  ;;  %v6496_v59 = vpop.xlane.xlu0 %6495 }
0x2735   : > { %7283 = vadd.xlane.f32.xlu0 %v7282_v44  ;;  %v7024_v56 = vsel %vm1208_vm2, %v13113_v37, 0.0 }
0x2736   : > { %7031 = vadd.xlane.f32.xlu1 %v7030_v34 }
0x2737   : > { %v13115_v46 = vpop.eup %10527 }
0x2738   : > { %v7276_v19 = vsel %vm1208_vm2, %v13115_v46, 0.0  ;;  %v13119_v1 = vpop.eup %10529  ;;  %v6490_v63 = vpop.xlane.xlu0 %6489 }
0x2739   : > { %7277 = vadd.xlane.f32.xlu0 %v7276_v19  ;;  %v13123_v17 = vpop.eup %10531  ;;  %v7291_v32 = vsel %vm1208_vm2, %v13119_v1, 0.0 }
0x273a   : > { %7025 = vadd.xlane.f32.xlu1 %v7024_v56  ;;  %v13127_v10 = vpop.eup %10533  ;;  %v7273_v25 = vsel %vm1208_vm2, %v13123_v17, 0.0 }
0x273b   : > { %v7285_v16 = vsel %vm1208_vm2, %v13127_v10, 0.0  ;;  %v13133_v24 = vpop.eup %10535 }
0x273c   : > { %v7294_v28 = vsel %vm1208_vm2, %v13133_v24, 0.0 }
0x273d   : > { %7292 = vadd.xlane.f32.xlu0 %v7291_v32 }
0x273e   : > { %7274 = vadd.xlane.f32.xlu1 %v7273_v25 }
0x273f   : > { %v13137_v12 = vpop.eup %10537 }
0x2740   : > { %v7288_v6 = vsel %vm1208_vm2, %v13137_v12, 0.0 }
0x2741   : > { %7286 = vadd.xlane.f32.xlu0 %v7285_v16 }
0x2745   : > { %7295 = vadd.xlane.f32.xlu0 %v7294_v28 }
0x2749   : > { %7289 = vadd.xlane.f32.xlu0 %v7288_v6  ;;  %v6804_v6 = vsel %vm2957_vm6, %v13099_v35, 0 }
0x274f   : > { %7317 = vrot.lane.b32.xlu1 %v12794_v29, %s13677_s6 }
0x275f   : > { %7053 = vrot.lane.b32.xlu0 %v12794_v29, %s13678_s9  ;;  %s13703_s9 = sld [smem:[#allocation18_spill]] }
0x2761   : > { %v6487_v42 = vpop.xlane.xlu1 %6486 }
0x2762   : > { %10539 = vrcp.f32 %v6487_v42 }
0x2763   : > { %10541 = vrcp.f32 %v6478_v15 }
0x2764   : > { %10543 = vrcp.f32 %v6484_v23 }
0x2765   : > { %v6481_v7 = vpop.xlane.xlu1 %6480 }
0x2766   : > { %10545 = vrcp.f32 %v6481_v7 }
0x2769   : > { %v6499_v38 = vpop.xlane.xlu1 %6498 }
0x276a   : > { %10547 = vrcp.f32 %v6499_v38 }
0x276b   : > { %10549 = vrcp.f32 %v6490_v63 }
0x276c   : > { %10551 = vrcp.f32 %v6496_v59 }
0x276d   : > { %v6493_v33 = vpop.xlane.xlu1 %6492 }
0x276e   : > { %10553 = vrcp.f32 %v6493_v33 }
0x276f   : > { %v10540_v40 = vpop.eup %10539 }
0x2770   : > { %v10542_v30 = vpop.eup %10541  ;;  %v6511_v29 = vmul.f32 %v10540_v40, %v13001_v58 }
0x2771   : > { %v10544_v22 = vpop.eup %10543  ;;  %v6508_v34 = vmul.f32 %v10542_v30, %v12983_v20 }
0x2772   : > { %v6510_v56 = vmul.f32 %v10544_v22, %v12975_v13 }
0x2773   : > { %v10546_v44 = vpop.eup %10545 }
0x2774   : > { %v6509_v19 = vmul.f32 %v10546_v44, %v13005_v45  ;;  %v6517_v25 = vpack.c.bf16 %v6511_v29, %v6510_v56 }
0x2776   : > { %v6516_v32 = vpack.c.bf16 %v6509_v19, %v6508_v34 }
0x2777   : > { %v10548_v16 = vpop.eup %10547 }
0x2778   : > { %9536 = vmatprep.mubr.msk.bf16.mxu1 %vm1208_vm2, %v6516_v32  ;;  %v10550_v28 = vpop.eup %10549  ;;  %v6515_v20 = vmul.f32 %v10548_v16, %v13009_v49 }
0x2779   : > { %9537 = vmatmul.mubr.msk.bf16.vlgmr.msra.gmra.mxu1 %vm1208_vm2, %v6517_v25  ;;  %v10552_v23 = vpop.eup %10551  ;;  %v6512_v45 = vmul.f32 %v10550_v28, %v12991_v26 }
0x277a   : > { %9555 = vmatpush3.bf16.msra.mxu1 %v6804_v6  ;;  %v6514_v15 = vmul.f32 %v10552_v23, %v12987_v9 }
0x277b   : > { %v10554_v58 = vpop.eup %10553 }
0x277c   : > { %v6513_v13 = vmul.f32 %v10554_v58, %v13013_v0  ;;  %v6519_v59 = vpack.c.bf16 %v6515_v20, %v6514_v15 }
0x277e   : > { %v6518_v42 = vpack.c.bf16 %v6513_v13, %v6512_v45 }
0x2780   : > { %9540 = vmatprep.mubr.msk.bf16.mxu1 %vm1208_vm2, %v6518_v42 }
0x2781   : > { %9541 = vmatmul.mubr.msk.bf16.gmra.mxu1 %vm1208_vm2, %v6519_v59 }
0x2796   : > { %v6753_v35 = vpop.xlane.xlu0 %6752 }
0x279a   : > { %v6747_v7 = vpop.xlane.xlu0 %6746 }
0x279b   : > { %v6756_v63 = vpop.xlane.xlu1 %6755 }
0x279c   : > { %10555 = vrcp.f32 %v6756_v63 }
0x279d   : > { %10557 = vrcp.f32 %v6747_v7 }
0x279e   : > { %v6765_v38 = vpop.xlane.xlu0 %6764  ;;  %10559 = vrcp.f32 %v6753_v35 }
0x279f   : > { %v6750_v49 = vpop.xlane.xlu1 %6749 }
0x27a0   : > { %10561 = vrcp.f32 %v6750_v49 }
0x27a2   : > { %v6759_v26 = vpop.xlane.xlu0 %6758 }
0x27a3   : > { %v6768_v33 = vpop.xlane.xlu1 %6767 }
0x27a4   : > { %10563 = vrcp.f32 %v6768_v33 }
0x27a5   : > { %10565 = vrcp.f32 %v6759_v26 }
0x27a6   : > { %10567 = vrcp.f32 %v6765_v38 }
0x27a7   : > { %v6762_v9 = vpop.xlane.xlu1 %6761 }
0x27a8   : > { %10569 = vrcp.f32 %v6762_v9 }
0x27a9   : > { %v10556_v0 = vpop.eup %10555 }
0x27aa   : > { %v10558_v40 = vpop.eup %10557  ;;  %v6780_v29 = vmul.f32 %v10556_v0, %v13032_v2 }
0x27ab   : > { %v7017_v30 = vpop.xlane.xlu1 %7016  ;;  %v10560_v22 = vpop.eup %10559  ;;  %v6777_v34 = vmul.f32 %v10558_v40, %v13030_v5 }
0x27ac   : > { %v6779_v56 = vmul.f32 %v10560_v22, %v13025_v18 }
0x27ad   : > { %v10562_v44 = vpop.eup %10561 }
0x27ae   : > { %v6778_v19 = vmul.f32 %v10562_v44, %v13042_v55  ;;  %v6786_v16 = vpack.c.bf16 %v6780_v29, %v6779_v56 }
0x27af   : > { %v7011_v32 = vpop.xlane.xlu1 %7010 }
0x27b0   : > { %v6785_v25 = vpack.c.bf16 %v6778_v19, %v6777_v34  ;;  %10571 = vrcp.f32 %v7011_v32 }
0x27b1   : > { %v10564_v28 = vpop.eup %10563  ;;  %v7029_v45 = vpop.xlane.xlu0 %7028 }
0x27b2   : > { %9556 = vmatprep.mubr.msk.bf16.mxu1 %vm1208_vm2, %v6785_v25  ;;  %v10566_v6 = vpop.eup %10565  ;;  %v6784_v2 = vmul.f32 %v10564_v28, %v13052_v39 }
0x27b3   : > { %9557 = vmatmul.mubr.msk.bf16.vlgmr.msra.gmra.mxu1 %vm1208_vm2, %v6786_v16  ;;  %v7020_v23 = vpop.xlane.xlu1 %7019  ;;  %v10568_v58 = vpop.eup %10567  ;;  %v6781_v5 = vmul.f32 %v10566_v6, %v13050_v11 }
0x27b4   : > { %v6783_v13 = vmul.f32 %v10568_v58, %v13040_v51 }
0x27b5   : > { %v10570_v20 = vpop.eup %10569 }
0x27b6   : > { %v6782_v18 = vmul.f32 %v10570_v20, %v13059_v53  ;;  %v6788_v59 = vpack.c.bf16 %v6784_v2, %v6783_v13 }
0x27b7   : > { %v7014_v55 = vpop.xlane.xlu1 %7013 }
0x27b8   : > { %10573 = vrcp.f32 %v7014_v55  ;;  %v6787_v15 = vpack.c.bf16 %v6782_v18, %v6781_v5 }
0x27b9   : > { %v7281_v42 = vpop.xlane.xlu0 %7280  ;;  %10575 = vrcp.f32 %v7020_v23 }
0x27ba   : > { %9560 = vmatprep.mubr.msk.bf16.mxu1 %vm1208_vm2, %v6787_v15 }
0x27bb   : > { %9561 = vmatmul.mubr.msk.bf16.gmra.mxu1 %vm1208_vm2, %v6788_v59  ;;  %v7023_v35 = vpop.xlane.xlu1 %7022 }
0x27bd   : > { %v10572_v38 = vpop.eup %10571 }
0x27be   : > { %v7284_v7 = vpop.xlane.xlu0 %7283  ;;  %v7041_v51 = vmul.f32 %v10572_v38, %v13071_v31 }
0x27bf   : > { %v7032_v63 = vpop.xlane.xlu1 %7031 }
0x27c2   : > { %v7278_v39 = vpop.xlane.xlu0 %7277 }
0x27c3   : > { %v7026_v49 = vpop.xlane.xlu1 %7025 }
0x27c4   : > { %10577 = vrcp.f32 %v7026_v49 }
0x27c5   : > { %v10574_v11 = vpop.eup %10573  ;;  %10579 = vrcp.f32 %v7017_v30 }
0x27c6   : > { %v7293_v53 = vpop.xlane.xlu0 %7292  ;;  %v7042_v26 = vmul.f32 %v10574_v11, %v13087_v60  ;;  %10581 = vrcp.f32 %v7023_v35  ;;  %v10576_v22 = vpop.eup %10575 }
0x27c7   : > { %v7275_v0 = vpop.xlane.xlu1 %7274  ;;  %10583 = vrcp.f32 %v7032_v63  ;;  %v7044_v31 = vmul.f32 %v10576_v22, %v13075_v21 }
0x27c8   : > { %v7049_v33 = vpack.c.bf16 %v7042_v26, %v7041_v51  ;;  %10585 = vrcp.f32 %v7275_v0 }
0x27c9   : > { %10587 = vrcp.f32 %v7029_v45 }
0x27ca   : > { %v7287_v9 = vpop.xlane.xlu0 %7286  ;;  %9576 = vmatprep.mubr.msk.bf16.mxu1 %vm1208_vm2, %v7049_v33  ;;  %10589 = vrcp.f32 %v7278_v39 }
0x27cb   : > { %10591 = vrcp.f32 %v7284_v7  ;;  %v7318_v25 = vpop.permute.xlu1 %7317 }
0x27ce   : > { %v7296_v40 = vpop.xlane.xlu0 %7295 }
0x27d1   : > { %v10578_v29 = vpop.eup %10577 }
0x27d2   : > { %v7290_v44 = vpop.xlane.xlu0 %7289  ;;  %v10580_v34 = vpop.eup %10579  ;;  %v7046_v30 = vmul.f32 %v10578_v29, %v13113_v37  ;;  %v7332_v37 = vsel %vm2957_vm6, %v7318_v25, 0 }
0x27d3   : > { %v10582_v19 = vpop.eup %10581  ;;  %10593 = vrcp.f32 %v7290_v44  ;;  %v7043_v56 = vmul.f32 %v10580_v34, %v13065_v52 }
0x27d4   : > { %10595 = vrcp.f32 %v7281_v42  ;;  %v7045_v16 = vmul.f32 %v10582_v19, %v13090_v50  ;;  %v10584_v21 = vpop.eup %10583 }
0x27d5   : > { %10597 = vrcp.f32 %v7287_v9  ;;  %v7050_v28 = vpack.c.bf16 %v7044_v31, %v7043_v56  ;;  %v10586_v23 = vpop.eup %10585  ;;  %v7048_v20 = vmul.f32 %v10584_v21, %v13101_v8  ;;  %v10013_v21 = vld [vmem:[%s13702_s28 + $0x18] sm:$0xff]  }
0x27d6   : > { %v7054_v60 = vpop.permute.xlu0 %7053  ;;  %v7051_v6 = vpack.c.bf16 %v7046_v30, %v7045_v16  ;;  %v10588_v52 = vpop.eup %10587  ;;  %10599 = vrcp.f32 %v7296_v40  ;;  %v7305_v50 = vmul.f32 %v10586_v23, %v13123_v17  ;;  %9604 = vmatprep.subr.bf16.mxu0 %v10013_v21 }
0x27d7   : > { %v7068_v32 = vsel %vm2957_vm6, %v7054_v60, 0  ;;  %9717 = vmatprep.subr.msk.bf16.mxu1 %vm2957_vm6, %v7054_v60  ;;  %v10590_v58 = vpop.eup %10589  ;;  %10601 = vrcp.f32 %v7293_v53  ;;  %v7047_v45 = vmul.f32 %v10588_v52, %v13080_v47  ;;  %9605 = vmatpush3.bf16.msra.mxu0 %v10013_v21 }
0x27d8   : > { %9575 = vmatpush3.bf16.msra.mxu1 %v7068_v32  ;;  %v7306_v2 = vmul.f32 %v10590_v58, %v13115_v46  ;;  %v10592_v18 = vpop.eup %10591 }
0x27d9   : > { %9719 = vmatprep.subr.msk.bf16.mxu1 %vm2957_vm6, %v7318_v25  ;;  %v7052_v5 = vpack.c.bf16 %v7048_v20, %v7047_v45  ;;  %v7308_v59 = vmul.f32 %v10592_v18, %v13107_v3 }
0x27da   : > { %v7313_v55 = vpack.c.bf16 %v7306_v2, %v7305_v50 }
0x27db   : > { %9577 = vmatmul.mubr.msk.bf16.vlgmr.msra.gmra.mxu1 %vm1208_vm2, %v7050_v28 }
0x27dc   : > { %9580 = vmatprep.mubr.msk.bf16.mxu1 %vm1208_vm2, %v7051_v6  ;;  %9595 = vmatpush3.bf16.msra.mxu1 %v7332_v37  ;;  %v10014_v37 = vld [vmem:[%s13702_s28 + $0x10] sm:$0xff]  }
0x27dd   : > { %9606 = vmatprep.subr.bf16.mxu0 %v10014_v37 }
0x27de   : > { %9607 = vmatpush3.bf16.msra.mxu0 %v10014_v37 }
0x27e0   : > { %v10594_v13 = vpop.eup %10593 }
0x27e1   : > { %v10596_v15 = vpop.eup %10595  ;;  %v7310_v8 = vmul.f32 %v10594_v13, %v13137_v12 }
0x27e2   : > { %v10598_v42 = vpop.eup %10597  ;;  %v7307_v17 = vmul.f32 %v10596_v15, %v13094_v62 }
0x27e3   : > { %9581 = vmatmul.mubr.msk.bf16.gmra.mxu1 %vm1208_vm2, %v7052_v5  ;;  %v7309_v47 = vmul.f32 %v10598_v42, %v13127_v10  ;;  %v10600_v46 = vpop.eup %10599 }
0x27e4   : > { %9596 = vmatprep.mubr.msk.bf16.mxu1 %vm1208_vm2, %v7313_v55  ;;  %v7314_v35 = vpack.c.bf16 %v7308_v59, %v7307_v17  ;;  %v10602_v63 = vpop.eup %10601  ;;  %v7312_v39 = vmul.f32 %v10600_v46, %v13133_v24 }
0x27e5   : > { %v7315_v7 = vpack.c.bf16 %v7310_v8, %v7309_v47  ;;  %v7311_v38 = vmul.f32 %v10602_v63, %v13119_v1 }
0x27e7   : > { %v7316_v49 = vpack.c.bf16 %v7312_v39, %v7311_v38 }
0x27eb   : > { %9597 = vmatmul.mubr.msk.bf16.vlgmr.msra.gmra.mxu1 %vm1208_vm2, %v7314_v35 }
0x27ec   : > { %9600 = vmatprep.mubr.msk.bf16.mxu1 %vm1208_vm2, %v7315_v7 }
0x27f3   : > { %9601 = vmatmul.mubr.msk.bf16.gmra.mxu1 %vm1208_vm2, %v7316_v49 }
0x2839   : > { %v13199_v3 = vpop.f32.mrf.mxu1 }
0x283b   : > { %v13201_v62 = vpop.f32.mrf.mxu1 }
0x283d   : > { %v13203_v10 = vpop.f32.mrf.mxu1 }
0x283f   : > { %v13205_v12 = vpop.f32.mrf.mxu1 }
0x2841   : > { %v13207_v11 = vpop.f32.mrf.mxu1 }
0x2843   : > { %v13209_v53 = vpop.f32.mrf.mxu1 }
0x2845   : > { %v13211_v51 = vpop.f32.mrf.mxu1 }
0x2847   : > { %v13213_v24 = vpop.f32.mrf.mxu1 }
0x2873   : > { %v9558_v1 = vpop.f32.mrf.mxu1 }
0x2875   : > { %v6840_v26 = vpop.f32.mrf.mxu1 }
0x2877   : > { %v9559_v33 = vpop.f32.mrf.mxu1 }
0x2878   : > { %v9924_v9 = vpack.i.bf16 %v9559_v33, %v9558_v1 }
0x2879   : > { %v6843_v0 = vpop.f32.mrf.mxu1 }
0x287a   : > { %9925 = vrot.lane.b32.xlu1 %v9924_v9, %s13679_s0  ;;  %v9929_v22 = vpack.i.bf16 %v6843_v0, %v6840_v26 }
0x287b   : > { %v9562_v40 = vpop.f32.mrf.mxu1 }
0x287d   : > { %v6856_v44 = vpop.f32.mrf.mxu1 }
0x287e   : > { %9930 = vrot.lane.b32.xlu1 %v9929_v22, %s13679_s0 }
0x287f   : > { %v9563_v29 = vpop.f32.mrf.mxu1 }
0x2880   : > { %v9934_v34 = vpack.i.bf16 %v9563_v29, %v9562_v40 }
0x2881   : > { %v6859_v19 = vpop.f32.mrf.mxu1 }
0x2882   : > { %v9939_v31 = vpack.i.bf16 %v6859_v19, %v6856_v44  ;;  %9935 = vrot.lane.b32.xlu1 %v9934_v34, %s13679_s0 }
0x2884   : > { %9940 = vrot.lane.b32.xlu0 %v9939_v31, %s13679_s0 }
0x289b   : > { %v9578_v60 = vpop.f32.mrf.mxu1 }
0x289d   : > { %v7104_v30 = vpop.f32.mrf.mxu1 }
0x289f   : > { %v9579_v56 = vpop.f32.mrf.mxu1 }
0x28a0   : > { %v9944_v32 = vpack.i.bf16 %v9579_v56, %v9578_v60 }
0x28a1   : > { %v7107_v25 = vpop.f32.mrf.mxu1 }
0x28a2   : > { %v9949_v16 = vpack.i.bf16 %v7107_v25, %v7104_v30  ;;  %9945 = vrot.lane.b32.xlu1 %v9944_v32, %s13680_s30 }
0x28a3   : > { %v9582_v28 = vpop.f32.mrf.mxu1 }
0x28a4   : > { %9950 = vrot.lane.b32.xlu0 %v9949_v16, %s13680_s30 }
0x28a5   : > { %v7120_v6 = vpop.f32.mrf.mxu1 }
0x28a7   : > { %v9583_v23 = vpop.f32.mrf.mxu1 }
0x28a8   : > { %v9969_v55 = vpack.i.bf16 %v9583_v23, %v9582_v28 }
0x28a9   : > { %v7123_v52 = vpop.f32.mrf.mxu1 }
0x28aa   : > { %v9964_v15 = vpack.i.bf16 %v7123_v52, %v7120_v6 }
0x28ab   : > { %v9598_v58 = vpop.f32.mrf.mxu1 }
0x28ad   : > { %v7368_v20 = vpop.f32.mrf.mxu1 }
0x28af   : > { %v9599_v50 = vpop.f32.mrf.mxu1 }
0x28b0   : > { %v9954_v45 = vpack.i.bf16 %v9599_v50, %v9598_v58 }
0x28b1   : > { %v7371_v2 = vpop.f32.mrf.mxu1 }
0x28b2   : > { %v9959_v5 = vpack.i.bf16 %v7371_v2, %v7368_v20  ;;  %9955 = vrot.lane.b32.xlu1 %v9954_v45, %s13682_s23 }
0x28b3   : > { %v9602_v18 = vpop.f32.mrf.mxu1 }
0x28b4   : > { %9960 = vrot.lane.b32.xlu0 %v9959_v5, %s13682_s23 }
0x28b5   : > { %v7384_v13 = vpop.f32.mrf.mxu1 }
0x28b6   : > { %9970 = vrot.lane.b32.xlu1 %v9969_v55, %s13680_s30 }
0x28b7   : > { %v9603_v42 = vpop.f32.mrf.mxu1 }
0x28b8   : > { %v9979_v59 = vpack.i.bf16 %v9603_v42, %v9602_v18  ;;  %9965 = vrot.lane.b32.xlu0 %v9964_v15, %s13680_s30 }
0x28b9   : > { %v7387_v8 = vpop.f32.mrf.mxu1 }
0x28ba   : > { %v9974_v17 = vpack.i.bf16 %v7387_v8, %v7384_v13  ;;  %9980 = vrot.lane.b32.xlu1 %v9979_v59, %s13682_s23 }
0x28bc   : > { %9975 = vrot.lane.b32.xlu0 %v9974_v17, %s13682_s23 }
0x28ec   : > { %v9926_v47 = vpop.permute.xlu1 %9925 }
0x28ed   : > { %v9928_v38 = vunpack.i.h.bf16 %v9926_v47  ;;  %v9927_v49 = vunpack.i.l.bf16 %v9926_v47 }
0x28ef   : > { %v7498_v34 = vsel %vm1208_vm2, %v13203_v10, %v9928_v38  ;;  %v7497_v19 = vsel %vm1208_vm2, %v13199_v3, %v9927_v49 }
0x28f0   : > { %v9931_v35 = vpop.permute.xlu1 %9930 }
0x28f1   : > { %v9933_v1 = vunpack.i.h.bf16 %v9931_v35  ;;  %v9932_v26 = vunpack.i.l.bf16 %v9931_v35 }
0x28f3   : > { %v7496_v31 = vsel %vm1208_vm2, %v13205_v12, %v9933_v1  ;;  %v7495_v60 = vsel %vm1208_vm2, %v13201_v62, %v9932_v26 }
0x28f4   : > { %v9936_v46 = vpop.permute.xlu1 %9935 }
0x28f5   : > { %v9938_v12 = vunpack.i.h.bf16 %v9936_v46  ;;  %v9937_v37 = vunpack.i.l.bf16 %v9936_v46 }
0x28f6   : > { %v9941_v7 = vpop.permute.xlu0 %9940 }
0x28f7   : > { %v9943_v52 = vunpack.i.h.bf16 %v9941_v7  ;;  %v9942_v58 = vunpack.i.l.bf16 %v9941_v7  ;;  %v7502_v59 = vsel %vm1208_vm2, %v13211_v51, %v9938_v12  ;;  %v7501_v8 = vsel %vm1208_vm2, %v13207_v11, %v9937_v37 }
0x28f9   : > { %v7500_v17 = vsel %vm1208_vm2, %v13213_v24, %v9943_v52  ;;  %v7499_v47 = vsel %vm1208_vm2, %v13209_v53, %v9942_v58 }
0x2914   : > { %v9946_v63 = vpop.permute.xlu1 %9945 }
0x2915   : > { %v9948_v33 = vunpack.i.h.bf16 %v9946_v63  ;;  %v9947_v9 = vunpack.i.l.bf16 %v9946_v63 }
0x2916   : > { %v9951_v39 = vpop.permute.xlu0 %9950 }
0x2917   : > { %v9953_v0 = vunpack.i.h.bf16 %v9951_v39  ;;  %v9952_v40 = vunpack.i.l.bf16 %v9951_v39  ;;  %v7505_v56 = vsel %vm841_vm0, %v7497_v19, %v9947_v9  ;;  %v7506_v32 = vsel %vm841_vm0, %v7498_v34, %v9948_v33  ;;  %v8676_v9 = vld [vmem:[%s13703_s9 + $0x1] ss:$0 sm:$0xff]  ;;  %s13712_s9 = sld [smem:[#allocation20_spill]] }
0x2919   : > { %v7503_v28 = vsel %vm841_vm0, %v7495_v60, %v9952_v40  ;;  %v7504_v10 = vsel %vm841_vm0, %v7496_v31, %v9953_v0 }
0x2924   : > { %v9956_v22 = vpop.permute.xlu1 %9955 }
0x2925   : > { %v9958_v44 = vunpack.i.h.bf16 %v9956_v22  ;;  %v9957_v29 = vunpack.i.l.bf16 %v9956_v22 }
0x2926   : > { %v9961_v30 = vpop.permute.xlu0 %9960 }
0x2927   : > { %v9963_v25 = vunpack.i.h.bf16 %v9961_v30  ;;  %v9962_v16 = vunpack.i.l.bf16 %v9961_v30  ;;  %v7513_v21 = vsel %vm2454_vm4, %v7505_v56, %v9957_v29  ;;  %v7514_v3 = vsel %vm2454_vm4, %v7506_v32, %v9958_v44 }
0x2928   : > { %v9971_v6 = vpop.permute.xlu1 %9970  ;;  %v7520_v45 = vpack.c.bf16 %v7514_v3, %v7513_v21 }
0x2929   : > { %v7511_v23 = vsel %vm2454_vm4, %v7503_v28, %v9962_v16  ;;  %v7512_v62 = vsel %vm2454_vm4, %v7504_v10, %v9963_v25  ;;  %v9973_v2 = vunpack.i.h.bf16 %v9971_v6  ;;  %v9972_v5 = vunpack.i.l.bf16 %v9971_v6 }
0x292a   : > { %v7519_v20 = vpack.c.bf16 %v7512_v62, %v7511_v23  ;;  %v9966_v50 = vpop.permute.xlu0 %9965 }
0x292b   : > { %v9968_v18 = vunpack.i.h.bf16 %v9966_v50  ;;  %v9967_v55 = vunpack.i.l.bf16 %v9966_v50  ;;  %v7509_v46 = vsel %vm841_vm0, %v7501_v8, %v9972_v5  ;;  %v7510_v7 = vsel %vm841_vm0, %v7502_v59, %v9973_v2 }
0x292c   : > { %v9981_v13 = vpop.permute.xlu1 %9980  ;;  %9608 = vmatprep.mubr.msk.bf16.mxu0 %vm940_vm1, %v7519_v20 }
0x292d   : > { %v9983_v15 = vunpack.i.h.bf16 %v9981_v13  ;;  %v9982_v42 = vunpack.i.l.bf16 %v9981_v13  ;;  %9609 = vmatmul.mubr.msk.bf16.vlgmr.msra.gmra.mxu0 %vm940_vm1, %v7520_v45  ;;  %v7508_v38 = vsel %vm841_vm0, %v7500_v17, %v9968_v18  ;;  %v7507_v51 = vsel %vm841_vm0, %v7499_v47, %v9967_v55 }
0x292e   : > { %v9976_v35 = vpop.permute.xlu0 %9975 }
0x292f   : > { %v9978_v63 = vunpack.i.h.bf16 %v9976_v35  ;;  %v9977_v39 = vunpack.i.l.bf16 %v9976_v35  ;;  %v7517_v49 = vsel %vm2454_vm4, %v7509_v46, %v9982_v42  ;;  %v7518_v11 = vsel %vm2454_vm4, %v7510_v7, %v9983_v15 }
0x2930   : > { %v7522_v26 = vpack.c.bf16 %v7518_v11, %v7517_v49 }
0x2931   : > { %v7516_v24 = vsel %vm2454_vm4, %v7508_v38, %v9978_v63  ;;  %v7515_v1 = vsel %vm2454_vm4, %v7507_v51, %v9977_v39 }
0x2932   : > { %v7521_v53 = vpack.c.bf16 %v7516_v24, %v7515_v1 }
0x2934   : > { %9612 = vmatprep.mubr.msk.bf16.mxu0 %vm940_vm1, %v7521_v53 }
0x2935   : > { %9613 = vmatmul.mubr.msk.bf16.gmra.mxu0 %vm940_vm1, %v7522_v26 }
0x29ed   : > { %v9610_v33 = vpop.f32.mrf.mxu0 }
0x29ee   : > { %v7596_v40 = vadd.f32 %v9610_v33, %v8676_v9 }
0x29ef   : > { %v7587_v0 = vpop.f32.mrf.mxu0 }
0x29f0   : > { %v7588_v22 = vadd.f32 %v8676_v9, %v7587_v0  ;;  %v13276_v19 = vadd.f32 %v7596_v40, %v12765_v41 }
0x29f1   : > { %v9611_v44 = vpop.f32.mrf.mxu0 }
0x29f2   : > { %v13273_v29 = vadd.f32 %v7588_v22, %v12759_v43  ;;  %v7599_v31 = vadd.f32 %v9611_v44, %v8676_v9  ;;  %v7632_v41 = vsel %vm940_vm1, %v13276_v19, 0.0 }
0x29f3   : > { %v7590_v34 = vpop.f32.mrf.mxu0 }
0x29f4   : > { %v7591_v60 = vadd.f32 %v8676_v9, %v7590_v34  ;;  %v7626_v30 = vsel %vm940_vm1, %v13273_v29, 0.0  ;;  %v13284_v16 = vadd.f32 %v7599_v31, %v12756_v27 }
0x29f5   : > { %v9614_v56 = vpop.f32.mrf.mxu0  ;;  %7627 = vadd.xlane.f32.xlu0 %v7626_v30 }
0x29f6   : > { %v13281_v32 = vadd.f32 %v7591_v60, %v12762_v48  ;;  %v7612_v21 = vadd.f32 %v9614_v56, %v8676_v9  ;;  %v7635_v27 = vsel %vm940_vm1, %v13284_v16, 0.0 }
0x29f7   : > { %v7603_v25 = vpop.f32.mrf.mxu0 }
0x29f8   : > { %v7604_v43 = vadd.f32 %v8676_v9, %v7603_v25  ;;  %v7629_v28 = vsel %vm940_vm1, %v13281_v32, 0.0  ;;  %v13299_v62 = vadd.f32 %v7612_v21, %v12783_v61  ;;  %v10015_v25 = vld [vmem:[%s13704_s17 + $0x18] sm:$0xff]  }
0x29f9   : > { %v9615_v10 = vpop.f32.mrf.mxu0  ;;  %7630 = vadd.xlane.f32.xlu1 %v7629_v28  ;;  %7633 = vadd.xlane.f32.xlu0 %v7632_v41 }
0x29fa   : > { %v13291_v6 = vadd.f32 %v7604_v43, %v12777_v36  ;;  %v7615_v48 = vadd.f32 %v9615_v10, %v8676_v9  ;;  %9616 = vmatprep.subr.bf16.mxu1 %v10015_v25  ;;  %v10016_v43 = vld [vmem:[%s13704_s17 + $0x10] sm:$0xff]   ;;  %s13715_s17 = sld [smem:[#allocation22_spill]] }
0x29fb   : > { %v7606_v3 = vpop.f32.mrf.mxu0  ;;  %9617 = vmatpush3.bf16.msra.mxu1 %v10015_v25 }
0x29fc   : > { %v7607_v12 = vadd.f32 %v8676_v9, %v7606_v3  ;;  %v13302_v37 = vadd.f32 %v7615_v48, %v12774_v14  ;;  %v7638_v36 = vsel %vm940_vm1, %v13291_v6, 0.0  ;;  %9618 = vmatprep.subr.bf16.mxu1 %v10016_v43 }
0x29fd   : > { %7636 = vadd.xlane.f32.xlu0 %v7635_v27 }
0x29fe   : > { %v13296_v23 = vadd.f32 %v7607_v12, %v12780_v4  ;;  %v7647_v58 = vsel %vm940_vm1, %v13302_v37, 0.0  ;;  %v7644_v4 = vsel %vm940_vm1, %v13299_v62, 0.0 }
0x29ff   : > { %9619 = vmatpush3.bf16.msra.mxu1 %v10016_v43 }
0x2a00   : > { %v7641_v52 = vsel %vm940_vm1, %v13296_v23, 0.0 }
0x2a01   : > { %7642 = vadd.xlane.f32.xlu1 %v7641_v52  ;;  %7639 = vadd.xlane.f32.xlu0 %v7638_v36 }
0x2a05   : > { %7648 = vadd.xlane.f32.xlu1 %v7647_v58  ;;  %7645 = vadd.xlane.f32.xlu0 %v7644_v4 }
0x2a7e   : > { %v7628_v61 = vpop.xlane.xlu0 %7627 }
0x2a7f   : > { %v7650_v20 = vmul.f32 0.03125, %v7628_v61 }
0x2a81   : > { %v13313_v14 = vsub.f32 %v13273_v29, %v7650_v20 }
0x2a82   : > { %v7631_v50 = vpop.xlane.xlu1 %7630  ;;  %v7634_v45 = vpop.xlane.xlu0 %7633 }
0x2a83   : > { %v7651_v2 = vmul.f32 0.03125, %v7631_v50  ;;  %v7652_v5 = vmul.f32 0.03125, %v7634_v45  ;;  %v7666_v18 = vmul.f32 %v13313_v14, %v13313_v14 }
0x2a85   : > { %v13318_v55 = vsub.f32 %v13281_v32, %v7651_v2  ;;  %v13321_v13 = vsub.f32 %v13276_v19, %v7652_v5  ;;  %v7674_v15 = vsel %vm940_vm1, %v7666_v18, 0.0 }
0x2a86   : > { %7675 = vadd.xlane.f32.xlu0 %v7674_v15  ;;  %v7637_v42 = vpop.xlane.xlu0 %7636 }
0x2a87   : > { %v7653_v59 = vmul.f32 0.03125, %v7637_v42  ;;  %v7667_v8 = vmul.f32 %v13318_v55, %v13318_v55  ;;  %v7668_v17 = vmul.f32 %v13321_v13, %v13321_v13 }
0x2a89   : > { %v13329_v47 = vsub.f32 %v13284_v16, %v7653_v59  ;;  %v7677_v35 = vsel %vm940_vm1, %v7667_v8, 0.0  ;;  %v7680_v46 = vsel %vm940_vm1, %v7668_v17, 0.0  ;;  %v13705_v17 = vsub.s32 4, %v10956_v57 }
0x2a8a   : > { %7678 = vadd.xlane.f32.xlu1 %v7677_v35  ;;  %v7643_v7 = vpop.xlane.xlu1 %7642  ;;  %7681 = vadd.xlane.f32.xlu0 %v7680_v46  ;;  %v7640_v63 = vpop.xlane.xlu0 %7639  ;;  %v13706_v35 = vld [vmem:[#allocation6_spill] sm:$0xff] }
0x2a8b   : > { %v7655_v39 = vmul.f32 0.03125, %v7643_v7  ;;  %v7654_v38 = vmul.f32 0.03125, %v7640_v63  ;;  %v7669_v51 = vmul.f32 %v13329_v47, %v13329_v47  ;;  %v7733_v46 = vrot.slane %v13706_v35, %v13705_v17 }
0x2a8d   : > { %v13336_v49 = vsub.f32 %v13296_v23, %v7655_v39  ;;  %v13339_v11 = vsub.f32 %v13291_v6, %v7654_v38  ;;  %v7683_v24 = vsel %vm940_vm1, %v7669_v51, 0.0 }
0x2a8e   : > { %v7649_v1 = vpop.xlane.xlu1 %7648  ;;  %7684 = vadd.xlane.f32.xlu1 %v7683_v24  ;;  %v7646_v53 = vpop.xlane.xlu0 %7645  ;;  %v13707_v24 = vsub.s32 3, %v10956_v57 }
0x2a8f   : > { %v7657_v26 = vmul.f32 0.03125, %v7649_v1  ;;  %v7656_v33 = vmul.f32 0.03125, %v7646_v53  ;;  %v7671_v9 = vmul.f32 %v13336_v49, %v13336_v49  ;;  %v7670_v0 = vmul.f32 %v13339_v11, %v13339_v11 }
0x2a90   : > { %v7745_v1 = vrot.slane %v12241_v54, %v13707_v24 }
0x2a91   : > { %v13347_v40 = vsub.f32 %v13302_v37, %v7657_v26  ;;  %v13350_v22 = vsub.f32 %v13299_v62, %v7656_v33  ;;  %v7689_v44 = vsel %vm940_vm1, %v7671_v9, 0.0  ;;  %v7686_v34 = vsel %vm940_vm1, %v7670_v0, 0.0 }
0x2a92   : > { %7690 = vadd.xlane.f32.xlu1 %v7689_v44  ;;  %7687 = vadd.xlane.f32.xlu0 %v7686_v34 }
0x2a93   : > { %v7673_v31 = vmul.f32 %v13347_v40, %v13347_v40  ;;  %v7672_v60 = vmul.f32 %v13350_v22, %v13350_v22 }
0x2a95   : > { %v7695_v30 = vsel %vm940_vm1, %v7673_v31, 0.0  ;;  %v7692_v56 = vsel %vm940_vm1, %v7672_v60, 0.0 }
0x2a96   : > { %7696 = vadd.xlane.f32.xlu1 %v7695_v30  ;;  %7693 = vadd.xlane.f32.xlu0 %v7692_v56 }
0x2b0f   : > { %v7676_v28 = vpop.xlane.xlu0 %7675 }
0x2b10   : > { %v7698_v41 = vmul.f32 0.03125, %v7676_v28 }
0x2b12   : > { %v7706_v10 = vadd.f32 1e-06, %v7698_v41 }
0x2b13   : > { %v7679_v21 = vpop.xlane.xlu1 %7678  ;;  %v7682_v3 = vpop.xlane.xlu0 %7681 }
0x2b14   : > { %10603 = vrsqrt.f32 %v7706_v10  ;;  %v7699_v48 = vmul.f32 0.03125, %v7679_v21  ;;  %v7700_v12 = vmul.f32 0.03125, %v7682_v3 }
0x2b16   : > { %v7707_v27 = vadd.f32 1e-06, %v7699_v48  ;;  %v7708_v52 = vadd.f32 1e-06, %v7700_v12 }
0x2b17   : > { %v7685_v36 = vpop.xlane.xlu1 %7684 }
0x2b18   : > { %10605 = vrsqrt.f32 %v7707_v27  ;;  %v7701_v58 = vmul.f32 0.03125, %v7685_v36 }
0x2b19   : > { %10607 = vrsqrt.f32 %v7708_v52 }
0x2b1a   : > { %v7709_v4 = vadd.f32 1e-06, %v7701_v58 }
0x2b1b   : > { %v7691_v61 = vpop.xlane.xlu1 %7690  ;;  %v7688_v20 = vpop.xlane.xlu0 %7687 }
0x2b1c   : > { %10609 = vrsqrt.f32 %v7709_v4  ;;  %v7703_v50 = vmul.f32 0.03125, %v7691_v61  ;;  %v7702_v45 = vmul.f32 0.03125, %v7688_v20  ;;  %v10019_v20 = vld [vmem:[%s13581_s20 + $0x68] sm:$0xff]  }
0x2b1e   : > { %v7711_v2 = vadd.f32 1e-06, %v7703_v50  ;;  %v7710_v5 = vadd.f32 1e-06, %v7702_v45  ;;  %v10020_v50 = vld [vmem:[%s13581_s20 + $0x60] sm:$0xff]   ;;  %v10021_v45 = vld [vmem:[%s13581_s20 + $0x58] sm:$0xff]  }
0x2b1f   : > { %v7697_v18 = vpop.xlane.xlu1 %7696  ;;  %v7694_v15 = vpop.xlane.xlu0 %7693 }
0x2b20   : > { %10611 = vrsqrt.f32 %v7711_v2  ;;  %v7705_v42 = vmul.f32 0.03125, %v7697_v18  ;;  %v7704_v59 = vmul.f32 0.03125, %v7694_v15  ;;  %v10022_v2 = vld [vmem:[%s13581_s20 + $0x50] sm:$0xff]   ;;  %v10024_v18 = vld [vmem:[%s13581_s20 + $0x40] sm:$0xff]  }
0x2b21   : > { %v10604_v8 = vpop.eup %10603  ;;  %10613 = vrsqrt.f32 %v7710_v5  ;;  %v10023_v5 = vld [vmem:[%s13581_s20 + $0x48] sm:$0xff]   ;;  %v8688_v15 = vld [vmem:[%s13580_s19 + $0x1] ss:$0 sm:$0xff] }
0x2b22   : > { %v7713_v7 = vadd.f32 1e-06, %v7705_v42  ;;  %v7712_v63 = vadd.f32 1e-06, %v7704_v59  ;;  %v7722_v39 = vmul.f32 %v10604_v8, %v13313_v14 }
0x2b24   : > { %10615 = vrsqrt.f32 %v7713_v7  ;;  %v7734_v26 = vmul.f32 %v7733_v46, %v7722_v39 }
0x2b25   : > { %v10606_v38 = vpop.eup %10605  ;;  %10617 = vrsqrt.f32 %v7712_v63 }
0x2b26   : > { %v10608_v51 = vpop.eup %10607  ;;  %v7723_v53 = vmul.f32 %v10606_v38, %v13318_v55  ;;  %v7746_v31 = vadd.f32 %v7745_v1, %v7734_v26 }
0x2b27   : > { %v7724_v33 = vmul.f32 %v10608_v51, %v13321_v13 }
0x2b28   : > { %v7735_v9 = vmul.f32 %v7733_v46, %v7723_v53 }
0x2b29   : > { %v10610_v0 = vpop.eup %10609  ;;  %v7736_v44 = vmul.f32 %v7733_v46, %v7724_v33 }
0x2b2a   : > { %v7725_v34 = vmul.f32 %v10610_v0, %v13329_v47  ;;  %v7747_v14 = vadd.f32 %v7745_v1, %v7735_v9 }
0x2b2b   : > { %v7748_v43 = vadd.f32 %v7745_v1, %v7736_v44 }
0x2b2c   : > { %v7737_v60 = vmul.f32 %v7733_v46, %v7725_v34  ;;  %v7754_v30 = vpack.c.bf16 %v7747_v14, %v7746_v31 }
0x2b2d   : > { %v10612_v56 = vpop.eup %10611 }
0x2b2e   : > { %v10614_v25 = vpop.eup %10613  ;;  %v7749_v28 = vadd.f32 %v7745_v1, %v7737_v60  ;;  %9620 = vmatprep.mubr.msk.bf16.mxu1 %vm940_vm1, %v7754_v30  ;;  %v7727_v55 = vmul.f32 %v10612_v56, %v13336_v49 }
0x2b2f   : > { %v7726_v41 = vmul.f32 %v10614_v25, %v13339_v11 }
0x2b30   : > { %v7755_v13 = vpack.c.bf16 %v7749_v28, %v7748_v43  ;;  %v7739_v10 = vmul.f32 %v7733_v46, %v7727_v55 }
0x2b31   : > { %v10616_v21 = vpop.eup %10615  ;;  %v7738_v3 = vmul.f32 %v7733_v46, %v7726_v41 }
0x2b32   : > { %v10618_v48 = vpop.eup %10617  ;;  %v7729_v47 = vmul.f32 %v10616_v21, %v13347_v40  ;;  %9621 = vmatmul.mubr.msk.bf16.vlgmr.msra.gmra.mxu1 %vm940_vm1, %v7755_v13  ;;  %v7751_v12 = vadd.f32 %v7745_v1, %v7739_v10  ;;  %v10017_v40 = vld [vmem:[%s13581_s20 + $0x78] sm:$0xff]  }
0x2b33   : > { %v7728_v27 = vmul.f32 %v10618_v48, %v13350_v22  ;;  %v7750_v52 = vadd.f32 %v7745_v1, %v7738_v3  ;;  %9628 = vmatprep.subr.bf16.mxu0 %v10017_v40  ;;  %v10018_v22 = vld [vmem:[%s13581_s20 + $0x70] sm:$0xff]  }
0x2b34   : > { %v7741_v36 = vmul.f32 %v7733_v46, %v7729_v47  ;;  %9629 = vmatpush3.bf16.msra.mxu0 %v10017_v40 }
0x2b35   : > { %v7756_v58 = vpack.c.bf16 %v7751_v12, %v7750_v52  ;;  %v7740_v4 = vmul.f32 %v7733_v46, %v7728_v27  ;;  %9630 = vmatprep.subr.bf16.mxu0 %v10018_v22 }
0x2b36   : > { %v7753_v61 = vadd.f32 %v7745_v1, %v7741_v36 }
0x2b37   : > { %9624 = vmatprep.mubr.msk.bf16.mxu1 %vm940_vm1, %v7756_v58  ;;  %v7752_v49 = vadd.f32 %v7745_v1, %v7740_v4 }
0x2b38   : > { %9631 = vmatpush3.bf16.msra.mxu0 %v10018_v22 }
0x2b39   : > { %v7757_v11 = vpack.c.bf16 %v7753_v61, %v7752_v49  ;;  %9632 = vmatprep.subr.bf16.mxu0 %v10019_v20 }
0x2b3b   : > { %9625 = vmatmul.mubr.msk.bf16.gmra.mxu1 %vm940_vm1, %v7757_v11 }
0x2b3c   : > { %9633 = vmatpush3.bf16.msra.mxu0 %v10019_v20 }
0x2b3d   : > { %9634 = vmatprep.subr.bf16.mxu0 %v10020_v50 }
0x2b40   : > { %9635 = vmatpush3.bf16.msra.mxu0 %v10020_v50 }
0x2b41   : > { %9636 = vmatprep.subr.bf16.mxu0 %v10021_v45 }
0x2b44   : > { %9637 = vmatpush3.bf16.msra.mxu0 %v10021_v45 }
0x2b45   : > { %9638 = vmatprep.subr.bf16.mxu0 %v10022_v2 }
0x2b48   : > { %9639 = vmatpush3.bf16.msra.mxu0 %v10022_v2 }
0x2b49   : > { %9640 = vmatprep.subr.bf16.mxu0 %v10023_v5 }
0x2b4c   : > { %9641 = vmatpush3.bf16.msra.mxu0 %v10023_v5 }
0x2b4d   : > { %9642 = vmatprep.subr.bf16.mxu0 %v10024_v18 }
0x2b50   : > { %9643 = vmatpush3.bf16.msra.mxu0 %v10024_v18 }
0x2bf2   : > { %v9622_v42 = vpop.f32.mrf.mxu1 }
0x2bf3   : > { %v13411_v59 = vadd.f32 %v9622_v42, %v8688_v15 }
0x2bf4   : > { %v7829_v8 = vpop.f32.mrf.mxu1 }
0x2bf5   : > { %v7862_v17 = vmul.f32 %v13411_v59, %v13411_v59  ;;  %v13415_v35 = vadd.f32 %v8688_v15, %v7829_v8 }
0x2bf6   : > { %v9623_v46 = vpop.f32.mrf.mxu1 }
0x2bf7   : > { %v7870_v7 = vmul.f32 %v7862_v17, %v13411_v59  ;;  %v7860_v63 = vmul.f32 %v13415_v35, %v13415_v35  ;;  %v13420_v39 = vadd.f32 %v9623_v46, %v8688_v15 }
0x2bf8   : > { %v7832_v38 = vpop.f32.mrf.mxu1 }
0x2bf9   : > { %v7878_v51 = vmul.f32 0.044715, %v7870_v7  ;;  %v7868_v24 = vmul.f32 %v7860_v63, %v13415_v35  ;;  %v7863_v1 = vmul.f32 %v13420_v39, %v13420_v39  ;;  %v13425_v53 = vadd.f32 %v8688_v15, %v7832_v38 }
0x2bfb   : > { %v7886_v26 = vadd.f32 %v7878_v51, %v13411_v59  ;;  %v7876_v33 = vmul.f32 0.044715, %v7868_v24  ;;  %v7871_v9 = vmul.f32 %v7863_v1, %v13420_v39  ;;  %v7861_v0 = vmul.f32 %v13425_v53, %v13425_v53  ;;  %v9626_v44 = vpop.f32.mrf.mxu1 }
0x2bfc   : > { %v13431_v34 = vadd.f32 %v9626_v44, %v8688_v15 }
0x2bfd   : > { %v7894_v31 = vmul.f32 0.7978846, %v7886_v26  ;;  %v7884_v14 = vadd.f32 %v7876_v33, %v13415_v35  ;;  %v7879_v60 = vmul.f32 0.044715, %v7871_v9  ;;  %v7869_v30 = vmul.f32 %v7861_v0, %v13425_v53  ;;  %v7845_v56 = vpop.f32.mrf.mxu1 }
0x2bfe   : > { %v7866_v25 = vmul.f32 %v13431_v34, %v13431_v34  ;;  %v13437_v43 = vadd.f32 %v8688_v15, %v7845_v56 }
0x2bff   : > { %v7892_v28 = vmul.f32 0.7978846, %v7884_v14  ;;  %v7887_v55 = vadd.f32 %v7879_v60, %v13420_v39  ;;  %v7877_v41 = vmul.f32 0.044715, %v7869_v30  ;;  %v9627_v13 = vpop.f32.mrf.mxu1  ;;  %10619 = vtanh.f32 %v7894_v31 }
0x2c00   : > { %v7874_v10 = vmul.f32 %v7866_v25, %v13431_v34  ;;  %v7864_v21 = vmul.f32 %v13437_v43, %v13437_v43  ;;  %v7857_v3 = vadd.f32 %v9627_v13, %v8688_v15 }
0x2c01   : > { %10621 = vtanh.f32 %v7892_v28  ;;  %v7895_v48 = vmul.f32 0.7978846, %v7887_v55  ;;  %v7885_v47 = vadd.f32 %v7877_v41, %v13425_v53  ;;  %v7848_v12 = vpop.f32.mrf.mxu1 }
0x2c02   : > { %v7882_v27 = vmul.f32 0.044715, %v7874_v10  ;;  %v7872_v52 = vmul.f32 %v7864_v21, %v13437_v43  ;;  %v7867_v36 = vmul.f32 %v7857_v3, %v7857_v3  ;;  %v7849_v58 = vadd.f32 %v8688_v15, %v7848_v12 }
0x2c03   : > { %10623 = vtanh.f32 %v7895_v48  ;;  %v7893_v4 = vmul.f32 0.7978846, %v7885_v47 }
0x2c04   : > { %v7890_v61 = vadd.f32 %v7882_v27, %v13431_v34  ;;  %v7880_v49 = vmul.f32 0.044715, %v7872_v52  ;;  %v7875_v11 = vmul.f32 %v7867_v36, %v7857_v3  ;;  %v7865_v40 = vmul.f32 %v7849_v58, %v7849_v58 }
0x2c05   : > { %10625 = vtanh.f32 %v7893_v4 }
0x2c06   : > { %v7898_v22 = vmul.f32 0.7978846, %v7890_v61  ;;  %v7888_v20 = vadd.f32 %v7880_v49, %v13437_v43  ;;  %v7883_v50 = vmul.f32 0.044715, %v7875_v11  ;;  %v7873_v45 = vmul.f32 %v7865_v40, %v7849_v58  ;;  %v8712_v61 = vld [vmem:[%s13582_s21 + $0x1] ss:$0 sm:$0xff] }
0x2c07   : > { %v13708_v40 = vsub.s32 5, %v10956_v57 }
0x2c08   : > { %v7896_v2 = vmul.f32 0.7978846, %v7888_v20  ;;  %v7891_v5 = vadd.f32 %v7883_v50, %v7857_v3  ;;  %v7881_v18 = vmul.f32 0.044715, %v7873_v45  ;;  %10627 = vtanh.f32 %v7898_v22 }
0x2c09   : > { %v8077_v22 = vrot.slane %v12241_v54, %v13708_v40 }
0x2c0a   : > { %10629 = vtanh.f32 %v7896_v2  ;;  %v7899_v42 = vmul.f32 0.7978846, %v7891_v5  ;;  %v7889_v15 = vadd.f32 %v7881_v18, %v7849_v58 }
0x2c0c   : > { %10631 = vtanh.f32 %v7899_v42  ;;  %v7897_v8 = vmul.f32 0.7978846, %v7889_v15  ;;  %v10620_v17 = vpop.eup %10619 }
0x2c0d   : > { %v7910_v38 = vadd.f32 1.0, %v10620_v17 }
0x2c0e   : > { %v10622_v46 = vpop.eup %10621  ;;  %10633 = vtanh.f32 %v7897_v8 }
0x2c0f   : > { %v7908_v7 = vadd.f32 1.0, %v10622_v46  ;;  %v7918_v9 = vmul.f32 0.5, %v7910_v38 }
0x2c10   : > { %v10624_v63 = vpop.eup %10623 }
0x2c11   : > { %v7911_v51 = vadd.f32 1.0, %v10624_v63  ;;  %v7916_v33 = vmul.f32 0.5, %v7908_v7  ;;  %v7926_v56 = vmul.f32 %v7918_v9, %v13411_v59 }
0x2c12   : > { %v10626_v24 = vpop.eup %10625 }
0x2c13   : > { %v7919_v1 = vmul.f32 0.5, %v7911_v51  ;;  %v7909_v26 = vadd.f32 1.0, %v10626_v24  ;;  %v7924_v60 = vmul.f32 %v7916_v33, %v13415_v35 }
0x2c15   : > { %v7917_v0 = vmul.f32 0.5, %v7909_v26  ;;  %v10628_v44 = vpop.eup %10627  ;;  %v7927_v31 = vmul.f32 %v7919_v1, %v13420_v39 }
0x2c16   : > { %v7914_v55 = vadd.f32 1.0, %v10628_v44 }
0x2c17   : > { %v10630_v14 = vpop.eup %10629  ;;  %v7925_v30 = vmul.f32 %v7917_v0, %v13425_v53  ;;  %v7933_v13 = vpack.c.bf16 %v7927_v31, %v7926_v56 }
0x2c18   : > { %v7912_v25 = vadd.f32 1.0, %v10630_v14  ;;  %v7922_v39 = vmul.f32 0.5, %v7914_v55 }
0x2c19   : > { %v10632_v28 = vpop.eup %10631  ;;  %v7932_v41 = vpack.c.bf16 %v7925_v30, %v7924_v60 }
0x2c1a   : > { %v7915_v10 = vadd.f32 1.0, %v10632_v28  ;;  %v7920_v12 = vmul.f32 0.5, %v7912_v25  ;;  %v7930_v59 = vmul.f32 %v7922_v39, %v13431_v34 }
0x2c1b   : > { %v10634_v21 = vpop.eup %10633  ;;  %9644 = vmatprep.mubr.bf16.mxu0 %v7932_v41 }
0x2c1c   : > { %v7923_v48 = vmul.f32 0.5, %v7915_v10  ;;  %9645 = vmatmul.mubr.bf16.vlgmr.msra.gmra.mxu0 %v7933_v13  ;;  %v7913_v47 = vadd.f32 1.0, %v10634_v21  ;;  %v7928_v35 = vmul.f32 %v7920_v12, %v13437_v43 }
0x2c1e   : > { %v7921_v27 = vmul.f32 0.5, %v7913_v47  ;;  %v7931_v52 = vmul.f32 %v7923_v48, %v7857_v3 }
0x2c20   : > { %v7929_v53 = vmul.f32 %v7921_v27, %v7849_v58  ;;  %v7935_v4 = vpack.c.bf16 %v7931_v52, %v7930_v59 }
0x2c22   : > { %v7934_v36 = vpack.c.bf16 %v7929_v53, %v7928_v35 }
0x2c24   : > { %9648 = vmatprep.mubr.bf16.mxu0 %v7934_v36 }
0x2c25   : > { %9649 = vmatmul.mubr.bf16.gmra.mxu0 %v7935_v4 }
0x2cdc   : > { %v9646_v49 = vpop.f32.mrf.mxu0 }
0x2cdd   : > { %v8052_v11 = vadd.f32 %v9646_v49, %v8712_v61 }
0x2cde   : > { %v8043_v3 = vpop.f32.mrf.mxu0 }
0x2cdf   : > { %v8044_v20 = vadd.f32 %v8712_v61, %v8043_v3  ;;  %v8080_v58 = vmul.f32 %v8077_v22, %v8052_v11 }
0x2ce0   : > { %v9647_v43 = vpop.f32.mrf.mxu0 }
0x2ce1   : > { %v8078_v50 = vmul.f32 %v8077_v22, %v8044_v20  ;;  %v8055_v34 = vadd.f32 %v9647_v43, %v8712_v61  ;;  %v8088_v17 = vadd.f32 %v8080_v58, %v13276_v19 }
0x2ce2   : > { %v8046_v45 = vpop.f32.mrf.mxu0 }
0x2ce3   : > { %v8047_v2 = vadd.f32 %v8712_v61, %v8046_v45  ;;  %v8086_v5 = vadd.f32 %v8078_v50, %v13273_v29  ;;  %v8081_v18 = vmul.f32 %v8077_v22, %v8055_v34  ;;  %v8109_v51 = vsel %vm940_vm1, %v8088_v17, 0.0 }
0x2ce5   : > { %v8079_v42 = vmul.f32 %v8077_v22, %v8047_v2  ;;  %v9650_v15 = vpop.f32.mrf.mxu0  ;;  %v8103_v8 = vsel %vm940_vm1, %v8086_v5, 0.0  ;;  %v8089_v29 = vadd.f32 %v8081_v18, %v13284_v16 }
0x2ce6   : > { %v8068_v57 = vadd.f32 %v9650_v15, %v8712_v61  ;;  %8104 = vadd.xlane.f32.xlu0 %v8103_v8 }
0x2ce7   : > { %v8059_v54 = vpop.f32.mrf.mxu0  ;;  %v8087_v46 = vadd.f32 %v8079_v42, %v13281_v32  ;;  %v8112_v0 = vsel %vm940_vm1, %v8089_v29, 0.0 }
0x2ce8   : > { %v8060_v7 = vadd.f32 %v8712_v61, %v8059_v54  ;;  %v8084_v24 = vmul.f32 %v8077_v22, %v8068_v57  ;;  %v10025_v57 = vld [vmem:[%s13710_s2 + $0x8] sm:$0xff]   ;;  %v10026_v54 = vld [vmem:[%s13710_s2] sm:$0xff]  }
0x2ce9   : > { %v9651_v63 = vpop.f32.mrf.mxu0  ;;  %v8106_v38 = vsel %vm940_vm1, %v8087_v46, 0.0  ;;  %9652 = vmatprep.subr.bf16.mxu1 %v10025_v57 }
0x2cea   : > { %v8082_v1 = vmul.f32 %v8077_v22, %v8060_v7  ;;  %v8071_v26 = vadd.f32 %v9651_v63, %v8712_v61  ;;  %8107 = vadd.xlane.f32.xlu1 %v8106_v38  ;;  %8110 = vadd.xlane.f32.xlu0 %v8109_v51  ;;  %v8092_v14 = vadd.f32 %v8084_v24, %v13299_v62 }
0x2ceb   : > { %v8062_v33 = vpop.f32.mrf.mxu0  ;;  %9653 = vmatpush3.bf16.msra.mxu1 %v10025_v57 }
0x2cec   : > { %v8063_v19 = vadd.f32 %v8712_v61, %v8062_v33  ;;  %v8090_v9 = vadd.f32 %v8082_v1, %v13291_v6  ;;  %v8085_v32 = vmul.f32 %v8077_v22, %v8071_v26  ;;  %v8121_v30 = vsel %vm940_vm1, %v8092_v14, 0.0  ;;  %9654 = vmatprep.subr.bf16.mxu1 %v10026_v54  ;;  %v8094_v33 = vld [vmem:[%s13712_s9] sm:$0x3] }
0x2cee   : > { %v8083_v44 = vmul.f32 %v8077_v22, %v8063_v19  ;;  %8113 = vadd.xlane.f32.xlu1 %v8112_v0  ;;  %v8115_v31 = vsel %vm940_vm1, %v8090_v9, 0.0  ;;  %v8093_v56 = vadd.f32 %v8085_v32, %v13302_v37  ;;  %v8721_v19 = vld [vmem:[%s807_s26] ss:$0 sm:$0xff] }
0x2cef   : > { %8116 = vadd.xlane.f32.xlu0 %v8115_v31  ;;  %9655 = vmatpush3.bf16.msra.mxu1 %v10026_v54  ;;  %v8102_v31 = vadd.f32 %v8721_v19, %v8094_v33 }
0x2cf0   : > { %v8091_v16 = vadd.f32 %v8083_v44, %v13296_v23  ;;  %v8124_v6 = vsel %vm940_vm1, %v8093_v56, 0.0 }
0x2cf2   : > { %v8118_v60 = vsel %vm940_vm1, %v8091_v16, 0.0 }
0x2cf3   : > { %8119 = vadd.xlane.f32.xlu1 %v8118_v60  ;;  %8122 = vadd.xlane.f32.xlu0 %v8121_v30 }
0x2cf7   : > { %8125 = vadd.xlane.f32.xlu1 %v8124_v6 }
0x2d6f   : > { %v8105_v25 = vpop.xlane.xlu0 %8104 }
0x2d70   : > { %v8127_v28 = vmul.f32 0.03125, %v8105_v25  ;;  %v8207_v25 = vadd.f32 1.0, %v8102_v31 }
0x2d72   : > { %v13475_v55 = vsub.f32 %v8086_v5, %v8127_v28 }
0x2d73   : > { %v8108_v41 = vpop.xlane.xlu1 %8107  ;;  %v8111_v62 = vpop.xlane.xlu0 %8110 }
0x2d74   : > { %v8128_v13 = vmul.f32 0.03125, %v8108_v41  ;;  %v8129_v10 = vmul.f32 0.03125, %v8111_v62  ;;  %v8143_v23 = vmul.f32 %v13475_v55, %v13475_v55 }
0x2d76   : > { %v13479_v21 = vsub.f32 %v8087_v46, %v8128_v13  ;;  %v13481_v48 = vsub.f32 %v8088_v17, %v8129_v10  ;;  %v8151_v37 = vsel %vm940_vm1, %v8143_v23, 0.0  ;;  %v13713_v23 = vld [vmem:[#allocation4_spill] sm:$0xff] }
0x2d77   : > { %v8114_v47 = vpop.xlane.xlu1 %8113  ;;  %8152 = vadd.xlane.f32.xlu0 %v8151_v37  ;;  %v8211_v37 = vrot.slane %v8207_v25, %v13713_v23 }
0x2d78   : > { %v8130_v12 = vmul.f32 0.03125, %v8114_v47  ;;  %v8117_v39 = vpop.xlane.xlu0 %8116  ;;  %v8144_v27 = vmul.f32 %v13479_v21, %v13479_v21  ;;  %v8145_v52 = vmul.f32 %v13481_v48, %v13481_v48 }
0x2d79   : > { %v8131_v35 = vmul.f32 0.03125, %v8117_v39 }
0x2d7a   : > { %v13488_v53 = vsub.f32 %v8089_v29, %v8130_v12  ;;  %v8154_v59 = vsel %vm940_vm1, %v8144_v27, 0.0  ;;  %v8157_v36 = vsel %vm940_vm1, %v8145_v52, 0.0  ;;  %v13714_v52 = vld [vmem:[#allocation5_spill] sm:$0xff] }
0x2d7b   : > { %v13492_v4 = vsub.f32 %v8090_v9, %v8131_v35  ;;  %8155 = vadd.xlane.f32.xlu1 %v8154_v59  ;;  %8158 = vadd.xlane.f32.xlu0 %v8157_v36  ;;  %v8223_v35 = vrot.slane %v8102_v31, %v13714_v52 }
0x2d7c   : > { %v8120_v61 = vpop.xlane.xlu1 %8119  ;;  %v8123_v49 = vpop.xlane.xlu0 %8122  ;;  %v8146_v11 = vmul.f32 %v13488_v53, %v13488_v53 }
0x2d7d   : > { %v8132_v40 = vmul.f32 0.03125, %v8120_v61  ;;  %v8133_v22 = vmul.f32 0.03125, %v8123_v49  ;;  %v8147_v3 = vmul.f32 %v13492_v4, %v13492_v4 }
0x2d7e   : > { %v8160_v20 = vsel %vm940_vm1, %v8146_v11, 0.0 }
0x2d7f   : > { %v13499_v43 = vsub.f32 %v8091_v16, %v8132_v40  ;;  %v13501_v58 = vsub.f32 %v8092_v14, %v8133_v22  ;;  %8161 = vadd.xlane.f32.xlu1 %v8160_v20  ;;  %v8163_v50 = vsel %vm940_vm1, %v8147_v3, 0.0 }
0x2d80   : > { %v8126_v34 = vpop.xlane.xlu1 %8125  ;;  %8164 = vadd.xlane.f32.xlu0 %v8163_v50 }
0x2d81   : > { %v8134_v45 = vmul.f32 0.03125, %v8126_v34  ;;  %v8148_v2 = vmul.f32 %v13499_v43, %v13499_v43  ;;  %v8149_v5 = vmul.f32 %v13501_v58, %v13501_v58 }
0x2d83   : > { %v13508_v18 = vsub.f32 %v8093_v56, %v8134_v45  ;;  %v8166_v42 = vsel %vm940_vm1, %v8148_v2, 0.0  ;;  %v8169_v15 = vsel %vm940_vm1, %v8149_v5, 0.0 }
0x2d84   : > { %8167 = vadd.xlane.f32.xlu1 %v8166_v42  ;;  %8170 = vadd.xlane.f32.xlu0 %v8169_v15 }
0x2d85   : > { %v8150_v8 = vmul.f32 %v13508_v18, %v13508_v18 }
0x2d87   : > { %v8172_v17 = vsel %vm940_vm1, %v8150_v8, 0.0 }
0x2d88   : > { %8173 = vadd.xlane.f32.xlu1 %v8172_v17 }
0x2e00   : > { %v8153_v46 = vpop.xlane.xlu0 %8152 }
0x2e01   : > { %v8175_v7 = vmul.f32 0.03125, %v8153_v46 }
0x2e03   : > { %v8183_v63 = vadd.f32 1e-06, %v8175_v7 }
0x2e04   : > { %v8156_v38 = vpop.xlane.xlu1 %8155  ;;  %v8159_v51 = vpop.xlane.xlu0 %8158 }
0x2e05   : > { %10635 = vrsqrt.f32 %v8183_v63  ;;  %v8176_v29 = vmul.f32 0.03125, %v8156_v38  ;;  %v8177_v24 = vmul.f32 0.03125, %v8159_v51 }
0x2e07   : > { %v8184_v1 = vadd.f32 1e-06, %v8176_v29  ;;  %v8185_v26 = vadd.f32 1e-06, %v8177_v24 }
0x2e08   : > { %v8162_v9 = vpop.xlane.xlu1 %8161 }
0x2e09   : > { %10637 = vrsqrt.f32 %v8184_v1  ;;  %v8178_v0 = vmul.f32 0.03125, %v8162_v9  ;;  %v8165_v32 = vpop.xlane.xlu0 %8164 }
0x2e0a   : > { %10639 = vrsqrt.f32 %v8185_v26  ;;  %v8179_v44 = vmul.f32 0.03125, %v8165_v32 }
0x2e0b   : > { %v8186_v14 = vadd.f32 1e-06, %v8178_v0 }
0x2e0c   : > { %v8187_v16 = vadd.f32 1e-06, %v8179_v44 }
0x2e0d   : > { %10641 = vrsqrt.f32 %v8186_v14  ;;  %v8168_v60 = vpop.xlane.xlu1 %8167  ;;  %v8171_v30 = vpop.xlane.xlu0 %8170 }
0x2e0e   : > { %10643 = vrsqrt.f32 %v8187_v16  ;;  %v8180_v56 = vmul.f32 0.03125, %v8168_v60  ;;  %v8181_v6 = vmul.f32 0.03125, %v8171_v30 }
0x2e10   : > { %v8188_v28 = vadd.f32 1e-06, %v8180_v56  ;;  %v8189_v41 = vadd.f32 1e-06, %v8181_v6 }
0x2e11   : > { %v8174_v62 = vpop.xlane.xlu1 %8173 }
0x2e12   : > { %v10636_v13 = vpop.eup %10635  ;;  %10645 = vrsqrt.f32 %v8188_v28  ;;  %v8182_v10 = vmul.f32 0.03125, %v8174_v62 }
0x2e13   : > { %10647 = vrsqrt.f32 %v8189_v41  ;;  %v8199_v47 = vmul.f32 %v10636_v13, %v13475_v55 }
0x2e14   : > { %v8190_v12 = vadd.f32 1e-06, %v8182_v10 }
0x2e15   : > { %v8212_v36 = vmul.f32 %v8211_v37, %v8199_v47 }
0x2e16   : > { %v10638_v39 = vpop.eup %10637  ;;  %10649 = vrsqrt.f32 %v8190_v12 }
0x2e17   : > { %v10640_v27 = vpop.eup %10639  ;;  %v8200_v59 = vmul.f32 %v10638_v39, %v13479_v21  ;;  %v8224_v20 = vadd.f32 %v8223_v35, %v8212_v36 }
0x2e18   : > { %v8201_v61 = vmul.f32 %v10640_v27, %v13481_v48 }
0x2e19   : > { %v8213_v49 = vmul.f32 %v8211_v37, %v8200_v59 }
0x2e1a   : > { %v10642_v11 = vpop.eup %10641  ;;  %v8214_v22 = vmul.f32 %v8211_v37, %v8201_v61 }
0x2e1b   : > { %v10644_v40 = vpop.eup %10643  ;;  %v8202_v3 = vmul.f32 %v10642_v11, %v13488_v53  ;;  %v8225_v50 = vadd.f32 %v8223_v35, %v8213_v49 }
0x2e1c   : > { %v8203_v55 = vmul.f32 %v10644_v40, %v13492_v4  ;;  %v8226_v5 = vadd.f32 %v8223_v35, %v8214_v22 }
0x2e1d   : > { %v8215_v34 = vmul.f32 %v8211_v37, %v8202_v3  ;;  %v8232_v45 = vpack.c.bf16 %v8225_v50, %v8224_v20 }
0x2e1e   : > { %v8216_v15 = vmul.f32 %v8211_v37, %v8203_v55 }
0x2e1f   : > { %v10646_v2 = vpop.eup %10645  ;;  %v8227_v42 = vadd.f32 %v8223_v35, %v8215_v34  ;;  %9656 = vmatprep.mubr.msk.bf16.mxu1 %vm940_vm1, %v8232_v45 }
0x2e20   : > { %v10648_v21 = vpop.eup %10647  ;;  %v8204_v48 = vmul.f32 %v10646_v2, %v13499_v43  ;;  %v8228_v54 = vadd.f32 %v8223_v35, %v8216_v15 }
0x2e21   : > { %v8233_v8 = vpack.c.bf16 %v8227_v42, %v8226_v5  ;;  %v8205_v17 = vmul.f32 %v10648_v21, %v13501_v58  ;;  %v8722_v58 = vld [vmem:[%s13715_s17] ss:$0 sm:$0xff] }
0x2e22   : > { %v8217_v53 = vmul.f32 %v8211_v37, %v8204_v48 }
0x2e23   : > { %v10650_v57 = vpop.eup %10649  ;;  %9657 = vmatmul.mubr.msk.bf16.vlgmr.msra.gmra.mxu1 %vm940_vm1, %v8233_v8  ;;  %v8218_v7 = vmul.f32 %v8211_v37, %v8205_v17 }
0x2e24   : > { %v8206_v4 = vmul.f32 %v10650_v57, %v13508_v18  ;;  %v8229_v46 = vadd.f32 %v8223_v35, %v8217_v53 }
0x2e25   : > { %v8230_v51 = vadd.f32 %v8223_v35, %v8218_v7 }
0x2e26   : > { %v8234_v63 = vpack.c.bf16 %v8229_v46, %v8228_v54  ;;  %v8219_v38 = vmul.f32 %v8211_v37, %v8206_v4 }
0x2e28   : > { %9660 = vmatprep.mubr.msk.bf16.mxu1 %vm940_vm1, %v8234_v63  ;;  %v8231_v43 = vadd.f32 %v8223_v35, %v8219_v38 }
0x2e2a   : > { %v8235_v29 = vpack.c.bf16 %v8231_v43, %v8230_v51 }
0x2e2c   : > { %9661 = vmatmul.mubr.msk.bf16.gmra.mxu1 %vm940_vm1, %v8235_v29 }
0x2ee3   : > { %v9658_v18 = vpop.f32.mrf.mxu1 }
0x2ee4   : > { %v8314_v24 = vadd.f32 %v9658_v18, %v8722_v58 }
0x2ee5   : > { %v8305_v1 = vpop.f32.mrf.mxu1 }
0x2ee6   : > { %8338 = vst.msk [vmem:[%s812_s18 + $0x10] sm:$0xff] %vm940_vm1, %v8314_v24  ;;  %v8306_v26 = vadd.f32 %v8722_v58, %v8305_v1 }
0x2ee7   : > { %v9659_v33 = vpop.f32.mrf.mxu1 }
0x2ee8   : > { %8336 = vst.msk [vmem:[%s812_s18] sm:$0xff] %vm940_vm1, %v8306_v26  ;;  %v8317_v19 = vadd.f32 %v9659_v33, %v8722_v58 }
0x2ee9   : > { %v8308_v9 = vpop.f32.mrf.mxu1 }
0x2eea   : > { %8339 = vst.msk [vmem:[%s812_s18 + $0x18] sm:$0xff] %vm940_vm1, %v8317_v19  ;;  %v8309_v0 = vadd.f32 %v8722_v58, %v8308_v9 }
0x2eec   : > { %8337 = vst.msk [vmem:[%s812_s18 + $0x8] sm:$0xff] %vm940_vm1, %v8309_v0  ;;  %v9662_v32 = vpop.f32.mrf.mxu1 }
0x2eed   : > { %v8330_v44 = vadd.f32 %v9662_v32, %v8722_v58 }
0x2eee   : > { %v8321_v31 = vpop.f32.mrf.mxu1 }
0x2eef   : > { %8342 = vst.msk [vmem:[%s812_s18 + $0x30] sm:$0xff] %vm940_vm1, %v8330_v44  ;;  %v8322_v14 = vadd.f32 %v8722_v58, %v8321_v31 }
0x2ef0   : > { %v9663_v16 = vpop.f32.mrf.mxu1 }
0x2ef1   : > { %8340 = vst.msk [vmem:[%s812_s18 + $0x20] sm:$0xff] %vm940_vm1, %v8322_v14  ;;  %v8333_v60 = vadd.f32 %v9663_v16, %v8722_v58 }
0x2ef2   : > { %v8324_v30 = vpop.f32.mrf.mxu1 }
0x2ef3   : > { %8343 = vst.msk [vmem:[%s812_s18 + $0x38] sm:$0xff] %vm940_vm1, %v8333_v60  ;;  %v8325_v56 = vadd.f32 %v8722_v58, %v8324_v30 }
0x2ef5   : > { %8341 = vst.msk [vmem:[%s812_s18 + $0x28] sm:$0xff] %vm940_vm1, %v8325_v56 }
0x2ef6 PF: > { %s13718_s22 = sld [smem:[#allocation2_spill]] }
0x2efc   : > { %s35_s29 = sadd.s32 1, %s13718_s22  }
0x2efd   : > { %p32_p4 = scmp.ge.s32.totalorder %s35_s29, 4  }
0x2eff   :  { %34 = sbr.rel (!%p32_p4) target bundleno = 18 (0x12), region = 174 }

</bundles_post_ra>
